<compile_context>
chip_gen: v7x
topology: tpu7x:2x2x1
jax: 0.10.0
libtpu: 0.0.40
codegen_flags: <defaults>
</compile_context>

<pallas_src>
import functools

import jax
import jax.numpy as jnp
from jax.experimental import pallas as pl
from jax.experimental.pallas import tpu as pltpu

# ----- model hyper-parameters (the `args` of VAENet) -----
CHANNELS = 4          # args.channels
IMAGE_SIZE = 16       # args.image_size
VOCAB = 32            # args.vocab_size
LATENT = 128          # args.latent_dim (module default)
H2 = IMAGE_SIZE // 2
FLAT = VOCAB * H2 * H2


# ---------------------------------------------------------------------------
# Pallas kernels
# ---------------------------------------------------------------------------
def _mm_act_kernel(x_ref, w_ref, b_ref, o_ref, *, act):
    """o = act(x @ w + b) for one (TM, K) row-tile."""
    y = jnp.dot(x_ref[...], w_ref[...], preferred_element_type=jnp.float32)
    y = y + b_ref[...]
    if act == "relu":
        y = jnp.maximum(y, 0.0)
    elif act == "sigmoid":
        y = 1.0 / (1.0 + jnp.exp(-y))
    o_ref[...] = y.astype(o_ref.dtype)


def _mm2_relu_relu_kernel(x_ref, w1_ref, b1_ref, w2_ref, b2_ref, o_ref):
    """Fused encoder conv2 (3x3, im2col'd) + conv3 (1x1): relu(relu(x@w1+b1)@w2+b2)."""
    h = jnp.dot(x_ref[...], w1_ref[...], preferred_element_type=jnp.float32) + b1_ref[...]
    h = jnp.maximum(h, 0.0)
    h = jnp.dot(h, w2_ref[...], preferred_element_type=jnp.float32) + b2_ref[...]
    o_ref[...] = jnp.maximum(h, 0.0).astype(o_ref.dtype)


def _bottleneck_kernel(h_ref, wmu_ref, bmu_ref, wlv_ref, blv_ref,
                       eps_ref, wdec_ref, bdec_ref, o_ref):
    """Fused fc_mu / fc_logvar / reparameterize / fc_decode for one batch tile."""
    h = h_ref[...]
    mu = jnp.dot(h, wmu_ref[...], preferred_element_type=jnp.float32) + bmu_ref[...]
    logvar = jnp.dot(h, wlv_ref[...], preferred_element_type=jnp.float32) + blv_ref[...]
    z = mu + eps_ref[...] * jnp.exp(0.5 * logvar)
    hdec = jnp.dot(z, wdec_ref[...], preferred_element_type=jnp.float32) + bdec_ref[...]
    o_ref[...] = hdec.astype(o_ref.dtype)


# ---------------------------------------------------------------------------
# pallas_call wrappers
# ---------------------------------------------------------------------------
def _round_up(x, m):
    return (x + m - 1) // m * m


def _choose_tile(m, max_tm):
    tm = min(max_tm, _round_up(m, 8))      # tile is a multiple of 8 (sublane) or full dim
    return _round_up(m, tm), tm


def _pallas_mm_act(x, w, b, act, max_tm=512):
    m, k = x.shape
    n = w.shape[1]
    mp, tm = _choose_tile(m, max_tm)
    if mp != m:
        x = jnp.pad(x, ((0, mp - m), (0, 0)))
    out = pl.pallas_call(
        functools.partial(_mm_act_kernel, act=act),
        out_shape=jax.ShapeDtypeStruct((mp, n), jnp.float32),
        grid_spec=pltpu.PrefetchScalarGridSpec(
            num_scalar_prefetch=0,
            grid=(mp // tm,),
            in_specs=[pl.BlockSpec((tm, k), lambda i: (i, 0)),
                      pl.BlockSpec((k, n), lambda i: (0, 0)),
                      pl.BlockSpec((1, n), lambda i: (0, 0))],
            out_specs=pl.BlockSpec((tm, n), lambda i: (i, 0))),
        compiler_params=pltpu.CompilerParams(dimension_semantics=("parallel",)),
    )(x, w, b)
    return out[:m] if mp != m else out


def _pallas_mm2_relu(x, w1, b1, w2, b2, max_tm=512):
    m, k = x.shape
    n1 = w1.shape[1]
    n2 = w2.shape[1]
    mp, tm = _choose_tile(m, max_tm)
    if mp != m:
        x = jnp.pad(x, ((0, mp - m), (0, 0)))
    out = pl.pallas_call(
        _mm2_relu_relu_kernel,
        out_shape=jax.ShapeDtypeStruct((mp, n2), jnp.float32),
        grid_spec=pltpu.PrefetchScalarGridSpec(
            num_scalar_prefetch=0,
            grid=(mp // tm,),
            in_specs=[pl.BlockSpec((tm, k), lambda i: (i, 0)),
                      pl.BlockSpec((k, n1), lambda i: (0, 0)),
                      pl.BlockSpec((1, n1), lambda i: (0, 0)),
                      pl.BlockSpec((n1, n2), lambda i: (0, 0)),
                      pl.BlockSpec((1, n2), lambda i: (0, 0))],
            out_specs=pl.BlockSpec((tm, n2), lambda i: (i, 0))),
        compiler_params=pltpu.CompilerParams(dimension_semantics=("parallel",)),
    )(x, w1, b1, w2, b2)
    return out[:m] if mp != m else out


def _pallas_bottleneck(h, wmu, bmu, wlv, blv, eps, wdec, bdec, max_tb=128):
    bsz, dh = h.shape
    lat = wmu.shape[1]
    bp, tb = _choose_tile(bsz, max_tb)
    if bp != bsz:
        h = jnp.pad(h, ((0, bp - bsz), (0, 0)))
        eps = jnp.pad(eps, ((0, bp - bsz), (0, 0)))
    out = pl.pallas_call(
        _bottleneck_kernel,
        out_shape=jax.ShapeDtypeStruct((bp, dh), jnp.float32),
        grid_spec=pltpu.PrefetchScalarGridSpec(
            num_scalar_prefetch=0,
            grid=(bp // tb,),
            in_specs=[pl.BlockSpec((tb, dh), lambda i: (i, 0)),
                      pl.BlockSpec((dh, lat), lambda i: (0, 0)),
                      pl.BlockSpec((1, lat), lambda i: (0, 0)),
                      pl.BlockSpec((dh, lat), lambda i: (0, 0)),
                      pl.BlockSpec((1, lat), lambda i: (0, 0)),
                      pl.BlockSpec((tb, lat), lambda i: (i, 0)),
                      pl.BlockSpec((lat, dh), lambda i: (0, 0)),
                      pl.BlockSpec((1, dh), lambda i: (0, 0))],
            out_specs=pl.BlockSpec((tb, dh), lambda i: (i, 0))),
        compiler_params=pltpu.CompilerParams(dimension_semantics=("parallel",)),
    )(h, wmu, bmu, wlv, blv, eps, wdec, bdec)
    return out[:bsz] if bp != bsz else out


# ---------------------------------------------------------------------------
# XLA-side layout helpers (im2col, dilation, weight conversion)
# ---------------------------------------------------------------------------
def _im2col(x_nhwc, k, stride, pad_lo, pad_hi):
    """(B,H,W,C) -> (B*Ho*Wo, k*k*C) patches, tap order (kh, kw, c)."""
    bsz, h, w, c = x_nhwc.shape
    xp = jnp.pad(x_nhwc, ((0, 0), (pad_lo, pad_hi), (pad_lo, pad_hi), (0, 0)))
    hp, wp = h + pad_lo + pad_hi, w + pad_lo + pad_hi
    ho = (hp - k) // stride + 1
    wo = (wp - k) // stride + 1
    cols = []
    for kh in range(k):
        for kw in range(k):
            cols.append(xp[:, kh:kh + stride * (ho - 1) + 1:stride,
                              kw:kw + stride * (wo - 1) + 1:stride, :])
    patches = jnp.concatenate(cols, axis=-1)            # (B, Ho, Wo, k*k*C)
    return patches.reshape(bsz * ho * wo, k * k * c), ho, wo


def _dilate2(x_nhwc):
    """Insert one zero between spatial samples (stride-2 transposed conv)."""
    bsz, h, w, c = x_nhwc.shape
    y = jnp.zeros((bsz, 2 * h - 1, 2 * w - 1, c), x_nhwc.dtype)
    return y.at[:, ::2, ::2, :].set(x_nhwc)


def _conv_w_to_mat(w_oihw):
    """Conv2d weight (O,I,kh,kw) -> (kh*kw*I, O) matching _im2col tap order."""
    o, i, kh, kw = w_oihw.shape
    return jnp.transpose(w_oihw, (2, 3, 1, 0)).reshape(kh * kw * i, o)


def _convT_w_to_mat(w_iokk):
    """ConvTranspose2d weight (I,O,kh,kw) -> equivalent conv matrix (kh*kw*I, O)."""
    i, o, kh, kw = w_iokk.shape
    w_hwio = jnp.transpose(w_iokk, (2, 3, 0, 1))[::-1, ::-1, :, :]   # spatial flip
    return w_hwio.reshape(kh * kw * i, o)


# ---------------------------------------------------------------------------
# Full forward pass (Pallas path)
# ---------------------------------------------------------------------------
def vae_forward_pallas(x_nchw, params, eps):
    bsz = x_nchw.shape[0]
    x = jnp.transpose(x_nchw, (0, 2, 3, 1))                           # NHWC

    # encoder conv1: 3x3, stride 2, pad 1  -> (B, H/2, W/2, 16)
    p1, h1, w1 = _im2col(x, 3, 2, 1, 1)
    y1 = _pallas_mm_act(p1, _conv_w_to_mat(params["w_e1"]),
                        params["b_e1"].reshape(1, -1), "relu")
    y1 = y1.reshape(bsz, h1, w1, 16)

    # encoder conv2 (3x3,s1,p1) + conv3 (1x1), fused in one kernel -> (B, H/2, W/2, V)
    p2, _, _ = _im2col(y1, 3, 1, 1, 1)
    y3 = _pallas_mm2_relu(p2,
                          _conv_w_to_mat(params["w_e2"]), params["b_e2"].reshape(1, -1),
                          _conv_w_to_mat(params["w_e3"]), params["b_e3"].reshape(1, -1))
    y3 = y3.reshape(bsz, H2, H2, VOCAB)

    # flatten in PyTorch (NCHW) order
    h_flat = jnp.transpose(y3, (0, 3, 1, 2)).reshape(bsz, FLAT)

    # fused bottleneck: mu, logvar, reparameterize, fc_decode
    hdec = _pallas_bottleneck(
        h_flat,
        params["w_mu"].T, params["b_mu"].reshape(1, -1),
        params["w_lv"].T, params["b_lv"].reshape(1, -1),
        eps,
        params["w_dec"].T, params["b_dec"].reshape(1, -1))

    d0 = jnp.transpose(hdec.reshape(bsz, VOCAB, H2, H2), (0, 2, 3, 1))  # NHWC

    # decoder tconv1 (V->64, s1, p1) as an ordinary conv with flipped kernel
    q1, _, _ = _im2col(d0, 3, 1, 1, 1)
    d1 = _pallas_mm_act(q1, _convT_w_to_mat(params["w_d1"]),
                        params["b_d1"].reshape(1, -1), "relu").reshape(bsz, H2, H2, 64)

    # decoder tconv2 (64->16, s1, p1)
    q2, _, _ = _im2col(d1, 3, 1, 1, 1)
    d2 = _pallas_mm_act(q2, _convT_w_to_mat(params["w_d2"]),
                        params["b_d2"].reshape(1, -1), "relu").reshape(bsz, H2, H2, 16)

    # decoder tconv3 (16->C, s2, p1, output_padding 1): zero-dilate, pad (1,2), conv, sigmoid
    q3, ho, wo = _im2col(_dilate2(d2), 3, 1, 1, 2)
    out = _pallas_mm_act(q3, _convT_w_to_mat(params["w_d3"]),
                         params["b_d3"].reshape(1, -1), "sigmoid")
    out = out.reshape(bsz, ho, wo, CHANNELS)
    return jnp.transpose(out, (0, 3, 1, 2))                           # NCHW


# ---------------------------------------------------------------------------
# Pure-JAX reference with PyTorch semantics (independent of the Pallas path)
# ---------------------------------------------------------------------------
def _torch_conv2d(x, w, b, stride, padding):
    y = jax.lax.conv_general_dilated(
        x, w, window_strides=(stride, stride),
        padding=[(padding, padding)] * 2,
        dimension_numbers=("NCHW", "OIHW", "NCHW"),
        precision=jax.lax.Precision.HIGHEST)
    return y + b.reshape(1, -1, 1, 1)


def _torch_conv_transpose2d(x, w, b, stride, padding, output_padding):
    # ConvTranspose2d == adjoint (input-gradient) of the corresponding Conv2d.
    bsz, _, h, win = x.shape
    cout, k = w.shape[1], w.shape[2]
    hout = (h - 1) * stride - 2 * padding + k + output_padding
    wout = (win - 1) * stride - 2 * padding + k + output_padding

    def fwd(y):
        return jax.lax.conv_general_dilated(
            y, w, window_strides=(stride, stride),
            padding=[(padding, padding)] * 2,
            dimension_numbers=("NCHW", "OIHW", "NCHW"),
            precision=jax.lax.Precision.HIGHEST)

    y0 = jnp.zeros((bsz, cout, hout, wout), x.dtype)
    out = jax.vjp(fwd, y0)[1](x)[0]
    return out + b.reshape(1, -1, 1, 1)


def vae_forward_reference(x, params, eps):
    hp = jax.lax.Precision.HIGHEST
    h = jnp.maximum(_torch_conv2d(x, params["w_e1"], params["b_e1"], 2, 1), 0.0)
    h = jnp.maximum(_torch_conv2d(h, params["w_e2"], params["b_e2"], 1, 1), 0.0)
    h = jnp.maximum(_torch_conv2d(h, params["w_e3"], params["b_e3"], 1, 0), 0.0)
    hf = h.reshape(h.shape[0], -1)
    mu = jnp.dot(hf, params["w_mu"].T, precision=hp) + params["b_mu"]
    logvar = jnp.dot(hf, params["w_lv"].T, precision=hp) + params["b_lv"]
    z = mu + eps * jnp.exp(0.5 * logvar)
    hd = jnp.dot(z, params["w_dec"].T, precision=hp) + params["b_dec"]
    hd = hd.reshape(h.shape[0], VOCAB, H2, H2)
    d = jnp.maximum(_torch_conv_transpose2d(hd, params["w_d1"], params["b_d1"], 1, 1, 0), 0.0)
    d = jnp.maximum(_torch_conv_transpose2d(d, params["w_d2"], params["b_d2"], 1, 1, 0), 0.0)
    d = _torch_conv_transpose2d(d, params["w_d3"], params["b_d3"], 2, 1, 1)
    return 1.0 / (1.0 + jnp.exp(-d))


# ---------------------------------------------------------------------------
if __name__ == "__main__":
    B = 2
    key = jax.random.PRNGKey(0)
    ks = jax.random.split(key, 20)

    def winit(k, shape, fan_in):
        return jax.random.normal(k, shape, jnp.float32) / jnp.sqrt(float(fan_in))

    def binit(k, n):
        return 0.01 * jax.random.normal(k, (n,), jnp.float32)

    params = {
        # encoder (Conv2d weights: OIHW)
        "w_e1": winit(ks[0], (16, CHANNELS, 3, 3), 9 * CHANNELS), "b_e1": binit(ks[1], 16),
        "w_e2": winit(ks[2], (64, 16, 3, 3), 9 * 16),             "b_e2": binit(ks[3], 64),
        "w_e3": winit(ks[4], (VOCAB, 64, 1, 1), 64),              "b_e3": binit(ks[5], VOCAB),
        # fully connected (Linear weights: (out, in))
        "w_mu": winit(ks[6], (LATENT, FLAT), FLAT),   "b_mu": binit(ks[7], LATENT),
        "w_lv": winit(ks[8], (LATENT, FLAT), FLAT),   "b_lv": binit(ks[9], LATENT),
        "w_dec": winit(ks[10], (FLAT, LATENT), LATENT), "b_dec": binit(ks[11], FLAT),
        # decoder (ConvTranspose2d weights: (in, out, kh, kw))
        "w_d1": winit(ks[12], (VOCAB, 64, 3, 3), 9 * VOCAB), "b_d1": binit(ks[13], 64),
        "w_d2": winit(ks[14], (64, 16, 3, 3), 9 * 64),       "b_d2": binit(ks[15], 16),
        "w_d3": winit(ks[16], (16, CHANNELS, 3, 3), 9 * 16), "b_d3": binit(ks[17], CHANNELS),
    }

    x = jax.random.normal(ks[18], (B, CHANNELS, IMAGE_SIZE, IMAGE_SIZE), jnp.float32)
    eps = jax.random.normal(ks[19], (B, LATENT), jnp.float32)   # reparameterization noise

    fwd = jax.jit(vae_forward_pallas)
    out = jax.block_until_ready(fwd(x, params, eps))

    ref = vae_forward_reference(x, params, eps)
    assert out.shape == (B, CHANNELS, IMAGE_SIZE, IMAGE_SIZE), out.shape
    err = float(jnp.max(jnp.abs(out - ref)))
    assert jnp.allclose(out, ref, atol=2e-3, rtol=2e-3), f"mismatch vs reference, max err {err}"

    print("KERNEL_OK")
</pallas_src>

<mosaic_0001>
module attributes {stable_mosaic.version = 11 : i64} {
  func.func @_mm_act_kernel(%arg0: i32, %arg1: memref<128x36xf32, #tpu.memory_space<vmem>>, %arg2: memref<36x16xf32, #tpu.memory_space<vmem>>, %arg3: memref<1x16xf32, #tpu.memory_space<vmem>>, %arg4: memref<128x16xf32, #tpu.memory_space<vmem>>) attributes {dimension_semantics = [#tpu.dimension_semantics<parallel>], iteration_bounds = array<i64: 1>, scalar_prefetch = 0 : i64, scratch_operands = 0 : i64, tpu.core_type = #tpu.core_type<tc>, window_params = [{transform_indices = @transform_0, window_bounds = array<i64: 128, 36>}, {pipeline_mode = #tpu.pipeline_mode<synchronous>, transform_indices = @transform_1, window_bounds = array<i64: 36, 16>}, {pipeline_mode = #tpu.pipeline_mode<synchronous>, transform_indices = @transform_2, window_bounds = array<i64: 1, 16>}, {transform_indices = @transform_3, window_bounds = array<i64: 128, 16>}]} {
    %c0 = arith.constant 0 : index
    %c0_0 = arith.constant 0 : index
    %0 = vector.load %arg1[%c0, %c0_0] : memref<128x36xf32, #tpu.memory_space<vmem>>, vector<128x36xf32>
    %c0_1 = arith.constant 0 : index
    %c0_2 = arith.constant 0 : index
    %1 = vector.load %arg2[%c0_1, %c0_2] : memref<36x16xf32, #tpu.memory_space<vmem>>, vector<36x16xf32>
    %cst = arith.constant dense<0.000000e+00> : vector<128x16xf32>
    %2 = tpu.matmul %0, %1, %cst {dimension_numbers = #tpu.dot_dimension_numbers<[1], [0], [0], [1], [0, 0, 1, 1], [], []>} : vector<128x36xf32>, vector<36x16xf32>, vector<128x16xf32> -> vector<128x16xf32>
    %c0_3 = arith.constant 0 : index
    %c0_4 = arith.constant 0 : index
    %3 = vector.load %arg3[%c0_3, %c0_4] : memref<1x16xf32, #tpu.memory_space<vmem>>, vector<1x16xf32>
    %4 = vector.broadcast %3 : vector<1x16xf32> to vector<128x16xf32>
    %5 = arith.addf %2, %4 : vector<128x16xf32>
    %cst_5 = arith.constant 0.000000e+00 : f32
    %6 = vector.broadcast %cst_5 : f32 to vector<128x16xf32>
    %7 = arith.maximumf %5, %6 : vector<128x16xf32>
    %c0_6 = arith.constant 0 : index
    %c0_7 = arith.constant 0 : index
    %8 = vector.load %arg4[%c0_6, %c0_7] : memref<128x16xf32, #tpu.memory_space<vmem>>, vector<128x16xf32>
    tpu.vector_store %arg4[%c0_6, %c0_7], %7 {strides = array<i32>} : memref<128x16xf32, #tpu.memory_space<vmem>>, vector<128x16xf32>,
    return
  }
  func.func @transform_0(%arg0: i32) -> (i32, i32) {
    %c0_i32 = arith.constant 0 : i32
    %c0_i32_0 = arith.constant 0 : i32
    return %arg0, %c0_i32 : i32, i32
  }
  func.func @transform_1(%arg0: i32) -> (i32, i32) {
    %c0_i32 = arith.constant 0 : i32
    %c0_i32_0 = arith.constant 0 : i32
    %c0_i32_1 = arith.constant 0 : i32
    return %c0_i32, %c0_i32_0 : i32, i32
  }
  func.func @transform_2(%arg0: i32) -> (i32, i32) {
    %c0_i32 = arith.constant 0 : i32
    %c0_i32_0 = arith.constant 0 : i32
    %c0_i32_1 = arith.constant 0 : i32
    return %c0_i32, %c0_i32_0 : i32, i32
  }
  func.func @transform_3(%arg0: i32) -> (i32, i32) {
    %c0_i32 = arith.constant 0 : i32
    %c0_i32_0 = arith.constant 0 : i32
    return %arg0, %c0_i32 : i32, i32
  }
}

module attributes {stable_mosaic.version = 11 : i64} {
  func.func @_mm2_relu_relu_kernel(%arg0: i32, %arg1: memref<128x144xf32, #tpu.memory_space<vmem>>, %arg2: memref<144x64xf32, #tpu.memory_space<vmem>>, %arg3: memref<1x64xf32, #tpu.memory_space<vmem>>, %arg4: memref<64x32xf32, #tpu.memory_space<vmem>>, %arg5: memref<1x32xf32, #tpu.memory_space<vmem>>, %arg6: memref<128x32xf32, #tpu.memory_space<vmem>>) attributes {dimension_semantics = [#tpu.dimension_semantics<parallel>], iteration_bounds = array<i64: 1>, scalar_prefetch = 0 : i64, scratch_operands = 0 : i64, tpu.core_type = #tpu.core_type<tc>, window_params = [{transform_indices = @transform_0, window_bounds = array<i64: 128, 144>}, {pipeline_mode = #tpu.pipeline_mode<synchronous>, transform_indices = @transform_1, window_bounds = array<i64: 144, 64>}, {pipeline_mode = #tpu.pipeline_mode<synchronous>, transform_indices = @transform_2, window_bounds = array<i64: 1, 64>}, {pipeline_mode = #tpu.pipeline_mode<synchronous>, transform_indices = @transform_3, window_bounds = array<i64: 64, 32>}, {pipeline_mode = #tpu.pipeline_mode<synchronous>, transform_indices = @transform_4, window_bounds = array<i64: 1, 32>}, {transform_indices = @transform_5, window_bounds = array<i64: 128, 32>}]} {
    %c0 = arith.constant 0 : index
    %c0_0 = arith.constant 0 : index
    %0 = vector.load %arg1[%c0, %c0_0] : memref<128x144xf32, #tpu.memory_space<vmem>>, vector<128x144xf32>
    %c0_1 = arith.constant 0 : index
    %c0_2 = arith.constant 0 : index
    %1 = vector.load %arg2[%c0_1, %c0_2] : memref<144x64xf32, #tpu.memory_space<vmem>>, vector<144x64xf32>
    %cst = arith.constant dense<0.000000e+00> : vector<128x64xf32>
    %2 = tpu.matmul %0, %1, %cst {dimension_numbers = #tpu.dot_dimension_numbers<[1], [0], [0], [1], [0, 0, 1, 1], [], []>} : vector<128x144xf32>, vector<144x64xf32>, vector<128x64xf32> -> vector<128x64xf32>
    %c0_3 = arith.constant 0 : index
    %c0_4 = arith.constant 0 : index
    %3 = vector.load %arg3[%c0_3, %c0_4] : memref<1x64xf32, #tpu.memory_space<vmem>>, vector<1x64xf32>
    %4 = vector.broadcast %3 : vector<1x64xf32> to vector<128x64xf32>
    %5 = arith.addf %2, %4 : vector<128x64xf32>
    %cst_5 = arith.constant 0.000000e+00 : f32
    %6 = vector.broadcast %cst_5 : f32 to vector<128x64xf32>
    %7 = arith.maximumf %5, %6 : vector<128x64xf32>
    %c0_6 = arith.constant 0 : index
    %c0_7 = arith.constant 0 : index
    %8 = vector.load %arg4[%c0_6, %c0_7] : memref<64x32xf32, #tpu.memory_space<vmem>>, vector<64x32xf32>
    %cst_8 = arith.constant dense<0.000000e+00> : vector<128x32xf32>
    %9 = tpu.matmul %7, %8, %cst_8 {dimension_numbers = #tpu.dot_dimension_numbers<[1], [0], [0], [1], [0, 0, 1, 1], [], []>} : vector<128x64xf32>, vector<64x32xf32>, vector<128x32xf32> -> vector<128x32xf32>
    %c0_9 = arith.constant 0 : index
    %c0_10 = arith.constant 0 : index
    %10 = vector.load %arg5[%c0_9, %c0_10] : memref<1x32xf32, #tpu.memory_space<vmem>>, vector<1x32xf32>
    %11 = vector.broadcast %10 : vector<1x32xf32> to vector<128x32xf32>
    %12 = arith.addf %9, %11 : vector<128x32xf32>
    %cst_11 = arith.constant 0.000000e+00 : f32
    %13 = vector.broadcast %cst_11 : f32 to vector<128x32xf32>
    %14 = arith.maximumf %12, %13 : vector<128x32xf32>
    %c0_12 = arith.constant 0 : index
    %c0_13 = arith.constant 0 : index
    %15 = vector.load %arg6[%c0_12, %c0_13] : memref<128x32xf32, #tpu.memory_space<vmem>>, vector<128x32xf32>
    tpu.vector_store %arg6[%c0_12, %c0_13], %14 {strides = array<i32>} : memref<128x32xf32, #tpu.memory_space<vmem>>, vector<128x32xf32>,
    return
  }
  func.func @transform_0(%arg0: i32) -> (i32, i32) {
    %c0_i32 = arith.constant 0 : i32
    %c0_i32_0 = arith.constant 0 : i32
    return %arg0, %c0_i32 : i32, i32
  }
  func.func @transform_1(%arg0: i32) -> (i32, i32) {
    %c0_i32 = arith.constant 0 : i32
    %c0_i32_0 = arith.constant 0 : i32
    %c0_i32_1 = arith.constant 0 : i32
    return %c0_i32, %c0_i32_0 : i32, i32
  }
  func.func @transform_2(%arg0: i32) -> (i32, i32) {
    %c0_i32 = arith.constant 0 : i32
    %c0_i32_0 = arith.constant 0 : i32
    %c0_i32_1 = arith.constant 0 : i32
    return %c0_i32, %c0_i32_0 : i32, i32
  }
  func.func @transform_3(%arg0: i32) -> (i32, i32) {
    %c0_i32 = arith.constant 0 : i32
    %c0_i32_0 = arith.constant 0 : i32
    %c0_i32_1 = arith.constant 0 : i32
    return %c0_i32, %c0_i32_0 : i32, i32
  }
  func.func @transform_4(%arg0: i32) -> (i32, i32) {
    %c0_i32 = arith.constant 0 : i32
    %c0_i32_0 = arith.constant 0 : i32
    %c0_i32_1 = arith.constant 0 : i32
    return %c0_i32, %c0_i32_0 : i32, i32
  }
  func.func @transform_5(%arg0: i32) -> (i32, i32) {
    %c0_i32 = arith.constant 0 : i32
    %c0_i32_0 = arith.constant 0 : i32
    return %arg0, %c0_i32 : i32, i32
  }
}

module attributes {stable_mosaic.version = 11 : i64} {
  func.func @_bottleneck_kernel(%arg0: i32, %arg1: memref<8x2048xf32, #tpu.memory_space<vmem>>, %arg2: memref<2048x128xf32, #tpu.memory_space<vmem>>, %arg3: memref<1x128xf32, #tpu.memory_space<vmem>>, %arg4: memref<2048x128xf32, #tpu.memory_space<vmem>>, %arg5: memref<1x128xf32, #tpu.memory_space<vmem>>, %arg6: memref<8x128xf32, #tpu.memory_space<vmem>>, %arg7: memref<128x2048xf32, #tpu.memory_space<vmem>>, %arg8: memref<1x2048xf32, #tpu.memory_space<vmem>>, %arg9: memref<8x2048xf32, #tpu.memory_space<vmem>>) attributes {dimension_semantics = [#tpu.dimension_semantics<parallel>], iteration_bounds = array<i64: 1>, scalar_prefetch = 0 : i64, scratch_operands = 0 : i64, tpu.core_type = #tpu.core_type<tc>, window_params = [{transform_indices = @transform_0, window_bounds = array<i64: 8, 2048>}, {pipeline_mode = #tpu.pipeline_mode<synchronous>, transform_indices = @transform_1, window_bounds = array<i64: 2048, 128>}, {pipeline_mode = #tpu.pipeline_mode<synchronous>, transform_indices = @transform_2, window_bounds = array<i64: 1, 128>}, {pipeline_mode = #tpu.pipeline_mode<synchronous>, transform_indices = @transform_3, window_bounds = array<i64: 2048, 128>}, {pipeline_mode = #tpu.pipeline_mode<synchronous>, transform_indices = @transform_4, window_bounds = array<i64: 1, 128>}, {transform_indices = @transform_5, window_bounds = array<i64: 8, 128>}, {pipeline_mode = #tpu.pipeline_mode<synchronous>, transform_indices = @transform_6, window_bounds = array<i64: 128, 2048>}, {pipeline_mode = #tpu.pipeline_mode<synchronous>, transform_indices = @transform_7, window_bounds = array<i64: 1, 2048>}, {transform_indices = @transform_8, window_bounds = array<i64: 8, 2048>}]} {
    %c0 = arith.constant 0 : index
    %c0_0 = arith.constant 0 : index
    %0 = vector.load %arg1[%c0, %c0_0] : memref<8x2048xf32, #tpu.memory_space<vmem>>, vector<8x2048xf32>
    %c0_1 = arith.constant 0 : index
    %c0_2 = arith.constant 0 : index
    %1 = vector.load %arg2[%c0_1, %c0_2] : memref<2048x128xf32, #tpu.memory_space<vmem>>, vector<2048x128xf32>
    %cst = arith.constant dense<0.000000e+00> : vector<8x128xf32>
    %2 = tpu.matmul %0, %1, %cst {dimension_numbers = #tpu.dot_dimension_numbers<[1], [0], [0], [1], [0, 0, 1, 1], [], []>} : vector<8x2048xf32>, vector<2048x128xf32>, vector<8x128xf32> -> vector<8x128xf32>
    %c0_3 = arith.constant 0 : index
    %c0_4 = arith.constant 0 : index
    %3 = vector.load %arg3[%c0_3, %c0_4] : memref<1x128xf32, #tpu.memory_space<vmem>>, vector<1x128xf32>
    %4 = vector.broadcast %3 : vector<1x128xf32> to vector<8x128xf32>
    %5 = arith.addf %2, %4 : vector<8x128xf32>
    %c0_5 = arith.constant 0 : index
    %c0_6 = arith.constant 0 : index
    %6 = vector.load %arg4[%c0_5, %c0_6] : memref<2048x128xf32, #tpu.memory_space<vmem>>, vector<2048x128xf32>
    %cst_7 = arith.constant dense<0.000000e+00> : vector<8x128xf32>
    %7 = tpu.matmul %0, %6, %cst_7 {dimension_numbers = #tpu.dot_dimension_numbers<[1], [0], [0], [1], [0, 0, 1, 1], [], []>} : vector<8x2048xf32>, vector<2048x128xf32>, vector<8x128xf32> -> vector<8x128xf32>
    %c0_8 = arith.constant 0 : index
    %c0_9 = arith.constant 0 : index
    %8 = vector.load %arg5[%c0_8, %c0_9] : memref<1x128xf32, #tpu.memory_space<vmem>>, vector<1x128xf32>
    %9 = vector.broadcast %8 : vector<1x128xf32> to vector<8x128xf32>
    %10 = arith.addf %7, %9 : vector<8x128xf32>
    %c0_10 = arith.constant 0 : index
    %c0_11 = arith.constant 0 : index
    %11 = vector.load %arg6[%c0_10, %c0_11] : memref<8x128xf32, #tpu.memory_space<vmem>>, vector<8x128xf32>
    %cst_12 = arith.constant 5.000000e-01 : f32
    %12 = vector.broadcast %cst_12 : f32 to vector<8x128xf32>
    %13 = arith.mulf %12, %10 : vector<8x128xf32>
    %14 = math.exp %13 : vector<8x128xf32>
    %15 = arith.mulf %11, %14 : vector<8x128xf32>
    %16 = arith.addf %5, %15 : vector<8x128xf32>
    %c0_13 = arith.constant 0 : index
    %c0_14 = arith.constant 0 : index
    %17 = vector.load %arg7[%c0_13, %c0_14] : memref<128x2048xf32, #tpu.memory_space<vmem>>, vector<128x2048xf32>
    %cst_15 = arith.constant dense<0.000000e+00> : vector<8x2048xf32>
    %18 = tpu.matmul %16, %17, %cst_15 {dimension_numbers = #tpu.dot_dimension_numbers<[1], [0], [0], [1], [0, 0, 1, 1], [], []>} : vector<8x128xf32>, vector<128x2048xf32>, vector<8x2048xf32> -> vector<8x2048xf32>
    %c0_16 = arith.constant 0 : index
    %c0_17 = arith.constant 0 : index
    %19 = vector.load %arg8[%c0_16, %c0_17] : memref<1x2048xf32, #tpu.memory_space<vmem>>, vector<1x2048xf32>
    %20 = vector.broadcast %19 : vector<1x2048xf32> to vector<8x2048xf32>
    %21 = arith.addf %18, %20 : vector<8x2048xf32>
    %c0_18 = arith.constant 0 : index
    %c0_19 = arith.constant 0 : index
    %22 = vector.load %arg9[%c0_18, %c0_19] : memref<8x2048xf32, #tpu.memory_space<vmem>>, vector<8x2048xf32>
    tpu.vector_store %arg9[%c0_18, %c0_19], %21 {strides = array<i32>} : memref<8x2048xf32, #tpu.memory_space<vmem>>, vector<8x2048xf32>,
    return
  }
  func.func @transform_0(%arg0: i32) -> (i32, i32) {
    %c0_i32 = arith.constant 0 : i32
    %c0_i32_0 = arith.constant 0 : i32
    return %arg0, %c0_i32 : i32, i32
  }
  func.func @transform_1(%arg0: i32) -> (i32, i32) {
    %c0_i32 = arith.constant 0 : i32
    %c0_i32_0 = arith.constant 0 : i32
    %c0_i32_1 = arith.constant 0 : i32
    return %c0_i32, %c0_i32_0 : i32, i32
  }
  func.func @transform_2(%arg0: i32) -> (i32, i32) {
    %c0_i32 = arith.constant 0 : i32
    %c0_i32_0 = arith.constant 0 : i32
    %c0_i32_1 = arith.constant 0 : i32
    return %c0_i32, %c0_i32_0 : i32, i32
  }
  func.func @transform_3(%arg0: i32) -> (i32, i32) {
    %c0_i32 = arith.constant 0 : i32
    %c0_i32_0 = arith.constant 0 : i32
    %c0_i32_1 = arith.constant 0 : i32
    return %c0_i32, %c0_i32_0 : i32, i32
  }
  func.func @transform_4(%arg0: i32) -> (i32, i32) {
    %c0_i32 = arith.constant 0 : i32
    %c0_i32_0 = arith.constant 0 : i32
    %c0_i32_1 = arith.constant 0 : i32
    return %c0_i32, %c0_i32_0 : i32, i32
  }
  func.func @transform_5(%arg0: i32) -> (i32, i32) {
    %c0_i32 = arith.constant 0 : i32
    %c0_i32_0 = arith.constant 0 : i32
    return %arg0, %c0_i32 : i32, i32
  }
  func.func @transform_6(%arg0: i32) -> (i32, i32) {
    %c0_i32 = arith.constant 0 : i32
    %c0_i32_0 = arith.constant 0 : i32
    %c0_i32_1 = arith.constant 0 : i32
    return %c0_i32, %c0_i32_0 : i32, i32
  }
  func.func @transform_7(%arg0: i32) -> (i32, i32) {
    %c0_i32 = arith.constant 0 : i32
    %c0_i32_0 = arith.constant 0 : i32
    %c0_i32_1 = arith.constant 0 : i32
    return %c0_i32, %c0_i32_0 : i32, i32
  }
  func.func @transform_8(%arg0: i32) -> (i32, i32) {
    %c0_i32 = arith.constant 0 : i32
    %c0_i32_0 = arith.constant 0 : i32
    return %arg0, %c0_i32 : i32, i32
  }
}

module attributes {stable_mosaic.version = 11 : i64} {
  func.func @_mm_act_kernel(%arg0: i32, %arg1: memref<128x288xf32, #tpu.memory_space<vmem>>, %arg2: memref<288x64xf32, #tpu.memory_space<vmem>>, %arg3: memref<1x64xf32, #tpu.memory_space<vmem>>, %arg4: memref<128x64xf32, #tpu.memory_space<vmem>>) attributes {dimension_semantics = [#tpu.dimension_semantics<parallel>], iteration_bounds = array<i64: 1>, scalar_prefetch = 0 : i64, scratch_operands = 0 : i64, tpu.core_type = #tpu.core_type<tc>, window_params = [{transform_indices = @transform_0, window_bounds = array<i64: 128, 288>}, {pipeline_mode = #tpu.pipeline_mode<synchronous>, transform_indices = @transform_1, window_bounds = array<i64: 288, 64>}, {pipeline_mode = #tpu.pipeline_mode<synchronous>, transform_indices = @transform_2, window_bounds = array<i64: 1, 64>}, {transform_indices = @transform_3, window_bounds = array<i64: 128, 64>}]} {
    %c0 = arith.constant 0 : index
    %c0_0 = arith.constant 0 : index
    %0 = vector.load %arg1[%c0, %c0_0] : memref<128x288xf32, #tpu.memory_space<vmem>>, vector<128x288xf32>
    %c0_1 = arith.constant 0 : index
    %c0_2 = arith.constant 0 : index
    %1 = vector.load %arg2[%c0_1, %c0_2] : memref<288x64xf32, #tpu.memory_space<vmem>>, vector<288x64xf32>
    %cst = arith.constant dense<0.000000e+00> : vector<128x64xf32>
    %2 = tpu.matmul %0, %1, %cst {dimension_numbers = #tpu.dot_dimension_numbers<[1], [0], [0], [1], [0, 0, 1, 1], [], []>} : vector<128x288xf32>, vector<288x64xf32>, vector<128x64xf32> -> vector<128x64xf32>
    %c0_3 = arith.constant 0 : index
    %c0_4 = arith.constant 0 : index
    %3 = vector.load %arg3[%c0_3, %c0_4] : memref<1x64xf32, #tpu.memory_space<vmem>>, vector<1x64xf32>
    %4 = vector.broadcast %3 : vector<1x64xf32> to vector<128x64xf32>
    %5 = arith.addf %2, %4 : vector<128x64xf32>
    %cst_5 = arith.constant 0.000000e+00 : f32
    %6 = vector.broadcast %cst_5 : f32 to vector<128x64xf32>
    %7 = arith.maximumf %5, %6 : vector<128x64xf32>
    %c0_6 = arith.constant 0 : index
    %c0_7 = arith.constant 0 : index
    %8 = vector.load %arg4[%c0_6, %c0_7] : memref<128x64xf32, #tpu.memory_space<vmem>>, vector<128x64xf32>
    tpu.vector_store %arg4[%c0_6, %c0_7], %7 {strides = array<i32>} : memref<128x64xf32, #tpu.memory_space<vmem>>, vector<128x64xf32>,
    return
  }
  func.func @transform_0(%arg0: i32) -> (i32, i32) {
    %c0_i32 = arith.constant 0 : i32
    %c0_i32_0 = arith.constant 0 : i32
    return %arg0, %c0_i32 : i32, i32
  }
  func.func @transform_1(%arg0: i32) -> (i32, i32) {
    %c0_i32 = arith.constant 0 : i32
    %c0_i32_0 = arith.constant 0 : i32
    %c0_i32_1 = arith.constant 0 : i32
    return %c0_i32, %c0_i32_0 : i32, i32
  }
  func.func @transform_2(%arg0: i32) -> (i32, i32) {
    %c0_i32 = arith.constant 0 : i32
    %c0_i32_0 = arith.constant 0 : i32
    %c0_i32_1 = arith.constant 0 : i32
    return %c0_i32, %c0_i32_0 : i32, i32
  }
  func.func @transform_3(%arg0: i32) -> (i32, i32) {
    %c0_i32 = arith.constant 0 : i32
    %c0_i32_0 = arith.constant 0 : i32
    return %arg0, %c0_i32 : i32, i32
  }
}

module attributes {stable_mosaic.version = 11 : i64} {
  func.func @_mm_act_kernel(%arg0: i32, %arg1: memref<128x576xf32, #tpu.memory_space<vmem>>, %arg2: memref<576x16xf32, #tpu.memory_space<vmem>>, %arg3: memref<1x16xf32, #tpu.memory_space<vmem>>, %arg4: memref<128x16xf32, #tpu.memory_space<vmem>>) attributes {dimension_semantics = [#tpu.dimension_semantics<parallel>], iteration_bounds = array<i64: 1>, scalar_prefetch = 0 : i64, scratch_operands = 0 : i64, tpu.core_type = #tpu.core_type<tc>, window_params = [{transform_indices = @transform_0, window_bounds = array<i64: 128, 576>}, {pipeline_mode = #tpu.pipeline_mode<synchronous>, transform_indices = @transform_1, window_bounds = array<i64: 576, 16>}, {pipeline_mode = #tpu.pipeline_mode<synchronous>, transform_indices = @transform_2, window_bounds = array<i64: 1, 16>}, {transform_indices = @transform_3, window_bounds = array<i64: 128, 16>}]} {
    %c0 = arith.constant 0 : index
    %c0_0 = arith.constant 0 : index
    %0 = vector.load %arg1[%c0, %c0_0] : memref<128x576xf32, #tpu.memory_space<vmem>>, vector<128x576xf32>
    %c0_1 = arith.constant 0 : index
    %c0_2 = arith.constant 0 : index
    %1 = vector.load %arg2[%c0_1, %c0_2] : memref<576x16xf32, #tpu.memory_space<vmem>>, vector<576x16xf32>
    %cst = arith.constant dense<0.000000e+00> : vector<128x16xf32>
    %2 = tpu.matmul %0, %1, %cst {dimension_numbers = #tpu.dot_dimension_numbers<[1], [0], [0], [1], [0, 0, 1, 1], [], []>} : vector<128x576xf32>, vector<576x16xf32>, vector<128x16xf32> -> vector<128x16xf32>
    %c0_3 = arith.constant 0 : index
    %c0_4 = arith.constant 0 : index
    %3 = vector.load %arg3[%c0_3, %c0_4] : memref<1x16xf32, #tpu.memory_space<vmem>>, vector<1x16xf32>
    %4 = vector.broadcast %3 : vector<1x16xf32> to vector<128x16xf32>
    %5 = arith.addf %2, %4 : vector<128x16xf32>
    %cst_5 = arith.constant 0.000000e+00 : f32
    %6 = vector.broadcast %cst_5 : f32 to vector<128x16xf32>
    %7 = arith.maximumf %5, %6 : vector<128x16xf32>
    %c0_6 = arith.constant 0 : index
    %c0_7 = arith.constant 0 : index
    %8 = vector.load %arg4[%c0_6, %c0_7] : memref<128x16xf32, #tpu.memory_space<vmem>>, vector<128x16xf32>
    tpu.vector_store %arg4[%c0_6, %c0_7], %7 {strides = array<i32>} : memref<128x16xf32, #tpu.memory_space<vmem>>, vector<128x16xf32>,
    return
  }
  func.func @transform_0(%arg0: i32) -> (i32, i32) {
    %c0_i32 = arith.constant 0 : i32
    %c0_i32_0 = arith.constant 0 : i32
    return %arg0, %c0_i32 : i32, i32
  }
  func.func @transform_1(%arg0: i32) -> (i32, i32) {
    %c0_i32 = arith.constant 0 : i32
    %c0_i32_0 = arith.constant 0 : i32
    %c0_i32_1 = arith.constant 0 : i32
    return %c0_i32, %c0_i32_0 : i32, i32
  }
  func.func @transform_2(%arg0: i32) -> (i32, i32) {
    %c0_i32 = arith.constant 0 : i32
    %c0_i32_0 = arith.constant 0 : i32
    %c0_i32_1 = arith.constant 0 : i32
    return %c0_i32, %c0_i32_0 : i32, i32
  }
  func.func @transform_3(%arg0: i32) -> (i32, i32) {
    %c0_i32 = arith.constant 0 : i32
    %c0_i32_0 = arith.constant 0 : i32
    return %arg0, %c0_i32 : i32, i32
  }
}

module attributes {stable_mosaic.version = 11 : i64} {
  func.func @_mm_act_kernel(%arg0: i32, %arg1: memref<512x144xf32, #tpu.memory_space<vmem>>, %arg2: memref<144x4xf32, #tpu.memory_space<vmem>>, %arg3: memref<1x4xf32, #tpu.memory_space<vmem>>, %arg4: memref<512x4xf32, #tpu.memory_space<vmem>>) attributes {dimension_semantics = [#tpu.dimension_semantics<parallel>], iteration_bounds = array<i64: 1>, scalar_prefetch = 0 : i64, scratch_operands = 0 : i64, tpu.core_type = #tpu.core_type<tc>, window_params = [{transform_indices = @transform_0, window_bounds = array<i64: 512, 144>}, {pipeline_mode = #tpu.pipeline_mode<synchronous>, transform_indices = @transform_1, window_bounds = array<i64: 144, 4>}, {pipeline_mode = #tpu.pipeline_mode<synchronous>, transform_indices = @transform_2, window_bounds = array<i64: 1, 4>}, {transform_indices = @transform_3, window_bounds = array<i64: 512, 4>}]} {
    %c0 = arith.constant 0 : index
    %c0_0 = arith.constant 0 : index
    %0 = vector.load %arg1[%c0, %c0_0] : memref<512x144xf32, #tpu.memory_space<vmem>>, vector<512x144xf32>
    %c0_1 = arith.constant 0 : index
    %c0_2 = arith.constant 0 : index
    %1 = vector.load %arg2[%c0_1, %c0_2] : memref<144x4xf32, #tpu.memory_space<vmem>>, vector<144x4xf32>
    %cst = arith.constant dense<0.000000e+00> : vector<512x4xf32>
    %2 = tpu.matmul %0, %1, %cst {dimension_numbers = #tpu.dot_dimension_numbers<[1], [0], [0], [1], [0, 0, 1, 1], [], []>} : vector<512x144xf32>, vector<144x4xf32>, vector<512x4xf32> -> vector<512x4xf32>
    %c0_3 = arith.constant 0 : index
    %c0_4 = arith.constant 0 : index
    %3 = vector.load %arg3[%c0_3, %c0_4] : memref<1x4xf32, #tpu.memory_space<vmem>>, vector<1x4xf32>
    %4 = vector.broadcast %3 : vector<1x4xf32> to vector<512x4xf32>
    %5 = arith.addf %2, %4 : vector<512x4xf32>
    %cst_5 = arith.constant 0.000000e+00 : f32
    %6 = vector.broadcast %cst_5 : f32 to vector<512x4xf32>
    %7 = arith.subf %6, %5 : vector<512x4xf32>
    %8 = math.exp %7 : vector<512x4xf32>
    %cst_6 = arith.constant 1.000000e+00 : f32
    %9 = vector.broadcast %cst_6 : f32 to vector<512x4xf32>
    %10 = arith.addf %9, %8 : vector<512x4xf32>
    %cst_7 = arith.constant 1.000000e+00 : f32
    %11 = vector.broadcast %cst_7 : f32 to vector<512x4xf32>
    %12 = arith.divf %11, %10 : vector<512x4xf32>
    %c0_8 = arith.constant 0 : index
    %c0_9 = arith.constant 0 : index
    %13 = vector.load %arg4[%c0_8, %c0_9] : memref<512x4xf32, #tpu.memory_space<vmem>>, vector<512x4xf32>
    tpu.vector_store %arg4[%c0_8, %c0_9], %12 {strides = array<i32>} : memref<512x4xf32, #tpu.memory_space<vmem>>, vector<512x4xf32>,
    return
  }
  func.func @transform_0(%arg0: i32) -> (i32, i32) {
    %c0_i32 = arith.constant 0 : i32
    %c0_i32_0 = arith.constant 0 : i32
    return %arg0, %c0_i32 : i32, i32
  }
  func.func @transform_1(%arg0: i32) -> (i32, i32) {
    %c0_i32 = arith.constant 0 : i32
    %c0_i32_0 = arith.constant 0 : i32
    %c0_i32_1 = arith.constant 0 : i32
    return %c0_i32, %c0_i32_0 : i32, i32
  }
  func.func @transform_2(%arg0: i32) -> (i32, i32) {
    %c0_i32 = arith.constant 0 : i32
    %c0_i32_0 = arith.constant 0 : i32
    %c0_i32_1 = arith.constant 0 : i32
    return %c0_i32, %c0_i32_0 : i32, i32
  }
  func.func @transform_3(%arg0: i32) -> (i32, i32) {
    %c0_i32 = arith.constant 0 : i32
    %c0_i32_0 = arith.constant 0 : i32
    return %arg0, %c0_i32 : i32, i32
  }
}

</mosaic_0001>

<bundles_post_ra>
// kernel: vae_forward_pallas.6
= control target key start
LH: loop header
LB: loop body
LE: loop exit
PB: predicated region body
PF: predicated region fallthrough
CT: control target
= control target key end

     0   :  { %vm42_vm0 = vcmask 293888   ;;  %vm91_vm1 = vcmask 1043456   ;;  %vm256_vm2 = vcmask 130048   ;;  %s530_s1 = inlined_call_operand.vmem [shape: f32[36,16], index: 1, kind: input, shape index: {}]   ;;  %s531_s0 = inlined_call_operand.vmem [shape: f32[128,36], index: 0, kind: input, shape index: {}]   ;;  %s532_s2 = inlined_call_operand.vmem [shape: f32[1,16], index: 2, kind: input, shape index: {}]   ;;  %s533_s3 = inlined_call_operand.vmem [shape: f32[128,16], index: 3, kind: output, shape index: {}]  }
   0x1   :  { %v30_v0 = vld [vmem:[%s530_s1] sm:$0xff]  ;;  %v31_v1 = vld [vmem:[%s530_s1 + $0x8] sm:$0xff]  ;;  %v32_v2 = vld [vmem:[%s530_s1 + $0x10] sm:$0xff] }
   0x2   :  { %v350_v3 = vpack.c.bf16 %v31_v1, %v30_v0  ;;  %v33_v4 = vld [vmem:[%s530_s1 + $0x18] sm:$0xff]  ;;  %v14_v5 = vld [vmem:[%s531_s0] sm:$0xff]  ;;  %v15_v9 = vld [vmem:[%s531_s0 + $0x8] sm:$0xff] }
   0x3   :  { %v354_v6 = vpack.c.bf16 %v33_v4, %v32_v2  ;;  %326 = vmatprep.mubr.msk.f32.mxu0 %vm42_vm0, %v14_v5  ;;  %v22_v7 = vld [vmem:[%s531_s0 + $0x40] sm:$0xff]  ;;  %v23_v10 = vld [vmem:[%s531_s0 + $0x48] sm:$0xff]  ;;  %v16_v11 = vld [vmem:[%s531_s0 + $0x10] sm:$0xff] }
   0x4   :  { %351 = vmatprep.subr.bf16.mxu0 %v350_v3  ;;  %358 = vmatprep.subr.bf16.mxu1 %v350_v3  ;;  %v34_v8 = vld [vmem:[%s530_s1 + $0x20] sm:$0xf]  ;;  %v24_v12 = vld [vmem:[%s531_s0 + $0x50] sm:$0xff]  ;;  %v17_v13 = vld [vmem:[%s531_s0 + $0x18] sm:$0xff] }
   0x5   :  { %353 = vmatpush3.bf16.msra.mxu0 %v350_v3  ;;  %361 = vmatpush3.bf16.msra.mxu1 %v350_v3  ;;  %v25_v14 = vld [vmem:[%s531_s0 + $0x58] sm:$0xff]  ;;  %v18_v15 = vld [vmem:[%s531_s0 + $0x20] sm:$0xff]  ;;  %v19_v17 = vld [vmem:[%s531_s0 + $0x28] sm:$0xff] }
   0x6   :  { %355 = vmatprep.subr.bf16.mxu0 %v354_v6  ;;  %359 = vmatprep.subr.bf16.mxu1 %v354_v6  ;;  %v26_v16 = vld [vmem:[%s531_s0 + $0x60] sm:$0xff]  ;;  %v27_v18 = vld [vmem:[%s531_s0 + $0x68] sm:$0xff]  ;;  %v20_v19 = vld [vmem:[%s531_s0 + $0x30] sm:$0xff] }
   0x7   :  { %338 = vmatprep.mubr.msk.f32.mxu1 %vm42_vm0, %v22_v7  ;;  %v28_v20 = vld [vmem:[%s531_s0 + $0x70] sm:$0xff]  ;;  %v21_v21 = vld [vmem:[%s531_s0 + $0x38] sm:$0xff]  ;;  %v277_v23 = vld [vmem:[%s532_s2] ss:$0 sm:$0xff] }
   0x8   :  { %v29_v22 = vld [vmem:[%s531_s0 + $0x78] sm:$0xff] }
   0x9   :  { %357 = vmatpush3.bf16.msra.mxu0 %v354_v6  ;;  %362 = vmatpush3.bf16.msra.mxu1 %v354_v6 }
   0xa   :  { %324 = vmatprep.subr.msk.mxu0 %vm91_vm1, %v34_v8  ;;  %360 = vmatprep.subr.msk.mxu1 %vm91_vm1, %v34_v8 }
   0xd   :  { %325 = vmatpush3.msk.msra.mxu0 %vm91_vm1, %v34_v8  ;;  %363 = vmatpush3.msk.msra.mxu1 %vm91_vm1, %v34_v8 }
   0xe   :  { %327 = vmatmul.mubr.msk.f32.vlgmr.msra.gmra.mrb[0].mxu0 %vm42_vm0, %v15_v9  ;;  %339 = vmatmul.mubr.msk.f32.vlgmr.msra.gmra.mrb[0].mxu1 %vm42_vm0, %v23_v10 }
   0xf   :  { %329 = vmatprep.mubr.msk.f32.mxu0 %vm42_vm0, %v16_v11  ;;  %341 = vmatprep.mubr.msk.f32.mxu1 %vm42_vm0, %v24_v12 }
  0x12   :  { %330 = vmatmul.mubr.msk.f32.gmra.mrb[2].mxu0 %vm42_vm0, %v17_v13  ;;  %342 = vmatmul.mubr.msk.f32.gmra.mrb[2].mxu1 %vm42_vm0, %v25_v14 }
  0x13   :  { %332 = vmatprep.mubr.msk.f32.mxu0 %vm42_vm0, %v18_v15  ;;  %344 = vmatprep.mubr.msk.f32.mxu1 %vm42_vm0, %v26_v16 }
  0x16   :  { %333 = vmatmul.mubr.msk.f32.gmra.mrb[4].mxu0 %vm42_vm0, %v19_v17  ;;  %345 = vmatmul.mubr.msk.f32.gmra.mrb[4].mxu1 %vm42_vm0, %v27_v18 }
  0x17   :  { %335 = vmatprep.mubr.msk.f32.mxu0 %vm42_vm0, %v20_v19  ;;  %347 = vmatprep.mubr.msk.f32.mxu1 %vm42_vm0, %v28_v20 }
  0x1a   :  { %336 = vmatmul.mubr.msk.f32.gmra.mrb[6].mxu0 %vm42_vm0, %v21_v21  ;;  %348 = vmatmul.mubr.msk.f32.gmra.mrb[6].mxu1 %vm42_vm0, %v29_v22 }
  0xe1   :  { %v328_v24 = vpop.f32.mrb[0].mxu0  ;;  %v340_v25 = vpop.f32.mrb[0].mxu1 }
  0xe2   :  { %v167_v26 = vadd.f32 %v328_v24, %v277_v23  ;;  %v207_v27 = vadd.f32 %v340_v25, %v277_v23  ;;  %v161_v28 = vpop.f32.mrb[1].mxu0  ;;  %v201_v29 = vpop.f32.mrb[1].mxu1 }
  0xe3   :  { %v162_v30 = vadd.f32 %v277_v23, %v161_v28  ;;  %v202_v31 = vadd.f32 %v277_v23, %v201_v29 }
  0xe4   :  { %v241_v32 = vmax.f32 %v167_v26, 0.0  ;;  %v249_v33 = vmax.f32 %v207_v27, 0.0 }
  0xe5   :  { %v240_v34 = vmax.f32 %v162_v30, 0.0  ;;  %v248_v35 = vmax.f32 %v202_v31, 0.0  ;;  %v331_v36 = vpop.f32.mrb[2].mxu0  ;;  %v343_v37 = vpop.f32.mrb[2].mxu1 }
  0xe6   :  { %258 = vst.msk [vmem:[%s533_s3 + $0x8] sm:$0xff] %vm256_vm2, %v241_v32  ;;  %266 = vst.msk [vmem:[%s533_s3 + $0x48] sm:$0xff] %vm256_vm2, %v249_v33  ;;  %v177_v38 = vadd.f32 %v331_v36, %v277_v23  ;;  %v217_v39 = vadd.f32 %v343_v37, %v277_v23  ;;  %v171_v40 = vpop.f32.mrb[3].mxu0  ;;  %v211_v41 = vpop.f32.mrb[3].mxu1 }
  0xe7   :  { %257 = vst.msk [vmem:[%s533_s3] sm:$0xff] %vm256_vm2, %v240_v34  ;;  %265 = vst.msk [vmem:[%s533_s3 + $0x40] sm:$0xff] %vm256_vm2, %v248_v35  ;;  %v172_v42 = vadd.f32 %v277_v23, %v171_v40  ;;  %v212_v43 = vadd.f32 %v277_v23, %v211_v41 }
  0xe8   :  { %v243_v44 = vmax.f32 %v177_v38, 0.0  ;;  %v251_v45 = vmax.f32 %v217_v39, 0.0 }
  0xe9   :  { %v242_v46 = vmax.f32 %v172_v42, 0.0  ;;  %v250_v47 = vmax.f32 %v212_v43, 0.0  ;;  %v334_v48 = vpop.f32.mrb[4].mxu0  ;;  %v346_v49 = vpop.f32.mrb[4].mxu1 }
  0xea   :  { %260 = vst.msk [vmem:[%s533_s3 + $0x18] sm:$0xff] %vm256_vm2, %v243_v44  ;;  %268 = vst.msk [vmem:[%s533_s3 + $0x58] sm:$0xff] %vm256_vm2, %v251_v45  ;;  %v187_v50 = vadd.f32 %v334_v48, %v277_v23  ;;  %v227_v51 = vadd.f32 %v346_v49, %v277_v23  ;;  %v181_v52 = vpop.f32.mrb[5].mxu0  ;;  %v221_v53 = vpop.f32.mrb[5].mxu1 }
  0xeb   :  { %259 = vst.msk [vmem:[%s533_s3 + $0x10] sm:$0xff] %vm256_vm2, %v242_v46  ;;  %267 = vst.msk [vmem:[%s533_s3 + $0x50] sm:$0xff] %vm256_vm2, %v250_v47  ;;  %v182_v54 = vadd.f32 %v277_v23, %v181_v52  ;;  %v222_v55 = vadd.f32 %v277_v23, %v221_v53 }
  0xec   :  { %v245_v56 = vmax.f32 %v187_v50, 0.0  ;;  %v253_v57 = vmax.f32 %v227_v51, 0.0 }
  0xed   :  { %v244_v58 = vmax.f32 %v182_v54, 0.0  ;;  %v252_v59 = vmax.f32 %v222_v55, 0.0  ;;  %v337_v60 = vpop.f32.mrb[6].mxu0  ;;  %v349_v61 = vpop.f32.mrb[6].mxu1 }
  0xee   :  { %262 = vst.msk [vmem:[%s533_s3 + $0x28] sm:$0xff] %vm256_vm2, %v245_v56  ;;  %270 = vst.msk [vmem:[%s533_s3 + $0x68] sm:$0xff] %vm256_vm2, %v253_v57  ;;  %v197_v62 = vadd.f32 %v337_v60, %v277_v23  ;;  %v237_v63 = vadd.f32 %v349_v61, %v277_v23  ;;  %v191_v0 = vpop.f32.mrb[7].mxu0  ;;  %v231_v1 = vpop.f32.mrb[7].mxu1 }
  0xef   :  { %261 = vst.msk [vmem:[%s533_s3 + $0x20] sm:$0xff] %vm256_vm2, %v244_v58  ;;  %269 = vst.msk [vmem:[%s533_s3 + $0x60] sm:$0xff] %vm256_vm2, %v252_v59  ;;  %v192_v2 = vadd.f32 %v277_v23, %v191_v0  ;;  %v232_v3 = vadd.f32 %v277_v23, %v231_v1 }
  0xf0   :  { %v247_v4 = vmax.f32 %v197_v62, 0.0  ;;  %v255_v5 = vmax.f32 %v237_v63, 0.0 }
  0xf1   :  { %v246_v6 = vmax.f32 %v192_v2, 0.0  ;;  %v254_v7 = vmax.f32 %v232_v3, 0.0 }
  0xf2   :  { %264 = vst.msk [vmem:[%s533_s3 + $0x38] sm:$0xff] %vm256_vm2, %v247_v4  ;;  %272 = vst.msk [vmem:[%s533_s3 + $0x78] sm:$0xff] %vm256_vm2, %v255_v5 }
  0xf3   :  { %263 = vst.msk [vmem:[%s533_s3 + $0x30] sm:$0xff] %vm256_vm2, %v246_v6  ;;  %271 = vst.msk [vmem:[%s533_s3 + $0x70] sm:$0xff] %vm256_vm2, %v254_v7 }

// kernel: vae_forward_pallas.7
= control target key start
LH: loop header
LB: loop body
LE: loop exit
PB: predicated region body
PF: predicated region fallthrough
CT: control target
= control target key end

     0   :  { %v693_v0 = vmov 0.0|0.0   ;;  %vm77_vm0 = vcmask 130048   ;;  %vm302_vm1 = vcmask 523264   ;;  %vm512_vm2 = vcmask 261120   ;;  %s1036_s1 = inlined_call_operand.vmem [shape: f32[144,64], index: 1, kind: input, shape index: {}]   ;;  %s1037_s0 = inlined_call_operand.vmem [shape: f32[128,144], index: 0, kind: input, shape index: {}]   ;;  %s1038_s3 = inlined_call_operand.vmem [shape: f32[64,32], index: 3, kind: input, shape index: {}]   ;;  %s1039_s2 = inlined_call_operand.vmem [shape: f32[1,64], index: 2, kind: input, shape index: {}]   ;;  %s1040_s4 = inlined_call_operand.vmem [shape: f32[1,32], index: 4, kind: input, shape index: {}]   ;;  %s1041_s5 = inlined_call_operand.vmem [shape: f32[128,32], index: 5, kind: output, shape index: {}]  }
   0x1   :  { %631 = vmatprep.subr.bf16.mxu0 %v693_v0  ;;  %v52_v1 = vld [vmem:[%s1036_s1] sm:$0xff]  ;;  %v53_v2 = vld [vmem:[%s1036_s1 + $0x8] sm:$0xff]  ;;  %v54_v3 = vld [vmem:[%s1036_s1 + $0x10] sm:$0xff]  ;;  %674 = vmatprep.subr.bf16.mxu1 %v693_v0 }
   0x2   :  { %v632_v4 = vpack.c.bf16 %v53_v2, %v52_v1  ;;  %v55_v5 = vld [vmem:[%s1036_s1 + $0x18] sm:$0xff]  ;;  %v56_v7 = vld [vmem:[%s1036_s1 + $0x20] sm:$0xff]  ;;  %v57_v8 = vld [vmem:[%s1036_s1 + $0x28] sm:$0xff] }
   0x3   :  { %v635_v6 = vpack.c.bf16 %v55_v5, %v54_v3  ;;  %v21_v9 = vld [vmem:[%s1037_s0 + $0x8] sm:$0xff]  ;;  %v638_v10 = vpack.c.bf16 %v57_v8, %v56_v7  ;;  %v58_v11 = vld [vmem:[%s1036_s1 + $0x30] sm:$0xff]  ;;  %v59_v12 = vld [vmem:[%s1036_s1 + $0x38] sm:$0xff] }
   0x4   :  { %633 = vmatpush1.bf16.msra.mxu0 %v632_v4  ;;  %683 = vmatpush1.bf16.msra.mxu1 %v632_v4  ;;  %v641_v13 = vpack.c.bf16 %v59_v12, %v58_v11  ;;  %v60_v14 = vld [vmem:[%s1036_s1 + $0x40] sm:$0xff]  ;;  %v61_v15 = vld [vmem:[%s1036_s1 + $0x48] sm:$0xff]  ;;  %v62_v18 = vld [vmem:[%s1036_s1 + $0x50] sm:$0xff] }
   0x5   :  { %634 = vmatprep.subr.bf16.mxu0 %v693_v0  ;;  %675 = vmatprep.subr.bf16.mxu1 %v693_v0  ;;  %v45_v16 = vld [vmem:[%s1037_s0 + $0xc8] sm:$0xff]  ;;  %v644_v17 = vpack.c.bf16 %v61_v15, %v60_v14  ;;  %v63_v19 = vld [vmem:[%s1036_s1 + $0x58] sm:$0xff]  ;;  %v64_v21 = vld [vmem:[%s1036_s1 + $0x60] sm:$0xff] }
   0x6   :  { %534 = vmatprep.mubr.msk.f32.mxu0 %vm77_vm0, %v21_v9  ;;  %546 = vmatprep.mubr.msk.f32.mxu1 %vm77_vm0, %v45_v16  ;;  %v647_v20 = vpack.c.bf16 %v63_v19, %v62_v18  ;;  %v65_v22 = vld [vmem:[%s1036_s1 + $0x68] sm:$0xff]  ;;  %v66_v24 = vld [vmem:[%s1036_s1 + $0x70] sm:$0xff]  ;;  %v67_v25 = vld [vmem:[%s1036_s1 + $0x78] sm:$0xff] }
   0x7   :  { %v650_v23 = vpack.c.bf16 %v65_v22, %v64_v21  ;;  %v653_v26 = vpack.c.bf16 %v67_v25, %v66_v24  ;;  %v68_v27 = vld [vmem:[%s1036_s1 + $0x80] sm:$0xff]  ;;  %v69_v28 = vld [vmem:[%s1036_s1 + $0x88] sm:$0xff]  ;;  %v289_v33 = vld [vmem:[%s1038_s3 + $0x10] sm:$0xff] }
   0x8   :  { %636 = vmatpush1.bf16.msra.mxu0 %v635_v6  ;;  %684 = vmatpush1.bf16.msra.mxu1 %v635_v6  ;;  %v287_v29 = vld [vmem:[%s1038_s3] sm:$0xff]  ;;  %v288_v30 = vld [vmem:[%s1038_s3 + $0x8] sm:$0xff]  ;;  %v656_v31 = vpack.c.bf16 %v69_v28, %v68_v27  ;;  %v290_v34 = vld [vmem:[%s1038_s3 + $0x18] sm:$0xff] }
   0x9   :  { %637 = vmatprep.subr.bf16.mxu0 %v693_v0  ;;  %676 = vmatprep.subr.bf16.mxu1 %v693_v0  ;;  %v658_v32 = vpack.c.bf16 %v288_v30, %v287_v29  ;;  %v20_v35 = vld [vmem:[%s1037_s0] sm:$0xff]  ;;  %v23_v36 = vld [vmem:[%s1037_s0 + $0x18] sm:$0xff]  ;;  %v662_v39 = vpack.c.bf16 %v290_v34, %v289_v33  ;;  %v22_v40 = vld [vmem:[%s1037_s0 + $0x10] sm:$0xff] }
   0xa   :  { %v44_v37 = vld [vmem:[%s1037_s0 + $0xc0] sm:$0xff]  ;;  %v47_v38 = vld [vmem:[%s1037_s0 + $0xd8] sm:$0xff]  ;;  %v25_v41 = vld [vmem:[%s1037_s0 + $0x28] sm:$0xff] }
   0xb   :  { %v46_v42 = vld [vmem:[%s1037_s0 + $0xd0] sm:$0xff]  ;;  %v49_v43 = vld [vmem:[%s1037_s0 + $0xe8] sm:$0xff]  ;;  %v24_v44 = vld [vmem:[%s1037_s0 + $0x20] sm:$0xff] }
   0xc   :  { %639 = vmatpush1.bf16.msra.mxu0 %v638_v10  ;;  %685 = vmatpush1.bf16.msra.mxu1 %v638_v10  ;;  %v27_v45 = vld [vmem:[%s1037_s0 + $0x38] sm:$0xff]  ;;  %v48_v46 = vld [vmem:[%s1037_s0 + $0xe0] sm:$0xff]  ;;  %v26_v48 = vld [vmem:[%s1037_s0 + $0x30] sm:$0xff] }
   0xd   :  { %640 = vmatprep.subr.bf16.mxu0 %v693_v0  ;;  %677 = vmatprep.subr.bf16.mxu1 %v693_v0  ;;  %v51_v47 = vld [vmem:[%s1037_s0 + $0xf8] sm:$0xff]  ;;  %v29_v49 = vld [vmem:[%s1037_s0 + $0x48] sm:$0xff]  ;;  %v50_v50 = vld [vmem:[%s1037_s0 + $0xf0] sm:$0xff] }
   0xe   :  { %v28_v51 = vld [vmem:[%s1037_s0 + $0x40] sm:$0xff]  ;;  %v31_v52 = vld [vmem:[%s1037_s0 + $0x58] sm:$0xff]  ;;  %v30_v53 = vld [vmem:[%s1037_s0 + $0x50] sm:$0xff] }
   0xf   :  { %v33_v54 = vld [vmem:[%s1037_s0 + $0x68] sm:$0xff]  ;;  %v32_v55 = vld [vmem:[%s1037_s0 + $0x60] sm:$0xff]  ;;  %v35_v56 = vld [vmem:[%s1037_s0 + $0x78] sm:$0xff] }
  0x10   :  { %642 = vmatpush1.bf16.msra.mxu0 %v641_v13  ;;  %686 = vmatpush1.bf16.msra.mxu1 %v641_v13  ;;  %v34_v57 = vld [vmem:[%s1037_s0 + $0x70] sm:$0xff]  ;;  %v37_v58 = vld [vmem:[%s1037_s0 + $0x88] sm:$0xff]  ;;  %v36_v59 = vld [vmem:[%s1037_s0 + $0x80] sm:$0xff] }
  0x11   :  { %643 = vmatprep.subr.bf16.mxu0 %v693_v0  ;;  %678 = vmatprep.subr.bf16.mxu1 %v693_v0  ;;  %v39_v60 = vld [vmem:[%s1037_s0 + $0x98] sm:$0xff]  ;;  %v38_v61 = vld [vmem:[%s1037_s0 + $0x90] sm:$0xff]  ;;  %v41_v62 = vld [vmem:[%s1037_s0 + $0xa8] sm:$0xff] }
  0x12   :  { %v40_v63 = vld [vmem:[%s1037_s0 + $0xa0] sm:$0xff]  ;;  %v42_v1 = vld [vmem:[%s1037_s0 + $0xb0] sm:$0xff]  ;;  %v292_v3 = vld [vmem:[%s1038_s3 + $0x28] sm:$0xff] }
  0x13   :  { %v291_v2 = vld [vmem:[%s1038_s3 + $0x20] sm:$0xff]  ;;  %v293_v5 = vld [vmem:[%s1038_s3 + $0x30] sm:$0xff]  ;;  %v294_v6 = vld [vmem:[%s1038_s3 + $0x38] sm:$0xff] }
  0x14   :  { %645 = vmatpush1.bf16.msra.mxu0 %v644_v17  ;;  %687 = vmatpush1.bf16.msra.mxu1 %v644_v17  ;;  %v666_v4 = vpack.c.bf16 %v292_v3, %v291_v2  ;;  %v670_v7 = vpack.c.bf16 %v294_v6, %v293_v5  ;;  %v935_v8 = vld [vmem:[%s1039_s2] ss:$0 sm:$0xff] }
  0x15   :  { %646 = vmatprep.subr.bf16.mxu0 %v693_v0  ;;  %679 = vmatprep.subr.bf16.mxu1 %v693_v0 }
  0x18   :  { %648 = vmatpush1.bf16.msra.mxu0 %v647_v20  ;;  %688 = vmatpush1.bf16.msra.mxu1 %v647_v20 }
  0x19   :  { %649 = vmatprep.subr.bf16.mxu0 %v693_v0  ;;  %680 = vmatprep.subr.bf16.mxu1 %v693_v0 }
  0x1c   :  { %651 = vmatpush1.bf16.msra.mxu0 %v650_v23  ;;  %689 = vmatpush1.bf16.msra.mxu1 %v650_v23 }
  0x1d   :  { %652 = vmatprep.subr.bf16.mxu0 %v693_v0  ;;  %681 = vmatprep.subr.bf16.mxu1 %v693_v0 }
  0x20   :  { %654 = vmatpush1.bf16.msra.mxu0 %v653_v26  ;;  %690 = vmatpush1.bf16.msra.mxu1 %v653_v26 }
  0x21   :  { %655 = vmatprep.subr.bf16.mxu0 %v693_v0  ;;  %682 = vmatprep.subr.bf16.mxu1 %v693_v0  ;;  %v43_v0 = vld [vmem:[%s1037_s0 + $0xb8] sm:$0xff] }
  0x24   :  { %657 = vmatpush1.bf16.msra.mxu0 %v656_v31  ;;  %691 = vmatpush1.bf16.msra.mxu1 %v656_v31 }
  0x25   :  { %659 = vmatprep.subr.bf16.mxu1 %v658_v32 }
  0x27   :  { %191 = vmatmul.mubr.f32.vlgmr.msra.gmra.mrb[0].mxu0 %v20_v35  ;;  %251 = vmatmul.mubr.f32.vlgmr.msra.gmra.mrb[0].mxu1 %v44_v37 }
  0x28   :  { %535 = vmatprep.mubr.msk.f32.mxu0 %vm77_vm0, %v23_v36  ;;  %547 = vmatprep.mubr.msk.f32.mxu1 %vm77_vm0, %v47_v38 }
  0x29   :  { %661 = vmatpush3.bf16.msra.mxu1 %v658_v32 }
  0x2a   :  { %663 = vmatprep.subr.bf16.mxu1 %v662_v39 }
  0x2b   :  { %196 = vmatmul.mubr.f32.gmra.mrb[2].mxu0 %v22_v40  ;;  %256 = vmatmul.mubr.f32.gmra.mrb[2].mxu1 %v46_v42 }
  0x2c   :  { %536 = vmatprep.mubr.msk.f32.mxu0 %vm77_vm0, %v25_v41  ;;  %548 = vmatprep.mubr.msk.f32.mxu1 %vm77_vm0, %v49_v43 }
  0x2d   :  { %665 = vmatpush3.bf16.msra.mxu1 %v662_v39 }
  0x2e   :  { %667 = vmatprep.subr.bf16.mxu1 %v666_v4 }
  0x2f   :  { %201 = vmatmul.mubr.f32.gmra.mrb[4].mxu0 %v24_v44  ;;  %261 = vmatmul.mubr.f32.gmra.mrb[4].mxu1 %v48_v46 }
  0x30   :  { %537 = vmatprep.mubr.msk.f32.mxu0 %vm77_vm0, %v27_v45  ;;  %549 = vmatprep.mubr.msk.f32.mxu1 %vm77_vm0, %v51_v47 }
  0x31   :  { %669 = vmatpush3.bf16.msra.mxu1 %v666_v4 }
  0x32   :  { %671 = vmatprep.subr.bf16.mxu1 %v670_v7 }
  0x33   :  { %206 = vmatmul.mubr.f32.gmra.mrb[6].mxu0 %v26_v48  ;;  %266 = vmatmul.mubr.f32.gmra.mrb[6].mxu1 %v50_v50 }
  0x34   :  { %538 = vmatprep.mubr.msk.f32.mxu0 %vm77_vm0, %v29_v49 }
  0x35   :  { %673 = vmatpush3.bf16.msra.mxu1 %v670_v7 }
  0x37   :  { %211 = vmatmul.mubr.f32.gmra.mrb[8].mxu0 %v28_v51 }
  0x38   :  { %539 = vmatprep.mubr.msk.f32.mxu0 %vm77_vm0, %v31_v52 }
  0x3b   :  { %216 = vmatmul.mubr.f32.gmra.mrb[10].mxu0 %v30_v53 }
  0x3c   :  { %540 = vmatprep.mubr.msk.f32.mxu0 %vm77_vm0, %v33_v54 }
  0x3f   :  { %221 = vmatmul.mubr.f32.gmra.mrb[12].mxu0 %v32_v55 }
  0x40   :  { %541 = vmatprep.mubr.msk.f32.mxu0 %vm77_vm0, %v35_v56 }
  0x43   :  { %226 = vmatmul.mubr.f32.gmra.mrb[14].mxu0 %v34_v57 }
  0x44   :  { %542 = vmatprep.mubr.msk.f32.mxu0 %vm77_vm0, %v37_v58 }
  0x47   :  { %231 = vmatmul.mubr.f32.gmra.mrb[16].mxu0 %v36_v59 }
  0x48   :  { %543 = vmatprep.mubr.msk.f32.mxu0 %vm77_vm0, %v39_v60 }
  0x4b   :  { %236 = vmatmul.mubr.f32.gmra.mrb[18].mxu0 %v38_v61 }
  0x4c   :  { %544 = vmatprep.mubr.msk.f32.mxu0 %vm77_vm0, %v41_v62 }
  0x4f   :  { %241 = vmatmul.mubr.f32.gmra.mrb[20].mxu0 %v40_v63 }
  0x50   :  { %545 = vmatprep.mubr.msk.f32.mxu0 %vm77_vm0, %v43_v0 }
  0x53   :  { %246 = vmatmul.mubr.f32.gmra.mrb[22].mxu0 %v42_v1 }
  0xfa   :  { %v192_v9 = vpop.f32.mrb[0].mxu0  ;;  %v252_v12 = vpop.f32.mrb[0].mxu1 }
  0xfb   :  { %v193_v10 = vadd.f32 %v935_v8, %v192_v9  ;;  %v194_v11 = vpop.f32.mrb[1].mxu0  ;;  %v254_v13 = vpop.f32.mrb[1].mxu1  ;;  %v253_v61 = vadd.f32 %v935_v8, %v252_v12 }
  0xfd   :  { %v271_v14 = vmax.f32 %v193_v10, 0.0  ;;  %v283_v4 = vmax.f32 %v253_v61, 0.0  ;;  %v550_v10 = vld [vmem:[%s1040_s4] ss:$0 sm:$0xff] }
  0xfe   :  { %v197_v15 = vpop.f32.mrb[2].mxu0  ;;  %v257_v18 = vpop.f32.mrb[2].mxu1 }
  0xff   :  { %v198_v16 = vadd.f32 %v935_v8, %v197_v15  ;;  %v199_v17 = vpop.f32.mrb[3].mxu0  ;;  %607 = vmatprep.mubr.msk.f32.mxu1 %vm302_vm1, %v271_v14  ;;  %v259_v19 = vpop.f32.mrb[3].mxu1  ;;  %v258_v2 = vadd.f32 %v935_v8, %v257_v18 }
 0x101   :  { %v272_v20 = vmax.f32 %v198_v16, 0.0  ;;  %v284_v7 = vmax.f32 %v258_v2, 0.0 }
 0x102   :  { %v202_v21 = vpop.f32.mrb[4].mxu0  ;;  %v262_v24 = vpop.f32.mrb[4].mxu1 }
 0x103   :  { %v203_v22 = vadd.f32 %v935_v8, %v202_v21  ;;  %v204_v23 = vpop.f32.mrb[5].mxu0  ;;  %608 = vmatmul.mubr.msk.f32.vlgmr.msra.gmra.mrb[8].mxu1 %vm302_vm1, %v272_v20  ;;  %v264_v25 = vpop.f32.mrb[5].mxu1  ;;  %v263_v1 = vadd.f32 %v935_v8, %v262_v24 }
 0x105   :  { %v273_v26 = vmax.f32 %v203_v22, 0.0  ;;  %v285_v6 = vmax.f32 %v263_v1, 0.0 }
 0x106   :  { %v207_v27 = vpop.f32.mrb[6].mxu0  ;;  %v267_v30 = vpop.f32.mrb[6].mxu1 }
 0x107   :  { %v208_v28 = vadd.f32 %v935_v8, %v207_v27  ;;  %v209_v29 = vpop.f32.mrb[7].mxu0  ;;  %610 = vmatprep.mubr.msk.f32.mxu1 %vm302_vm1, %v273_v26  ;;  %v269_v31 = vpop.f32.mrb[7].mxu1  ;;  %v268_v5 = vadd.f32 %v935_v8, %v267_v30 }
 0x109   :  { %v274_v32 = vmax.f32 %v208_v28, 0.0  ;;  %v286_v9 = vmax.f32 %v268_v5, 0.0 }
 0x10a   :  { %v212_v33 = vpop.f32.mrb[8].mxu0 }
 0x10b   :  { %v213_v34 = vadd.f32 %v935_v8, %v212_v33  ;;  %v214_v35 = vpop.f32.mrb[9].mxu0  ;;  %611 = vmatmul.mubr.msk.f32.gmra.mrb[10].mxu1 %vm302_vm1, %v274_v32 }
 0x10d   :  { %v275_v36 = vmax.f32 %v213_v34, 0.0 }
 0x10e   :  { %v217_v37 = vpop.f32.mrb[10].mxu0 }
 0x10f   :  { %v218_v38 = vadd.f32 %v935_v8, %v217_v37  ;;  %v219_v39 = vpop.f32.mrb[11].mxu0  ;;  %613 = vmatprep.mubr.msk.f32.mxu1 %vm302_vm1, %v275_v36 }
 0x111   :  { %v276_v40 = vmax.f32 %v218_v38, 0.0 }
 0x112   :  { %v222_v41 = vpop.f32.mrb[12].mxu0 }
 0x113   :  { %v223_v42 = vadd.f32 %v935_v8, %v222_v41  ;;  %v224_v43 = vpop.f32.mrb[13].mxu0  ;;  %614 = vmatmul.mubr.msk.f32.gmra.mrb[12].mxu1 %vm302_vm1, %v276_v40 }
 0x115   :  { %v277_v44 = vmax.f32 %v223_v42, 0.0 }
 0x116   :  { %v227_v45 = vpop.f32.mrb[14].mxu0 }
 0x117   :  { %v228_v46 = vadd.f32 %v935_v8, %v227_v45  ;;  %v229_v47 = vpop.f32.mrb[15].mxu0  ;;  %616 = vmatprep.mubr.msk.f32.mxu1 %vm302_vm1, %v277_v44 }
 0x119   :  { %v278_v48 = vmax.f32 %v228_v46, 0.0 }
 0x11a   :  { %v232_v49 = vpop.f32.mrb[16].mxu0 }
 0x11b   :  { %v233_v50 = vadd.f32 %v935_v8, %v232_v49  ;;  %v234_v51 = vpop.f32.mrb[17].mxu0  ;;  %617 = vmatmul.mubr.msk.f32.gmra.mrb[14].mxu1 %vm302_vm1, %v278_v48 }
 0x11d   :  { %v279_v52 = vmax.f32 %v233_v50, 0.0 }
 0x11e   :  { %v237_v53 = vpop.f32.mrb[18].mxu0 }
 0x11f   :  { %v238_v54 = vadd.f32 %v935_v8, %v237_v53  ;;  %v239_v55 = vpop.f32.mrb[19].mxu0  ;;  %619 = vmatprep.mubr.msk.f32.mxu1 %vm302_vm1, %v279_v52 }
 0x121   :  { %v280_v56 = vmax.f32 %v238_v54, 0.0 }
 0x122   :  { %v242_v57 = vpop.f32.mrb[20].mxu0 }
 0x123   :  { %v243_v58 = vadd.f32 %v935_v8, %v242_v57  ;;  %v244_v59 = vpop.f32.mrb[21].mxu0  ;;  %620 = vmatmul.mubr.msk.f32.gmra.mrb[16].mxu1 %vm302_vm1, %v280_v56 }
 0x125   :  { %v281_v60 = vmax.f32 %v243_v58, 0.0 }
 0x126   :  { %v247_v62 = vpop.f32.mrb[22].mxu0 }
 0x127   :  { %v248_v63 = vadd.f32 %v935_v8, %v247_v62  ;;  %v249_v0 = vpop.f32.mrb[23].mxu0  ;;  %622 = vmatprep.mubr.msk.f32.mxu1 %vm302_vm1, %v281_v60 }
 0x129   :  { %v282_v3 = vmax.f32 %v248_v63, 0.0 }
 0x12b   :  { %623 = vmatmul.mubr.msk.f32.gmra.mrb[18].mxu1 %vm302_vm1, %v282_v3 }
 0x12c   :  { %625 = vmatprep.mubr.msk.f32.mxu1 %vm302_vm1, %v283_v4 }
 0x12f   :  { %626 = vmatmul.mubr.msk.f32.gmra.mrb[20].mxu1 %vm302_vm1, %v284_v7 }
 0x130   :  { %628 = vmatprep.mubr.msk.f32.mxu1 %vm302_vm1, %v285_v6 }
 0x133   :  { %629 = vmatmul.mubr.msk.f32.gmra.mrb[22].mxu1 %vm302_vm1, %v286_v9 }
 0x1d6   :  { %v609_v11 = vpop.f32.mrb[8].mxu1 }
 0x1d7   :  { %v423_v12 = vadd.f32 %v609_v11, %v550_v10  ;;  %v417_v13 = vpop.f32.mrb[9].mxu1 }
 0x1d8   :  { %v418_v8 = vadd.f32 %v550_v10, %v417_v13 }
 0x1d9   :  { %v497_v14 = vmax.f32 %v423_v12, 0.0 }
 0x1da   :  { %v496_v15 = vmax.f32 %v418_v8, 0.0 }
 0x1db   :  { %514 = vst.msk [vmem:[%s1041_s5 + $0x8] sm:$0xff] %vm512_vm2, %v497_v14 }
 0x1dc   :  { %513 = vst.msk [vmem:[%s1041_s5] sm:$0xff] %vm512_vm2, %v496_v15 }
 0x1de   :  { %v612_v16 = vpop.f32.mrb[10].mxu1 }
 0x1df   :  { %v433_v17 = vadd.f32 %v612_v16, %v550_v10  ;;  %v427_v18 = vpop.f32.mrb[11].mxu1 }
 0x1e0   :  { %v428_v19 = vadd.f32 %v550_v10, %v427_v18 }
 0x1e1   :  { %v499_v20 = vmax.f32 %v433_v17, 0.0 }
 0x1e2   :  { %v498_v21 = vmax.f32 %v428_v19, 0.0 }
 0x1e3   :  { %516 = vst.msk [vmem:[%s1041_s5 + $0x18] sm:$0xff] %vm512_vm2, %v499_v20 }
 0x1e4   :  { %515 = vst.msk [vmem:[%s1041_s5 + $0x10] sm:$0xff] %vm512_vm2, %v498_v21 }
 0x1e6   :  { %v615_v22 = vpop.f32.mrb[12].mxu1 }
 0x1e7   :  { %v443_v23 = vadd.f32 %v615_v22, %v550_v10  ;;  %v437_v24 = vpop.f32.mrb[13].mxu1 }
 0x1e8   :  { %v438_v25 = vadd.f32 %v550_v10, %v437_v24 }
 0x1e9   :  { %v501_v26 = vmax.f32 %v443_v23, 0.0 }
 0x1ea   :  { %v500_v27 = vmax.f32 %v438_v25, 0.0 }
 0x1eb   :  { %518 = vst.msk [vmem:[%s1041_s5 + $0x28] sm:$0xff] %vm512_vm2, %v501_v26 }
 0x1ec   :  { %517 = vst.msk [vmem:[%s1041_s5 + $0x20] sm:$0xff] %vm512_vm2, %v500_v27 }
 0x1ee   :  { %v618_v28 = vpop.f32.mrb[14].mxu1 }
 0x1ef   :  { %v453_v29 = vadd.f32 %v618_v28, %v550_v10  ;;  %v447_v30 = vpop.f32.mrb[15].mxu1 }
 0x1f0   :  { %v448_v31 = vadd.f32 %v550_v10, %v447_v30 }
 0x1f1   :  { %v503_v32 = vmax.f32 %v453_v29, 0.0 }
 0x1f2   :  { %v502_v33 = vmax.f32 %v448_v31, 0.0 }
 0x1f3   :  { %520 = vst.msk [vmem:[%s1041_s5 + $0x38] sm:$0xff] %vm512_vm2, %v503_v32 }
 0x1f4   :  { %519 = vst.msk [vmem:[%s1041_s5 + $0x30] sm:$0xff] %vm512_vm2, %v502_v33 }
 0x1f6   :  { %v621_v34 = vpop.f32.mrb[16].mxu1 }
 0x1f7   :  { %v463_v35 = vadd.f32 %v621_v34, %v550_v10  ;;  %v457_v36 = vpop.f32.mrb[17].mxu1 }
 0x1f8   :  { %v458_v37 = vadd.f32 %v550_v10, %v457_v36 }
 0x1f9   :  { %v505_v38 = vmax.f32 %v463_v35, 0.0 }
 0x1fa   :  { %v504_v39 = vmax.f32 %v458_v37, 0.0 }
 0x1fb   :  { %522 = vst.msk [vmem:[%s1041_s5 + $0x48] sm:$0xff] %vm512_vm2, %v505_v38 }
 0x1fc   :  { %521 = vst.msk [vmem:[%s1041_s5 + $0x40] sm:$0xff] %vm512_vm2, %v504_v39 }
 0x1fe   :  { %v624_v40 = vpop.f32.mrb[18].mxu1 }
 0x1ff   :  { %v473_v41 = vadd.f32 %v624_v40, %v550_v10  ;;  %v467_v42 = vpop.f32.mrb[19].mxu1 }
 0x200   :  { %v468_v43 = vadd.f32 %v550_v10, %v467_v42 }
 0x201   :  { %v507_v44 = vmax.f32 %v473_v41, 0.0 }
 0x202   :  { %v506_v45 = vmax.f32 %v468_v43, 0.0  ;;  %v627_v46 = vpop.f32.mrb[20].mxu1 }
 0x203   :  { %524 = vst.msk [vmem:[%s1041_s5 + $0x58] sm:$0xff] %vm512_vm2, %v507_v44  ;;  %v483_v47 = vadd.f32 %v627_v46, %v550_v10  ;;  %v477_v48 = vpop.f32.mrb[21].mxu1 }
 0x204   :  { %523 = vst.msk [vmem:[%s1041_s5 + $0x50] sm:$0xff] %vm512_vm2, %v506_v45  ;;  %v478_v49 = vadd.f32 %v550_v10, %v477_v48 }
 0x205   :  { %v509_v50 = vmax.f32 %v483_v47, 0.0 }
 0x206   :  { %v508_v51 = vmax.f32 %v478_v49, 0.0  ;;  %v630_v52 = vpop.f32.mrb[22].mxu1 }
 0x207   :  { %526 = vst.msk [vmem:[%s1041_s5 + $0x68] sm:$0xff] %vm512_vm2, %v509_v50  ;;  %v493_v53 = vadd.f32 %v630_v52, %v550_v10  ;;  %v487_v54 = vpop.f32.mrb[23].mxu1 }
 0x208   :  { %525 = vst.msk [vmem:[%s1041_s5 + $0x60] sm:$0xff] %vm512_vm2, %v508_v51  ;;  %v488_v55 = vadd.f32 %v550_v10, %v487_v54 }
 0x209   :  { %v511_v56 = vmax.f32 %v493_v53, 0.0 }
 0x20a   :  { %v510_v57 = vmax.f32 %v488_v55, 0.0 }
 0x20b   :  { %528 = vst.msk [vmem:[%s1041_s5 + $0x78] sm:$0xff] %vm512_vm2, %v511_v56 }
 0x20c   :  { %527 = vst.msk [vmem:[%s1041_s5 + $0x70] sm:$0xff] %vm512_vm2, %v510_v57 }

// kernel: vae_forward_pallas.8
= control target key start
LH: loop header
LB: loop body
LE: loop exit
PB: predicated region body
PF: predicated region fallthrough
CT: control target
= control target key end

     0   :  { %s6504_s1 = inlined_call_operand.vmem [shape: f32[2048,128], index: 1, kind: input, shape index: {}]   ;;  %s6505_s0 = inlined_call_operand.vmem [shape: f32[8,2048], index: 0, kind: input, shape index: {}]   ;;  %s6506_s3 = inlined_call_operand.vmem [shape: f32[2048,128], index: 3, kind: input, shape index: {}]   ;;  %s6507_s2 = inlined_call_operand.vmem [shape: f32[1,128], index: 2, kind: input, shape index: {}]   ;;  %s6508_s6 = inlined_call_operand.vmem [shape: f32[128,2048], index: 6, kind: input, shape index: {}]   ;;  %s6509_s4 = inlined_call_operand.vmem [shape: f32[1,128], index: 4, kind: input, shape index: {}]   ;;  %s6510_s5 = inlined_call_operand.vmem [shape: f32[8,128], index: 5, kind: input, shape index: {}]   ;;  %s6511_s7 = inlined_call_operand.vmem [shape: f32[1,2048], index: 7, kind: input, shape index: {}]   ;;  %s6512_s8 = inlined_call_operand.vmem [shape: f32[8,2048], index: 8, kind: output, shape index: {}]  }
   0x1   :  { %v61_v0 = vld [vmem:[%s6504_s1 + $0x80] sm:$0xff]  ;;  %v62_v1 = vld [vmem:[%s6504_s1 + $0x88] sm:$0xff]  ;;  %v63_v11 = vld [vmem:[%s6504_s1 + $0x90] sm:$0xff] }
   0x2   :  { %v45_v2 = vld [vmem:[%s6504_s1] sm:$0xff]  ;;  %v3187_v3 = vpack.c.bf16 %v62_v1, %v61_v0  ;;  %v46_v4 = vld [vmem:[%s6504_s1 + $0x8] sm:$0xff]  ;;  %v64_v13 = vld [vmem:[%s6504_s1 + $0x98] sm:$0xff] }
   0x3   :  { %v93_v5 = vld [vmem:[%s6504_s1 + $0x180] sm:$0xff]  ;;  %v94_v6 = vld [vmem:[%s6504_s1 + $0x188] sm:$0xff]  ;;  %v3189_v7 = vpack.c.bf16 %v46_v4, %v45_v2  ;;  %v47_v14 = vld [vmem:[%s6504_s1 + $0x10] sm:$0xff]  ;;  %v3191_v16 = vpack.c.bf16 %v64_v13, %v63_v11 }
   0x4   :  { %v3219_v8 = vpack.c.bf16 %v94_v6, %v93_v5  ;;  %v77_v9 = vld [vmem:[%s6504_s1 + $0x100] sm:$0xff]  ;;  %v78_v10 = vld [vmem:[%s6504_s1 + $0x108] sm:$0xff]  ;;  %3188 = vmatprep.subr.bf16.mxu0 %v3187_v3  ;;  %v48_v15 = vld [vmem:[%s6504_s1 + $0x18] sm:$0xff] }
   0x5   :  { %v3221_v12 = vpack.c.bf16 %v78_v10, %v77_v9  ;;  %3190 = vmatpush3.bf16.msra.mxu0 %v3189_v7  ;;  %v3193_v17 = vpack.c.bf16 %v48_v15, %v47_v14  ;;  %v95_v18 = vld [vmem:[%s6504_s1 + $0x190] sm:$0xff]  ;;  %v96_v19 = vld [vmem:[%s6504_s1 + $0x198] sm:$0xff]  ;;  %v65_v23 = vld [vmem:[%s6504_s1 + $0xa0] sm:$0xff] }
   0x6   :  { %3220 = vmatprep.subr.bf16.mxu1 %v3219_v8  ;;  %v79_v20 = vld [vmem:[%s6504_s1 + $0x110] sm:$0xff]  ;;  %v3223_v21 = vpack.c.bf16 %v96_v19, %v95_v18  ;;  %v80_v22 = vld [vmem:[%s6504_s1 + $0x118] sm:$0xff]  ;;  %v66_v24 = vld [vmem:[%s6504_s1 + $0xa8] sm:$0xff]  ;;  %3192 = vmatprep.subr.bf16.mxu0 %v3191_v16 }
   0x7   :  { %3222 = vmatpush3.bf16.msra.mxu1 %v3221_v12  ;;  %v3225_v25 = vpack.c.bf16 %v80_v22, %v79_v20  ;;  %v3195_v26 = vpack.c.bf16 %v66_v24, %v65_v23  ;;  %v49_v27 = vld [vmem:[%s6504_s1 + $0x20] sm:$0xff]  ;;  %v50_v28 = vld [vmem:[%s6504_s1 + $0x28] sm:$0xff]  ;;  %v67_v35 = vld [vmem:[%s6504_s1 + $0xb0] sm:$0xff] }
   0x8   :  { %v97_v29 = vld [vmem:[%s6504_s1 + $0x1a0] sm:$0xff]  ;;  %3224 = vmatprep.subr.bf16.mxu1 %v3223_v21  ;;  %v98_v30 = vld [vmem:[%s6504_s1 + $0x1a8] sm:$0xff]  ;;  %v3197_v33 = vpack.c.bf16 %v50_v28, %v49_v27  ;;  %v68_v36 = vld [vmem:[%s6504_s1 + $0xb8] sm:$0xff] }
   0x9   :  { %v81_v31 = vld [vmem:[%s6504_s1 + $0x120] sm:$0xff]  ;;  %v82_v32 = vld [vmem:[%s6504_s1 + $0x128] sm:$0xff]  ;;  %3194 = vmatpush3.bf16.msra.mxu0 %v3193_v17  ;;  %v3227_v34 = vpack.c.bf16 %v98_v30, %v97_v29  ;;  %v51_v37 = vld [vmem:[%s6504_s1 + $0x30] sm:$0xff]  ;;  %v3199_v39 = vpack.c.bf16 %v68_v36, %v67_v35 }
   0xa   :  { %3196 = vmatprep.subr.bf16.mxu0 %v3195_v26  ;;  %v3229_v38 = vpack.c.bf16 %v82_v32, %v81_v31  ;;  %v52_v40 = vld [vmem:[%s6504_s1 + $0x38] sm:$0xff]  ;;  %v99_v41 = vld [vmem:[%s6504_s1 + $0x1b0] sm:$0xff]  ;;  %v69_v46 = vld [vmem:[%s6504_s1 + $0xc0] sm:$0xff] }
   0xb   :  { %3226 = vmatpush3.bf16.msra.mxu1 %v3225_v25  ;;  %v100_v42 = vld [vmem:[%s6504_s1 + $0x1b8] sm:$0xff]  ;;  %v83_v44 = vld [vmem:[%s6504_s1 + $0x130] sm:$0xff]  ;;  %v70_v47 = vld [vmem:[%s6504_s1 + $0xc8] sm:$0xff]  ;;  %v3201_v48 = vpack.c.bf16 %v52_v40, %v51_v37 }
   0xc   :  { %3228 = vmatprep.subr.bf16.mxu1 %v3227_v34  ;;  %v3231_v43 = vpack.c.bf16 %v100_v42, %v99_v41  ;;  %v84_v45 = vld [vmem:[%s6504_s1 + $0x138] sm:$0xff]  ;;  %v101_v49 = vld [vmem:[%s6504_s1 + $0x1c0] sm:$0xff]  ;;  %v102_v50 = vld [vmem:[%s6504_s1 + $0x1c8] sm:$0xff]  ;;  %v3203_v52 = vpack.c.bf16 %v70_v47, %v69_v46 }
   0xd   :  { %3198 = vmatpush3.bf16.msra.mxu0 %v3197_v33  ;;  %v3233_v51 = vpack.c.bf16 %v84_v45, %v83_v44  ;;  %v53_v53 = vld [vmem:[%s6504_s1 + $0x40] sm:$0xff]  ;;  %v54_v54 = vld [vmem:[%s6504_s1 + $0x48] sm:$0xff]  ;;  %v3235_v56 = vpack.c.bf16 %v102_v50, %v101_v49  ;;  %v71_v58 = vld [vmem:[%s6504_s1 + $0xd0] sm:$0xff] }
   0xe   :  { %3200 = vmatprep.subr.bf16.mxu0 %v3199_v39  ;;  %v85_v55 = vld [vmem:[%s6504_s1 + $0x140] sm:$0xff]  ;;  %v86_v57 = vld [vmem:[%s6504_s1 + $0x148] sm:$0xff]  ;;  %v72_v59 = vld [vmem:[%s6504_s1 + $0xd8] sm:$0xff]  ;;  %v3205_v62 = vpack.c.bf16 %v54_v54, %v53_v53 }
   0xf   :  { %3230 = vmatpush3.bf16.msra.mxu1 %v3229_v38  ;;  %v103_v60 = vld [vmem:[%s6504_s1 + $0x1d0] sm:$0xff]  ;;  %v104_v61 = vld [vmem:[%s6504_s1 + $0x1d8] sm:$0xff]  ;;  %v3237_v63 = vpack.c.bf16 %v86_v57, %v85_v55  ;;  %v3207_v0 = vpack.c.bf16 %v72_v59, %v71_v58  ;;  %v73_v6 = vld [vmem:[%s6504_s1 + $0xe0] sm:$0xff] }
  0x10   :  { %3232 = vmatprep.subr.bf16.mxu1 %v3231_v43  ;;  %v55_v1 = vld [vmem:[%s6504_s1 + $0x50] sm:$0xff]  ;;  %v56_v2 = vld [vmem:[%s6504_s1 + $0x58] sm:$0xff]  ;;  %v3239_v4 = vpack.c.bf16 %v104_v61, %v103_v60  ;;  %v74_v7 = vld [vmem:[%s6504_s1 + $0xe8] sm:$0xff] }
  0x11   :  { %3202 = vmatpush3.bf16.msra.mxu0 %v3201_v48  ;;  %v87_v3 = vld [vmem:[%s6504_s1 + $0x150] sm:$0xff]  ;;  %v88_v5 = vld [vmem:[%s6504_s1 + $0x158] sm:$0xff]  ;;  %v105_v8 = vld [vmem:[%s6504_s1 + $0x1e0] sm:$0xff]  ;;  %v3209_v10 = vpack.c.bf16 %v56_v2, %v55_v1  ;;  %v3211_v14 = vpack.c.bf16 %v74_v7, %v73_v6 }
  0x12   :  { %3204 = vmatprep.subr.bf16.mxu0 %v3203_v52  ;;  %v106_v9 = vld [vmem:[%s6504_s1 + $0x1e8] sm:$0xff]  ;;  %v57_v11 = vld [vmem:[%s6504_s1 + $0x60] sm:$0xff]  ;;  %v3241_v13 = vpack.c.bf16 %v88_v5, %v87_v3  ;;  %v75_v19 = vld [vmem:[%s6504_s1 + $0xf0] sm:$0xff] }
  0x13   :  { %3234 = vmatpush3.bf16.msra.mxu1 %v3233_v51  ;;  %v58_v12 = vld [vmem:[%s6504_s1 + $0x68] sm:$0xff]  ;;  %v89_v15 = vld [vmem:[%s6504_s1 + $0x160] sm:$0xff]  ;;  %v3243_v18 = vpack.c.bf16 %v106_v9, %v105_v8  ;;  %v76_v20 = vld [vmem:[%s6504_s1 + $0xf8] sm:$0xff] }
  0x14   :  { %3236 = vmatprep.subr.bf16.mxu1 %v3235_v56  ;;  %v90_v16 = vld [vmem:[%s6504_s1 + $0x168] sm:$0xff]  ;;  %v4201_v21 = vld [vmem:[%s6505_s0 + $0x18] sm:$0xff]  ;;  %v107_v22 = vld [vmem:[%s6504_s1 + $0x1f0] sm:$0xff]  ;;  %v3213_v24 = vpack.c.bf16 %v58_v12, %v57_v11  ;;  %v3215_v26 = vpack.c.bf16 %v76_v20, %v75_v19 }
  0x15   :  { %3206 = vmatpush3.bf16.msra.mxu0 %v3205_v62  ;;  %v4189_v17 = vld [vmem:[%s6505_s0 + $0x8] sm:$0xff]  ;;  %v108_v23 = vld [vmem:[%s6504_s1 + $0x1f8] sm:$0xff]  ;;  %442 = vmatprep.mubr.f32.mxu1 %v4201_v21  ;;  %v3245_v25 = vpack.c.bf16 %v90_v16, %v89_v15  ;;  %v59_v27 = vld [vmem:[%s6504_s1 + $0x70] sm:$0xff] }
  0x16   :  { %3208 = vmatprep.subr.bf16.mxu0 %v3207_v0  ;;  %372 = vmatprep.mubr.f32.mxu0 %v4189_v17  ;;  %v60_v28 = vld [vmem:[%s6504_s1 + $0x78] sm:$0xff]  ;;  %v91_v29 = vld [vmem:[%s6504_s1 + $0x170] sm:$0xff]  ;;  %v3247_v30 = vpack.c.bf16 %v108_v23, %v107_v22  ;;  %v125_v32 = vld [vmem:[%s6504_s1 + $0x280] sm:$0xff] }
  0x17   :  { %3238 = vmatpush3.bf16.msra.mxu1 %v3237_v63  ;;  %v92_v31 = vld [vmem:[%s6504_s1 + $0x178] sm:$0xff]  ;;  %v126_v33 = vld [vmem:[%s6504_s1 + $0x288] sm:$0xff]  ;;  %v157_v34 = vld [vmem:[%s6504_s1 + $0x380] sm:$0xff]  ;;  %v3217_v36 = vpack.c.bf16 %v60_v28, %v59_v27 }
  0x18   :  { %3240 = vmatprep.subr.bf16.mxu1 %v3239_v4  ;;  %v158_v35 = vld [vmem:[%s6504_s1 + $0x388] sm:$0xff]  ;;  %v3249_v37 = vpack.c.bf16 %v92_v31, %v91_v29  ;;  %v3251_v38 = vpack.c.bf16 %v126_v33, %v125_v32  ;;  %v109_v39 = vld [vmem:[%s6504_s1 + $0x200] sm:$0xff]  ;;  %v127_v44 = vld [vmem:[%s6504_s1 + $0x290] sm:$0xff] }
  0x19   :  { %3210 = vmatpush3.bf16.msra.mxu0 %v3209_v10  ;;  %v110_v40 = vld [vmem:[%s6504_s1 + $0x208] sm:$0xff]  ;;  %v141_v41 = vld [vmem:[%s6504_s1 + $0x300] sm:$0xff]  ;;  %v3283_v42 = vpack.c.bf16 %v158_v35, %v157_v34  ;;  %v128_v45 = vld [vmem:[%s6504_s1 + $0x298] sm:$0xff] }
  0x1a   :  { %3212 = vmatprep.subr.bf16.mxu0 %v3211_v14  ;;  %v142_v43 = vld [vmem:[%s6504_s1 + $0x308] sm:$0xff]  ;;  %v159_v46 = vld [vmem:[%s6504_s1 + $0x390] sm:$0xff]  ;;  %v160_v47 = vld [vmem:[%s6504_s1 + $0x398] sm:$0xff]  ;;  %v3253_v49 = vpack.c.bf16 %v110_v40, %v109_v39  ;;  %v3255_v52 = vpack.c.bf16 %v128_v45, %v127_v44 }
  0x1b   :  { %3242 = vmatpush3.bf16.msra.mxu1 %v3241_v13  ;;  %v29_v48 = vld [vmem:[%s6505_s0] sm:$0xff]  ;;  %v31_v50 = vld [vmem:[%s6505_s0 + $0x10] sm:$0xff]  ;;  %v3285_v51 = vpack.c.bf16 %v142_v43, %v141_v41  ;;  %v112_v54 = vld [vmem:[%s6504_s1 + $0x218] sm:$0xff]  ;;  %v3287_v56 = vpack.c.bf16 %v160_v47, %v159_v46 }
  0x1c   :  { %3244 = vmatprep.subr.bf16.mxu1 %v3243_v18  ;;  %v111_v53 = vld [vmem:[%s6504_s1 + $0x210] sm:$0xff]  ;;  %v144_v57 = vld [vmem:[%s6504_s1 + $0x318] sm:$0xff]  ;;  %v129_v58 = vld [vmem:[%s6504_s1 + $0x2a0] sm:$0xff] }
  0x1d   :  { %3214 = vmatpush3.bf16.msra.mxu0 %v3213_v24  ;;  %v143_v55 = vld [vmem:[%s6504_s1 + $0x310] sm:$0xff]  ;;  %v130_v59 = vld [vmem:[%s6504_s1 + $0x2a8] sm:$0xff]  ;;  %v161_v60 = vld [vmem:[%s6504_s1 + $0x3a0] sm:$0xff]  ;;  %v3257_v62 = vpack.c.bf16 %v112_v54, %v111_v53 }
  0x1e   :  { %3216 = vmatprep.subr.bf16.mxu0 %v3215_v26  ;;  %v162_v61 = vld [vmem:[%s6504_s1 + $0x3a8] sm:$0xff]  ;;  %v3289_v63 = vpack.c.bf16 %v144_v57, %v143_v55  ;;  %v3259_v0 = vpack.c.bf16 %v130_v59, %v129_v58  ;;  %v113_v1 = vld [vmem:[%s6504_s1 + $0x220] sm:$0xff]  ;;  %v131_v6 = vld [vmem:[%s6504_s1 + $0x2b0] sm:$0xff] }
  0x1f   :  { %3246 = vmatpush3.bf16.msra.mxu1 %v3245_v25  ;;  %v114_v2 = vld [vmem:[%s6504_s1 + $0x228] sm:$0xff]  ;;  %v145_v3 = vld [vmem:[%s6504_s1 + $0x320] sm:$0xff]  ;;  %v3291_v4 = vpack.c.bf16 %v162_v61, %v161_v60  ;;  %v132_v7 = vld [vmem:[%s6504_s1 + $0x2b8] sm:$0xff] }
  0x20   :  { %3248 = vmatprep.subr.bf16.mxu1 %v3247_v30  ;;  %v146_v5 = vld [vmem:[%s6504_s1 + $0x328] sm:$0xff]  ;;  %v163_v8 = vld [vmem:[%s6504_s1 + $0x3b0] sm:$0xff]  ;;  %v164_v9 = vld [vmem:[%s6504_s1 + $0x3b8] sm:$0xff]  ;;  %v3261_v10 = vpack.c.bf16 %v114_v2, %v113_v1  ;;  %v3263_v12 = vpack.c.bf16 %v132_v7, %v131_v6 }
  0x21   :  { %3218 = vmatpush3.bf16.msra.mxu0 %v3217_v36  ;;  %v3293_v11 = vpack.c.bf16 %v146_v5, %v145_v3  ;;  %v115_v13 = vld [vmem:[%s6504_s1 + $0x230] sm:$0xff]  ;;  %v116_v14 = vld [vmem:[%s6504_s1 + $0x238] sm:$0xff]  ;;  %v3295_v16 = vpack.c.bf16 %v164_v9, %v163_v8  ;;  %v133_v19 = vld [vmem:[%s6504_s1 + $0x2c0] sm:$0xff] }
  0x22   :  { %3252 = vmatprep.subr.bf16.mxu0 %v3251_v38  ;;  %v147_v15 = vld [vmem:[%s6504_s1 + $0x330] sm:$0xff]  ;;  %v148_v18 = vld [vmem:[%s6504_s1 + $0x338] sm:$0xff]  ;;  %v134_v20 = vld [vmem:[%s6504_s1 + $0x2c8] sm:$0xff]  ;;  %v3265_v24 = vpack.c.bf16 %v116_v14, %v115_v13 }
  0x23   :  { %3250 = vmatpush3.bf16.msra.mxu1 %v3249_v37  ;;  %v165_v22 = vld [vmem:[%s6504_s1 + $0x3c0] sm:$0xff]  ;;  %v166_v23 = vld [vmem:[%s6504_s1 + $0x3c8] sm:$0xff]  ;;  %v3297_v27 = vpack.c.bf16 %v148_v18, %v147_v15  ;;  %v3267_v28 = vpack.c.bf16 %v134_v20, %v133_v19  ;;  %v36_v31 = vld [vmem:[%s6505_s0 + $0x38] sm:$0xff] }
  0x24   :  { %3284 = vmatprep.subr.bf16.mxu1 %v3283_v42  ;;  %373 = vmatmul.mubr.f32.vlgmr.msra.gmra.mrb[0].mxu0 %v29_v48  ;;  %v117_v25 = vld [vmem:[%s6504_s1 + $0x240] sm:$0xff]  ;;  %v34_v26 = vld [vmem:[%s6505_s0 + $0x28] sm:$0xff]  ;;  %v3299_v32 = vpack.c.bf16 %v166_v23, %v165_v22  ;;  %v135_v34 = vld [vmem:[%s6504_s1 + $0x2d0] sm:$0xff] }
  0x25   :  { %3254 = vmatpush3.bf16.msra.mxu0 %v3253_v49  ;;  %v118_v29 = vld [vmem:[%s6504_s1 + $0x248] sm:$0xff]  ;;  %v149_v30 = vld [vmem:[%s6504_s1 + $0x340] sm:$0xff]  ;;  %v136_v35 = vld [vmem:[%s6504_s1 + $0x2d8] sm:$0xff]  ;;  %512 = vmatprep.mubr.f32.mxu0 %v34_v26 }
  0x26   :  { %443 = vmatmul.mubr.f32.vlgmr.msra.gmra.mrb[0].mxu1 %v31_v50  ;;  %3256 = vmatprep.subr.bf16.mxu0 %v3255_v52  ;;  %v150_v33 = vld [vmem:[%s6504_s1 + $0x348] sm:$0xff]  ;;  %v167_v36 = vld [vmem:[%s6504_s1 + $0x3d0] sm:$0xff]  ;;  %v168_v37 = vld [vmem:[%s6504_s1 + $0x3d8] sm:$0xff]  ;;  %v3269_v38 = vpack.c.bf16 %v118_v29, %v117_v25  ;;  %v3271_v40 = vpack.c.bf16 %v136_v35, %v135_v34 }
  0x27   :  { %3286 = vmatpush3.bf16.msra.mxu1 %v3285_v51  ;;  %582 = vmatprep.mubr.f32.mxu1 %v36_v31  ;;  %v3301_v39 = vpack.c.bf16 %v150_v33, %v149_v30  ;;  %v119_v41 = vld [vmem:[%s6504_s1 + $0x250] sm:$0xff]  ;;  %v120_v42 = vld [vmem:[%s6504_s1 + $0x258] sm:$0xff]  ;;  %v3303_v44 = vpack.c.bf16 %v168_v37, %v167_v36  ;;  %v137_v46 = vld [vmem:[%s6504_s1 + $0x2e0] sm:$0xff] }
  0x28   :  { %3288 = vmatprep.subr.bf16.mxu1 %v3287_v56  ;;  %v151_v43 = vld [vmem:[%s6504_s1 + $0x350] sm:$0xff]  ;;  %v152_v45 = vld [vmem:[%s6504_s1 + $0x358] sm:$0xff]  ;;  %v138_v47 = vld [vmem:[%s6504_s1 + $0x2e8] sm:$0xff]  ;;  %v3273_v50 = vpack.c.bf16 %v120_v42, %v119_v41 }
  0x29   :  { %3258 = vmatpush3.bf16.msra.mxu0 %v3257_v62  ;;  %v169_v48 = vld [vmem:[%s6504_s1 + $0x3e0] sm:$0xff]  ;;  %v170_v49 = vld [vmem:[%s6504_s1 + $0x3e8] sm:$0xff]  ;;  %v3305_v51 = vpack.c.bf16 %v152_v45, %v151_v43  ;;  %v3275_v52 = vpack.c.bf16 %v138_v47, %v137_v46  ;;  %v139_v58 = vld [vmem:[%s6504_s1 + $0x2f0] sm:$0xff] }
  0x2a   :  { %3260 = vmatprep.subr.bf16.mxu0 %v3259_v0  ;;  %v121_v53 = vld [vmem:[%s6504_s1 + $0x260] sm:$0xff]  ;;  %v122_v54 = vld [vmem:[%s6504_s1 + $0x268] sm:$0xff]  ;;  %v3307_v56 = vpack.c.bf16 %v170_v49, %v169_v48  ;;  %v140_v59 = vld [vmem:[%s6504_s1 + $0x2f8] sm:$0xff] }
  0x2b   :  { %3290 = vmatpush3.bf16.msra.mxu1 %v3289_v63  ;;  %v153_v55 = vld [vmem:[%s6504_s1 + $0x360] sm:$0xff]  ;;  %v154_v57 = vld [vmem:[%s6504_s1 + $0x368] sm:$0xff]  ;;  %v171_v60 = vld [vmem:[%s6504_s1 + $0x3f0] sm:$0xff]  ;;  %v3277_v62 = vpack.c.bf16 %v122_v54, %v121_v53  ;;  %v3279_v0 = vpack.c.bf16 %v140_v59, %v139_v58 }
  0x2c   :  { %3292 = vmatprep.subr.bf16.mxu1 %v3291_v4  ;;  %v172_v61 = vld [vmem:[%s6504_s1 + $0x3f8] sm:$0xff]  ;;  %v3309_v63 = vpack.c.bf16 %v154_v57, %v153_v55  ;;  %v123_v1 = vld [vmem:[%s6504_s1 + $0x270] sm:$0xff]  ;;  %v189_v6 = vld [vmem:[%s6504_s1 + $0x480] sm:$0xff] }
  0x2d   :  { %3262 = vmatpush3.bf16.msra.mxu0 %v3261_v10  ;;  %v124_v2 = vld [vmem:[%s6504_s1 + $0x278] sm:$0xff]  ;;  %v155_v3 = vld [vmem:[%s6504_s1 + $0x370] sm:$0xff]  ;;  %v3311_v4 = vpack.c.bf16 %v172_v61, %v171_v60  ;;  %v190_v7 = vld [vmem:[%s6504_s1 + $0x488] sm:$0xff] }
  0x2e   :  { %3264 = vmatprep.subr.bf16.mxu0 %v3263_v12  ;;  %v156_v5 = vld [vmem:[%s6504_s1 + $0x378] sm:$0xff]  ;;  %v221_v8 = vld [vmem:[%s6504_s1 + $0x580] sm:$0xff]  ;;  %v222_v9 = vld [vmem:[%s6504_s1 + $0x588] sm:$0xff]  ;;  %v3281_v10 = vpack.c.bf16 %v124_v2, %v123_v1  ;;  %v3315_v12 = vpack.c.bf16 %v190_v7, %v189_v6 }
  0x2f   :  { %3294 = vmatpush3.bf16.msra.mxu1 %v3293_v11  ;;  %v3313_v11 = vpack.c.bf16 %v156_v5, %v155_v3  ;;  %v173_v13 = vld [vmem:[%s6504_s1 + $0x400] sm:$0xff]  ;;  %v174_v14 = vld [vmem:[%s6504_s1 + $0x408] sm:$0xff]  ;;  %v191_v19 = vld [vmem:[%s6504_s1 + $0x490] sm:$0xff] }
  0x30   :  { %3296 = vmatprep.subr.bf16.mxu1 %v3295_v16  ;;  %v205_v15 = vld [vmem:[%s6504_s1 + $0x500] sm:$0xff]  ;;  %v3347_v16 = vpack.c.bf16 %v222_v9, %v221_v8  ;;  %v206_v18 = vld [vmem:[%s6504_s1 + $0x508] sm:$0xff]  ;;  %v192_v20 = vld [vmem:[%s6504_s1 + $0x498] sm:$0xff]  ;;  %v3317_v25 = vpack.c.bf16 %v174_v14, %v173_v13 }
  0x31   :  { %3266 = vmatpush3.bf16.msra.mxu0 %v3265_v24  ;;  %v223_v22 = vld [vmem:[%s6504_s1 + $0x590] sm:$0xff]  ;;  %v224_v23 = vld [vmem:[%s6504_s1 + $0x598] sm:$0xff]  ;;  %v33_v24 = vld [vmem:[%s6505_s0 + $0x20] sm:$0xff] }
  0x32   :  { %3268 = vmatprep.subr.bf16.mxu0 %v3267_v28  ;;  %v35_v26 = vld [vmem:[%s6505_s0 + $0x30] sm:$0xff]  ;;  %v3319_v28 = vpack.c.bf16 %v192_v20, %v191_v19  ;;  %v176_v30 = vld [vmem:[%s6504_s1 + $0x418] sm:$0xff]  ;;  %v193_v34 = vld [vmem:[%s6504_s1 + $0x4a0] sm:$0xff] }
  0x33   :  { %3298 = vmatpush3.bf16.msra.mxu1 %v3297_v27  ;;  %v3349_v27 = vpack.c.bf16 %v206_v18, %v205_v15  ;;  %v175_v29 = vld [vmem:[%s6504_s1 + $0x410] sm:$0xff]  ;;  %v208_v33 = vld [vmem:[%s6504_s1 + $0x518] sm:$0xff]  ;;  %v194_v35 = vld [vmem:[%s6504_s1 + $0x4a8] sm:$0xff] }
  0x34   :  { %3300 = vmatprep.subr.bf16.mxu1 %v3299_v32  ;;  %v207_v31 = vld [vmem:[%s6504_s1 + $0x510] sm:$0xff]  ;;  %v3351_v32 = vpack.c.bf16 %v224_v23, %v223_v22  ;;  %v225_v36 = vld [vmem:[%s6504_s1 + $0x5a0] sm:$0xff]  ;;  %v226_v37 = vld [vmem:[%s6504_s1 + $0x5a8] sm:$0xff]  ;;  %v3323_v42 = vpack.c.bf16 %v194_v35, %v193_v34 }
  0x35   :  { %3270 = vmatpush3.bf16.msra.mxu0 %v3269_v38  ;;  %v38_v38 = vld [vmem:[%s6505_s0 + $0x48] sm:$0xff]  ;;  %v3353_v41 = vpack.c.bf16 %v208_v33, %v207_v31  ;;  %v177_v43 = vld [vmem:[%s6504_s1 + $0x420] sm:$0xff]  ;;  %v3355_v46 = vpack.c.bf16 %v226_v37, %v225_v36  ;;  %v195_v48 = vld [vmem:[%s6504_s1 + $0x4b0] sm:$0xff] }
  0x36   :  { %3272 = vmatprep.subr.bf16.mxu0 %v3271_v40  ;;  %v40_v40 = vld [vmem:[%s6505_s0 + $0x58] sm:$0xff]  ;;  %v209_v45 = vld [vmem:[%s6504_s1 + $0x520] sm:$0xff]  ;;  %v210_v47 = vld [vmem:[%s6504_s1 + $0x528] sm:$0xff] }
  0x37   :  { %3302 = vmatpush3.bf16.msra.mxu1 %v3301_v39  ;;  %v3321_v39 = vpack.c.bf16 %v176_v30, %v175_v29  ;;  %v196_v49 = vld [vmem:[%s6504_s1 + $0x4b8] sm:$0xff]  ;;  %v3357_v53 = vpack.c.bf16 %v210_v47, %v209_v45  ;;  %v179_v55 = vld [vmem:[%s6504_s1 + $0x430] sm:$0xff]  ;;  %v197_v60 = vld [vmem:[%s6504_s1 + $0x4c0] sm:$0xff] }
  0x38   :  { %3304 = vmatprep.subr.bf16.mxu1 %v3303_v44  ;;  %v178_v44 = vld [vmem:[%s6504_s1 + $0x428] sm:$0xff]  ;;  %v3327_v54 = vpack.c.bf16 %v196_v49, %v195_v48  ;;  %v211_v57 = vld [vmem:[%s6504_s1 + $0x530] sm:$0xff]  ;;  %v212_v59 = vld [vmem:[%s6504_s1 + $0x538] sm:$0xff] }
  0x39   :  { %3274 = vmatpush3.bf16.msra.mxu0 %v3273_v50  ;;  %v227_v50 = vld [vmem:[%s6504_s1 + $0x5b0] sm:$0xff]  ;;  %v198_v61 = vld [vmem:[%s6504_s1 + $0x4c8] sm:$0xff]  ;;  %v3361_v1 = vpack.c.bf16 %v212_v59, %v211_v57  ;;  %v181_v3 = vld [vmem:[%s6504_s1 + $0x440] sm:$0xff] }
  0x3a   :  { %3276 = vmatprep.subr.bf16.mxu0 %v3275_v52  ;;  %v3325_v52 = vpack.c.bf16 %v178_v44, %v177_v43  ;;  %v3331_v2 = vpack.c.bf16 %v198_v61, %v197_v60  ;;  %v213_v5 = vld [vmem:[%s6504_s1 + $0x540] sm:$0xff]  ;;  %v214_v7 = vld [vmem:[%s6504_s1 + $0x548] sm:$0xff]  ;;  %v199_v8 = vld [vmem:[%s6504_s1 + $0x4d0] sm:$0xff] }
  0x3b   :  { %3306 = vmatpush3.bf16.msra.mxu1 %v3305_v51  ;;  %v228_v51 = vld [vmem:[%s6504_s1 + $0x5b8] sm:$0xff]  ;;  %v3365_v13 = vpack.c.bf16 %v214_v7, %v213_v5  ;;  %v183_v15 = vld [vmem:[%s6504_s1 + $0x450] sm:$0xff]  ;;  %v201_v22 = vld [vmem:[%s6504_s1 + $0x4e0] sm:$0xff] }
  0x3c   :  { %3308 = vmatprep.subr.bf16.mxu1 %v3307_v56  ;;  %v180_v56 = vld [vmem:[%s6504_s1 + $0x438] sm:$0xff]  ;;  %v3359_v58 = vpack.c.bf16 %v228_v51, %v227_v50  ;;  %v215_v18 = vld [vmem:[%s6504_s1 + $0x550] sm:$0xff]  ;;  %v202_v23 = vld [vmem:[%s6504_s1 + $0x4e8] sm:$0xff] }
  0x3d   :  { %3278 = vmatpush3.bf16.msra.mxu0 %v3277_v62  ;;  %v229_v62 = vld [vmem:[%s6504_s1 + $0x5c0] sm:$0xff]  ;;  %v200_v9 = vld [vmem:[%s6504_s1 + $0x4d8] sm:$0xff]  ;;  %v186_v30 = vld [vmem:[%s6504_s1 + $0x468] sm:$0xff] }
  0x3e   :  { %3280 = vmatprep.subr.bf16.mxu0 %v3279_v0  ;;  %v3329_v0 = vpack.c.bf16 %v180_v56, %v179_v55  ;;  %v3335_v14 = vpack.c.bf16 %v200_v9, %v199_v8  ;;  %v216_v20 = vld [vmem:[%s6504_s1 + $0x558] sm:$0xff]  ;;  %v185_v29 = vld [vmem:[%s6504_s1 + $0x460] sm:$0xff]  ;;  %v218_v33 = vld [vmem:[%s6504_s1 + $0x568] sm:$0xff] }
  0x3f   :  { %3310 = vmatpush3.bf16.msra.mxu1 %v3309_v63  ;;  %v230_v63 = vld [vmem:[%s6504_s1 + $0x5c8] sm:$0xff]  ;;  %v217_v31 = vld [vmem:[%s6504_s1 + $0x560] sm:$0xff]  ;;  %v203_v34 = vld [vmem:[%s6504_s1 + $0x4f0] sm:$0xff] }
  0x40   :  { %3312 = vmatprep.subr.bf16.mxu1 %v3311_v4  ;;  %v182_v4 = vld [vmem:[%s6504_s1 + $0x448] sm:$0xff]  ;;  %v3363_v6 = vpack.c.bf16 %v230_v63, %v229_v62  ;;  %v204_v35 = vld [vmem:[%s6504_s1 + $0x4f8] sm:$0xff]  ;;  %v235_v36 = vld [vmem:[%s6504_s1 + $0x5f0] sm:$0xff] }
  0x41   :  { %3282 = vmatpush3.bf16.msra.mxu0 %v3281_v10  ;;  %v231_v10 = vld [vmem:[%s6504_s1 + $0x5d0] sm:$0xff]  ;;  %v236_v37 = vld [vmem:[%s6504_s1 + $0x5f8] sm:$0xff]  ;;  %v254_v47 = vld [vmem:[%s6504_s1 + $0x688] sm:$0xff] }
  0x42   :  { %3316 = vmatprep.subr.bf16.mxu0 %v3315_v12  ;;  %v3333_v12 = vpack.c.bf16 %v182_v4, %v181_v3  ;;  %v219_v43 = vld [vmem:[%s6504_s1 + $0x570] sm:$0xff]  ;;  %v3375_v44 = vpack.c.bf16 %v236_v37, %v235_v36  ;;  %v220_v45 = vld [vmem:[%s6504_s1 + $0x578] sm:$0xff]  ;;  %v285_v48 = vld [vmem:[%s6504_s1 + $0x780] sm:$0xff] }
  0x43   :  { %3314 = vmatpush3.bf16.msra.mxu1 %v3313_v11  ;;  %v232_v11 = vld [vmem:[%s6504_s1 + $0x5d8] sm:$0xff]  ;;  %v286_v49 = vld [vmem:[%s6504_s1 + $0x788] sm:$0xff]  ;;  %v3377_v51 = vpack.c.bf16 %v220_v45, %v219_v43  ;;  %v269_v55 = vld [vmem:[%s6504_s1 + $0x700] sm:$0xff] }
  0x44   :  { %3348 = vmatprep.subr.bf16.mxu1 %v3347_v16  ;;  %513 = vmatmul.mubr.f32.vlgmr.msra.gmra.mrb[2].mxu0 %v33_v24  ;;  %v184_v16 = vld [vmem:[%s6504_s1 + $0x458] sm:$0xff]  ;;  %v3367_v19 = vpack.c.bf16 %v232_v11, %v231_v10  ;;  %v233_v24 = vld [vmem:[%s6504_s1 + $0x5e0] sm:$0xff]  ;;  %v3411_v56 = vpack.c.bf16 %v286_v49, %v285_v48  ;;  %v270_v57 = vld [vmem:[%s6504_s1 + $0x708] sm:$0xff] }
  0x45   :  { %3318 = vmatpush3.bf16.msra.mxu0 %v3317_v25  ;;  %652 = vmatprep.mubr.f32.mxu0 %v38_v38  ;;  %v234_v25 = vld [vmem:[%s6504_s1 + $0x5e8] sm:$0xff]  ;;  %v3341_v38 = vpack.c.bf16 %v186_v30, %v185_v29  ;;  %v256_v59 = vld [vmem:[%s6504_s1 + $0x698] sm:$0xff]  ;;  %v287_v60 = vld [vmem:[%s6504_s1 + $0x790] sm:$0xff] }
  0x46   :  { %583 = vmatmul.mubr.f32.vlgmr.msra.gmra.mrb[2].mxu1 %v35_v26  ;;  %3320 = vmatprep.subr.bf16.mxu0 %v3319_v28  ;;  %v3337_v26 = vpack.c.bf16 %v184_v16, %v183_v15  ;;  %v3339_v28 = vpack.c.bf16 %v202_v23, %v201_v22  ;;  %v288_v61 = vld [vmem:[%s6504_s1 + $0x798] sm:$0xff]  ;;  %v37_v62 = vld [vmem:[%s6505_s0 + $0x40] sm:$0xff]  ;;  %v239_v3 = vld [vmem:[%s6504_s1 + $0x610] sm:$0xff] }
  0x47   :  { %3350 = vmatpush3.bf16.msra.mxu1 %v3349_v27  ;;  %722 = vmatprep.mubr.f32.mxu1 %v40_v40  ;;  %v3369_v27 = vpack.c.bf16 %v216_v20, %v215_v18  ;;  %v3343_v40 = vpack.c.bf16 %v204_v35, %v203_v34  ;;  %v240_v4 = vld [vmem:[%s6504_s1 + $0x618] sm:$0xff]  ;;  %v271_v5 = vld [vmem:[%s6504_s1 + $0x710] sm:$0xff]  ;;  %v257_v8 = vld [vmem:[%s6504_s1 + $0x6a0] sm:$0xff] }
  0x48   :  { %3352 = vmatprep.subr.bf16.mxu1 %v3351_v32  ;;  %v3371_v32 = vpack.c.bf16 %v234_v25, %v233_v24  ;;  %v272_v7 = vld [vmem:[%s6504_s1 + $0x718] sm:$0xff]  ;;  %v258_v9 = vld [vmem:[%s6504_s1 + $0x6a8] sm:$0xff]  ;;  %v289_v10 = vld [vmem:[%s6504_s1 + $0x7a0] sm:$0xff] }
  0x49   :  { %3322 = vmatpush3.bf16.msra.mxu0 %v3321_v39  ;;  %v3373_v39 = vpack.c.bf16 %v218_v33, %v217_v31  ;;  %v290_v11 = vld [vmem:[%s6504_s1 + $0x7a8] sm:$0xff]  ;;  %v3417_v15 = vpack.c.bf16 %v272_v7, %v271_v5  ;;  %v3387_v16 = vpack.c.bf16 %v258_v9, %v257_v8  ;;  %v241_v18 = vld [vmem:[%s6504_s1 + $0x620] sm:$0xff]  ;;  %v259_v24 = vld [vmem:[%s6504_s1 + $0x6b0] sm:$0xff] }
  0x4a   :  { %3324 = vmatprep.subr.bf16.mxu0 %v3323_v42  ;;  %v188_v42 = vld [vmem:[%s6504_s1 + $0x478] sm:$0xff]  ;;  %v273_v20 = vld [vmem:[%s6504_s1 + $0x720] sm:$0xff]  ;;  %v3419_v22 = vpack.c.bf16 %v290_v11, %v289_v10  ;;  %v274_v23 = vld [vmem:[%s6504_s1 + $0x728] sm:$0xff] }
  0x4b   :  { %3354 = vmatpush3.bf16.msra.mxu1 %v3353_v41  ;;  %v187_v41 = vld [vmem:[%s6504_s1 + $0x470] sm:$0xff]  ;;  %v260_v25 = vld [vmem:[%s6504_s1 + $0x6b8] sm:$0xff]  ;;  %v3421_v29 = vpack.c.bf16 %v274_v23, %v273_v20  ;;  %v261_v36 = vld [vmem:[%s6504_s1 + $0x6c0] sm:$0xff] }
  0x4c   :  { %3356 = vmatprep.subr.bf16.mxu1 %v3355_v46  ;;  %v253_v46 = vld [vmem:[%s6504_s1 + $0x680] sm:$0xff]  ;;  %v3345_v50 = vpack.c.bf16 %v188_v42, %v187_v41  ;;  %v3391_v30 = vpack.c.bf16 %v260_v25, %v259_v24  ;;  %v243_v31 = vld [vmem:[%s6504_s1 + $0x630] sm:$0xff]  ;;  %v276_v35 = vld [vmem:[%s6504_s1 + $0x738] sm:$0xff] }
  0x4d   :  { %3326 = vmatpush3.bf16.msra.mxu0 %v3325_v52  ;;  %v3379_v52 = vpack.c.bf16 %v254_v47, %v253_v46  ;;  %v275_v33 = vld [vmem:[%s6504_s1 + $0x730] sm:$0xff]  ;;  %v262_v37 = vld [vmem:[%s6504_s1 + $0x6c8] sm:$0xff]  ;;  %v245_v43 = vld [vmem:[%s6504_s1 + $0x640] sm:$0xff] }
  0x4e   :  { %3328 = vmatprep.subr.bf16.mxu0 %v3327_v54  ;;  %v238_v54 = vld [vmem:[%s6504_s1 + $0x608] sm:$0xff]  ;;  %v3425_v41 = vpack.c.bf16 %v276_v35, %v275_v33  ;;  %v3395_v42 = vpack.c.bf16 %v262_v37, %v261_v36  ;;  %v277_v45 = vld [vmem:[%s6504_s1 + $0x740] sm:$0xff]  ;;  %v263_v48 = vld [vmem:[%s6504_s1 + $0x6d0] sm:$0xff] }
  0x4f   :  { %3358 = vmatpush3.bf16.msra.mxu1 %v3357_v53  ;;  %v237_v53 = vld [vmem:[%s6504_s1 + $0x600] sm:$0xff]  ;;  %v278_v47 = vld [vmem:[%s6504_s1 + $0x748] sm:$0xff]  ;;  %v264_v49 = vld [vmem:[%s6504_s1 + $0x6d8] sm:$0xff] }
  0x50   :  { %3360 = vmatprep.subr.bf16.mxu1 %v3359_v58  ;;  %v255_v58 = vld [vmem:[%s6504_s1 + $0x690] sm:$0xff]  ;;  %v3381_v63 = vpack.c.bf16 %v238_v54, %v237_v53  ;;  %v3429_v53 = vpack.c.bf16 %v278_v47, %v277_v45  ;;  %v3399_v54 = vpack.c.bf16 %v264_v49, %v263_v48  ;;  %v281_v5 = vld [vmem:[%s6504_s1 + $0x760] sm:$0xff]  ;;  %v282_v7 = vld [vmem:[%s6504_s1 + $0x768] sm:$0xff] }
  0x51   :  { %3330 = vmatpush3.bf16.msra.mxu0 %v3329_v0  ;;  %v39_v0 = vld [vmem:[%s6505_s0 + $0x50] sm:$0xff]  ;;  %v268_v9 = vld [vmem:[%s6504_s1 + $0x6f8] sm:$0xff]  ;;  %v885_v23 = vld [vmem:[%s6506_s3 + $0x88] sm:$0xff] }
  0x52   :  { %3332 = vmatprep.subr.bf16.mxu0 %v3331_v2  ;;  %v3383_v2 = vpack.c.bf16 %v256_v59, %v255_v58  ;;  %v280_v59 = vld [vmem:[%s6504_s1 + $0x758] sm:$0xff]  ;;  %v267_v8 = vld [vmem:[%s6504_s1 + $0x6f0] sm:$0xff]  ;;  %v916_v24 = vld [vmem:[%s6506_s3 + $0x180] sm:$0xff] }
  0x53   :  { %3362 = vmatpush3.bf16.msra.mxu1 %v3361_v1  ;;  %v3413_v1 = vpack.c.bf16 %v270_v57, %v269_v55  ;;  %v247_v55 = vld [vmem:[%s6504_s1 + $0x650] sm:$0xff]  ;;  %v300_v11 = vld [vmem:[%s6504_s1 + $0x7f8] sm:$0xff]  ;;  %v917_v25 = vld [vmem:[%s6506_s3 + $0x188] sm:$0xff] }
  0x54   :  { %3364 = vmatprep.subr.bf16.mxu1 %v3363_v6  ;;  %v3415_v6 = vpack.c.bf16 %v288_v61, %v287_v60  ;;  %v279_v57 = vld [vmem:[%s6504_s1 + $0x750] sm:$0xff]  ;;  %v265_v60 = vld [vmem:[%s6504_s1 + $0x6e0] sm:$0xff]  ;;  %v266_v61 = vld [vmem:[%s6504_s1 + $0x6e8] sm:$0xff] }
  0x55   :  { %3334 = vmatpush3.bf16.msra.mxu0 %v3333_v12  ;;  %v42_v12 = vld [vmem:[%s6505_s0 + $0x68] sm:$0xff]  ;;  %v299_v10 = vld [vmem:[%s6504_s1 + $0x7f0] sm:$0xff]  ;;  %v284_v20 = vld [vmem:[%s6504_s1 + $0x778] sm:$0xff] }
  0x56   :  { %3336 = vmatprep.subr.bf16.mxu0 %v3335_v14  ;;  %v44_v14 = vld [vmem:[%s6505_s0 + $0x78] sm:$0xff]  ;;  %v901_v33 = vld [vmem:[%s6506_s3 + $0x108] sm:$0xff]  ;;  %v918_v36 = vld [vmem:[%s6506_s3 + $0x190] sm:$0xff] }
  0x57   :  { %3366 = vmatpush3.bf16.msra.mxu1 %v3365_v13  ;;  %v3385_v13 = vpack.c.bf16 %v240_v4, %v239_v3  ;;  %v249_v3 = vld [vmem:[%s6504_s1 + $0x660] sm:$0xff]  ;;  %v250_v4 = vld [vmem:[%s6504_s1 + $0x668] sm:$0xff]  ;;  %v887_v35 = vld [vmem:[%s6506_s3 + $0x98] sm:$0xff] }
  0x58   :  { %3368 = vmatprep.subr.bf16.mxu1 %v3367_v19  ;;  %v242_v19 = vld [vmem:[%s6504_s1 + $0x628] sm:$0xff]  ;;  %v919_v37 = vld [vmem:[%s6506_s3 + $0x198] sm:$0xff]  ;;  %v902_v45 = vld [vmem:[%s6506_s3 + $0x110] sm:$0xff] }
  0x59   :  { %3338 = vmatpush3.bf16.msra.mxu0 %v3337_v26  ;;  %v291_v26 = vld [vmem:[%s6504_s1 + $0x7b0] sm:$0xff]  ;;  %v903_v47 = vld [vmem:[%s6506_s3 + $0x118] sm:$0xff]  ;;  %v888_v48 = vld [vmem:[%s6506_s3 + $0xa0] sm:$0xff] }
  0x5a   :  { %3340 = vmatprep.subr.bf16.mxu0 %v3339_v28  ;;  %v3389_v28 = vpack.c.bf16 %v242_v19, %v241_v18  ;;  %v283_v18 = vld [vmem:[%s6504_s1 + $0x770] sm:$0xff]  ;;  %v3439_v19 = vpack.c.bf16 %v300_v11, %v299_v10  ;;  %v889_v49 = vld [vmem:[%s6506_s3 + $0xa8] sm:$0xff] }
  0x5b   :  { %3370 = vmatpush3.bf16.msra.mxu1 %v3369_v27  ;;  %v292_v27 = vld [vmem:[%s6504_s1 + $0x7b8] sm:$0xff] }
  0x5c   :  { %3372 = vmatprep.subr.bf16.mxu1 %v3371_v32  ;;  %v244_v32 = vld [vmem:[%s6504_s1 + $0x638] sm:$0xff]  ;;  %v3423_v34 = vpack.c.bf16 %v292_v27, %v291_v26  ;;  %v3441_v27 = vpack.c.bf16 %v284_v20, %v283_v18  ;;  %v909_v18 = vld [vmem:[%s6506_s3 + $0x148] sm:$0xff] }
  0x5d   :  { %3342 = vmatpush3.bf16.msra.mxu0 %v3341_v38  ;;  %v293_v38 = vld [vmem:[%s6504_s1 + $0x7c0] sm:$0xff]  ;;  %v895_v20 = vld [vmem:[%s6506_s3 + $0xd8] sm:$0xff] }
  0x5e   :  { %3344 = vmatprep.subr.bf16.mxu0 %v3343_v40  ;;  %v3393_v40 = vpack.c.bf16 %v244_v32, %v243_v31  ;;  %v900_v31 = vld [vmem:[%s6506_s3 + $0x100] sm:$0xff]  ;;  %v3475_v32 = vpack.c.bf16 %v917_v25, %v916_v24 }
  0x5f   :  { %3374 = vmatpush3.bf16.msra.mxu1 %v3373_v39  ;;  %v294_v39 = vld [vmem:[%s6504_s1 + $0x7c8] sm:$0xff] }
  0x60   :  { %3376 = vmatprep.subr.bf16.mxu1 %v3375_v44  ;;  %v246_v44 = vld [vmem:[%s6504_s1 + $0x648] sm:$0xff]  ;;  %v3427_v46 = vpack.c.bf16 %v294_v39, %v293_v38  ;;  %v41_v38 = vld [vmem:[%s6505_s0 + $0x60] sm:$0xff] }
  0x61   :  { %3346 = vmatpush3.bf16.msra.mxu0 %v3345_v50  ;;  %v295_v50 = vld [vmem:[%s6504_s1 + $0x7d0] sm:$0xff] }
  0x62   :  { %3380 = vmatprep.subr.bf16.mxu0 %v3379_v52  ;;  %v3397_v52 = vpack.c.bf16 %v246_v44, %v245_v43  ;;  %v870_v43 = vld [vmem:[%s6506_s3 + $0x10] sm:$0xff]  ;;  %v871_v44 = vld [vmem:[%s6506_s3 + $0x18] sm:$0xff] }
  0x63   :  { %3378 = vmatpush3.bf16.msra.mxu1 %v3377_v51  ;;  %v296_v51 = vld [vmem:[%s6504_s1 + $0x7d8] sm:$0xff] }
  0x64   :  { %3412 = vmatprep.subr.bf16.mxu1 %v3411_v56  ;;  %653 = vmatmul.mubr.f32.vlgmr.msra.gmra.mrb[4].mxu0 %v37_v62  ;;  %v248_v56 = vld [vmem:[%s6504_s1 + $0x658] sm:$0xff]  ;;  %v3431_v58 = vpack.c.bf16 %v296_v51, %v295_v50  ;;  %v297_v62 = vld [vmem:[%s6504_s1 + $0x7e0] sm:$0xff]  ;;  %v921_v51 = vld [vmem:[%s6506_s3 + $0x1a8] sm:$0xff] }
  0x65   :  { %3382 = vmatpush3.bf16.msra.mxu0 %v3381_v63  ;;  %792 = vmatprep.mubr.f32.mxu0 %v42_v12  ;;  %v298_v63 = vld [vmem:[%s6504_s1 + $0x7e8] sm:$0xff]  ;;  %v3405_v12 = vpack.c.bf16 %v250_v4, %v249_v3  ;;  %v920_v50 = vld [vmem:[%s6506_s3 + $0x1a0] sm:$0xff]  ;;  %v875_v3 = vld [vmem:[%s6506_s3 + $0x38] sm:$0xff] }
  0x66   :  { %723 = vmatmul.mubr.f32.vlgmr.msra.gmra.mrb[4].mxu1 %v39_v0  ;;  %3384 = vmatprep.subr.bf16.mxu0 %v3383_v2  ;;  %v3401_v0 = vpack.c.bf16 %v248_v56, %v247_v55  ;;  %v3403_v2 = vpack.c.bf16 %v266_v61, %v265_v60  ;;  %v872_v55 = vld [vmem:[%s6506_s3 + $0x20] sm:$0xff]  ;;  %v873_v56 = vld [vmem:[%s6506_s3 + $0x28] sm:$0xff]  ;;  %v890_v60 = vld [vmem:[%s6506_s3 + $0xb0] sm:$0xff] }
  0x67   :  { %3414 = vmatpush3.bf16.msra.mxu1 %v3413_v1  ;;  %862 = vmatprep.mubr.f32.mxu1 %v44_v14  ;;  %v3433_v1 = vpack.c.bf16 %v280_v59, %v279_v57  ;;  %v3407_v14 = vpack.c.bf16 %v268_v9, %v267_v8  ;;  %v904_v57 = vld [vmem:[%s6506_s3 + $0x120] sm:$0xff]  ;;  %v905_v59 = vld [vmem:[%s6506_s3 + $0x128] sm:$0xff]  ;;  %v891_v61 = vld [vmem:[%s6506_s3 + $0xb8] sm:$0xff] }
  0x68   :  { %3416 = vmatprep.subr.bf16.mxu1 %v3415_v6  ;;  %v3435_v6 = vpack.c.bf16 %v298_v63, %v297_v62  ;;  %v922_v62 = vld [vmem:[%s6506_s3 + $0x1b0] sm:$0xff]  ;;  %v923_v63 = vld [vmem:[%s6506_s3 + $0x1b8] sm:$0xff]  ;;  %v924_v8 = vld [vmem:[%s6506_s3 + $0x1c0] sm:$0xff] }
  0x69   :  { %3386 = vmatpush3.bf16.msra.mxu0 %v3385_v13  ;;  %v3437_v13 = vpack.c.bf16 %v282_v7, %v281_v5  ;;  %v906_v4 = vld [vmem:[%s6506_s3 + $0x130] sm:$0xff]  ;;  %v907_v5 = vld [vmem:[%s6506_s3 + $0x138] sm:$0xff]  ;;  %v893_v7 = vld [vmem:[%s6506_s3 + $0xc8] sm:$0xff] }
  0x6a   :  { %3388 = vmatprep.subr.bf16.mxu0 %v3387_v16  ;;  %v252_v16 = vld [vmem:[%s6504_s1 + $0x678] sm:$0xff]  ;;  %v925_v9 = vld [vmem:[%s6506_s3 + $0x1c8] sm:$0xff]  ;;  %v3489_v11 = vpack.c.bf16 %v907_v5, %v906_v4 }
  0x6b   :  { %3418 = vmatpush3.bf16.msra.mxu1 %v3417_v15  ;;  %v251_v15 = vld [vmem:[%s6504_s1 + $0x670] sm:$0xff]  ;;  %v951_v4 = vld [vmem:[%s6506_s3 + $0x298] sm:$0xff] }
  0x6c   :  { %3420 = vmatprep.subr.bf16.mxu1 %v3419_v22  ;;  %v884_v22 = vld [vmem:[%s6506_s3 + $0x80] sm:$0xff]  ;;  %v3409_v26 = vpack.c.bf16 %v252_v16, %v251_v15  ;;  %v3491_v16 = vpack.c.bf16 %v925_v9, %v924_v8  ;;  %v983_v5 = vld [vmem:[%s6506_s3 + $0x398] sm:$0xff]  ;;  %v934_v9 = vld [vmem:[%s6506_s3 + $0x210] sm:$0xff] }
  0x6d   :  { %3390 = vmatpush3.bf16.msra.mxu0 %v3389_v28  ;;  %v3443_v28 = vpack.c.bf16 %v885_v23, %v884_v22  ;;  %v908_v15 = vld [vmem:[%s6506_s3 + $0x140] sm:$0xff]  ;;  %v926_v22 = vld [vmem:[%s6506_s3 + $0x1d0] sm:$0xff]  ;;  %v927_v23 = vld [vmem:[%s6506_s3 + $0x1d8] sm:$0xff] }
  0x6e   :  { %3392 = vmatprep.subr.bf16.mxu0 %v3391_v30  ;;  %v869_v30 = vld [vmem:[%s6506_s3 + $0x8] sm:$0xff]  ;;  %v3493_v25 = vpack.c.bf16 %v909_v18, %v908_v15  ;;  %v984_v18 = vld [vmem:[%s6506_s3 + $0x3a0] sm:$0xff] }
  0x6f   :  { %3422 = vmatpush3.bf16.msra.mxu1 %v3421_v29  ;;  %v868_v29 = vld [vmem:[%s6506_s3] sm:$0xff]  ;;  %v953_v15 = vld [vmem:[%s6506_s3 + $0x2a8] sm:$0xff] }
  0x70   :  { %3424 = vmatprep.subr.bf16.mxu1 %v3423_v34  ;;  %v886_v34 = vld [vmem:[%s6506_s3 + $0x90] sm:$0xff]  ;;  %v3445_v39 = vpack.c.bf16 %v869_v30, %v868_v29  ;;  %v3495_v30 = vpack.c.bf16 %v927_v23, %v926_v22 }
  0x71   :  { %3394 = vmatpush3.bf16.msra.mxu0 %v3393_v40  ;;  %v43_v40 = vld [vmem:[%s6505_s0 + $0x70] sm:$0xff] }
  0x72   :  { %3396 = vmatprep.subr.bf16.mxu0 %v3395_v42  ;;  %v3447_v42 = vpack.c.bf16 %v887_v35, %v886_v34  ;;  %v910_v29 = vld [vmem:[%s6506_s3 + $0x150] sm:$0xff]  ;;  %v928_v34 = vld [vmem:[%s6506_s3 + $0x1e0] sm:$0xff]  ;;  %v929_v35 = vld [vmem:[%s6506_s3 + $0x1e8] sm:$0xff] }
  0x73   :  { %3426 = vmatpush3.bf16.msra.mxu1 %v3425_v41  ;;  %v3477_v41 = vpack.c.bf16 %v901_v33, %v900_v31  ;;  %v911_v31 = vld [vmem:[%s6506_s3 + $0x158] sm:$0xff]  ;;  %v897_v33 = vld [vmem:[%s6506_s3 + $0xe8] sm:$0xff] }
  0x74   :  { %3428 = vmatprep.subr.bf16.mxu1 %v3427_v46  ;;  %v3479_v46 = vpack.c.bf16 %v919_v37, %v918_v36  ;;  %v3497_v37 = vpack.c.bf16 %v911_v31, %v910_v29  ;;  %v969_v29 = vld [vmem:[%s6506_s3 + $0x328] sm:$0xff]  ;;  %v955_v31 = vld [vmem:[%s6506_s3 + $0x2b8] sm:$0xff] }
  0x75   :  { %3398 = vmatpush3.bf16.msra.mxu0 %v3397_v52  ;;  %v3449_v52 = vpack.c.bf16 %v871_v44, %v870_v43  ;;  %v913_v43 = vld [vmem:[%s6506_s3 + $0x168] sm:$0xff]  ;;  %v898_v44 = vld [vmem:[%s6506_s3 + $0xf0] sm:$0xff] }
  0x76   :  { %3400 = vmatprep.subr.bf16.mxu0 %v3399_v54  ;;  %v3451_v54 = vpack.c.bf16 %v889_v49, %v888_v48 }
  0x77   :  { %3430 = vmatpush3.bf16.msra.mxu1 %v3429_v53  ;;  %v3481_v53 = vpack.c.bf16 %v903_v47, %v902_v45  ;;  %v899_v45 = vld [vmem:[%s6506_s3 + $0xf8] sm:$0xff] }
  0x78   :  { %3432 = vmatprep.subr.bf16.mxu1 %v3431_v58  ;;  %v3483_v58 = vpack.c.bf16 %v921_v51, %v920_v50  ;;  %v931_v47 = vld [vmem:[%s6506_s3 + $0x1f8] sm:$0xff]  ;;  %v3471_v50 = vpack.c.bf16 %v899_v45, %v898_v44  ;;  %v882_v51 = vld [vmem:[%s6506_s3 + $0x70] sm:$0xff]  ;;  %v956_v44 = vld [vmem:[%s6506_s3 + $0x2c0] sm:$0xff] }
  0x79   :  { %3402 = vmatpush3.bf16.msra.mxu0 %v3401_v0  ;;  %v3453_v0 = vpack.c.bf16 %v873_v56, %v872_v55  ;;  %v915_v55 = vld [vmem:[%s6506_s3 + $0x178] sm:$0xff]  ;;  %v948_v56 = vld [vmem:[%s6506_s3 + $0x280] sm:$0xff]  ;;  %v957_v45 = vld [vmem:[%s6506_s3 + $0x2c8] sm:$0xff] }
  0x7a   :  { %3404 = vmatprep.subr.bf16.mxu0 %v3403_v2  ;;  %v3455_v2 = vpack.c.bf16 %v891_v61, %v890_v60 }
  0x7b   :  { %3434 = vmatpush3.bf16.msra.mxu1 %v3433_v1  ;;  %v3485_v1 = vpack.c.bf16 %v905_v59, %v904_v57  ;;  %v949_v57 = vld [vmem:[%s6506_s3 + $0x288] sm:$0xff] }
  0x7c   :  { %3436 = vmatprep.subr.bf16.mxu1 %v3435_v6  ;;  %v892_v6 = vld [vmem:[%s6506_s3 + $0xc0] sm:$0xff]  ;;  %v981_v59 = vld [vmem:[%s6506_s3 + $0x388] sm:$0xff] }
  0x7d   :  { %3406 = vmatpush3.bf16.msra.mxu0 %v3405_v12  ;;  %v3459_v12 = vpack.c.bf16 %v893_v7, %v892_v6 }
  0x7e   :  { %3408 = vmatprep.subr.bf16.mxu0 %v3407_v14  ;;  %v877_v14 = vld [vmem:[%s6506_s3 + $0x48] sm:$0xff] }
  0x7f   :  { %3438 = vmatpush3.bf16.msra.mxu1 %v3437_v13  ;;  %v876_v13 = vld [vmem:[%s6506_s3 + $0x40] sm:$0xff] }
  0x80   :  { %3440 = vmatprep.subr.bf16.mxu1 %v3439_v19  ;;  %v894_v19 = vld [vmem:[%s6506_s3 + $0xd0] sm:$0xff]  ;;  %v3461_v24 = vpack.c.bf16 %v877_v14, %v876_v13  ;;  %v967_v13 = vld [vmem:[%s6506_s3 + $0x318] sm:$0xff]  ;;  %v952_v14 = vld [vmem:[%s6506_s3 + $0x2a0] sm:$0xff] }
  0x81   :  { %3410 = vmatpush3.bf16.msra.mxu0 %v3409_v26  ;;  %v3463_v26 = vpack.c.bf16 %v895_v20, %v894_v19  ;;  %v985_v19 = vld [vmem:[%s6506_s3 + $0x3a8] sm:$0xff]  ;;  %v3959_v20 = vld [vmem:[%s6505_s0 + $0x10] sm:$0xff] }
  0x82   :  { %3444 = vmatprep.subr.bf16.mxu0 %v3443_v28  ;;  %v879_v28 = vld [vmem:[%s6506_s3 + $0x58] sm:$0xff] }
  0x83   :  { %3442 = vmatpush3.bf16.msra.mxu1 %v3441_v27  ;;  %v878_v27 = vld [vmem:[%s6506_s3 + $0x50] sm:$0xff] }
  0x84   :  { %3476 = vmatprep.subr.bf16.mxu1 %v3475_v32  ;;  %793 = vmatmul.mubr.f32.vlgmr.msra.gmra.mrb[6].mxu0 %v41_v38  ;;  %v896_v32 = vld [vmem:[%s6506_s3 + $0xe0] sm:$0xff]  ;;  %v3465_v36 = vpack.c.bf16 %v879_v28, %v878_v27  ;;  %v3547_v28 = vpack.c.bf16 %v985_v19, %v984_v18  ;;  %v995_v18 = vld [vmem:[%s6506_s3 + $0x3f8] sm:$0xff] }
  0x85   :  { %3446 = vmatpush3.bf16.msra.mxu0 %v3445_v39  ;;  %1195 = vmatprep.mubr.f32.mxu0 %v4189_v17  ;;  %v874_v17 = vld [vmem:[%s6506_s3 + $0x30] sm:$0xff]  ;;  %v3467_v38 = vpack.c.bf16 %v897_v33, %v896_v32  ;;  %v880_v39 = vld [vmem:[%s6506_s3 + $0x60] sm:$0xff]  ;;  %v3960_v32 = vld [vmem:[%s6505_s0 + $0x28] sm:$0xff] }
  0x86   :  { %863 = vmatmul.mubr.f32.vlgmr.msra.gmra.mrb[6].mxu1 %v43_v40  ;;  %3448 = vmatprep.subr.bf16.mxu0 %v3447_v42  ;;  %v3457_v10 = vpack.c.bf16 %v875_v3, %v874_v17  ;;  %v881_v40 = vld [vmem:[%s6506_s3 + $0x68] sm:$0xff]  ;;  %v3499_v42 = vpack.c.bf16 %v929_v35, %v928_v34  ;;  %v950_v3 = vld [vmem:[%s6506_s3 + $0x290] sm:$0xff]  ;;  %v968_v27 = vld [vmem:[%s6506_s3 + $0x320] sm:$0xff] }
  0x87   :  { %3478 = vmatpush3.bf16.msra.mxu1 %v3477_v41  ;;  %1265 = vmatprep.mubr.f32.mxu1 %v4201_v21  ;;  %v3487_v21 = vpack.c.bf16 %v923_v63, %v922_v62  ;;  %v912_v41 = vld [vmem:[%s6506_s3 + $0x160] sm:$0xff]  ;;  %v3469_v48 = vpack.c.bf16 %v881_v40, %v880_v39  ;;  %v3507_v62 = vpack.c.bf16 %v949_v57, %v948_v56  ;;  %v965_v17 = vld [vmem:[%s6506_s3 + $0x308] sm:$0xff]  ;;  %v986_v33 = vld [vmem:[%s6506_s3 + $0x3b0] sm:$0xff] }
  0x88   :  { %3480 = vmatprep.subr.bf16.mxu1 %v3479_v46  ;;  %v930_v46 = vld [vmem:[%s6506_s3 + $0x1f0] sm:$0xff]  ;;  %v3501_v49 = vpack.c.bf16 %v913_v43, %v912_v41  ;;  %v932_v63 = vld [vmem:[%s6506_s3 + $0x200] sm:$0xff]  ;;  %v3511_v8 = vpack.c.bf16 %v951_v4, %v950_v3  ;;  %v987_v34 = vld [vmem:[%s6506_s3 + $0x3b8] sm:$0xff] }
  0x89   :  { %3450 = vmatpush3.bf16.msra.mxu0 %v3449_v52  ;;  %v883_v52 = vld [vmem:[%s6506_s3 + $0x78] sm:$0xff]  ;;  %v938_v39 = vld [vmem:[%s6506_s3 + $0x230] sm:$0xff]  ;;  %v960_v3 = vld [vmem:[%s6506_s3 + $0x2e0] sm:$0xff] }
  0x8a   :  { %3452 = vmatprep.subr.bf16.mxu0 %v3451_v54  ;;  %v3503_v54 = vpack.c.bf16 %v931_v47, %v930_v46  ;;  %v3473_v60 = vpack.c.bf16 %v883_v52, %v882_v51  ;;  %v3961_v35 = vld [vmem:[%s6505_s0 + $0x38] sm:$0xff]  ;;  %v970_v41 = vld [vmem:[%s6506_s3 + $0x330] sm:$0xff]  ;;  %v988_v46 = vld [vmem:[%s6506_s3 + $0x3c0] sm:$0xff] }
  0x8b   :  { %3482 = vmatpush3.bf16.msra.mxu1 %v3481_v53  ;;  %v914_v53 = vld [vmem:[%s6506_s3 + $0x170] sm:$0xff]  ;;  %v939_v40 = vld [vmem:[%s6506_s3 + $0x238] sm:$0xff]  ;;  %v989_v47 = vld [vmem:[%s6506_s3 + $0x3c8] sm:$0xff] }
  0x8c   :  { %3484 = vmatprep.subr.bf16.mxu1 %v3483_v58  ;;  %v980_v58 = vld [vmem:[%s6506_s3 + $0x380] sm:$0xff]  ;;  %v3505_v61 = vpack.c.bf16 %v915_v55, %v914_v53  ;;  %v971_v43 = vld [vmem:[%s6506_s3 + $0x338] sm:$0xff]  ;;  %v941_v52 = vld [vmem:[%s6506_s3 + $0x248] sm:$0xff] }
  0x8d   :  { %3454 = vmatpush3.bf16.msra.mxu0 %v3453_v0  ;;  %v933_v0 = vld [vmem:[%s6506_s3 + $0x208] sm:$0xff]  ;;  %v940_v51 = vld [vmem:[%s6506_s3 + $0x240] sm:$0xff]  ;;  %v958_v56 = vld [vmem:[%s6506_s3 + $0x2d0] sm:$0xff] }
  0x8e   :  { %3456 = vmatprep.subr.bf16.mxu0 %v3455_v2  ;;  %v3539_v2 = vpack.c.bf16 %v981_v59, %v980_v58  ;;  %v3509_v6 = vpack.c.bf16 %v933_v0, %v932_v63  ;;  %v972_v53 = vld [vmem:[%s6506_s3 + $0x340] sm:$0xff]  ;;  %v973_v55 = vld [vmem:[%s6506_s3 + $0x348] sm:$0xff]  ;;  %v959_v57 = vld [vmem:[%s6506_s3 + $0x2d8] sm:$0xff] }
  0x8f   :  { %3486 = vmatpush3.bf16.msra.mxu1 %v3485_v1  ;;  %v964_v1 = vld [vmem:[%s6506_s3 + $0x300] sm:$0xff]  ;;  %v990_v58 = vld [vmem:[%s6506_s3 + $0x3d0] sm:$0xff]  ;;  %v991_v59 = vld [vmem:[%s6506_s3 + $0x3d8] sm:$0xff] }
  0x90   :  { %3488 = vmatprep.subr.bf16.mxu1 %v3487_v21  ;;  %v982_v21 = vld [vmem:[%s6506_s3 + $0x390] sm:$0xff]  ;;  %v3541_v7 = vpack.c.bf16 %v965_v17, %v964_v1  ;;  %v943_v0 = vld [vmem:[%s6506_s3 + $0x258] sm:$0xff]  ;;  %v961_v4 = vld [vmem:[%s6506_s3 + $0x2e8] sm:$0xff] }
  0x91   :  { %3458 = vmatpush3.bf16.msra.mxu0 %v3457_v10  ;;  %v935_v10 = vld [vmem:[%s6506_s3 + $0x218] sm:$0xff]  ;;  %v942_v63 = vld [vmem:[%s6506_s3 + $0x250] sm:$0xff] }
  0x92   :  { %3460 = vmatprep.subr.bf16.mxu0 %v3459_v12  ;;  %v3543_v12 = vpack.c.bf16 %v983_v5, %v982_v21  ;;  %v3513_v22 = vpack.c.bf16 %v935_v10, %v934_v9  ;;  %v974_v1 = vld [vmem:[%s6506_s3 + $0x350] sm:$0xff]  ;;  %v975_v17 = vld [vmem:[%s6506_s3 + $0x358] sm:$0xff]  ;;  %v992_v21 = vld [vmem:[%s6506_s3 + $0x3e0] sm:$0xff] }
  0x93   :  { %3490 = vmatpush3.bf16.msra.mxu1 %v3489_v11  ;;  %v966_v11 = vld [vmem:[%s6506_s3 + $0x310] sm:$0xff]  ;;  %v993_v5 = vld [vmem:[%s6506_s3 + $0x3e8] sm:$0xff]  ;;  %v944_v9 = vld [vmem:[%s6506_s3 + $0x260] sm:$0xff] }
  0x94   :  { %3492 = vmatprep.subr.bf16.mxu1 %v3491_v16  ;;  %v3958_v16 = vld [vmem:[%s6505_s0] sm:$0xff]  ;;  %v3545_v23 = vpack.c.bf16 %v967_v13, %v966_v11  ;;  %v945_v10 = vld [vmem:[%s6506_s3 + $0x268] sm:$0xff] }
  0x95   :  { %3462 = vmatpush3.bf16.msra.mxu0 %v3461_v24  ;;  %v3515_v24 = vpack.c.bf16 %v953_v15, %v952_v14  ;;  %v976_v11 = vld [vmem:[%s6506_s3 + $0x360] sm:$0xff]  ;;  %v977_v13 = vld [vmem:[%s6506_s3 + $0x368] sm:$0xff]  ;;  %v962_v14 = vld [vmem:[%s6506_s3 + $0x2f0] sm:$0xff]  ;;  %v3533_v19 = vpack.c.bf16 %v945_v10, %v944_v9 }
  0x96   :  { %3464 = vmatprep.subr.bf16.mxu0 %v3463_v26  ;;  %v937_v26 = vld [vmem:[%s6506_s3 + $0x228] sm:$0xff]  ;;  %v963_v15 = vld [vmem:[%s6506_s3 + $0x2f8] sm:$0xff]  ;;  %v1002_v9 = vld [vmem:[%s6506_s3 + $0x430] sm:$0xff] }
  0x97   :  { %3494 = vmatpush3.bf16.msra.mxu1 %v3493_v25  ;;  %v936_v25 = vld [vmem:[%s6506_s3 + $0x220] sm:$0xff]  ;;  %v1003_v10 = vld [vmem:[%s6506_s3 + $0x438] sm:$0xff] }
  0x98   :  { %3496 = vmatprep.subr.bf16.mxu1 %v3495_v30  ;;  %v954_v30 = vld [vmem:[%s6506_s3 + $0x2b0] sm:$0xff] }
  0x99   :  { %3466 = vmatpush3.bf16.msra.mxu0 %v3465_v36  ;;  %v3517_v36 = vpack.c.bf16 %v937_v26, %v936_v25  ;;  %v978_v25 = vld [vmem:[%s6506_s3 + $0x370] sm:$0xff] }
  0x9a   :  { %3468 = vmatprep.subr.bf16.mxu0 %v3467_v38  ;;  %v3519_v38 = vpack.c.bf16 %v955_v31, %v954_v30  ;;  %v1044_v30 = vld [vmem:[%s6506_s3 + $0x580] sm:$0xff]  ;;  %v1045_v31 = vld [vmem:[%s6506_s3 + $0x588] sm:$0xff] }
  0x9b   :  { %3498 = vmatpush3.bf16.msra.mxu1 %v3497_v37  ;;  %v3549_v37 = vpack.c.bf16 %v969_v29, %v968_v27  ;;  %v979_v27 = vld [vmem:[%s6506_s3 + $0x378] sm:$0xff]  ;;  %v1013_v29 = vld [vmem:[%s6506_s3 + $0x488] sm:$0xff] }
  0x9c   :  { %3500 = vmatprep.subr.bf16.mxu1 %v3499_v42  ;;  %v3551_v42 = vpack.c.bf16 %v987_v34, %v986_v33  ;;  %v3569_v33 = vpack.c.bf16 %v979_v27, %v978_v25  ;;  %v1036_v25 = vld [vmem:[%s6506_s3 + $0x540] sm:$0xff]  ;;  %v1037_v27 = vld [vmem:[%s6506_s3 + $0x548] sm:$0xff] }
  0x9d   :  { %3470 = vmatpush3.bf16.msra.mxu0 %v3469_v48  ;;  %v3521_v48 = vpack.c.bf16 %v939_v40, %v938_v39  ;;  %v1029_v39 = vld [vmem:[%s6506_s3 + $0x508] sm:$0xff]  ;;  %v1014_v40 = vld [vmem:[%s6506_s3 + $0x490] sm:$0xff] }
  0x9e   :  { %3472 = vmatprep.subr.bf16.mxu0 %v3471_v50  ;;  %v3523_v50 = vpack.c.bf16 %v957_v45, %v956_v44 }
  0x9f   :  { %3502 = vmatpush3.bf16.msra.mxu1 %v3501_v49  ;;  %v3553_v49 = vpack.c.bf16 %v971_v43, %v970_v41  ;;  %v1015_v41 = vld [vmem:[%s6506_s3 + $0x498] sm:$0xff] }
  0xa0   :  { %3504 = vmatprep.subr.bf16.mxu1 %v3503_v54  ;;  %v3555_v54 = vpack.c.bf16 %v989_v47, %v988_v46  ;;  %v1047_v43 = vld [vmem:[%s6506_s3 + $0x598] sm:$0xff]  ;;  %v3575_v46 = vpack.c.bf16 %v1015_v41, %v1014_v40  ;;  %v998_v47 = vld [vmem:[%s6506_s3 + $0x410] sm:$0xff]  ;;  %v1024_v40 = vld [vmem:[%s6506_s3 + $0x4e0] sm:$0xff] }
  0xa1   :  { %3474 = vmatpush3.bf16.msra.mxu0 %v3473_v60  ;;  %v3525_v60 = vpack.c.bf16 %v941_v52, %v940_v51  ;;  %v1031_v51 = vld [vmem:[%s6506_s3 + $0x518] sm:$0xff]  ;;  %v1016_v52 = vld [vmem:[%s6506_s3 + $0x4a0] sm:$0xff]  ;;  %v1025_v41 = vld [vmem:[%s6506_s3 + $0x4e8] sm:$0xff] }
  0xa2   :  { %3508 = vmatprep.subr.bf16.mxu0 %v3507_v62  ;;  %v3527_v62 = vpack.c.bf16 %v959_v57, %v958_v56  ;;  %v1049_v56 = vld [vmem:[%s6506_s3 + $0x5a8] sm:$0xff]  ;;  %v3963_v57 = vld [vmem:[%s6505_s0 + $0x30] sm:$0xff] }
  0xa3   :  { %3506 = vmatpush3.bf16.msra.mxu1 %v3505_v61  ;;  %v3557_v61 = vpack.c.bf16 %v973_v55, %v972_v53  ;;  %v1017_v53 = vld [vmem:[%s6506_s3 + $0x4a8] sm:$0xff]  ;;  %v1048_v55 = vld [vmem:[%s6506_s3 + $0x5a0] sm:$0xff] }
  0xa4   :  { %3540 = vmatprep.subr.bf16.mxu1 %v3539_v2  ;;  %1196 = vmatmul.mubr.f32.vlgmr.msra.gmra.mrb[8].mxu0 %v3958_v16  ;;  %v3559_v2 = vpack.c.bf16 %v991_v59, %v990_v58  ;;  %v994_v16 = vld [vmem:[%s6506_s3 + $0x3f0] sm:$0xff] }
  0xa5   :  { %3510 = vmatpush3.bf16.msra.mxu0 %v3509_v6  ;;  %1335 = vmatprep.mubr.f32.mxu0 %v3960_v32  ;;  %v3529_v6 = vpack.c.bf16 %v943_v0, %v942_v63  ;;  %v3567_v26 = vpack.c.bf16 %v995_v18, %v994_v16  ;;  %v1032_v63 = vld [vmem:[%s6506_s3 + $0x520] sm:$0xff]  ;;  %v3611_v0 = vpack.c.bf16 %v1049_v56, %v1048_v55  ;;  %v1053_v18 = vld [vmem:[%s6506_s3 + $0x5c8] sm:$0xff]  ;;  %v1059_v55 = vld [vmem:[%s6506_s3 + $0x5f8] sm:$0xff] }
  0xa6   :  { %1266 = vmatmul.mubr.f32.vlgmr.msra.gmra.mrb[8].mxu1 %v3959_v20  ;;  %3512 = vmatprep.subr.bf16.mxu0 %v3511_v8  ;;  %v3531_v8 = vpack.c.bf16 %v961_v4, %v960_v3  ;;  %v3565_v20 = vpack.c.bf16 %v977_v13, %v976_v11  ;;  %v3964_v3 = vld [vmem:[%s6505_s0 + $0x48] sm:$0xff]  ;;  %v1050_v4 = vld [vmem:[%s6506_s3 + $0x5b0] sm:$0xff]  ;;  %v1035_v13 = vld [vmem:[%s6506_s3 + $0x538] sm:$0xff] }
  0xa7   :  { %3542 = vmatpush3.bf16.msra.mxu1 %v3541_v7  ;;  %1405 = vmatprep.mubr.f32.mxu1 %v3961_v35  ;;  %v3561_v7 = vpack.c.bf16 %v975_v17, %v974_v1  ;;  %v996_v35 = vld [vmem:[%s6506_s3 + $0x400] sm:$0xff]  ;;  %v1033_v1 = vld [vmem:[%s6506_s3 + $0x528] sm:$0xff]  ;;  %v1019_v17 = vld [vmem:[%s6506_s3 + $0x4b8] sm:$0xff] }
  0xa8   :  { %3544 = vmatprep.subr.bf16.mxu1 %v3543_v12  ;;  %v3563_v12 = vpack.c.bf16 %v993_v5, %v992_v21  ;;  %v1051_v21 = vld [vmem:[%s6506_s3 + $0x5b8] sm:$0xff]  ;;  %v1034_v11 = vld [vmem:[%s6506_s3 + $0x530] sm:$0xff]  ;;  %v1052_v16 = vld [vmem:[%s6506_s3 + $0x5c0] sm:$0xff] }
  0xa9   :  { %3514 = vmatpush3.bf16.msra.mxu0 %v3513_v22  ;;  %v3535_v22 = vpack.c.bf16 %v963_v15, %v962_v14  ;;  %v3965_v5 = vld [vmem:[%s6505_s0 + $0x58] sm:$0xff]  ;;  %v1020_v14 = vld [vmem:[%s6506_s3 + $0x4c0] sm:$0xff]  ;;  %v1021_v15 = vld [vmem:[%s6506_s3 + $0x4c8] sm:$0xff] }
  0xaa   :  { %3516 = vmatprep.subr.bf16.mxu0 %v3515_v24  ;;  %v947_v24 = vld [vmem:[%s6506_s3 + $0x278] sm:$0xff] }
  0xab   :  { %3546 = vmatpush3.bf16.msra.mxu1 %v3545_v23  ;;  %v946_v23 = vld [vmem:[%s6506_s3 + $0x270] sm:$0xff] }
  0xac   :  { %3548 = vmatprep.subr.bf16.mxu1 %v3547_v28  ;;  %v1012_v28 = vld [vmem:[%s6506_s3 + $0x480] sm:$0xff]  ;;  %v3537_v32 = vpack.c.bf16 %v947_v24, %v946_v23  ;;  %v1005_v24 = vld [vmem:[%s6506_s3 + $0x448] sm:$0xff] }
  0xad   :  { %3518 = vmatpush3.bf16.msra.mxu0 %v3517_v36  ;;  %v3571_v34 = vpack.c.bf16 %v1013_v29, %v1012_v28  ;;  %v997_v36 = vld [vmem:[%s6506_s3 + $0x408] sm:$0xff]  ;;  %v1004_v23 = vld [vmem:[%s6506_s3 + $0x440] sm:$0xff]  ;;  %v1022_v28 = vld [vmem:[%s6506_s3 + $0x4d0] sm:$0xff] }
  0xae   :  { %3520 = vmatprep.subr.bf16.mxu0 %v3519_v38  ;;  %v3603_v38 = vpack.c.bf16 %v1045_v31, %v1044_v30  ;;  %v3573_v44 = vpack.c.bf16 %v997_v36, %v996_v35  ;;  %v1023_v29 = vld [vmem:[%s6506_s3 + $0x4d8] sm:$0xff]  ;;  %v1054_v30 = vld [vmem:[%s6506_s3 + $0x5d0] sm:$0xff] }
  0xaf   :  { %3550 = vmatpush3.bf16.msra.mxu1 %v3549_v37  ;;  %v1028_v37 = vld [vmem:[%s6506_s3 + $0x500] sm:$0xff]  ;;  %v1055_v31 = vld [vmem:[%s6506_s3 + $0x5d8] sm:$0xff]  ;;  %v1006_v35 = vld [vmem:[%s6506_s3 + $0x450] sm:$0xff] }
  0xb0   :  { %3552 = vmatprep.subr.bf16.mxu1 %v3551_v42  ;;  %v1046_v42 = vld [vmem:[%s6506_s3 + $0x590] sm:$0xff]  ;;  %v3605_v45 = vpack.c.bf16 %v1029_v39, %v1028_v37  ;;  %v1007_v36 = vld [vmem:[%s6506_s3 + $0x458] sm:$0xff] }
  0xb1   :  { %3522 = vmatpush3.bf16.msra.mxu0 %v3521_v48  ;;  %v999_v48 = vld [vmem:[%s6506_s3 + $0x418] sm:$0xff]  ;;  %v1038_v37 = vld [vmem:[%s6506_s3 + $0x550] sm:$0xff] }
  0xb2   :  { %3524 = vmatprep.subr.bf16.mxu0 %v3523_v50  ;;  %v3607_v50 = vpack.c.bf16 %v1047_v43, %v1046_v42  ;;  %v3577_v58 = vpack.c.bf16 %v999_v48, %v998_v47  ;;  %v1039_v39 = vld [vmem:[%s6506_s3 + $0x558] sm:$0xff]  ;;  %v1056_v42 = vld [vmem:[%s6506_s3 + $0x5e0] sm:$0xff]  ;;  %v1057_v43 = vld [vmem:[%s6506_s3 + $0x5e8] sm:$0xff] }
  0xb3   :  { %3554 = vmatpush3.bf16.msra.mxu1 %v3553_v49  ;;  %v1030_v49 = vld [vmem:[%s6506_s3 + $0x510] sm:$0xff]  ;;  %v1008_v47 = vld [vmem:[%s6506_s3 + $0x460] sm:$0xff]  ;;  %v1009_v48 = vld [vmem:[%s6506_s3 + $0x468] sm:$0xff] }
  0xb4   :  { %3556 = vmatprep.subr.bf16.mxu1 %v3555_v54  ;;  %v3962_v54 = vld [vmem:[%s6505_s0 + $0x20] sm:$0xff]  ;;  %v3609_v59 = vpack.c.bf16 %v1031_v51, %v1030_v49  ;;  %v1041_v51 = vld [vmem:[%s6506_s3 + $0x568] sm:$0xff]  ;;  %v3597_v56 = vpack.c.bf16 %v1009_v48, %v1008_v47  ;;  %v1066_v47 = vld [vmem:[%s6506_s3 + $0x630] sm:$0xff] }
  0xb5   :  { %3526 = vmatpush3.bf16.msra.mxu0 %v3525_v60  ;;  %v3579_v60 = vpack.c.bf16 %v1017_v53, %v1016_v52  ;;  %v1040_v49 = vld [vmem:[%s6506_s3 + $0x560] sm:$0xff]  ;;  %v1026_v52 = vld [vmem:[%s6506_s3 + $0x4f0] sm:$0xff]  ;;  %v1027_v53 = vld [vmem:[%s6506_s3 + $0x4f8] sm:$0xff] }
  0xb6   :  { %3528 = vmatprep.subr.bf16.mxu0 %v3527_v62  ;;  %v1001_v62 = vld [vmem:[%s6506_s3 + $0x428] sm:$0xff]  ;;  %v1067_v48 = vld [vmem:[%s6506_s3 + $0x638] sm:$0xff] }
  0xb7   :  { %3558 = vmatpush3.bf16.msra.mxu1 %v3557_v61  ;;  %v1000_v61 = vld [vmem:[%s6506_s3 + $0x420] sm:$0xff] }
  0xb8   :  { %3560 = vmatprep.subr.bf16.mxu1 %v3559_v2  ;;  %v1018_v2 = vld [vmem:[%s6506_s3 + $0x4b0] sm:$0xff] }
  0xb9   :  { %3530 = vmatpush3.bf16.msra.mxu0 %v3529_v6  ;;  %v3581_v6 = vpack.c.bf16 %v1001_v62, %v1000_v61  ;;  %v1042_v61 = vld [vmem:[%s6506_s3 + $0x570] sm:$0xff] }
  0xba   :  { %3532 = vmatprep.subr.bf16.mxu0 %v3531_v8  ;;  %v3583_v8 = vpack.c.bf16 %v1019_v17, %v1018_v2  ;;  %v1108_v2 = vld [vmem:[%s6506_s3 + $0x780] sm:$0xff]  ;;  %v1109_v17 = vld [vmem:[%s6506_s3 + $0x788] sm:$0xff] }
  0xbb   :  { %3562 = vmatpush3.bf16.msra.mxu1 %v3561_v7  ;;  %v3613_v7 = vpack.c.bf16 %v1033_v1, %v1032_v63  ;;  %v1043_v63 = vld [vmem:[%s6506_s3 + $0x578] sm:$0xff]  ;;  %v1077_v1 = vld [vmem:[%s6506_s3 + $0x688] sm:$0xff] }
  0xbc   :  { %3564 = vmatprep.subr.bf16.mxu1 %v3563_v12  ;;  %v3615_v12 = vpack.c.bf16 %v1051_v21, %v1050_v4  ;;  %v3633_v4 = vpack.c.bf16 %v1043_v63, %v1042_v61  ;;  %v1100_v61 = vld [vmem:[%s6506_s3 + $0x740] sm:$0xff]  ;;  %v1101_v63 = vld [vmem:[%s6506_s3 + $0x748] sm:$0xff] }
  0xbd   :  { %3534 = vmatpush3.bf16.msra.mxu0 %v3533_v19  ;;  %v3585_v19 = vpack.c.bf16 %v1003_v10, %v1002_v9  ;;  %v1093_v9 = vld [vmem:[%s6506_s3 + $0x708] sm:$0xff]  ;;  %v1078_v10 = vld [vmem:[%s6506_s3 + $0x690] sm:$0xff] }
  0xbe   :  { %3536 = vmatprep.subr.bf16.mxu0 %v3535_v22  ;;  %v3587_v22 = vpack.c.bf16 %v1021_v15, %v1020_v14 }
  0xbf   :  { %3566 = vmatpush3.bf16.msra.mxu1 %v3565_v20  ;;  %v3617_v20 = vpack.c.bf16 %v1035_v13, %v1034_v11  ;;  %v1079_v11 = vld [vmem:[%s6506_s3 + $0x698] sm:$0xff] }
  0xc0   :  { %3568 = vmatprep.subr.bf16.mxu1 %v3567_v26  ;;  %v3619_v26 = vpack.c.bf16 %v1053_v18, %v1052_v16  ;;  %v1111_v13 = vld [vmem:[%s6506_s3 + $0x798] sm:$0xff]  ;;  %v3639_v16 = vpack.c.bf16 %v1079_v11, %v1078_v10  ;;  %v1062_v18 = vld [vmem:[%s6506_s3 + $0x610] sm:$0xff]  ;;  %v1088_v10 = vld [vmem:[%s6506_s3 + $0x6e0] sm:$0xff] }
  0xc1   :  { %3538 = vmatpush3.bf16.msra.mxu0 %v3537_v32  ;;  %v3589_v32 = vpack.c.bf16 %v1005_v24, %v1004_v23  ;;  %v1095_v23 = vld [vmem:[%s6506_s3 + $0x718] sm:$0xff]  ;;  %v1080_v24 = vld [vmem:[%s6506_s3 + $0x6a0] sm:$0xff]  ;;  %v1089_v11 = vld [vmem:[%s6506_s3 + $0x6e8] sm:$0xff] }
  0xc2   :  { %3572 = vmatprep.subr.bf16.mxu0 %v3571_v34  ;;  %v3591_v34 = vpack.c.bf16 %v1023_v29, %v1022_v28  ;;  %v1113_v28 = vld [vmem:[%s6506_s3 + $0x7a8] sm:$0xff]  ;;  %v3967_v29 = vld [vmem:[%s6505_s0 + $0x50] sm:$0xff] }
  0xc3   :  { %3570 = vmatpush3.bf16.msra.mxu1 %v3569_v33  ;;  %v3621_v33 = vpack.c.bf16 %v1037_v27, %v1036_v25  ;;  %v1081_v25 = vld [vmem:[%s6506_s3 + $0x6a8] sm:$0xff]  ;;  %v1112_v27 = vld [vmem:[%s6506_s3 + $0x7a0] sm:$0xff] }
  0xc4   :  { %3604 = vmatprep.subr.bf16.mxu1 %v3603_v38  ;;  %1336 = vmatmul.mubr.f32.vlgmr.msra.gmra.mrb[10].mxu0 %v3962_v54  ;;  %v3623_v38 = vpack.c.bf16 %v1055_v31, %v1054_v30  ;;  %v1058_v54 = vld [vmem:[%s6506_s3 + $0x5f0] sm:$0xff] }
  0xc5   :  { %3574 = vmatpush3.bf16.msra.mxu0 %v3573_v44  ;;  %1475 = vmatprep.mubr.f32.mxu0 %v3964_v3  ;;  %v3593_v44 = vpack.c.bf16 %v1007_v36, %v1006_v35  ;;  %v3631_v62 = vpack.c.bf16 %v1059_v55, %v1058_v54  ;;  %v1096_v35 = vld [vmem:[%s6506_s3 + $0x720] sm:$0xff]  ;;  %v3675_v36 = vpack.c.bf16 %v1113_v28, %v1112_v27  ;;  %v1117_v55 = vld [vmem:[%s6506_s3 + $0x7c8] sm:$0xff] }
  0xc6   :  { %1406 = vmatmul.mubr.f32.vlgmr.msra.gmra.mrb[10].mxu1 %v3963_v57  ;;  %3576 = vmatprep.subr.bf16.mxu0 %v3575_v46  ;;  %v3595_v46 = vpack.c.bf16 %v1025_v41, %v1024_v40  ;;  %v3629_v57 = vpack.c.bf16 %v1041_v51, %v1040_v49  ;;  %v3968_v40 = vld [vmem:[%s6505_s0 + $0x68] sm:$0xff]  ;;  %v1114_v41 = vld [vmem:[%s6506_s3 + $0x7b0] sm:$0xff]  ;;  %v1099_v51 = vld [vmem:[%s6506_s3 + $0x738] sm:$0xff] }
  0xc7   :  { %3606 = vmatpush3.bf16.msra.mxu1 %v3605_v45  ;;  %1545 = vmatprep.mubr.f32.mxu1 %v3965_v5  ;;  %v3625_v45 = vpack.c.bf16 %v1039_v39, %v1038_v37  ;;  %v1060_v5 = vld [vmem:[%s6506_s3 + $0x600] sm:$0xff]  ;;  %v1097_v37 = vld [vmem:[%s6506_s3 + $0x728] sm:$0xff]  ;;  %v1083_v39 = vld [vmem:[%s6506_s3 + $0x6b8] sm:$0xff] }
  0xc8   :  { %3608 = vmatprep.subr.bf16.mxu1 %v3607_v50  ;;  %v3627_v50 = vpack.c.bf16 %v1057_v43, %v1056_v42  ;;  %v1115_v42 = vld [vmem:[%s6506_s3 + $0x7b8] sm:$0xff]  ;;  %v1098_v49 = vld [vmem:[%s6506_s3 + $0x730] sm:$0xff]  ;;  %v1116_v54 = vld [vmem:[%s6506_s3 + $0x7c0] sm:$0xff] }
  0xc9   :  { %3578 = vmatpush3.bf16.msra.mxu0 %v3577_v58  ;;  %v3599_v58 = vpack.c.bf16 %v1027_v53, %v1026_v52  ;;  %v3969_v43 = vld [vmem:[%s6505_s0 + $0x78] sm:$0xff]  ;;  %v1084_v52 = vld [vmem:[%s6506_s3 + $0x6c0] sm:$0xff]  ;;  %v1085_v53 = vld [vmem:[%s6506_s3 + $0x6c8] sm:$0xff] }
  0xca   :  { %3580 = vmatprep.subr.bf16.mxu0 %v3579_v60  ;;  %v1011_v60 = vld [vmem:[%s6506_s3 + $0x478] sm:$0xff]  ;;  %v2625_v27 = vld [vmem:[%s6507_s2] ss:$0 sm:$0xff] }
  0xcb   :  { %3610 = vmatpush3.bf16.msra.mxu1 %v3609_v59  ;;  %v1010_v59 = vld [vmem:[%s6506_s3 + $0x470] sm:$0xff] }
  0xcc   :  { %3612 = vmatprep.subr.bf16.mxu1 %v3611_v0  ;;  %v1076_v0 = vld [vmem:[%s6506_s3 + $0x680] sm:$0xff]  ;;  %v3601_v3 = vpack.c.bf16 %v1011_v60, %v1010_v59  ;;  %v1069_v60 = vld [vmem:[%s6506_s3 + $0x648] sm:$0xff] }
  0xcd   :  { %3582 = vmatpush3.bf16.msra.mxu0 %v3581_v6  ;;  %v3635_v21 = vpack.c.bf16 %v1077_v1, %v1076_v0  ;;  %v1061_v6 = vld [vmem:[%s6506_s3 + $0x608] sm:$0xff]  ;;  %v1068_v59 = vld [vmem:[%s6506_s3 + $0x640] sm:$0xff]  ;;  %v1086_v0 = vld [vmem:[%s6506_s3 + $0x6d0] sm:$0xff] }
  0xce   :  { %3584 = vmatprep.subr.bf16.mxu0 %v3583_v8  ;;  %v3667_v8 = vpack.c.bf16 %v1109_v17, %v1108_v2  ;;  %v3637_v14 = vpack.c.bf16 %v1061_v6, %v1060_v5  ;;  %v1087_v1 = vld [vmem:[%s6506_s3 + $0x6d8] sm:$0xff]  ;;  %v1118_v2 = vld [vmem:[%s6506_s3 + $0x7d0] sm:$0xff] }
  0xcf   :  { %3614 = vmatpush3.bf16.msra.mxu1 %v3613_v7  ;;  %v1092_v7 = vld [vmem:[%s6506_s3 + $0x700] sm:$0xff]  ;;  %v1119_v17 = vld [vmem:[%s6506_s3 + $0x7d8] sm:$0xff]  ;;  %v1070_v5 = vld [vmem:[%s6506_s3 + $0x650] sm:$0xff] }
  0xd0   :  { %3616 = vmatprep.subr.bf16.mxu1 %v3615_v12  ;;  %v1110_v12 = vld [vmem:[%s6506_s3 + $0x790] sm:$0xff]  ;;  %v3669_v15 = vpack.c.bf16 %v1093_v9, %v1092_v7  ;;  %v1071_v6 = vld [vmem:[%s6506_s3 + $0x658] sm:$0xff] }
  0xd1   :  { %3586 = vmatpush3.bf16.msra.mxu0 %v3585_v19  ;;  %v1063_v19 = vld [vmem:[%s6506_s3 + $0x618] sm:$0xff]  ;;  %v1102_v7 = vld [vmem:[%s6506_s3 + $0x750] sm:$0xff] }
  0xd2   :  { %3588 = vmatprep.subr.bf16.mxu0 %v3587_v22  ;;  %v3671_v22 = vpack.c.bf16 %v1111_v13, %v1110_v12  ;;  %v3641_v30 = vpack.c.bf16 %v1063_v19, %v1062_v18  ;;  %v1103_v9 = vld [vmem:[%s6506_s3 + $0x758] sm:$0xff]  ;;  %v1120_v12 = vld [vmem:[%s6506_s3 + $0x7e0] sm:$0xff]  ;;  %v1121_v13 = vld [vmem:[%s6506_s3 + $0x7e8] sm:$0xff] }
  0xd3   :  { %3618 = vmatpush3.bf16.msra.mxu1 %v3617_v20  ;;  %v1094_v20 = vld [vmem:[%s6506_s3 + $0x710] sm:$0xff]  ;;  %v1072_v18 = vld [vmem:[%s6506_s3 + $0x660] sm:$0xff]  ;;  %v1073_v19 = vld [vmem:[%s6506_s3 + $0x668] sm:$0xff] }
  0xd4   :  { %3620 = vmatprep.subr.bf16.mxu1 %v3619_v26  ;;  %v3966_v26 = vld [vmem:[%s6505_s0 + $0x40] sm:$0xff]  ;;  %v3673_v31 = vpack.c.bf16 %v1095_v23, %v1094_v20  ;;  %v3691_v23 = vpack.c.bf16 %v1121_v13, %v1120_v12  ;;  %v1746_v12 = vld [vmem:[%s6508_s6 + $0x188] sm:$0xff]  ;;  %v1732_v13 = vld [vmem:[%s6508_s6 + $0x118] sm:$0xff] }
  0xd5   :  { %3590 = vmatpush3.bf16.msra.mxu0 %v3589_v32  ;;  %v3643_v32 = vpack.c.bf16 %v1081_v25, %v1080_v24  ;;  %v1104_v20 = vld [vmem:[%s6506_s3 + $0x760] sm:$0xff]  ;;  %v1105_v24 = vld [vmem:[%s6506_s3 + $0x768] sm:$0xff]  ;;  %v1090_v25 = vld [vmem:[%s6506_s3 + $0x6f0] sm:$0xff] }
  0xd6   :  { %3592 = vmatprep.subr.bf16.mxu0 %v3591_v34  ;;  %v1065_v34 = vld [vmem:[%s6506_s3 + $0x628] sm:$0xff] }
  0xd7   :  { %3622 = vmatpush3.bf16.msra.mxu1 %v3621_v33  ;;  %v1064_v33 = vld [vmem:[%s6506_s3 + $0x620] sm:$0xff] }
  0xd8   :  { %3624 = vmatprep.subr.bf16.mxu1 %v3623_v38  ;;  %v1082_v38 = vld [vmem:[%s6506_s3 + $0x6b0] sm:$0xff] }
  0xd9   :  { %3594 = vmatpush3.bf16.msra.mxu0 %v3593_v44  ;;  %v3645_v44 = vpack.c.bf16 %v1065_v34, %v1064_v33  ;;  %v3661_v34 = vpack.c.bf16 %v1073_v19, %v1072_v18  ;;  %v1729_v18 = vld [vmem:[%s6508_s6 + $0x100] sm:$0xff] }
  0xda   :  { %3596 = vmatprep.subr.bf16.mxu0 %v3595_v46  ;;  %v3647_v46 = vpack.c.bf16 %v1083_v39, %v1082_v38  ;;  %v1074_v38 = vld [vmem:[%s6506_s3 + $0x670] sm:$0xff]  ;;  %v1075_v39 = vld [vmem:[%s6506_s3 + $0x678] sm:$0xff]  ;;  %v1745_v19 = vld [vmem:[%s6508_s6 + $0x180] sm:$0xff] }
  0xdb   :  { %3626 = vmatpush3.bf16.msra.mxu1 %v3625_v45  ;;  %v3677_v45 = vpack.c.bf16 %v1097_v37, %v1096_v35 }
  0xdc   :  { %3628 = vmatprep.subr.bf16.mxu1 %v3627_v50  ;;  %v3679_v50 = vpack.c.bf16 %v1115_v42, %v1114_v41  ;;  %v1106_v42 = vld [vmem:[%s6506_s3 + $0x770] sm:$0xff] }
  0xdd   :  { %3598 = vmatpush3.bf16.msra.mxu0 %v3597_v56  ;;  %v3649_v56 = vpack.c.bf16 %v1067_v48, %v1066_v47  ;;  %v3970_v47 = vld [vmem:[%s6505_s0 + $0x60] sm:$0xff]  ;;  %v3971_v48 = vld [vmem:[%s6505_s0 + $0x70] sm:$0xff] }
  0xde   :  { %3600 = vmatprep.subr.bf16.mxu0 %v3599_v58  ;;  %v3651_v58 = vpack.c.bf16 %v1085_v53, %v1084_v52 }
  0xdf   :  { %3630 = vmatpush3.bf16.msra.mxu1 %v3629_v57  ;;  %v3681_v57 = vpack.c.bf16 %v1099_v51, %v1098_v49 }
  0xe0   :  { %3632 = vmatprep.subr.bf16.mxu1 %v3631_v62  ;;  %v3683_v62 = vpack.c.bf16 %v1117_v55, %v1116_v54 }
  0xe1   :  { %3602 = vmatpush3.bf16.msra.mxu0 %v3601_v3  ;;  %v3653_v3 = vpack.c.bf16 %v1069_v60, %v1068_v59 }
  0xe2   :  { %3636 = vmatprep.subr.bf16.mxu0 %v3635_v21  ;;  %v3655_v21 = vpack.c.bf16 %v1087_v1, %v1086_v0  ;;  %v1698_v1 = vld [vmem:[%s6508_s6 + $0x8] sm:$0xff] }
  0xe3   :  { %3634 = vmatpush3.bf16.msra.mxu1 %v3633_v4  ;;  %v3685_v4 = vpack.c.bf16 %v1101_v63, %v1100_v61 }
  0xe4   :  { %3668 = vmatprep.subr.bf16.mxu1 %v3667_v8  ;;  %1476 = vmatmul.mubr.f32.vlgmr.msra.gmra.mrb[12].mxu0 %v3966_v26  ;;  %v3687_v8 = vpack.c.bf16 %v1119_v17, %v1118_v2  ;;  %v1091_v26 = vld [vmem:[%s6506_s3 + $0x6f8] sm:$0xff]  ;;  %v1714_v2 = vld [vmem:[%s6508_s6 + $0x88] sm:$0xff] }
  0xe5   :  { %3638 = vmatpush3.bf16.msra.mxu0 %v3637_v14  ;;  %1615 = vmatprep.mubr.f32.mxu0 %v3968_v40  ;;  %v3657_v14 = vpack.c.bf16 %v1071_v6, %v1070_v5  ;;  %v3663_v37 = vpack.c.bf16 %v1091_v26, %v1090_v25  ;;  %v1700_v17 = vld [vmem:[%s6508_s6 + $0x18] sm:$0xff]  ;;  %v1713_v5 = vld [vmem:[%s6508_s6 + $0x80] sm:$0xff]  ;;  %v1762_v25 = vld [vmem:[%s6508_s6 + $0x208] sm:$0xff] }
  0xe6   :  { %1546 = vmatmul.mubr.f32.vlgmr.msra.gmra.mrb[12].mxu1 %v3967_v29  ;;  %3640 = vmatprep.subr.bf16.mxu0 %v3639_v16  ;;  %v3659_v16 = vpack.c.bf16 %v1089_v11, %v1088_v10  ;;  %v1730_v10 = vld [vmem:[%s6508_s6 + $0x108] sm:$0xff] }
  0xe7   :  { %3670 = vmatpush3.bf16.msra.mxu1 %v3669_v15  ;;  %1685 = vmatprep.mubr.f32.mxu1 %v3969_v43  ;;  %v3689_v15 = vpack.c.bf16 %v1103_v9, %v1102_v7  ;;  %v1107_v43 = vld [vmem:[%s6506_s3 + $0x778] sm:$0xff]  ;;  %v1715_v9 = vld [vmem:[%s6508_s6 + $0x90] sm:$0xff]  ;;  %v1778_v26 = vld [vmem:[%s6508_s6 + $0x288] sm:$0xff] }
  0xe8   :  { %3672 = vmatprep.subr.bf16.mxu1 %v3671_v22 }
  0xe9   :  { %3642 = vmatpush3.bf16.msra.mxu0 %v3641_v30  ;;  %v1122_v30 = vld [vmem:[%s6506_s3 + $0x7f0] sm:$0xff] }
  0xea   :  { %3644 = vmatprep.subr.bf16.mxu0 %v3643_v32 }
  0xeb   :  { %3674 = vmatpush3.bf16.msra.mxu1 %v3673_v31  ;;  %v1123_v31 = vld [vmem:[%s6506_s3 + $0x7f8] sm:$0xff] }
  0xec   :  { %3676 = vmatprep.subr.bf16.mxu1 %v3675_v36  ;;  %v3693_v36 = vpack.c.bf16 %v1105_v24, %v1104_v20  ;;  %v3695_v41 = vpack.c.bf16 %v1123_v31, %v1122_v30  ;;  %v1731_v20 = vld [vmem:[%s6508_s6 + $0x110] sm:$0xff]  ;;  %v1780_v30 = vld [vmem:[%s6508_s6 + $0x298] sm:$0xff]  ;;  %v1761_v31 = vld [vmem:[%s6508_s6 + $0x200] sm:$0xff] }
  0xed   :  { %3646 = vmatpush3.bf16.msra.mxu0 %v3645_v44 }
  0xee   :  { %3648 = vmatprep.subr.bf16.mxu0 %v3647_v46  ;;  %v3697_v46 = vpack.c.bf16 %v1107_v43, %v1106_v42  ;;  %v1794_v43 = vld [vmem:[%s6508_s6 + $0x308] sm:$0xff] }
  0xef   :  { %3678 = vmatpush3.bf16.msra.mxu1 %v3677_v45  ;;  %v3665_v45 = vpack.c.bf16 %v1075_v39, %v1074_v38  ;;  %v1779_v38 = vld [vmem:[%s6508_s6 + $0x290] sm:$0xff] }
  0xf0   :  { %3680 = vmatprep.subr.bf16.mxu1 %v3679_v50 }
  0xf1   :  { %3650 = vmatpush3.bf16.msra.mxu0 %v3649_v56 }
  0xf2   :  { %3652 = vmatprep.subr.bf16.mxu0 %v3651_v58 }
  0xf3   :  { %3682 = vmatpush3.bf16.msra.mxu1 %v3681_v57 }
  0xf4   :  { %3684 = vmatprep.subr.bf16.mxu1 %v3683_v62 }
  0xf5   :  { %3654 = vmatpush3.bf16.msra.mxu0 %v3653_v3  ;;  %v3699_v3 = vpack.c.bf16 %v1714_v2, %v1698_v1  ;;  %v1827_v2 = vld [vmem:[%s6508_s6 + $0x410] sm:$0xff] }
  0xf6   :  { %3656 = vmatprep.subr.bf16.mxu0 %v3655_v21  ;;  %v1697_v21 = vld [vmem:[%s6508_s6] sm:$0xff] }
  0xf7   :  { %3686 = vmatpush3.bf16.msra.mxu1 %v3685_v4  ;;  %v2659_v22 = vpop.f32.mrb[0].mxu0  ;;  %v1716_v4 = vld [vmem:[%s6508_s6 + $0x98] sm:$0xff]  ;;  %v3701_v7 = vpack.c.bf16 %v1713_v5, %v1697_v21  ;;  %v1874_v21 = vld [vmem:[%s6508_s6 + $0x588] sm:$0xff] }
  0xf8   :  { %3688 = vmatprep.subr.bf16.mxu1 %v3687_v8  ;;  %v2660_v28 = vpop.f32.mrb[1].mxu0  ;;  %v3731_v6 = vpack.c.bf16 %v1716_v4, %v1700_v17  ;;  %v1699_v8 = vld [vmem:[%s6508_s6 + $0x10] sm:$0xff]  ;;  %v1858_v4 = vld [vmem:[%s6508_s6 + $0x508] sm:$0xff]  ;;  %v1860_v5 = vld [vmem:[%s6508_s6 + $0x518] sm:$0xff] }
  0xf9   :  { %v2694_v29 = vpop.f32.mrb[0].mxu1  ;;  %v2661_v32 = vadd.f32 %v2660_v28, %v2659_v22  ;;  %3658 = vmatpush3.bf16.msra.mxu0 %v3657_v14  ;;  %v3733_v11 = vpack.c.bf16 %v1715_v9, %v1699_v8  ;;  %v1748_v14 = vld [vmem:[%s6508_s6 + $0x198] sm:$0xff]  ;;  %v3705_v22 = vpack.c.bf16 %v1745_v19, %v1729_v18  ;;  %v1843_v17 = vld [vmem:[%s6508_s6 + $0x490] sm:$0xff]  ;;  %v1857_v8 = vld [vmem:[%s6508_s6 + $0x500] sm:$0xff] }
  0xfa   :  { %v2695_v33 = vpop.f32.mrb[1].mxu1  ;;  %3660 = vmatprep.subr.bf16.mxu0 %v3659_v16  ;;  %v3735_v16 = vpack.c.bf16 %v1748_v14, %v1732_v13  ;;  %v1873_v9 = vld [vmem:[%s6508_s6 + $0x580] sm:$0xff]  ;;  %v1875_v13 = vld [vmem:[%s6508_s6 + $0x590] sm:$0xff]  ;;  %v1892_v18 = vld [vmem:[%s6508_s6 + $0x618] sm:$0xff] }
  0xfb   :  { %v2696_v35 = vadd.f32 %v2695_v33, %v2694_v29  ;;  %3690 = vmatpush3.bf16.msra.mxu1 %v3689_v15  ;;  %v375_v40 = vadd.f32 %v2661_v32, %v2625_v27  ;;  %v3703_v15 = vpack.c.bf16 %v1746_v12, %v1730_v10  ;;  %v1764_v27 = vld [vmem:[%s6508_s6 + $0x218] sm:$0xff]  ;;  %v3707_v29 = vpack.c.bf16 %v1778_v26, %v1762_v25  ;;  %v1777_v32 = vld [vmem:[%s6508_s6 + $0x280] sm:$0xff]  ;;  %v1859_v12 = vld [vmem:[%s6508_s6 + $0x510] sm:$0xff] }
  0xfc   :  { %3692 = vmatprep.subr.bf16.mxu1 %v3691_v23  ;;  %v1747_v23 = vld [vmem:[%s6508_s6 + $0x190] sm:$0xff]  ;;  %v3753_v14 = vpack.c.bf16 %v1875_v13, %v1859_v12 }
  0xfd   :  { %v445_v44 = vadd.f32 %v2696_v35, %v375_v40  ;;  %3662 = vmatpush3.bf16.msra.mxu0 %v3661_v34  ;;  %v3737_v24 = vpack.c.bf16 %v1747_v23, %v1731_v20  ;;  %v3739_v35 = vpack.c.bf16 %v1780_v30, %v1764_v27  ;;  %v1908_v20 = vld [vmem:[%s6508_s6 + $0x698] sm:$0xff]  ;;  %v1905_v23 = vld [vmem:[%s6508_s6 + $0x680] sm:$0xff]  ;;  %v1891_v26 = vld [vmem:[%s6508_s6 + $0x610] sm:$0xff] }
  0xfe   :  { %3664 = vmatprep.subr.bf16.mxu0 %v3663_v37  ;;  %v1763_v37 = vld [vmem:[%s6508_s6 + $0x210] sm:$0xff]  ;;  %v1938_v30 = vld [vmem:[%s6508_s6 + $0x788] sm:$0xff] }
  0xff   :  { %3694 = vmatpush3.bf16.msra.mxu1 %v3693_v36  ;;  %v3709_v36 = vpack.c.bf16 %v1777_v32, %v1761_v31  ;;  %v1907_v27 = vld [vmem:[%s6508_s6 + $0x690] sm:$0xff]  ;;  %v1924_v31 = vld [vmem:[%s6508_s6 + $0x718] sm:$0xff] }
 0x100   :  { %3696 = vmatprep.subr.bf16.mxu1 %v3695_v41  ;;  %v3741_v41 = vpack.c.bf16 %v1779_v38, %v1763_v37  ;;  %v1923_v38 = vld [vmem:[%s6508_s6 + $0x710] sm:$0xff] }
 0x101   :  { %3666 = vmatpush3.bf16.msra.mxu0 %v3665_v45  ;;  %v1796_v45 = vld [vmem:[%s6508_s6 + $0x318] sm:$0xff] }
 0x102   :  { %3700 = vmatprep.subr.bf16.mxu0 %v3699_v3  ;;  %v3749_v3 = vpack.c.bf16 %v1843_v17, %v1827_v2 }
 0x103   :  { %3698 = vmatpush3.bf16.msra.mxu1 %v3697_v46 }
 0x104   :  { %1616 = vmatmul.mubr.f32.vlgmr.msra.gmra.mrb[14].mxu0 %v3970_v47  ;;  %3732 = vmatprep.subr.bf16.mxu1 %v3731_v6  ;;  %v3719_v6 = vpack.c.bf16 %v1874_v21, %v1858_v4 }
 0x105   :  { %3702 = vmatpush1.bf16.msra.mxu0 %v3701_v7  ;;  %v1876_v7 = vld [vmem:[%s6508_s6 + $0x598] sm:$0xff] }
 0x106   :  { %1686 = vmatmul.mubr.f32.vlgmr.msra.gmra.mrb[14].mxu1 %v3971_v48  ;;  %3704 = vmatprep.subr.bf16.mxu0 %v3703_v15  ;;  %v1812_v48 = vld [vmem:[%s6508_s6 + $0x398] sm:$0xff]  ;;  %v3751_v10 = vpack.c.bf16 %v1876_v7, %v1860_v5  ;;  %v1890_v15 = vld [vmem:[%s6508_s6 + $0x608] sm:$0xff] }
 0x107   :  { %3734 = vmatpush1.bf16.msra.mxu1 %v3733_v11  ;;  %v3721_v11 = vpack.c.bf16 %v1873_v9, %v1857_v8 }
 0x108   :  { %3736 = vmatprep.subr.bf16.mxu1 %v3735_v16  ;;  %v1906_v16 = vld [vmem:[%s6508_s6 + $0x688] sm:$0xff] }
 0x109   :  { %3706 = vmatpush1.bf16.msra.mxu0 %v3705_v22  ;;  %v3723_v19 = vpack.c.bf16 %v1906_v16, %v1890_v15  ;;  %v1889_v22 = vld [vmem:[%s6508_s6 + $0x600] sm:$0xff] }
 0x10a   :  { %3708 = vmatprep.subr.bf16.mxu0 %v3707_v29  ;;  %v3725_v25 = vpack.c.bf16 %v1905_v23, %v1889_v22  ;;  %v1922_v29 = vld [vmem:[%s6508_s6 + $0x708] sm:$0xff]  ;;  %v1717_v22 = vld [vmem:[%s6508_s6 + $0xa0] sm:$0xff]  ;;  %v1703_v23 = vld [vmem:[%s6508_s6 + $0x30] sm:$0xff] }
 0x10b   :  { %3738 = vmatpush1.bf16.msra.mxu1 %v3737_v24  ;;  %v3755_v24 = vpack.c.bf16 %v1908_v20, %v1892_v18  ;;  %v3727_v32 = vpack.c.bf16 %v1938_v30, %v1922_v29  ;;  %v1701_v20 = vld [vmem:[%s6508_s6 + $0x20] sm:$0xff]  ;;  %v1752_v29 = vld [vmem:[%s6508_s6 + $0x1b8] sm:$0xff] }
 0x10c   :  { %3740 = vmatprep.subr.bf16.mxu1 %v3739_v35  ;;  %v1937_v35 = vld [vmem:[%s6508_s6 + $0x780] sm:$0xff] }
 0x10d   :  { %3710 = vmatpush1.bf16.msra.mxu0 %v3709_v36 }
 0x10f   :  { %3742 = vmatpush1.bf16.msra.mxu1 %v3741_v41  ;;  %v1702_v41 = vld [vmem:[%s6508_s6 + $0x28] sm:$0xff] }
 0x117   :  { %v2729_v49 = vpop.f32.mrb[2].mxu0 }
 0x118   :  { %v2730_v50 = vpop.f32.mrb[3].mxu0 }
 0x119   :  { %v2764_v51 = vpop.f32.mrb[2].mxu1  ;;  %v2731_v52 = vadd.f32 %v2730_v50, %v2729_v49  ;;  %v1793_v49 = vld [vmem:[%s6508_s6 + $0x300] sm:$0xff] }
 0x11a   :  { %v2765_v53 = vpop.f32.mrb[3].mxu1  ;;  %v1809_v50 = vld [vmem:[%s6508_s6 + $0x380] sm:$0xff] }
 0x11b   :  { %v2766_v54 = vadd.f32 %v2765_v53, %v2764_v51  ;;  %v515_v55 = vadd.f32 %v2731_v52, %v445_v44  ;;  %v1810_v44 = vld [vmem:[%s6508_s6 + $0x388] sm:$0xff]  ;;  %v3743_v51 = vpack.c.bf16 %v1812_v48, %v1796_v45  ;;  %v3713_v52 = vpack.c.bf16 %v1809_v50, %v1793_v49  ;;  %v1795_v53 = vld [vmem:[%s6508_s6 + $0x310] sm:$0xff]  ;;  %v1720_v45 = vld [vmem:[%s6508_s6 + $0xb8] sm:$0xff] }
 0x11c   :  { %v3711_v47 = vpack.c.bf16 %v1810_v44, %v1794_v43  ;;  %v1704_v43 = vld [vmem:[%s6508_s6 + $0x38] sm:$0xff]  ;;  %v2626_v49 = vld [vmem:[%s6509_s4] ss:$0 sm:$0xff] }
 0x11d   :  { %v585_v56 = vadd.f32 %v2766_v54, %v515_v55  ;;  %v1811_v54 = vld [vmem:[%s6508_s6 + $0x390] sm:$0xff]  ;;  %3744 = vmatprep.subr.bf16.mxu1 %v3743_v51 }
 0x11e   :  { %3712 = vmatprep.subr.bf16.mxu0 %v3711_v47  ;;  %v3972_v47 = vmov 0.0  }
 0x11f   :  { %3714 = vmatpush1.bf16.msra.mxu0 %v3713_v52  ;;  %2101 = vmatprep.mubr.f32.mxu0 %v3972_v47 }
 0x120   :  { %2172 = vmatprep.mubr.f32.mxu1 %v3972_v47 }
 0x137   :  { %v2799_v57 = vpop.f32.mrb[4].mxu0 }
 0x138   :  { %v2800_v58 = vpop.f32.mrb[5].mxu0 }
 0x139   :  { %v2834_v59 = vpop.f32.mrb[4].mxu1  ;;  %v2801_v60 = vadd.f32 %v2800_v58, %v2799_v57  ;;  %v1826_v57 = vld [vmem:[%s6508_s6 + $0x408] sm:$0xff] }
 0x13a   :  { %v2835_v61 = vpop.f32.mrb[5].mxu1  ;;  %v1842_v58 = vld [vmem:[%s6508_s6 + $0x488] sm:$0xff] }
 0x13b   :  { %v2836_v62 = vadd.f32 %v2835_v61, %v2834_v59  ;;  %v655_v63 = vadd.f32 %v2801_v60, %v585_v56  ;;  %v3745_v56 = vpack.c.bf16 %v1811_v54, %v1795_v53  ;;  %v1828_v59 = vld [vmem:[%s6508_s6 + $0x418] sm:$0xff]  ;;  %v3715_v60 = vpack.c.bf16 %v1842_v58, %v1826_v57 }
 0x13c   :  { %v1844_v61 = vld [vmem:[%s6508_s6 + $0x498] sm:$0xff] }
 0x13d   :  { %v725_v0 = vadd.f32 %v2836_v62, %v655_v63  ;;  %3746 = vmatpush1.bf16.msra.mxu1 %v3745_v56  ;;  %v1825_v62 = vld [vmem:[%s6508_s6 + $0x400] sm:$0xff]  ;;  %3716 = vmatprep.subr.bf16.mxu0 %v3715_v60 }
 0x13e   :  { %v1841_v63 = vld [vmem:[%s6508_s6 + $0x480] sm:$0xff] }
 0x13f   :  { %v3717_v1 = vpack.c.bf16 %v1841_v63, %v1825_v62 }
 0x141   :  { %3718 = vmatpush1.bf16.msra.mxu0 %v3717_v1 }
 0x142   :  { %3720 = vmatprep.subr.bf16.mxu0 %v3719_v6 }
 0x145   :  { %3722 = vmatpush1.bf16.msra.mxu0 %v3721_v11 }
 0x146   :  { %3724 = vmatprep.subr.bf16.mxu0 %v3723_v19  ;;  %v1691_v19 = vld [vmem:[%s6510_s5] sm:$0xff] }
 0x149   :  { %3726 = vmatpush1.bf16.msra.mxu0 %v3725_v25  ;;  %v1734_v25 = vld [vmem:[%s6508_s6 + $0x128] sm:$0xff] }
 0x14a   :  { %3728 = vmatprep.subr.bf16.mxu0 %v3727_v32 }
 0x157   :  { %v2869_v28 = vpop.f32.mrb[6].mxu0 }
 0x158   :  { %v2870_v33 = vpop.f32.mrb[7].mxu0 }
 0x159   :  { %v2904_v34 = vpop.f32.mrb[6].mxu1  ;;  %v2871_v39 = vadd.f32 %v2870_v33, %v2869_v28  ;;  %v3757_v28 = vpack.c.bf16 %v1907_v27, %v1891_v26  ;;  %v1940_v33 = vld [vmem:[%s6508_s6 + $0x798] sm:$0xff]  ;;  %v1750_v27 = vld [vmem:[%s6508_s6 + $0x1a8] sm:$0xff] }
 0x15a   :  { %v2905_v40 = vpop.f32.mrb[7].mxu1  ;;  %v3759_v36 = vpack.c.bf16 %v1940_v33, %v1924_v31  ;;  %v3765_v31 = vpack.c.bf16 %v1717_v22, %v1701_v20  ;;  %v1733_v33 = vld [vmem:[%s6508_s6 + $0x120] sm:$0xff] }
 0x15b   :  { %v2906_v42 = vadd.f32 %v2905_v40, %v2904_v34  ;;  %v795_v46 = vadd.f32 %v2871_v39, %v725_v0  ;;  %v3747_v0 = vpack.c.bf16 %v1844_v61, %v1828_v59  ;;  %v1921_v34 = vld [vmem:[%s6508_s6 + $0x700] sm:$0xff]  ;;  %v1939_v39 = vld [vmem:[%s6508_s6 + $0x790] sm:$0xff] }
 0x15c   :  { %v3729_v37 = vpack.c.bf16 %v1937_v35, %v1921_v34  ;;  %v3761_v40 = vpack.c.bf16 %v1939_v39, %v1923_v38  ;;  %v1749_v34 = vld [vmem:[%s6508_s6 + $0x1a0] sm:$0xff]  ;;  %v1735_v38 = vld [vmem:[%s6508_s6 + $0x130] sm:$0xff] }
 0x15d   :  { %v5751_v55 = vadd.f32 %v2906_v42, %v795_v46  ;;  %3748 = vmatprep.subr.bf16.mxu1 %v3747_v0  ;;  %v1718_v42 = vld [vmem:[%s6508_s6 + $0xa8] sm:$0xff]  ;;  %v3795_v46 = vpack.c.bf16 %v1720_v45, %v1704_v43  ;;  %v1751_v39 = vld [vmem:[%s6508_s6 + $0x1b0] sm:$0xff]  ;;  %v3769_v43 = vpack.c.bf16 %v1749_v34, %v1733_v33  ;;  %v1765_v45 = vld [vmem:[%s6508_s6 + $0x220] sm:$0xff] }
 0x15e   :  { %3750 = vmatpush1.bf16.msra.mxu1 %v3749_v3  ;;  %3730 = vmatpush1.bf16.msra.mxu0 %v3729_v37  ;;  %v3763_v44 = vpack.c.bf16 %v1718_v42, %v1702_v41  ;;  %v1782_v41 = vld [vmem:[%s6508_s6 + $0x2a8] sm:$0xff]  ;;  %v1784_v42 = vld [vmem:[%s6508_s6 + $0x2b8] sm:$0xff] }
 0x15f   :  { %3752 = vmatprep.subr.bf16.mxu1 %v3751_v10 }
 0x160   :  { %3764 = vmatprep.subr.bf16.mxu0 %v3763_v44  ;;  %v3801_v44 = vpack.c.bf16 %v1751_v39, %v1735_v38  ;;  %v1926_v38 = vld [vmem:[%s6508_s6 + $0x728] sm:$0xff] }
 0x161   :  { %v1942_v39 = vld [vmem:[%s6508_s6 + $0x7a8] sm:$0xff] }
 0x162   :  { %3754 = vmatpush1.bf16.msra.mxu1 %v3753_v14 }
 0x163   :  { %3756 = vmatprep.subr.bf16.mxu1 %v3755_v24  ;;  %v1719_v24 = vld [vmem:[%s6508_s6 + $0xb0] sm:$0xff] }
 0x164   :  { %v3797_v32 = vpack.c.bf16 %v1719_v24, %v1703_v23  ;;  %v1863_v23 = vld [vmem:[%s6508_s6 + $0x530] sm:$0xff] }
 0x165   :  { %v1879_v24 = vld [vmem:[%s6508_s6 + $0x5b0] sm:$0xff] }
 0x166   :  { %3758 = vmatpush1.bf16.msra.mxu1 %v3757_v28  ;;  %v1736_v28 = vld [vmem:[%s6508_s6 + $0x138] sm:$0xff] }
 0x167   :  { %3760 = vmatprep.subr.bf16.mxu1 %v3759_v36  ;;  %v3767_v36 = vpack.c.bf16 %v1750_v27, %v1734_v25  ;;  %v3799_v37 = vpack.c.bf16 %v1752_v29, %v1736_v28  ;;  %v1894_v25 = vld [vmem:[%s6508_s6 + $0x628] sm:$0xff]  ;;  %v1896_v27 = vld [vmem:[%s6508_s6 + $0x638] sm:$0xff] }
 0x168   :  { %v1912_v28 = vld [vmem:[%s6508_s6 + $0x6b8] sm:$0xff] }
 0x169   :  { %v3819_v34 = vpack.c.bf16 %v1912_v28, %v1896_v27 }
 0x16a   :  { %3762 = vmatpush1.bf16.msra.mxu1 %v3761_v40  ;;  %v1766_v40 = vld [vmem:[%s6508_s6 + $0x228] sm:$0xff] }
 0x16b   :  { %3796 = vmatprep.subr.bf16.mxu1 %v3795_v46  ;;  %v1781_v46 = vld [vmem:[%s6508_s6 + $0x2a0] sm:$0xff] }
 0x177   :  { %v2939_v48 = vpop.f32.mrb[8].mxu0 }
 0x178   :  { %v2940_v50 = vpop.f32.mrb[9].mxu0 }
 0x179   :  { %v2974_v51 = vpop.f32.mrb[8].mxu1  ;;  %v2941_v52 = vadd.f32 %v2940_v50, %v2939_v48  ;;  %v3771_v48 = vpack.c.bf16 %v1782_v41, %v1766_v40  ;;  %v1767_v50 = vld [vmem:[%s6508_s6 + $0x230] sm:$0xff]  ;;  %v1928_v40 = vld [vmem:[%s6508_s6 + $0x738] sm:$0xff] }
 0x17a   :  { %v2975_v53 = vpop.f32.mrb[9].mxu1  ;;  %v1944_v41 = vld [vmem:[%s6508_s6 + $0x7b8] sm:$0xff] }
 0x17b   :  { %v2976_v54 = vadd.f32 %v2975_v53, %v2974_v51  ;;  %v1198_v56 = vadd.f32 %v2941_v52, %v2626_v49  ;;  %v1783_v51 = vld [vmem:[%s6508_s6 + $0x2b0] sm:$0xff]  ;;  %v1798_v52 = vld [vmem:[%s6508_s6 + $0x328] sm:$0xff] }
 0x17c   :  { %v1814_v53 = vld [vmem:[%s6508_s6 + $0x3a8] sm:$0xff] }
 0x17d   :  { %v1268_v57 = vadd.f32 %v2976_v54, %v1198_v56  ;;  %v1800_v54 = vld [vmem:[%s6508_s6 + $0x338] sm:$0xff] }
 0x17e   :  { %v1816_v56 = vld [vmem:[%s6508_s6 + $0x3b8] sm:$0xff] }
 0x197   :  { %v3009_v58 = vpop.f32.mrb[10].mxu0 }
 0x198   :  { %v3010_v59 = vpop.f32.mrb[11].mxu0 }
 0x199   :  { %v3044_v60 = vpop.f32.mrb[10].mxu1  ;;  %v3011_v61 = vadd.f32 %v3010_v59, %v3009_v58  ;;  %v3805_v58 = vpack.c.bf16 %v1783_v51, %v1767_v50  ;;  %v1797_v59 = vld [vmem:[%s6508_s6 + $0x320] sm:$0xff]  ;;  %v1706_v50 = vld [vmem:[%s6508_s6 + $0x48] sm:$0xff] }
 0x19a   :  { %v3045_v62 = vpop.f32.mrb[11].mxu1  ;;  %v1722_v51 = vld [vmem:[%s6508_s6 + $0xc8] sm:$0xff] }
 0x19b   :  { %v3046_v63 = vadd.f32 %v3045_v62, %v3044_v60  ;;  %v1338_v0 = vadd.f32 %v3011_v61, %v1268_v57  ;;  %v3773_v57 = vpack.c.bf16 %v1781_v46, %v1765_v45  ;;  %v1813_v60 = vld [vmem:[%s6508_s6 + $0x3a0] sm:$0xff]  ;;  %v3775_v61 = vpack.c.bf16 %v1814_v53, %v1798_v52  ;;  %v1708_v52 = vld [vmem:[%s6508_s6 + $0x58] sm:$0xff] }
 0x19c   :  { %v3807_v62 = vpack.c.bf16 %v1816_v56, %v1800_v54  ;;  %v3791_v45 = vpack.c.bf16 %v1942_v39, %v1926_v38  ;;  %v3823_v46 = vpack.c.bf16 %v1944_v41, %v1928_v40  ;;  %v1724_v53 = vld [vmem:[%s6508_s6 + $0xd8] sm:$0xff] }
 0x19d   :  { %v1408_v1 = vadd.f32 %v3046_v63, %v1338_v0  ;;  %v1799_v63 = vld [vmem:[%s6508_s6 + $0x330] sm:$0xff]  ;;  %v1836_v38 = vld [vmem:[%s6508_s6 + $0x458] sm:$0xff] }
 0x19e   :  { %v1815_v0 = vld [vmem:[%s6508_s6 + $0x3b0] sm:$0xff]  ;;  %v1852_v39 = vld [vmem:[%s6508_s6 + $0x4d8] sm:$0xff] }
 0x1b7   :  { %v3079_v2 = vpop.f32.mrb[12].mxu0 }
 0x1b8   :  { %v3080_v17 = vpop.f32.mrb[13].mxu0 }
 0x1b9   :  { %v3114_v3 = vpop.f32.mrb[12].mxu1  ;;  %v3081_v4 = vadd.f32 %v3080_v17, %v3079_v2  ;;  %v1846_v2 = vld [vmem:[%s6508_s6 + $0x4a8] sm:$0xff]  ;;  %v1832_v17 = vld [vmem:[%s6508_s6 + $0x438] sm:$0xff] }
 0x1ba   :  { %v3115_v21 = vpop.f32.mrb[13].mxu1 }
 0x1bb   :  { %v3116_v5 = vadd.f32 %v3115_v21, %v3114_v3  ;;  %v1478_v6 = vadd.f32 %v3081_v4, %v1408_v1  ;;  %v1830_v1 = vld [vmem:[%s6508_s6 + $0x428] sm:$0xff]  ;;  %v1848_v3 = vld [vmem:[%s6508_s6 + $0x4b8] sm:$0xff]  ;;  %v3777_v4 = vpack.c.bf16 %v1813_v60, %v1797_v59  ;;  %v3809_v21 = vpack.c.bf16 %v1815_v0, %v1799_v63 }
 0x1bc   :  { %v3827_v59 = vpack.c.bf16 %v1722_v51, %v1706_v50  ;;  %v3859_v60 = vpack.c.bf16 %v1724_v53, %v1708_v52  ;;  %v1738_v63 = vld [vmem:[%s6508_s6 + $0x148] sm:$0xff]  ;;  %v1868_v50 = vld [vmem:[%s6508_s6 + $0x558] sm:$0xff] }
 0x1bd   :  { %v1548_v7 = vadd.f32 %v3116_v5, %v1478_v6  ;;  %v1829_v5 = vld [vmem:[%s6508_s6 + $0x420] sm:$0xff]  ;;  %v1754_v0 = vld [vmem:[%s6508_s6 + $0x1c8] sm:$0xff]  ;;  %v1884_v51 = vld [vmem:[%s6508_s6 + $0x5d8] sm:$0xff] }
 0x1be   :  { %v1845_v6 = vld [vmem:[%s6508_s6 + $0x4a0] sm:$0xff] }
 0x1d7   :  { %v3149_v8 = vpop.f32.mrb[14].mxu0 }
 0x1d8   :  { %v3150_v9 = vpop.f32.mrb[15].mxu0 }
 0x1d9   :  { %v3184_v10 = vpop.f32.mrb[14].mxu1  ;;  %v3151_v11 = vadd.f32 %v3150_v9, %v3149_v8  ;;  %v3811_v8 = vpack.c.bf16 %v1848_v3, %v1832_v17  ;;  %v1831_v9 = vld [vmem:[%s6508_s6 + $0x430] sm:$0xff] }
 0x1da   :  { %v3185_v12 = vpop.f32.mrb[15].mxu1 }
 0x1db   :  { %v3186_v13 = vadd.f32 %v3185_v12, %v3184_v10  ;;  %v1618_v14 = vadd.f32 %v3151_v11, %v1548_v7  ;;  %v3779_v7 = vpack.c.bf16 %v1846_v2, %v1830_v1  ;;  %v1847_v10 = vld [vmem:[%s6508_s6 + $0x4b0] sm:$0xff]  ;;  %v1862_v11 = vld [vmem:[%s6508_s6 + $0x528] sm:$0xff]  ;;  %v1740_v1 = vld [vmem:[%s6508_s6 + $0x158] sm:$0xff] }
 0x1dc   :  { %v1878_v12 = vld [vmem:[%s6508_s6 + $0x5a8] sm:$0xff]  ;;  %v1756_v2 = vld [vmem:[%s6508_s6 + $0x1d8] sm:$0xff] }
 0x1dd   :  { %v1688_v15 = vadd.f32 %v3186_v13, %v1618_v14  ;;  %v1864_v13 = vld [vmem:[%s6508_s6 + $0x538] sm:$0xff]  ;;  %v3783_v20 = vpack.c.bf16 %v1878_v12, %v1862_v11 }
 0x1de   :  { %v1880_v14 = vld [vmem:[%s6508_s6 + $0x5b8] sm:$0xff] }
 0x1df   :  { %v1692_v16 = vmul.f32 0.5, %v1688_v15  ;;  %v3781_v15 = vpack.c.bf16 %v1845_v6, %v1829_v5  ;;  %v3815_v22 = vpack.c.bf16 %v1880_v14, %v1864_v13  ;;  %v3831_v5 = vpack.c.bf16 %v1754_v0, %v1738_v63  ;;  %v1772_v11 = vld [vmem:[%s6508_s6 + $0x258] sm:$0xff] }
 0x1e0   :  { %v3863_v6 = vpack.c.bf16 %v1756_v2, %v1740_v1  ;;  %v1788_v12 = vld [vmem:[%s6508_s6 + $0x2d8] sm:$0xff] }
 0x1e1   :  { %v1693_v18 = vmul.f32 1.442695, %v1692_v16  ;;  %v3813_v16 = vpack.c.bf16 %v1847_v10, %v1831_v9  ;;  %v1770_v9 = vld [vmem:[%s6508_s6 + $0x248] sm:$0xff]  ;;  %v1900_v63 = vld [vmem:[%s6508_s6 + $0x658] sm:$0xff] }
 0x1e2   :  { %v1786_v10 = vld [vmem:[%s6508_s6 + $0x2c8] sm:$0xff]  ;;  %v1916_v0 = vld [vmem:[%s6508_s6 + $0x6d8] sm:$0xff] }
 0x1e3   :  { %3956 = vpow2.f32 %v1693_v18  ;;  %v1861_v18 = vld [vmem:[%s6508_s6 + $0x520] sm:$0xff] }
 0x1ed   :  { %v3957_v26 = vpop.eup %3956 }
 0x1ee   :  { %v1695_v30 = vmul.f32 %v3957_v26, %v1691_v19  ;;  %v1877_v19 = vld [vmem:[%s6508_s6 + $0x5a0] sm:$0xff]  ;;  %v1910_v26 = vld [vmem:[%s6508_s6 + $0x6a8] sm:$0xff] }
 0x1ef   :  { %v3785_v29 = vpack.c.bf16 %v1877_v19, %v1861_v18  ;;  %v3787_v33 = vpack.c.bf16 %v1910_v26, %v1894_v25  ;;  %v3835_v18 = vpack.c.bf16 %v1786_v10, %v1770_v9  ;;  %v3867_v19 = vpack.c.bf16 %v1788_v12, %v1772_v11  ;;  %v1804_v25 = vld [vmem:[%s6508_s6 + $0x358] sm:$0xff] }
 0x1f0   :  { %v5900_v35 = vadd.f32 %v1695_v30, %v5751_v55  ;;  %v1768_v55 = vld [vmem:[%s6508_s6 + $0x238] sm:$0xff]  ;;  %v3817_v30 = vpack.c.bf16 %v1879_v24, %v1863_v23  ;;  %v1802_v23 = vld [vmem:[%s6508_s6 + $0x348] sm:$0xff] }
 0x1f1   :  { %v3803_v49 = vpack.c.bf16 %v1784_v42, %v1768_v55  ;;  %v1818_v24 = vld [vmem:[%s6508_s6 + $0x3c8] sm:$0xff]  ;;  %v1820_v26 = vld [vmem:[%s6508_s6 + $0x3d8] sm:$0xff] }
 0x1f2   :  { %2102 = vmatmul.mubr.f32.vlgmr.msra.gmra.mrb[16].mxu0 %v5900_v35  ;;  %2173 = vmatmul.mubr.f32.vlgmr.msra.gmra.mrb[16].mxu1 %v5900_v35  ;;  %v1932_v9 = vld [vmem:[%s6508_s6 + $0x758] sm:$0xff] }
 0x1f3   :  { %3766 = vmatpush1.bf16.msra.mxu0 %v3765_v31  ;;  %3798 = vmatpush1.bf16.msra.mxu1 %v3797_v32  ;;  %v1893_v31 = vld [vmem:[%s6508_s6 + $0x620] sm:$0xff]  ;;  %v1948_v10 = vld [vmem:[%s6508_s6 + $0x7d8] sm:$0xff] }
 0x1f4   :  { %3768 = vmatprep.subr.bf16.mxu0 %v3767_v36  ;;  %3800 = vmatprep.subr.bf16.mxu1 %v3799_v37  ;;  %v1909_v32 = vld [vmem:[%s6508_s6 + $0x6a0] sm:$0xff]  ;;  %v1895_v36 = vld [vmem:[%s6508_s6 + $0x630] sm:$0xff] }
 0x1f5   :  { %2243 = vmatprep.mubr.f32.mxu0 %v3972_v47  ;;  %2314 = vmatprep.mubr.f32.mxu1 %v3972_v47  ;;  %v1911_v37 = vld [vmem:[%s6508_s6 + $0x6b0] sm:$0xff]  ;;  %v3789_v55 = vpack.c.bf16 %v1909_v32, %v1893_v31  ;;  %v3839_v31 = vpack.c.bf16 %v1818_v24, %v1802_v23  ;;  %v3871_v32 = vpack.c.bf16 %v1820_v26, %v1804_v25  ;;  %v1712_v23 = vld [vmem:[%s6508_s6 + $0x78] sm:$0xff] }
 0x1f6   :  { %v3821_v42 = vpack.c.bf16 %v1911_v37, %v1895_v36  ;;  %v1834_v36 = vld [vmem:[%s6508_s6 + $0x448] sm:$0xff]  ;;  %v1728_v24 = vld [vmem:[%s6508_s6 + $0xf8] sm:$0xff] }
 0x1f7   :  { %3770 = vmatpush1.bf16.msra.mxu0 %v3769_v43  ;;  %3802 = vmatpush1.bf16.msra.mxu1 %v3801_v44  ;;  %v1925_v43 = vld [vmem:[%s6508_s6 + $0x720] sm:$0xff]  ;;  %v1850_v37 = vld [vmem:[%s6508_s6 + $0x4c8] sm:$0xff] }
 0x1f8   :  { %3772 = vmatprep.subr.bf16.mxu0 %v3771_v48  ;;  %3804 = vmatprep.subr.bf16.mxu1 %v3803_v49  ;;  %v1941_v44 = vld [vmem:[%s6508_s6 + $0x7a0] sm:$0xff]  ;;  %v1927_v48 = vld [vmem:[%s6508_s6 + $0x730] sm:$0xff] }
 0x1f9   :  { %v1943_v49 = vld [vmem:[%s6508_s6 + $0x7b0] sm:$0xff]  ;;  %v3793_v54 = vpack.c.bf16 %v1941_v44, %v1925_v43  ;;  %v3843_v43 = vpack.c.bf16 %v1850_v37, %v1834_v36  ;;  %v3875_v44 = vpack.c.bf16 %v1852_v39, %v1836_v38  ;;  %v1744_v36 = vld [vmem:[%s6508_s6 + $0x178] sm:$0xff] }
 0x1fa   :  { %v3825_v56 = vpack.c.bf16 %v1943_v49, %v1927_v48  ;;  %v1866_v48 = vld [vmem:[%s6508_s6 + $0x548] sm:$0xff]  ;;  %v1760_v37 = vld [vmem:[%s6508_s6 + $0x1f8] sm:$0xff] }
 0x1fb   :  { %3774 = vmatpush1.bf16.msra.mxu0 %v3773_v57  ;;  %3806 = vmatpush1.bf16.msra.mxu1 %v3805_v58  ;;  %v1705_v57 = vld [vmem:[%s6508_s6 + $0x40] sm:$0xff]  ;;  %v1882_v49 = vld [vmem:[%s6508_s6 + $0x5c8] sm:$0xff] }
 0x1fc   :  { %3776 = vmatprep.subr.bf16.mxu0 %v3775_v61  ;;  %3808 = vmatprep.subr.bf16.mxu1 %v3807_v62  ;;  %v1721_v58 = vld [vmem:[%s6508_s6 + $0xc0] sm:$0xff]  ;;  %v1707_v61 = vld [vmem:[%s6508_s6 + $0x50] sm:$0xff] }
 0x1fd   :  { %v1723_v62 = vld [vmem:[%s6508_s6 + $0xd0] sm:$0xff]  ;;  %v3829_v17 = vpack.c.bf16 %v1721_v58, %v1705_v57  ;;  %v3847_v57 = vpack.c.bf16 %v1882_v49, %v1866_v48  ;;  %v3879_v58 = vpack.c.bf16 %v1884_v51, %v1868_v50  ;;  %v1776_v48 = vld [vmem:[%s6508_s6 + $0x278] sm:$0xff] }
 0x1fe   :  { %v3861_v3 = vpack.c.bf16 %v1723_v62, %v1707_v61  ;;  %v1898_v61 = vld [vmem:[%s6508_s6 + $0x648] sm:$0xff]  ;;  %v1792_v49 = vld [vmem:[%s6508_s6 + $0x2f8] sm:$0xff] }
 0x1ff   :  { %3778 = vmatpush1.bf16.msra.mxu0 %v3777_v4  ;;  %3810 = vmatpush1.bf16.msra.mxu1 %v3809_v21  ;;  %v1737_v4 = vld [vmem:[%s6508_s6 + $0x140] sm:$0xff]  ;;  %v1914_v62 = vld [vmem:[%s6508_s6 + $0x6c8] sm:$0xff] }
 0x200   :  { %3780 = vmatprep.subr.bf16.mxu0 %v3779_v7  ;;  %3812 = vmatprep.subr.bf16.mxu1 %v3811_v8  ;;  %v1753_v21 = vld [vmem:[%s6508_s6 + $0x1c0] sm:$0xff]  ;;  %v1739_v7 = vld [vmem:[%s6508_s6 + $0x150] sm:$0xff] }
 0x201   :  { %v1755_v8 = vld [vmem:[%s6508_s6 + $0x1d0] sm:$0xff]  ;;  %v3833_v13 = vpack.c.bf16 %v1753_v21, %v1737_v4  ;;  %v3851_v4 = vpack.c.bf16 %v1914_v62, %v1898_v61  ;;  %v3883_v21 = vpack.c.bf16 %v1916_v0, %v1900_v63  ;;  %v1808_v61 = vld [vmem:[%s6508_s6 + $0x378] sm:$0xff] }
 0x202   :  { %v3865_v14 = vpack.c.bf16 %v1755_v8, %v1739_v7  ;;  %v1930_v7 = vld [vmem:[%s6508_s6 + $0x748] sm:$0xff]  ;;  %v1824_v62 = vld [vmem:[%s6508_s6 + $0x3f8] sm:$0xff] }
 0x203   :  { %3782 = vmatpush1.bf16.msra.mxu0 %v3781_v15  ;;  %3814 = vmatpush1.bf16.msra.mxu1 %v3813_v16  ;;  %v1769_v15 = vld [vmem:[%s6508_s6 + $0x240] sm:$0xff]  ;;  %v1946_v8 = vld [vmem:[%s6508_s6 + $0x7c8] sm:$0xff] }
 0x204   :  { %3784 = vmatprep.subr.bf16.mxu0 %v3783_v20  ;;  %3816 = vmatprep.subr.bf16.mxu1 %v3815_v22  ;;  %v1785_v16 = vld [vmem:[%s6508_s6 + $0x2c0] sm:$0xff]  ;;  %v1771_v20 = vld [vmem:[%s6508_s6 + $0x250] sm:$0xff] }
 0x205   :  { %v1787_v22 = vld [vmem:[%s6508_s6 + $0x2d0] sm:$0xff]  ;;  %v3837_v27 = vpack.c.bf16 %v1785_v16, %v1769_v15  ;;  %v3855_v15 = vpack.c.bf16 %v1946_v8, %v1930_v7  ;;  %v3887_v16 = vpack.c.bf16 %v1948_v10, %v1932_v9  ;;  %v1856_v7 = vld [vmem:[%s6508_s6 + $0x4f8] sm:$0xff]  ;;  %v1837_v10 = vld [vmem:[%s6508_s6 + $0x460] sm:$0xff] }
 0x206   :  { %v3869_v28 = vpack.c.bf16 %v1787_v22, %v1771_v20  ;;  %v1710_v20 = vld [vmem:[%s6508_s6 + $0x68] sm:$0xff] }
 0x207   :  { %3786 = vmatpush1.bf16.msra.mxu0 %v3785_v29  ;;  %3818 = vmatpush1.bf16.msra.mxu1 %v3817_v30  ;;  %v1801_v29 = vld [vmem:[%s6508_s6 + $0x340] sm:$0xff]  ;;  %v1726_v22 = vld [vmem:[%s6508_s6 + $0xe8] sm:$0xff] }
 0x208   :  { %3788 = vmatprep.subr.bf16.mxu0 %v3787_v33  ;;  %3820 = vmatprep.subr.bf16.mxu1 %v3819_v34  ;;  %v1817_v30 = vld [vmem:[%s6508_s6 + $0x3c0] sm:$0xff]  ;;  %v1803_v33 = vld [vmem:[%s6508_s6 + $0x350] sm:$0xff] }
 0x209   :  { %v1819_v34 = vld [vmem:[%s6508_s6 + $0x3d0] sm:$0xff]  ;;  %v3841_v40 = vpack.c.bf16 %v1817_v30, %v1801_v29  ;;  %v3891_v29 = vpack.c.bf16 %v1726_v22, %v1710_v20  ;;  %v3923_v30 = vpack.c.bf16 %v1728_v24, %v1712_v23  ;;  %v1888_v20 = vld [vmem:[%s6508_s6 + $0x5f8] sm:$0xff]  ;;  %v1869_v24 = vld [vmem:[%s6508_s6 + $0x560] sm:$0xff] }
 0x20a   :  { %v3873_v41 = vpack.c.bf16 %v1819_v34, %v1803_v33  ;;  %v1742_v33 = vld [vmem:[%s6508_s6 + $0x168] sm:$0xff] }
 0x20b   :  { %3790 = vmatpush1.bf16.msra.mxu0 %v3789_v55  ;;  %3822 = vmatpush1.bf16.msra.mxu1 %v3821_v42  ;;  %v1833_v55 = vld [vmem:[%s6508_s6 + $0x440] sm:$0xff]  ;;  %v1758_v34 = vld [vmem:[%s6508_s6 + $0x1e8] sm:$0xff] }
 0x20c   :  { %3792 = vmatprep.subr.bf16.mxu0 %v3791_v45  ;;  %3824 = vmatprep.subr.bf16.mxu1 %v3823_v46  ;;  %v1849_v42 = vld [vmem:[%s6508_s6 + $0x4c0] sm:$0xff]  ;;  %v1835_v45 = vld [vmem:[%s6508_s6 + $0x450] sm:$0xff] }
 0x20d   :  { %v1851_v46 = vld [vmem:[%s6508_s6 + $0x4d0] sm:$0xff]  ;;  %v3845_v52 = vpack.c.bf16 %v1849_v42, %v1833_v55  ;;  %v3895_v55 = vpack.c.bf16 %v1758_v34, %v1742_v33  ;;  %v3927_v42 = vpack.c.bf16 %v1760_v37, %v1744_v36  ;;  %v1920_v33 = vld [vmem:[%s6508_s6 + $0x6f8] sm:$0xff]  ;;  %v1901_v37 = vld [vmem:[%s6508_s6 + $0x660] sm:$0xff] }
 0x20e   :  { %v3877_v53 = vpack.c.bf16 %v1851_v46, %v1835_v45  ;;  %v1774_v45 = vld [vmem:[%s6508_s6 + $0x268] sm:$0xff] }
 0x20f   :  { %3794 = vmatpush1.bf16.msra.mxu0 %v3793_v54  ;;  %3826 = vmatpush1.bf16.msra.mxu1 %v3825_v56  ;;  %v1865_v54 = vld [vmem:[%s6508_s6 + $0x540] sm:$0xff]  ;;  %v1790_v46 = vld [vmem:[%s6508_s6 + $0x2e8] sm:$0xff] }
 0x210   :  { %3828 = vmatprep.subr.bf16.mxu0 %v3827_v59  ;;  %3860 = vmatprep.subr.bf16.mxu1 %v3859_v60  ;;  %v1881_v56 = vld [vmem:[%s6508_s6 + $0x5c0] sm:$0xff]  ;;  %v1867_v59 = vld [vmem:[%s6508_s6 + $0x550] sm:$0xff] }
 0x211   :  { %v1883_v60 = vld [vmem:[%s6508_s6 + $0x5d0] sm:$0xff]  ;;  %v3849_v1 = vpack.c.bf16 %v1881_v56, %v1865_v54  ;;  %v3899_v54 = vpack.c.bf16 %v1790_v46, %v1774_v45  ;;  %v3931_v56 = vpack.c.bf16 %v1792_v49, %v1776_v48  ;;  %v1952_v45 = vld [vmem:[%s6508_s6 + $0x7f8] sm:$0xff]  ;;  %v1933_v49 = vld [vmem:[%s6508_s6 + $0x760] sm:$0xff] }
 0x212   :  { %2244 = vmatmul.mubr.f32.vlgmr.msra.gmra.mrb[18].mxu0 %v5900_v35  ;;  %2315 = vmatmul.mubr.f32.vlgmr.msra.gmra.mrb[18].mxu1 %v5900_v35  ;;  %v3881_v2 = vpack.c.bf16 %v1883_v60, %v1867_v59  ;;  %v1806_v59 = vld [vmem:[%s6508_s6 + $0x368] sm:$0xff] }
 0x213   :  { %3830 = vmatpush1.bf16.msra.mxu0 %v3829_v17  ;;  %3862 = vmatpush1.bf16.msra.mxu1 %v3861_v3  ;;  %v1897_v17 = vld [vmem:[%s6508_s6 + $0x640] sm:$0xff]  ;;  %v1822_v60 = vld [vmem:[%s6508_s6 + $0x3e8] sm:$0xff] }
 0x214   :  { %3832 = vmatprep.subr.bf16.mxu0 %v3831_v5  ;;  %3864 = vmatprep.subr.bf16.mxu1 %v3863_v6  ;;  %v1913_v3 = vld [vmem:[%s6508_s6 + $0x6c0] sm:$0xff]  ;;  %v1899_v5 = vld [vmem:[%s6508_s6 + $0x650] sm:$0xff] }
 0x215   :  { %2385 = vmatprep.mubr.f32.mxu0 %v3972_v47  ;;  %2456 = vmatprep.mubr.f32.mxu1 %v3972_v47  ;;  %v1915_v6 = vld [vmem:[%s6508_s6 + $0x6d0] sm:$0xff]  ;;  %v3853_v11 = vpack.c.bf16 %v1913_v3, %v1897_v17  ;;  %v3903_v17 = vpack.c.bf16 %v1822_v60, %v1806_v59  ;;  %v3935_v3 = vpack.c.bf16 %v1824_v62, %v1808_v61  ;;  %v1954_v61 = vld [vmem:[%s6511_s7 + $0x8] sm:$0xff] }
 0x216   :  { %v3885_v12 = vpack.c.bf16 %v1915_v6, %v1899_v5  ;;  %v1854_v5 = vld [vmem:[%s6508_s6 + $0x4e8] sm:$0xff]  ;;  %v1840_v6 = vld [vmem:[%s6508_s6 + $0x478] sm:$0xff] }
 0x217   :  { %3834 = vmatpush1.bf16.msra.mxu0 %v3833_v13  ;;  %3866 = vmatpush1.bf16.msra.mxu1 %v3865_v14  ;;  %v1929_v13 = vld [vmem:[%s6508_s6 + $0x740] sm:$0xff] }
 0x218   :  { %3836 = vmatprep.subr.bf16.mxu0 %v3835_v18  ;;  %3868 = vmatprep.subr.bf16.mxu1 %v3867_v19  ;;  %v1945_v14 = vld [vmem:[%s6508_s6 + $0x7c0] sm:$0xff]  ;;  %v1931_v18 = vld [vmem:[%s6508_s6 + $0x750] sm:$0xff] }
 0x219   :  { %v1947_v19 = vld [vmem:[%s6508_s6 + $0x7d0] sm:$0xff]  ;;  %v3857_v25 = vpack.c.bf16 %v1945_v14, %v1929_v13  ;;  %v3939_v13 = vpack.c.bf16 %v1856_v7, %v1840_v6 }
 0x21a   :  { %v3889_v26 = vpack.c.bf16 %v1947_v19, %v1931_v18  ;;  %v1839_v14 = vld [vmem:[%s6508_s6 + $0x470] sm:$0xff]  ;;  %v1886_v18 = vld [vmem:[%s6508_s6 + $0x5e8] sm:$0xff]  ;;  %v1872_v19 = vld [vmem:[%s6508_s6 + $0x578] sm:$0xff] }
 0x21b   :  { %3838 = vmatpush1.bf16.msra.mxu0 %v3837_v27  ;;  %3870 = vmatpush1.bf16.msra.mxu1 %v3869_v28  ;;  %v1709_v27 = vld [vmem:[%s6508_s6 + $0x60] sm:$0xff] }
 0x21c   :  { %3840 = vmatprep.subr.bf16.mxu0 %v3839_v31  ;;  %3872 = vmatprep.subr.bf16.mxu1 %v3871_v32  ;;  %v1725_v28 = vld [vmem:[%s6508_s6 + $0xe0] sm:$0xff]  ;;  %v1711_v31 = vld [vmem:[%s6508_s6 + $0x70] sm:$0xff] }
 0x21d   :  { %v1727_v32 = vld [vmem:[%s6508_s6 + $0xf0] sm:$0xff]  ;;  %v3893_v38 = vpack.c.bf16 %v1725_v28, %v1709_v27  ;;  %v3943_v27 = vpack.c.bf16 %v1888_v20, %v1872_v19 }
 0x21e   :  { %v3925_v39 = vpack.c.bf16 %v1727_v32, %v1711_v31  ;;  %v1871_v28 = vld [vmem:[%s6508_s6 + $0x570] sm:$0xff]  ;;  %v1918_v31 = vld [vmem:[%s6508_s6 + $0x6e8] sm:$0xff]  ;;  %v1904_v32 = vld [vmem:[%s6508_s6 + $0x678] sm:$0xff] }
 0x21f   :  { %3842 = vmatpush1.bf16.msra.mxu0 %v3841_v40  ;;  %3874 = vmatpush1.bf16.msra.mxu1 %v3873_v41  ;;  %v1741_v40 = vld [vmem:[%s6508_s6 + $0x160] sm:$0xff] }
 0x220   :  { %3844 = vmatprep.subr.bf16.mxu0 %v3843_v43  ;;  %3876 = vmatprep.subr.bf16.mxu1 %v3875_v44  ;;  %v1757_v41 = vld [vmem:[%s6508_s6 + $0x1e0] sm:$0xff]  ;;  %v1743_v43 = vld [vmem:[%s6508_s6 + $0x170] sm:$0xff] }
 0x221   :  { %v1759_v44 = vld [vmem:[%s6508_s6 + $0x1f0] sm:$0xff]  ;;  %v3897_v50 = vpack.c.bf16 %v1757_v41, %v1741_v40  ;;  %v3947_v40 = vpack.c.bf16 %v1920_v33, %v1904_v32 }
 0x222   :  { %v3929_v51 = vpack.c.bf16 %v1759_v44, %v1743_v43  ;;  %v1903_v41 = vld [vmem:[%s6508_s6 + $0x670] sm:$0xff]  ;;  %v1950_v43 = vld [vmem:[%s6508_s6 + $0x7e8] sm:$0xff]  ;;  %v1936_v44 = vld [vmem:[%s6508_s6 + $0x778] sm:$0xff] }
 0x223   :  { %3846 = vmatpush1.bf16.msra.mxu0 %v3845_v52  ;;  %3878 = vmatpush1.bf16.msra.mxu1 %v3877_v53  ;;  %v1773_v52 = vld [vmem:[%s6508_s6 + $0x260] sm:$0xff] }
 0x224   :  { %3848 = vmatprep.subr.bf16.mxu0 %v3847_v57  ;;  %3880 = vmatprep.subr.bf16.mxu1 %v3879_v58  ;;  %v1789_v53 = vld [vmem:[%s6508_s6 + $0x2e0] sm:$0xff]  ;;  %v1775_v57 = vld [vmem:[%s6508_s6 + $0x270] sm:$0xff] }
 0x225   :  { %v1791_v58 = vld [vmem:[%s6508_s6 + $0x2f0] sm:$0xff]  ;;  %v3901_v63 = vpack.c.bf16 %v1789_v53, %v1773_v52  ;;  %v1949_v52 = vld [vmem:[%s6508_s6 + $0x7e0] sm:$0xff] }
 0x226   :  { %v3933_v0 = vpack.c.bf16 %v1791_v58, %v1775_v57  ;;  %v1935_v53 = vld [vmem:[%s6508_s6 + $0x770] sm:$0xff]  ;;  %v1957_v58 = vlaneseq }
 0x227   :  { %3850 = vmatpush1.bf16.msra.mxu0 %v3849_v1  ;;  %3882 = vmatpush1.bf16.msra.mxu1 %v3881_v2  ;;  %v1805_v1 = vld [vmem:[%s6508_s6 + $0x360] sm:$0xff] }
 0x228   :  { %3852 = vmatprep.subr.bf16.mxu0 %v3851_v4  ;;  %3884 = vmatprep.subr.bf16.mxu1 %v3883_v21  ;;  %v1821_v2 = vld [vmem:[%s6508_s6 + $0x3e0] sm:$0xff]  ;;  %v1823_v4 = vld [vmem:[%s6508_s6 + $0x3f0] sm:$0xff]  ;;  %v1838_v21 = vld [vmem:[%s6508_s6 + $0x468] sm:$0xff]  ;;  %v1958_v59 = vshrl.u32 %v1957_v58, 7 }
 0x229   :  { %v3905_v8 = vpack.c.bf16 %v1821_v2, %v1805_v1 }
 0x22a   :  { %v1959_v60 = vsub.s32 0, %v1958_v59  ;;  %v1971_v1 = vsub.s32 3, %v1958_v59  ;;  %v1987_v6 = vsub.s32 7, %v1958_v59 }
 0x22b   :  { %3854 = vmatpush1.bf16.msra.mxu0 %v3853_v11  ;;  %3886 = vmatpush1.bf16.msra.mxu1 %v3885_v12  ;;  %v1853_v11 = vld [vmem:[%s6508_s6 + $0x4e0] sm:$0xff]  ;;  %v3907_v12 = vpack.c.bf16 %v1854_v5, %v1838_v21  ;;  %v1983_v21 = vsub.s32 6, %v1958_v59  ;;  %v1979_v5 = vsub.s32 5, %v1958_v59 }
 0x22c   :  { %3856 = vmatprep.subr.bf16.mxu0 %v3855_v15  ;;  %3888 = vmatprep.subr.bf16.mxu1 %v3887_v16  ;;  %v1855_v15 = vld [vmem:[%s6508_s6 + $0x4f0] sm:$0xff]  ;;  %v1870_v16 = vld [vmem:[%s6508_s6 + $0x568] sm:$0xff]  ;;  %v3909_v22 = vpack.c.bf16 %v1853_v11, %v1837_v10  ;;  %v1992_v62 = vrot.slane %v1954_v61, %v1959_v60 }
 0x22d   :  { %v3941_v23 = vpack.c.bf16 %v1855_v15, %v1839_v14  ;;  %v2012_v7 = vrot.slane %v1954_v61, %v1979_v5 }
 0x22f   :  { %3858 = vmatpush1.bf16.msra.mxu0 %v3857_v25  ;;  %3890 = vmatpush1.bf16.msra.mxu1 %v3889_v26  ;;  %v1885_v25 = vld [vmem:[%s6508_s6 + $0x5e0] sm:$0xff]  ;;  %v3911_v26 = vpack.c.bf16 %v1886_v18, %v1870_v16 }
 0x230   :  { %3892 = vmatprep.subr.bf16.mxu0 %v3891_v29  ;;  %3924 = vmatprep.subr.bf16.mxu1 %v3923_v30  ;;  %v1887_v29 = vld [vmem:[%s6508_s6 + $0x5f0] sm:$0xff]  ;;  %v1902_v30 = vld [vmem:[%s6508_s6 + $0x668] sm:$0xff]  ;;  %v3913_v34 = vpack.c.bf16 %v1885_v25, %v1869_v24 }
 0x231   :  { %v3945_v36 = vpack.c.bf16 %v1887_v29, %v1871_v28 }
 0x232   :  { %2386 = vmatmul.mubr.f32.vlgmr.msra.gmra.mrb[20].mxu0 %v5900_v35  ;;  %2457 = vmatmul.mubr.f32.vlgmr.msra.gmra.mrb[20].mxu1 %v5900_v35 }
 0x233   :  { %3894 = vmatpush1.bf16.msra.mxu0 %v3893_v38  ;;  %3926 = vmatpush1.bf16.msra.mxu1 %v3925_v39  ;;  %v1917_v38 = vld [vmem:[%s6508_s6 + $0x6e0] sm:$0xff]  ;;  %v3915_v39 = vpack.c.bf16 %v1918_v31, %v1902_v30 }
 0x234   :  { %3896 = vmatprep.subr.bf16.mxu0 %v3895_v55  ;;  %3928 = vmatprep.subr.bf16.mxu1 %v3927_v42  ;;  %v1919_v55 = vld [vmem:[%s6508_s6 + $0x6f0] sm:$0xff]  ;;  %v1934_v42 = vld [vmem:[%s6508_s6 + $0x768] sm:$0xff]  ;;  %v3917_v46 = vpack.c.bf16 %v1917_v38, %v1901_v37 }
 0x235   :  { %2527 = vmatprep.mubr.f32.mxu0 %v3972_v47  ;;  %2598 = vmatprep.mubr.f32.mxu1 %v3972_v47  ;;  %v1807_v47 = vld [vmem:[%s6508_s6 + $0x370] sm:$0xff]  ;;  %v3949_v48 = vpack.c.bf16 %v1919_v55, %v1903_v41 }
 0x236   :  { %v3937_v9 = vpack.c.bf16 %v1823_v4, %v1807_v47  ;;  %v1975_v47 = vsub.s32 4, %v1958_v59 }
 0x237   :  { %3898 = vmatpush1.bf16.msra.mxu0 %v3897_v50  ;;  %3930 = vmatpush1.bf16.msra.mxu1 %v3929_v51  ;;  %v3919_v50 = vpack.c.bf16 %v1950_v43, %v1934_v42  ;;  %v3951_v51 = vpack.c.bf16 %v1952_v45, %v1936_v44 }
 0x238   :  { %3900 = vmatprep.subr.bf16.mxu0 %v3899_v54  ;;  %3932 = vmatprep.subr.bf16.mxu1 %v3931_v56  ;;  %v1951_v54 = vld [vmem:[%s6508_s6 + $0x7f0] sm:$0xff]  ;;  %v3921_v56 = vpack.c.bf16 %v1949_v52, %v1933_v49  ;;  %v2008_v4 = vrot.slane %v1954_v61, %v1975_v47 }
 0x239   :  { %v3953_v57 = vpack.c.bf16 %v1951_v54, %v1935_v53 }
 0x23b   :  { %3902 = vmatpush1.bf16.msra.mxu0 %v3901_v63  ;;  %3934 = vmatpush1.bf16.msra.mxu1 %v3933_v0  ;;  %v1967_v63 = vsub.s32 2, %v1958_v59  ;;  %v1963_v0 = vsub.s32 1, %v1958_v59 }
 0x23c   :  { %3904 = vmatprep.subr.bf16.mxu0 %v3903_v17  ;;  %3936 = vmatprep.subr.bf16.mxu1 %v3935_v3  ;;  %v2004_v3 = vrot.slane %v1954_v61, %v1971_v1 }
 0x23d   :  { %v2000_v2 = vrot.slane %v1954_v61, %v1967_v63  ;;  %v1996_v17 = vrot.slane %v1954_v61, %v1963_v0 }
 0x23f   :  { %3906 = vmatpush1.bf16.msra.mxu0 %v3905_v8  ;;  %3938 = vmatpush1.bf16.msra.mxu1 %v3937_v9  ;;  %v2020_v8 = vrot.slane %v1954_v61, %v1987_v6  ;;  %v1953_v9 = vld [vmem:[%s6511_s7] sm:$0xff] }
 0x240   :  { %3908 = vmatprep.subr.bf16.mxu0 %v3907_v12  ;;  %3940 = vmatprep.subr.bf16.mxu1 %v3939_v13  ;;  %v1960_v10 = vrot.slane %v1953_v9, %v1959_v60  ;;  %v1968_v11 = vrot.slane %v1953_v9, %v1967_v63  ;;  %v1964_v12 = vrot.slane %v1953_v9, %v1963_v0 }
 0x241   :  { %v1972_v13 = vrot.slane %v1953_v9, %v1971_v1  ;;  %v1976_v24 = vrot.slane %v1953_v9, %v1975_v47  ;;  %v1984_v25 = vrot.slane %v1953_v9, %v1983_v21 }
 0x243   :  { %3910 = vmatpush1.bf16.msra.mxu0 %v3909_v22  ;;  %3942 = vmatpush1.bf16.msra.mxu1 %v3941_v23 }
 0x244   :  { %3912 = vmatprep.subr.bf16.mxu0 %v3911_v26  ;;  %3944 = vmatprep.subr.bf16.mxu1 %v3943_v27  ;;  %v1980_v26 = vrot.slane %v1953_v9, %v1979_v5  ;;  %v1988_v27 = vrot.slane %v1953_v9, %v1987_v6 }
 0x247   :  { %3914 = vmatpush1.bf16.msra.mxu0 %v3913_v34  ;;  %3946 = vmatpush1.bf16.msra.mxu1 %v3945_v36 }
 0x248   :  { %3916 = vmatprep.subr.bf16.mxu0 %v3915_v39  ;;  %3948 = vmatprep.subr.bf16.mxu1 %v3947_v40 }
 0x24b   :  { %3918 = vmatpush1.bf16.msra.mxu0 %v3917_v46  ;;  %3950 = vmatpush1.bf16.msra.mxu1 %v3949_v48 }
 0x24c   :  { %3920 = vmatprep.subr.bf16.mxu0 %v3919_v50  ;;  %3952 = vmatprep.subr.bf16.mxu1 %v3951_v51 }
 0x24f   :  { %3922 = vmatpush1.bf16.msra.mxu0 %v3921_v56  ;;  %3954 = vmatpush1.bf16.msra.mxu1 %v3953_v57 }
 0x252   :  { %2528 = vmatmul.mubr.f32.vlgmr.msra.gmra.mrb[22].mxu0 %v5900_v35  ;;  %2599 = vmatmul.mubr.f32.vlgmr.msra.gmra.mrb[22].mxu1 %v5900_v35  ;;  %v2016_v35 = vrot.slane %v1954_v61, %v1983_v21 }
 0x2c5   :  { %v2103_v14 = vpop.f32.mrb[16].mxu0  ;;  %v2174_v15 = vpop.f32.mrb[16].mxu1 }
 0x2c6   :  { %v2104_v16 = vadd.f32 %v2103_v14, %v1960_v10  ;;  %v2175_v18 = vadd.f32 %v2174_v15, %v1968_v11  ;;  %v2105_v19 = vpop.f32.mrb[17].mxu0  ;;  %v2176_v20 = vpop.f32.mrb[17].mxu1 }
 0x2c7   :  { %v2106_v22 = vadd.f32 %v2105_v19, %v1964_v12  ;;  %v2177_v23 = vadd.f32 %v2176_v20, %v1972_v13 }
 0x2c8   :  { %2605 = vst [vmem:[%s6512_s8] sm:$0xff] %v2104_v16  ;;  %2607 = vst [vmem:[%s6512_s8 + $0x10] sm:$0xff] %v2175_v18 }
 0x2c9   :  { %2606 = vst [vmem:[%s6512_s8 + $0x8] sm:$0xff] %v2106_v22  ;;  %2608 = vst [vmem:[%s6512_s8 + $0x18] sm:$0xff] %v2177_v23 }
 0x2e5   :  { %v2245_v28 = vpop.f32.mrb[18].mxu0  ;;  %v2316_v29 = vpop.f32.mrb[18].mxu1 }
 0x2e6   :  { %v2246_v30 = vadd.f32 %v2245_v28, %v1976_v24  ;;  %v2317_v31 = vadd.f32 %v2316_v29, %v1984_v25  ;;  %v2247_v32 = vpop.f32.mrb[19].mxu0  ;;  %v2318_v33 = vpop.f32.mrb[19].mxu1 }
 0x2e7   :  { %v2248_v34 = vadd.f32 %v2247_v32, %v1980_v26  ;;  %v2319_v36 = vadd.f32 %v2318_v33, %v1988_v27 }
 0x2e8   :  { %2609 = vst [vmem:[%s6512_s8 + $0x20] sm:$0xff] %v2246_v30  ;;  %2611 = vst [vmem:[%s6512_s8 + $0x30] sm:$0xff] %v2317_v31 }
 0x2e9   :  { %2610 = vst [vmem:[%s6512_s8 + $0x28] sm:$0xff] %v2248_v34  ;;  %2612 = vst [vmem:[%s6512_s8 + $0x38] sm:$0xff] %v2319_v36 }
 0x305   :  { %v2387_v37 = vpop.f32.mrb[20].mxu0  ;;  %v2458_v38 = vpop.f32.mrb[20].mxu1 }
 0x306   :  { %v2388_v39 = vadd.f32 %v2387_v37, %v1992_v62  ;;  %v2459_v40 = vadd.f32 %v2458_v38, %v2000_v2  ;;  %v2389_v41 = vpop.f32.mrb[21].mxu0  ;;  %v2460_v55 = vpop.f32.mrb[21].mxu1 }
 0x307   :  { %v2390_v42 = vadd.f32 %v2389_v41, %v1996_v17  ;;  %v2461_v43 = vadd.f32 %v2460_v55, %v2004_v3 }
 0x308   :  { %2613 = vst [vmem:[%s6512_s8 + $0x40] sm:$0xff] %v2388_v39  ;;  %2615 = vst [vmem:[%s6512_s8 + $0x50] sm:$0xff] %v2459_v40 }
 0x309   :  { %2614 = vst [vmem:[%s6512_s8 + $0x48] sm:$0xff] %v2390_v42  ;;  %2616 = vst [vmem:[%s6512_s8 + $0x58] sm:$0xff] %v2461_v43 }
 0x325   :  { %v2529_v44 = vpop.f32.mrb[22].mxu0  ;;  %v2600_v45 = vpop.f32.mrb[22].mxu1 }
 0x326   :  { %v2530_v46 = vadd.f32 %v2529_v44, %v2008_v4  ;;  %v2601_v48 = vadd.f32 %v2600_v45, %v2016_v35  ;;  %v2531_v49 = vpop.f32.mrb[23].mxu0  ;;  %v2602_v50 = vpop.f32.mrb[23].mxu1 }
 0x327   :  { %v2532_v51 = vadd.f32 %v2531_v49, %v2012_v7  ;;  %v2603_v52 = vadd.f32 %v2602_v50, %v2020_v8 }
 0x328   :  { %2617 = vst [vmem:[%s6512_s8 + $0x60] sm:$0xff] %v2530_v46  ;;  %2619 = vst [vmem:[%s6512_s8 + $0x70] sm:$0xff] %v2601_v48 }
 0x329   :  { %2618 = vst [vmem:[%s6512_s8 + $0x68] sm:$0xff] %v2532_v51  ;;  %2620 = vst [vmem:[%s6512_s8 + $0x78] sm:$0xff] %v2603_v52 }

// kernel: vae_forward_pallas.9
= control target key start
LH: loop header
LB: loop body
LE: loop exit
PB: predicated region body
PF: predicated region fallthrough
CT: control target
= control target key end

     0   :  { %vm105_vm0 = vcmask 261120   ;;  %vm460_vm1 = vcmask 523264   ;;  %s1071_s1 = inlined_call_operand.vmem [shape: f32[288,64], index: 1, kind: input, shape index: {}]   ;;  %s1072_s0 = inlined_call_operand.vmem [shape: f32[128,288], index: 0, kind: input, shape index: {}]   ;;  %s1073_s2 = inlined_call_operand.vmem [shape: f32[1,64], index: 2, kind: input, shape index: {}]   ;;  %s1074_s3 = inlined_call_operand.vmem [shape: f32[128,64], index: 3, kind: output, shape index: {}]  }
   0x1   :  { %v78_v0 = vld [vmem:[%s1071_s1 + $0x80] sm:$0xff]  ;;  %v79_v1 = vld [vmem:[%s1071_s1 + $0x88] sm:$0xff]  ;;  %v80_v5 = vld [vmem:[%s1071_s1 + $0x90] sm:$0xff] }
   0x2   :  { %v62_v2 = vld [vmem:[%s1071_s1] sm:$0xff]  ;;  %v630_v3 = vpack.c.bf16 %v79_v1, %v78_v0  ;;  %v63_v4 = vld [vmem:[%s1071_s1 + $0x8] sm:$0xff]  ;;  %v81_v6 = vld [vmem:[%s1071_s1 + $0x98] sm:$0xff] }
   0x3   :  { %v632_v7 = vpack.c.bf16 %v63_v4, %v62_v2  ;;  %v634_v8 = vpack.c.bf16 %v81_v6, %v80_v5  ;;  %v64_v9 = vld [vmem:[%s1071_s1 + $0x10] sm:$0xff]  ;;  %v65_v10 = vld [vmem:[%s1071_s1 + $0x18] sm:$0xff]  ;;  %v82_v11 = vld [vmem:[%s1071_s1 + $0xa0] sm:$0xff] }
   0x4   :  { %631 = vmatprep.subr.bf16.mxu0 %v630_v3  ;;  %670 = vmatprep.subr.bf16.mxu1 %v630_v3  ;;  %v83_v12 = vld [vmem:[%s1071_s1 + $0xa8] sm:$0xff]  ;;  %v636_v13 = vpack.c.bf16 %v65_v10, %v64_v9  ;;  %v66_v15 = vld [vmem:[%s1071_s1 + $0x20] sm:$0xff]  ;;  %v84_v17 = vld [vmem:[%s1071_s1 + $0xb0] sm:$0xff] }
   0x5   :  { %633 = vmatpush3.bf16.msra.mxu0 %v632_v7  ;;  %678 = vmatpush3.bf16.msra.mxu1 %v632_v7  ;;  %v638_v14 = vpack.c.bf16 %v83_v12, %v82_v11  ;;  %v67_v16 = vld [vmem:[%s1071_s1 + $0x28] sm:$0xff]  ;;  %v85_v18 = vld [vmem:[%s1071_s1 + $0xb8] sm:$0xff]  ;;  %v68_v21 = vld [vmem:[%s1071_s1 + $0x30] sm:$0xff] }
   0x6   :  { %635 = vmatprep.subr.bf16.mxu0 %v634_v8  ;;  %671 = vmatprep.subr.bf16.mxu1 %v634_v8  ;;  %v640_v19 = vpack.c.bf16 %v67_v16, %v66_v15  ;;  %v642_v20 = vpack.c.bf16 %v85_v18, %v84_v17  ;;  %v69_v22 = vld [vmem:[%s1071_s1 + $0x38] sm:$0xff]  ;;  %v86_v23 = vld [vmem:[%s1071_s1 + $0xc0] sm:$0xff]  ;;  %v87_v24 = vld [vmem:[%s1071_s1 + $0xc8] sm:$0xff] }
   0x7   :  { %v15_v25 = vld [vmem:[%s1072_s0 + $0x8] sm:$0xff]  ;;  %v644_v27 = vpack.c.bf16 %v69_v22, %v68_v21  ;;  %v646_v28 = vpack.c.bf16 %v87_v24, %v86_v23  ;;  %v70_v29 = vld [vmem:[%s1071_s1 + $0x40] sm:$0xff]  ;;  %v88_v31 = vld [vmem:[%s1071_s1 + $0xd0] sm:$0xff] }
   0x8   :  { %218 = vmatprep.mubr.f32.mxu0 %v15_v25  ;;  %v51_v26 = vld [vmem:[%s1072_s0 + $0x128] sm:$0xff]  ;;  %v89_v32 = vld [vmem:[%s1071_s1 + $0xd8] sm:$0xff]  ;;  %v72_v35 = vld [vmem:[%s1071_s1 + $0x50] sm:$0xff] }
   0x9   :  { %637 = vmatpush3.bf16.msra.mxu0 %v636_v13  ;;  %679 = vmatpush3.bf16.msra.mxu1 %v636_v13  ;;  %v71_v30 = vld [vmem:[%s1071_s1 + $0x48] sm:$0xff]  ;;  %v650_v34 = vpack.c.bf16 %v89_v32, %v88_v31  ;;  %v73_v36 = vld [vmem:[%s1071_s1 + $0x58] sm:$0xff]  ;;  %v90_v37 = vld [vmem:[%s1071_s1 + $0xe0] sm:$0xff] }
   0xa   :  { %639 = vmatprep.subr.bf16.mxu0 %v638_v14  ;;  %672 = vmatprep.subr.bf16.mxu1 %v638_v14  ;;  %v648_v33 = vpack.c.bf16 %v71_v30, %v70_v29  ;;  %v91_v38 = vld [vmem:[%s1071_s1 + $0xe8] sm:$0xff]  ;;  %v652_v39 = vpack.c.bf16 %v73_v36, %v72_v35  ;;  %v74_v41 = vld [vmem:[%s1071_s1 + $0x60] sm:$0xff]  ;;  %v92_v43 = vld [vmem:[%s1071_s1 + $0xf0] sm:$0xff] }
   0xb   :  { %278 = vmatprep.mubr.f32.mxu1 %v51_v26  ;;  %v654_v40 = vpack.c.bf16 %v91_v38, %v90_v37  ;;  %v75_v42 = vld [vmem:[%s1071_s1 + $0x68] sm:$0xff]  ;;  %v93_v44 = vld [vmem:[%s1071_s1 + $0xf8] sm:$0xff]  ;;  %v76_v47 = vld [vmem:[%s1071_s1 + $0x70] sm:$0xff] }
   0xc   :  { %v656_v45 = vpack.c.bf16 %v75_v42, %v74_v41  ;;  %v658_v46 = vpack.c.bf16 %v93_v44, %v92_v43  ;;  %v77_v48 = vld [vmem:[%s1071_s1 + $0x78] sm:$0xff]  ;;  %v94_v49 = vld [vmem:[%s1071_s1 + $0x100] sm:$0xff]  ;;  %v95_v50 = vld [vmem:[%s1071_s1 + $0x108] sm:$0xff] }
   0xd   :  { %641 = vmatpush3.bf16.msra.mxu0 %v640_v19  ;;  %680 = vmatpush3.bf16.msra.mxu1 %v640_v19  ;;  %v660_v51 = vpack.c.bf16 %v77_v48, %v76_v47  ;;  %v662_v52 = vpack.c.bf16 %v95_v50, %v94_v49  ;;  %v96_v53 = vld [vmem:[%s1071_s1 + $0x110] sm:$0xff]  ;;  %v97_v54 = vld [vmem:[%s1071_s1 + $0x118] sm:$0xff]  ;;  %v14_v55 = vld [vmem:[%s1072_s0] sm:$0xff] }
   0xe   :  { %643 = vmatprep.subr.bf16.mxu0 %v642_v20  ;;  %673 = vmatprep.subr.bf16.mxu1 %v642_v20  ;;  %v50_v56 = vld [vmem:[%s1072_s0 + $0x120] sm:$0xff]  ;;  %v666_v59 = vpack.c.bf16 %v97_v54, %v96_v53  ;;  %v17_v60 = vld [vmem:[%s1072_s0 + $0x18] sm:$0xff]  ;;  %v20_v0 = vld [vmem:[%s1072_s0 + $0x30] sm:$0xff] }
   0xf   :  { %v18_v57 = vld [vmem:[%s1072_s0 + $0x20] sm:$0xff]  ;;  %v53_v61 = vld [vmem:[%s1072_s0 + $0x138] sm:$0xff]  ;;  %v56_v1 = vld [vmem:[%s1072_s0 + $0x150] sm:$0xff] }
  0x10   :  { %v54_v58 = vld [vmem:[%s1072_s0 + $0x140] sm:$0xff]  ;;  %v21_v62 = vld [vmem:[%s1072_s0 + $0x38] sm:$0xff]  ;;  %v24_v2 = vld [vmem:[%s1072_s0 + $0x50] sm:$0xff] }
  0x11   :  { %645 = vmatpush3.bf16.msra.mxu0 %v644_v27  ;;  %681 = vmatpush3.bf16.msra.mxu1 %v644_v27  ;;  %v57_v63 = vld [vmem:[%s1072_s0 + $0x158] sm:$0xff]  ;;  %v60_v3 = vld [vmem:[%s1072_s0 + $0x170] sm:$0xff]  ;;  %v23_v4 = vld [vmem:[%s1072_s0 + $0x48] sm:$0xff] }
  0x12   :  { %647 = vmatprep.subr.bf16.mxu0 %v646_v28  ;;  %674 = vmatprep.subr.bf16.mxu1 %v646_v28  ;;  %v59_v5 = vld [vmem:[%s1072_s0 + $0x168] sm:$0xff]  ;;  %v16_v7 = vld [vmem:[%s1072_s0 + $0x10] sm:$0xff]  ;;  %v26_v8 = vld [vmem:[%s1072_s0 + $0x60] sm:$0xff] }
  0x13   :  { %v27_v6 = vld [vmem:[%s1072_s0 + $0x68] sm:$0xff]  ;;  %v30_v10 = vld [vmem:[%s1072_s0 + $0x80] sm:$0xff]  ;;  %v29_v12 = vld [vmem:[%s1072_s0 + $0x78] sm:$0xff] }
  0x14   :  { %v19_v9 = vld [vmem:[%s1072_s0 + $0x28] sm:$0xff]  ;;  %v22_v11 = vld [vmem:[%s1072_s0 + $0x40] sm:$0xff]  ;;  %v25_v13 = vld [vmem:[%s1072_s0 + $0x58] sm:$0xff] }
  0x15   :  { %649 = vmatpush3.bf16.msra.mxu0 %v648_v33  ;;  %682 = vmatpush3.bf16.msra.mxu1 %v648_v33  ;;  %v33_v14 = vld [vmem:[%s1072_s0 + $0x98] sm:$0xff]  ;;  %v28_v15 = vld [vmem:[%s1072_s0 + $0x70] sm:$0xff]  ;;  %v31_v17 = vld [vmem:[%s1072_s0 + $0x88] sm:$0xff] }
  0x16   :  { %651 = vmatprep.subr.bf16.mxu0 %v650_v34  ;;  %675 = vmatprep.subr.bf16.mxu1 %v650_v34  ;;  %v32_v16 = vld [vmem:[%s1072_s0 + $0x90] sm:$0xff]  ;;  %v34_v19 = vld [vmem:[%s1072_s0 + $0xa0] sm:$0xff]  ;;  %v35_v20 = vld [vmem:[%s1072_s0 + $0xa8] sm:$0xff] }
  0x17   :  { %v36_v18 = vld [vmem:[%s1072_s0 + $0xb0] sm:$0xff]  ;;  %v37_v21 = vld [vmem:[%s1072_s0 + $0xb8] sm:$0xff]  ;;  %v39_v22 = vld [vmem:[%s1072_s0 + $0xc8] sm:$0xff] }
  0x18   :  { %v40_v23 = vld [vmem:[%s1072_s0 + $0xd0] sm:$0xff]  ;;  %v38_v24 = vld [vmem:[%s1072_s0 + $0xc0] sm:$0xff]  ;;  %v43_v25 = vld [vmem:[%s1072_s0 + $0xe8] sm:$0xff] }
  0x19   :  { %653 = vmatpush3.bf16.msra.mxu0 %v652_v39  ;;  %683 = vmatpush3.bf16.msra.mxu1 %v652_v39  ;;  %v42_v26 = vld [vmem:[%s1072_s0 + $0xe0] sm:$0xff]  ;;  %v41_v28 = vld [vmem:[%s1072_s0 + $0xd8] sm:$0xff]  ;;  %v52_v31 = vld [vmem:[%s1072_s0 + $0x130] sm:$0xff] }
  0x1a   :  { %655 = vmatprep.subr.bf16.mxu0 %v654_v40  ;;  %676 = vmatprep.subr.bf16.mxu1 %v654_v40  ;;  %v46_v27 = vld [vmem:[%s1072_s0 + $0x100] sm:$0xff]  ;;  %v49_v29 = vld [vmem:[%s1072_s0 + $0x118] sm:$0xff]  ;;  %v44_v32 = vld [vmem:[%s1072_s0 + $0xf0] sm:$0xff] }
  0x1b   :  { %v45_v30 = vld [vmem:[%s1072_s0 + $0xf8] sm:$0xff]  ;;  %v55_v33 = vld [vmem:[%s1072_s0 + $0x148] sm:$0xff]  ;;  %v48_v34 = vld [vmem:[%s1072_s0 + $0x110] sm:$0xff] }
  0x1c   :  { %v58_v35 = vld [vmem:[%s1072_s0 + $0x160] sm:$0xff]  ;;  %v47_v36 = vld [vmem:[%s1072_s0 + $0x108] sm:$0xff]  ;;  %v61_v37 = vld [vmem:[%s1072_s0 + $0x178] sm:$0xff] }
  0x1d   :  { %657 = vmatpush3.bf16.msra.mxu0 %v656_v45  ;;  %684 = vmatpush3.bf16.msra.mxu1 %v656_v45 }
  0x1e   :  { %659 = vmatprep.subr.bf16.mxu0 %v658_v46  ;;  %677 = vmatprep.subr.bf16.mxu1 %v658_v46 }
  0x21   :  { %661 = vmatpush3.bf16.msra.mxu0 %v660_v51  ;;  %685 = vmatpush3.bf16.msra.mxu1 %v660_v51 }
  0x22   :  { %663 = vmatprep.subr.bf16.mxu1 %v662_v52 }
  0x24   :  { %219 = vmatmul.mubr.f32.vlgmr.msra.gmra.mrb[0].mxu0 %v14_v55  ;;  %279 = vmatmul.mubr.f32.vlgmr.msra.gmra.mrb[0].mxu1 %v50_v56 }
  0x25   :  { %223 = vmatprep.mubr.f32.mxu0 %v18_v57  ;;  %283 = vmatprep.mubr.f32.mxu1 %v54_v58 }
  0x26   :  { %665 = vmatpush3.bf16.msra.mxu1 %v662_v52 }
  0x27   :  { %667 = vmatprep.subr.bf16.mxu1 %v666_v59 }
  0x28   :  { %224 = vmatmul.mubr.f32.gmra.mrb[2].mxu0 %v17_v60  ;;  %284 = vmatmul.mubr.f32.gmra.mrb[2].mxu1 %v53_v61  ;;  %v983_v60 = vld [vmem:[%s1073_s2] ss:$0 sm:$0xff] }
  0x29   :  { %228 = vmatprep.mubr.f32.mxu0 %v21_v62  ;;  %288 = vmatprep.mubr.f32.mxu1 %v57_v63 }
  0x2a   :  { %669 = vmatpush3.bf16.msra.mxu1 %v666_v59 }
  0x2c   :  { %229 = vmatmul.mubr.f32.gmra.mrb[4].mxu0 %v20_v0  ;;  %289 = vmatmul.mubr.f32.gmra.mrb[4].mxu1 %v56_v1 }
  0x2d   :  { %233 = vmatprep.mubr.f32.mxu0 %v24_v2  ;;  %293 = vmatprep.mubr.f32.mxu1 %v60_v3 }
  0x30   :  { %234 = vmatmul.mubr.f32.gmra.mrb[6].mxu0 %v23_v4  ;;  %294 = vmatmul.mubr.f32.gmra.mrb[6].mxu1 %v59_v5 }
  0x31   :  { %238 = vmatprep.mubr.f32.mxu0 %v27_v6  ;;  %606 = vmatprep.mubr.msk.f32.mxu1 %vm105_vm0, %v16_v7 }
  0x34   :  { %239 = vmatmul.mubr.f32.gmra.mrb[8].mxu0 %v26_v8  ;;  %607 = vmatmul.mubr.msk.f32.vlgmr.msra.gmra.mrb[8].mxu1 %vm105_vm0, %v19_v9 }
  0x35   :  { %243 = vmatprep.mubr.f32.mxu0 %v30_v10  ;;  %609 = vmatprep.mubr.msk.f32.mxu1 %vm105_vm0, %v22_v11 }
  0x38   :  { %244 = vmatmul.mubr.f32.gmra.mrb[10].mxu0 %v29_v12  ;;  %610 = vmatmul.mubr.msk.f32.gmra.mrb[10].mxu1 %vm105_vm0, %v25_v13 }
  0x39   :  { %248 = vmatprep.mubr.f32.mxu0 %v33_v14  ;;  %612 = vmatprep.mubr.msk.f32.mxu1 %vm105_vm0, %v28_v15 }
  0x3c   :  { %249 = vmatmul.mubr.f32.gmra.mrb[12].mxu0 %v32_v16  ;;  %613 = vmatmul.mubr.msk.f32.gmra.mrb[12].mxu1 %vm105_vm0, %v31_v17 }
  0x3d   :  { %253 = vmatprep.mubr.f32.mxu0 %v36_v18  ;;  %615 = vmatprep.mubr.msk.f32.mxu1 %vm105_vm0, %v34_v19 }
  0x40   :  { %254 = vmatmul.mubr.f32.gmra.mrb[14].mxu0 %v35_v20  ;;  %616 = vmatmul.mubr.msk.f32.gmra.mrb[14].mxu1 %vm105_vm0, %v37_v21 }
  0x41   :  { %258 = vmatprep.mubr.f32.mxu0 %v39_v22  ;;  %618 = vmatprep.mubr.msk.f32.mxu1 %vm105_vm0, %v40_v23 }
  0x44   :  { %259 = vmatmul.mubr.f32.gmra.mrb[16].mxu0 %v38_v24  ;;  %619 = vmatmul.mubr.msk.f32.gmra.mrb[16].mxu1 %vm105_vm0, %v43_v25 }
  0x45   :  { %263 = vmatprep.mubr.f32.mxu0 %v42_v26  ;;  %621 = vmatprep.mubr.msk.f32.mxu1 %vm105_vm0, %v46_v27 }
  0x48   :  { %264 = vmatmul.mubr.f32.gmra.mrb[18].mxu0 %v41_v28  ;;  %622 = vmatmul.mubr.msk.f32.gmra.mrb[18].mxu1 %vm105_vm0, %v49_v29 }
  0x49   :  { %268 = vmatprep.mubr.f32.mxu0 %v45_v30  ;;  %624 = vmatprep.mubr.msk.f32.mxu1 %vm105_vm0, %v52_v31 }
  0x4c   :  { %269 = vmatmul.mubr.f32.gmra.mrb[20].mxu0 %v44_v32  ;;  %625 = vmatmul.mubr.msk.f32.gmra.mrb[20].mxu1 %vm105_vm0, %v55_v33 }
  0x4d   :  { %273 = vmatprep.mubr.f32.mxu0 %v48_v34  ;;  %627 = vmatprep.mubr.msk.f32.mxu1 %vm105_vm0, %v58_v35 }
  0x50   :  { %274 = vmatmul.mubr.f32.gmra.mrb[22].mxu0 %v47_v36  ;;  %628 = vmatmul.mubr.msk.f32.gmra.mrb[22].mxu1 %vm105_vm0, %v61_v37 }
  0xf7   :  { %v530_v38 = vpop.f32.mrb[0].mxu0  ;;  %v566_v39 = vpop.f32.mrb[0].mxu1 }
  0xf8   :  { %v531_v40 = vpop.f32.mrb[1].mxu0  ;;  %v567_v41 = vpop.f32.mrb[1].mxu1 }
  0xf9   :  { %v532_v42 = vadd.f32 %v531_v40, %v530_v38  ;;  %v974_v43 = vadd.f32 %v567_v41, %v566_v39 }
  0xfb   :  { %v533_v44 = vpop.f32.mrb[2].mxu0  ;;  %v569_v45 = vpop.f32.mrb[2].mxu1  ;;  %v221_v2 = vadd.f32 %v532_v42, %v983_v60 }
  0xfc   :  { %v534_v46 = vpop.f32.mrb[3].mxu0  ;;  %v570_v47 = vpop.f32.mrb[3].mxu1 }
  0xfd   :  { %v535_v48 = vadd.f32 %v534_v46, %v533_v44  ;;  %v976_v49 = vadd.f32 %v570_v47, %v569_v45 }
  0xff   :  { %v536_v50 = vpop.f32.mrb[4].mxu0  ;;  %v572_v51 = vpop.f32.mrb[4].mxu1  ;;  %v226_v63 = vadd.f32 %v535_v48, %v983_v60 }
 0x100   :  { %v537_v52 = vpop.f32.mrb[5].mxu0  ;;  %v573_v53 = vpop.f32.mrb[5].mxu1 }
 0x101   :  { %v538_v54 = vadd.f32 %v537_v52, %v536_v50  ;;  %v978_v55 = vadd.f32 %v573_v53, %v572_v51 }
 0x103   :  { %v539_v56 = vpop.f32.mrb[6].mxu0  ;;  %v575_v57 = vpop.f32.mrb[6].mxu1  ;;  %v231_v13 = vadd.f32 %v538_v54, %v983_v60 }
 0x104   :  { %v540_v58 = vpop.f32.mrb[7].mxu0  ;;  %v576_v59 = vpop.f32.mrb[7].mxu1 }
 0x105   :  { %v541_v61 = vadd.f32 %v540_v58, %v539_v56  ;;  %v985_v62 = vadd.f32 %v576_v59, %v575_v57  ;;  %v286_v58 = vadd.f32 %v976_v49, %v983_v60 }
 0x107   :  { %v542_v0 = vpop.f32.mrb[8].mxu0  ;;  %v608_v1 = vpop.f32.mrb[8].mxu1  ;;  %v236_v9 = vadd.f32 %v541_v61, %v983_v60 }
 0x108   :  { %v371_v3 = vadd.f32 %v608_v1, %v226_v63  ;;  %v543_v4 = vpop.f32.mrb[9].mxu0  ;;  %v365_v5 = vpop.f32.mrb[9].mxu1  ;;  %v281_v1 = vadd.f32 %v974_v43, %v983_v60 }
 0x109   :  { %v544_v6 = vadd.f32 %v543_v4, %v542_v0  ;;  %v366_v7 = vadd.f32 %v365_v5, %v221_v2 }
 0x10a   :  { %v445_v8 = vmax.f32 %v371_v3, 0.0 }
 0x10b   :  { %v444_v10 = vmax.f32 %v366_v7, 0.0  ;;  %v545_v11 = vpop.f32.mrb[10].mxu0  ;;  %v611_v12 = vpop.f32.mrb[10].mxu1  ;;  %v241_v24 = vadd.f32 %v544_v6, %v983_v60 }
 0x10c   :  { %462 = vst.msk [vmem:[%s1074_s3 + $0x8] sm:$0xff] %vm460_vm1, %v445_v8  ;;  %v381_v14 = vadd.f32 %v611_v12, %v236_v9  ;;  %v546_v15 = vpop.f32.mrb[11].mxu0  ;;  %v375_v16 = vpop.f32.mrb[11].mxu1  ;;  %v296_v8 = vadd.f32 %v985_v62, %v983_v60 }
 0x10d   :  { %461 = vst.msk [vmem:[%s1074_s3] sm:$0xff] %vm460_vm1, %v444_v10  ;;  %v547_v17 = vadd.f32 %v546_v15, %v545_v11  ;;  %v376_v18 = vadd.f32 %v375_v16, %v231_v13  ;;  %v291_v13 = vadd.f32 %v978_v55, %v983_v60 }
 0x10e   :  { %v447_v19 = vmax.f32 %v381_v14, 0.0 }
 0x10f   :  { %v446_v20 = vmax.f32 %v376_v18, 0.0  ;;  %v548_v21 = vpop.f32.mrb[12].mxu0  ;;  %v246_v22 = vadd.f32 %v547_v17, %v983_v60  ;;  %v614_v23 = vpop.f32.mrb[12].mxu1 }
 0x110   :  { %464 = vst.msk [vmem:[%s1074_s3 + $0x18] sm:$0xff] %vm460_vm1, %v447_v19  ;;  %v549_v25 = vpop.f32.mrb[13].mxu0  ;;  %v385_v26 = vpop.f32.mrb[13].mxu1 }
 0x111   :  { %463 = vst.msk [vmem:[%s1074_s3 + $0x10] sm:$0xff] %vm460_vm1, %v446_v20  ;;  %v391_v27 = vadd.f32 %v614_v23, %v246_v22  ;;  %v550_v28 = vadd.f32 %v549_v25, %v548_v21  ;;  %v386_v29 = vadd.f32 %v385_v26, %v241_v24 }
 0x113   :  { %v449_v30 = vmax.f32 %v391_v27, 0.0  ;;  %v448_v31 = vmax.f32 %v386_v29, 0.0  ;;  %v551_v32 = vpop.f32.mrb[14].mxu0  ;;  %v617_v33 = vpop.f32.mrb[14].mxu1  ;;  %v251_v34 = vadd.f32 %v550_v28, %v983_v60 }
 0x114   :  { %v552_v35 = vpop.f32.mrb[15].mxu0  ;;  %v395_v36 = vpop.f32.mrb[15].mxu1 }
 0x115   :  { %466 = vst.msk [vmem:[%s1074_s3 + $0x28] sm:$0xff] %vm460_vm1, %v449_v30  ;;  %465 = vst.msk [vmem:[%s1074_s3 + $0x20] sm:$0xff] %vm460_vm1, %v448_v31  ;;  %v553_v37 = vadd.f32 %v552_v35, %v551_v32  ;;  %v396_v38 = vadd.f32 %v395_v36, %v251_v34 }
 0x117   :  { %v256_v39 = vadd.f32 %v553_v37, %v983_v60  ;;  %v450_v40 = vmax.f32 %v396_v38, 0.0  ;;  %v554_v41 = vpop.f32.mrb[16].mxu0  ;;  %v620_v42 = vpop.f32.mrb[16].mxu1 }
 0x118   :  { %v555_v44 = vpop.f32.mrb[17].mxu0  ;;  %v405_v45 = vpop.f32.mrb[17].mxu1 }
 0x119   :  { %v401_v46 = vadd.f32 %v617_v33, %v256_v39  ;;  %467 = vst.msk [vmem:[%s1074_s3 + $0x30] sm:$0xff] %vm460_vm1, %v450_v40  ;;  %v556_v47 = vadd.f32 %v555_v44, %v554_v41 }
 0x11b   :  { %v451_v48 = vmax.f32 %v401_v46, 0.0  ;;  %v557_v50 = vpop.f32.mrb[18].mxu0  ;;  %v261_v51 = vadd.f32 %v556_v47, %v983_v60  ;;  %v623_v52 = vpop.f32.mrb[18].mxu1 }
 0x11c   :  { %v558_v53 = vpop.f32.mrb[19].mxu0  ;;  %v415_v54 = vpop.f32.mrb[19].mxu1 }
 0x11d   :  { %468 = vst.msk [vmem:[%s1074_s3 + $0x38] sm:$0xff] %vm460_vm1, %v451_v48  ;;  %v406_v56 = vadd.f32 %v405_v45, %v261_v51  ;;  %v559_v57 = vadd.f32 %v558_v53, %v557_v50 }
 0x11f   :  { %v452_v59 = vmax.f32 %v406_v56, 0.0  ;;  %v266_v61 = vadd.f32 %v559_v57, %v983_v60  ;;  %v560_v63 = vpop.f32.mrb[20].mxu0  ;;  %v626_v0 = vpop.f32.mrb[20].mxu1 }
 0x120   :  { %v431_v2 = vadd.f32 %v626_v0, %v286_v58  ;;  %v561_v3 = vpop.f32.mrb[21].mxu0  ;;  %v425_v4 = vpop.f32.mrb[21].mxu1 }
 0x121   :  { %469 = vst.msk [vmem:[%s1074_s3 + $0x40] sm:$0xff] %vm460_vm1, %v452_v59  ;;  %v411_v5 = vadd.f32 %v620_v42, %v266_v61  ;;  %v562_v6 = vadd.f32 %v561_v3, %v560_v63  ;;  %v426_v7 = vadd.f32 %v425_v4, %v281_v1 }
 0x122   :  { %v457_v49 = vmax.f32 %v431_v2, 0.0 }
 0x123   :  { %v453_v9 = vmax.f32 %v411_v5, 0.0  ;;  %v271_v10 = vadd.f32 %v562_v6, %v983_v60  ;;  %v456_v11 = vmax.f32 %v426_v7, 0.0  ;;  %v563_v43 = vpop.f32.mrb[22].mxu0  ;;  %v629_v12 = vpop.f32.mrb[22].mxu1 }
 0x124   :  { %474 = vst.msk [vmem:[%s1074_s3 + $0x68] sm:$0xff] %vm460_vm1, %v457_v49  ;;  %v441_v14 = vadd.f32 %v629_v12, %v296_v8  ;;  %v564_v15 = vpop.f32.mrb[23].mxu0  ;;  %v435_v16 = vpop.f32.mrb[23].mxu1 }
 0x125   :  { %470 = vst.msk [vmem:[%s1074_s3 + $0x48] sm:$0xff] %vm460_vm1, %v453_v9  ;;  %v416_v62 = vadd.f32 %v415_v54, %v271_v10  ;;  %473 = vst.msk [vmem:[%s1074_s3 + $0x60] sm:$0xff] %vm460_vm1, %v456_v11  ;;  %v565_v55 = vadd.f32 %v564_v15, %v563_v43  ;;  %v436_v17 = vadd.f32 %v435_v16, %v291_v13 }
 0x126   :  { %v459_v18 = vmax.f32 %v441_v14, 0.0 }
 0x127   :  { %v454_v19 = vmax.f32 %v416_v62, 0.0  ;;  %v276_v20 = vadd.f32 %v565_v55, %v983_v60  ;;  %v458_v21 = vmax.f32 %v436_v17, 0.0 }
 0x128   :  { %476 = vst.msk [vmem:[%s1074_s3 + $0x78] sm:$0xff] %vm460_vm1, %v459_v18 }
 0x129   :  { %471 = vst.msk [vmem:[%s1074_s3 + $0x50] sm:$0xff] %vm460_vm1, %v454_v19  ;;  %v421_v22 = vadd.f32 %v623_v52, %v276_v20  ;;  %475 = vst.msk [vmem:[%s1074_s3 + $0x70] sm:$0xff] %vm460_vm1, %v458_v21 }
 0x12b   :  { %v455_v23 = vmax.f32 %v421_v22, 0.0 }
 0x12d   :  { %472 = vst.msk [vmem:[%s1074_s3 + $0x58] sm:$0xff] %vm460_vm1, %v455_v23 }

// kernel: vae_forward_pallas.10
= control target key start
LH: loop header
LB: loop body
LE: loop exit
PB: predicated region body
PF: predicated region fallthrough
CT: control target
= control target key end

     0   :  { %vm173_vm0 = vcmask 523264   ;;  %vm673_vm1 = vcmask 130048   ;;  %s1624_s1 = inlined_call_operand.vmem [shape: f32[576,16], index: 1, kind: input, shape index: {}]   ;;  %s1625_s0 = inlined_call_operand.vmem [shape: f32[128,576], index: 0, kind: input, shape index: {}]   ;;  %s1626_s2 = inlined_call_operand.vmem [shape: f32[1,16], index: 2, kind: input, shape index: {}]   ;;  %s1627_s3 = inlined_call_operand.vmem [shape: f32[128,16], index: 3, kind: output, shape index: {}]  }
   0x1   :  { %v110_v0 = vld [vmem:[%s1624_s1 + $0x80] sm:$0xff]  ;;  %v111_v1 = vld [vmem:[%s1624_s1 + $0x88] sm:$0xff]  ;;  %v112_v11 = vld [vmem:[%s1624_s1 + $0x90] sm:$0xff] }
   0x2   :  { %v142_v2 = vld [vmem:[%s1624_s1 + $0x180] sm:$0xff]  ;;  %v935_v3 = vpack.c.bf16 %v111_v1, %v110_v0  ;;  %v143_v4 = vld [vmem:[%s1624_s1 + $0x188] sm:$0xff]  ;;  %v113_v13 = vld [vmem:[%s1624_s1 + $0x98] sm:$0xff] }
   0x3   :  { %v94_v5 = vld [vmem:[%s1624_s1] sm:$0xff]  ;;  %v95_v6 = vld [vmem:[%s1624_s1 + $0x8] sm:$0xff]  ;;  %v967_v7 = vpack.c.bf16 %v143_v4, %v142_v2  ;;  %v144_v14 = vld [vmem:[%s1624_s1 + $0x190] sm:$0xff]  ;;  %v939_v16 = vpack.c.bf16 %v113_v13, %v112_v11 }
   0x4   :  { %v937_v8 = vpack.c.bf16 %v95_v6, %v94_v5  ;;  %v126_v9 = vld [vmem:[%s1624_s1 + $0x100] sm:$0xff]  ;;  %v127_v10 = vld [vmem:[%s1624_s1 + $0x108] sm:$0xff]  ;;  %936 = vmatprep.subr.bf16.mxu0 %v935_v3  ;;  %v145_v15 = vld [vmem:[%s1624_s1 + $0x198] sm:$0xff] }
   0x5   :  { %v969_v12 = vpack.c.bf16 %v127_v10, %v126_v9  ;;  %968 = vmatprep.subr.bf16.mxu1 %v967_v7  ;;  %v971_v17 = vpack.c.bf16 %v145_v15, %v144_v14  ;;  %v96_v18 = vld [vmem:[%s1624_s1 + $0x10] sm:$0xff]  ;;  %v97_v19 = vld [vmem:[%s1624_s1 + $0x18] sm:$0xff]  ;;  %v114_v23 = vld [vmem:[%s1624_s1 + $0xa0] sm:$0xff] }
   0x6   :  { %938 = vmatpush3.bf16.msra.mxu0 %v937_v8  ;;  %v128_v20 = vld [vmem:[%s1624_s1 + $0x110] sm:$0xff]  ;;  %v941_v21 = vpack.c.bf16 %v97_v19, %v96_v18  ;;  %v129_v22 = vld [vmem:[%s1624_s1 + $0x118] sm:$0xff]  ;;  %v115_v24 = vld [vmem:[%s1624_s1 + $0xa8] sm:$0xff] }
   0x7   :  { %970 = vmatpush3.bf16.msra.mxu1 %v969_v12  ;;  %940 = vmatprep.subr.bf16.mxu0 %v939_v16  ;;  %v973_v25 = vpack.c.bf16 %v129_v22, %v128_v20  ;;  %v943_v26 = vpack.c.bf16 %v115_v24, %v114_v23  ;;  %v146_v27 = vld [vmem:[%s1624_s1 + $0x1a0] sm:$0xff]  ;;  %v147_v28 = vld [vmem:[%s1624_s1 + $0x1a8] sm:$0xff]  ;;  %v116_v35 = vld [vmem:[%s1624_s1 + $0xb0] sm:$0xff] }
   0x8   :  { %972 = vmatprep.subr.bf16.mxu1 %v971_v17  ;;  %v98_v29 = vld [vmem:[%s1624_s1 + $0x20] sm:$0xff]  ;;  %v975_v30 = vpack.c.bf16 %v147_v28, %v146_v27  ;;  %v99_v31 = vld [vmem:[%s1624_s1 + $0x28] sm:$0xff]  ;;  %v117_v36 = vld [vmem:[%s1624_s1 + $0xb8] sm:$0xff] }
   0x9   :  { %v130_v32 = vld [vmem:[%s1624_s1 + $0x120] sm:$0xff]  ;;  %v131_v33 = vld [vmem:[%s1624_s1 + $0x128] sm:$0xff]  ;;  %v945_v34 = vpack.c.bf16 %v99_v31, %v98_v29  ;;  %v148_v37 = vld [vmem:[%s1624_s1 + $0x1b0] sm:$0xff]  ;;  %v947_v39 = vpack.c.bf16 %v117_v36, %v116_v35 }
   0xa   :  { %942 = vmatpush3.bf16.msra.mxu0 %v941_v21  ;;  %v977_v38 = vpack.c.bf16 %v131_v33, %v130_v32  ;;  %v149_v40 = vld [vmem:[%s1624_s1 + $0x1b8] sm:$0xff]  ;;  %v100_v41 = vld [vmem:[%s1624_s1 + $0x30] sm:$0xff]  ;;  %v118_v46 = vld [vmem:[%s1624_s1 + $0xc0] sm:$0xff] }
   0xb   :  { %974 = vmatpush3.bf16.msra.mxu1 %v973_v25  ;;  %944 = vmatprep.subr.bf16.mxu0 %v943_v26  ;;  %v101_v42 = vld [vmem:[%s1624_s1 + $0x38] sm:$0xff]  ;;  %v979_v43 = vpack.c.bf16 %v149_v40, %v148_v37  ;;  %v132_v44 = vld [vmem:[%s1624_s1 + $0x130] sm:$0xff]  ;;  %v119_v47 = vld [vmem:[%s1624_s1 + $0xc8] sm:$0xff] }
   0xc   :  { %976 = vmatprep.subr.bf16.mxu1 %v975_v30  ;;  %v133_v45 = vld [vmem:[%s1624_s1 + $0x138] sm:$0xff]  ;;  %v150_v48 = vld [vmem:[%s1624_s1 + $0x1c0] sm:$0xff]  ;;  %v151_v49 = vld [vmem:[%s1624_s1 + $0x1c8] sm:$0xff]  ;;  %v949_v50 = vpack.c.bf16 %v101_v42, %v100_v41  ;;  %v951_v52 = vpack.c.bf16 %v119_v47, %v118_v46 }
   0xd   :  { %v981_v51 = vpack.c.bf16 %v133_v45, %v132_v44  ;;  %v102_v53 = vld [vmem:[%s1624_s1 + $0x40] sm:$0xff]  ;;  %v103_v54 = vld [vmem:[%s1624_s1 + $0x48] sm:$0xff]  ;;  %v983_v56 = vpack.c.bf16 %v151_v49, %v150_v48  ;;  %v120_v58 = vld [vmem:[%s1624_s1 + $0xd0] sm:$0xff] }
   0xe   :  { %946 = vmatpush3.bf16.msra.mxu0 %v945_v34  ;;  %v134_v55 = vld [vmem:[%s1624_s1 + $0x140] sm:$0xff]  ;;  %v135_v57 = vld [vmem:[%s1624_s1 + $0x148] sm:$0xff]  ;;  %v121_v59 = vld [vmem:[%s1624_s1 + $0xd8] sm:$0xff]  ;;  %v953_v62 = vpack.c.bf16 %v103_v54, %v102_v53 }
   0xf   :  { %978 = vmatpush3.bf16.msra.mxu1 %v977_v38  ;;  %948 = vmatprep.subr.bf16.mxu0 %v947_v39  ;;  %v152_v60 = vld [vmem:[%s1624_s1 + $0x1d0] sm:$0xff]  ;;  %v153_v61 = vld [vmem:[%s1624_s1 + $0x1d8] sm:$0xff]  ;;  %v985_v63 = vpack.c.bf16 %v135_v57, %v134_v55  ;;  %v955_v0 = vpack.c.bf16 %v121_v59, %v120_v58  ;;  %v122_v6 = vld [vmem:[%s1624_s1 + $0xe0] sm:$0xff] }
  0x10   :  { %980 = vmatprep.subr.bf16.mxu1 %v979_v43  ;;  %v104_v1 = vld [vmem:[%s1624_s1 + $0x50] sm:$0xff]  ;;  %v105_v2 = vld [vmem:[%s1624_s1 + $0x58] sm:$0xff]  ;;  %v987_v4 = vpack.c.bf16 %v153_v61, %v152_v60  ;;  %v123_v7 = vld [vmem:[%s1624_s1 + $0xe8] sm:$0xff] }
  0x11   :  { %v136_v3 = vld [vmem:[%s1624_s1 + $0x150] sm:$0xff]  ;;  %v137_v5 = vld [vmem:[%s1624_s1 + $0x158] sm:$0xff]  ;;  %v154_v8 = vld [vmem:[%s1624_s1 + $0x1e0] sm:$0xff]  ;;  %v957_v10 = vpack.c.bf16 %v105_v2, %v104_v1  ;;  %v959_v14 = vpack.c.bf16 %v123_v7, %v122_v6 }
  0x12   :  { %950 = vmatpush3.bf16.msra.mxu0 %v949_v50  ;;  %v155_v9 = vld [vmem:[%s1624_s1 + $0x1e8] sm:$0xff]  ;;  %v106_v11 = vld [vmem:[%s1624_s1 + $0x60] sm:$0xff]  ;;  %v989_v13 = vpack.c.bf16 %v137_v5, %v136_v3  ;;  %v17_v17 = vld [vmem:[%s1625_s0 + $0x18] sm:$0xff] }
  0x13   :  { %982 = vmatpush3.bf16.msra.mxu1 %v981_v51  ;;  %952 = vmatprep.subr.bf16.mxu0 %v951_v52  ;;  %v107_v12 = vld [vmem:[%s1624_s1 + $0x68] sm:$0xff]  ;;  %v138_v15 = vld [vmem:[%s1624_s1 + $0x160] sm:$0xff]  ;;  %v991_v18 = vpack.c.bf16 %v155_v9, %v154_v8  ;;  %v124_v20 = vld [vmem:[%s1624_s1 + $0xf0] sm:$0xff] }
  0x14   :  { %984 = vmatprep.subr.bf16.mxu1 %v983_v56  ;;  %v15_v16 = vld [vmem:[%s1625_s0 + $0x8] sm:$0xff]  ;;  %v125_v21 = vld [vmem:[%s1624_s1 + $0xf8] sm:$0xff]  ;;  %v156_v22 = vld [vmem:[%s1624_s1 + $0x1f0] sm:$0xff]  ;;  %431 = vmatprep.mubr.f32.mxu1 %v17_v17  ;;  %v961_v24 = vpack.c.bf16 %v107_v12, %v106_v11 }
  0x15   :  { %v139_v19 = vld [vmem:[%s1624_s1 + $0x168] sm:$0xff]  ;;  %286 = vmatprep.mubr.f32.mxu0 %v15_v16  ;;  %v157_v23 = vld [vmem:[%s1624_s1 + $0x1f8] sm:$0xff]  ;;  %v963_v26 = vpack.c.bf16 %v125_v21, %v124_v20  ;;  %v108_v27 = vld [vmem:[%s1624_s1 + $0x70] sm:$0xff] }
  0x16   :  { %954 = vmatpush3.bf16.msra.mxu0 %v953_v62  ;;  %v993_v25 = vpack.c.bf16 %v139_v19, %v138_v15  ;;  %v109_v28 = vld [vmem:[%s1624_s1 + $0x78] sm:$0xff]  ;;  %v140_v29 = vld [vmem:[%s1624_s1 + $0x170] sm:$0xff]  ;;  %v995_v30 = vpack.c.bf16 %v157_v23, %v156_v22  ;;  %v158_v32 = vld [vmem:[%s1624_s1 + $0x200] sm:$0xff] }
  0x17   :  { %986 = vmatpush3.bf16.msra.mxu1 %v985_v63  ;;  %956 = vmatprep.subr.bf16.mxu0 %v955_v0  ;;  %v141_v31 = vld [vmem:[%s1624_s1 + $0x178] sm:$0xff]  ;;  %v159_v33 = vld [vmem:[%s1624_s1 + $0x208] sm:$0xff]  ;;  %v965_v34 = vpack.c.bf16 %v109_v28, %v108_v27  ;;  %v160_v37 = vld [vmem:[%s1624_s1 + $0x210] sm:$0xff] }
  0x18   :  { %988 = vmatprep.subr.bf16.mxu1 %v987_v4  ;;  %v997_v35 = vpack.c.bf16 %v141_v31, %v140_v29  ;;  %v999_v36 = vpack.c.bf16 %v159_v33, %v158_v32  ;;  %v161_v38 = vld [vmem:[%s1624_s1 + $0x218] sm:$0xff]  ;;  %v14_v39 = vld [vmem:[%s1625_s0] sm:$0xff]  ;;  %v16_v40 = vld [vmem:[%s1625_s0 + $0x10] sm:$0xff] }
  0x19   :  { %v20_v41 = vld [vmem:[%s1625_s0 + $0x30] sm:$0xff]  ;;  %v1003_v42 = vpack.c.bf16 %v161_v38, %v160_v37  ;;  %v22_v43 = vld [vmem:[%s1625_s0 + $0x40] sm:$0xff]  ;;  %v163_v45 = vld [vmem:[%s1624_s1 + $0x228] sm:$0xff] }
  0x1a   :  { %958 = vmatpush3.bf16.msra.mxu0 %v957_v10  ;;  %v162_v44 = vld [vmem:[%s1624_s1 + $0x220] sm:$0xff]  ;;  %v19_v46 = vld [vmem:[%s1625_s0 + $0x28] sm:$0xff]  ;;  %v21_v47 = vld [vmem:[%s1625_s0 + $0x38] sm:$0xff] }
  0x1b   :  { %990 = vmatpush3.bf16.msra.mxu1 %v989_v13  ;;  %960 = vmatprep.subr.bf16.mxu0 %v959_v14  ;;  %v25_v48 = vld [vmem:[%s1625_s0 + $0x58] sm:$0xff]  ;;  %v27_v49 = vld [vmem:[%s1625_s0 + $0x68] sm:$0xff]  ;;  %v1007_v50 = vpack.c.bf16 %v163_v45, %v162_v44  ;;  %v24_v51 = vld [vmem:[%s1625_s0 + $0x50] sm:$0xff] }
  0x1c   :  { %992 = vmatprep.subr.bf16.mxu1 %v991_v18  ;;  %v164_v52 = vld [vmem:[%s1624_s1 + $0x230] sm:$0xff]  ;;  %v26_v53 = vld [vmem:[%s1625_s0 + $0x60] sm:$0xff]  ;;  %v165_v55 = vld [vmem:[%s1624_s1 + $0x238] sm:$0xff] }
  0x1d   :  { %v30_v54 = vld [vmem:[%s1625_s0 + $0x80] sm:$0xff]  ;;  %v32_v56 = vld [vmem:[%s1625_s0 + $0x90] sm:$0xff]  ;;  %v1011_v57 = vpack.c.bf16 %v165_v55, %v164_v52  ;;  %v29_v58 = vld [vmem:[%s1625_s0 + $0x78] sm:$0xff] }
  0x1e   :  { %962 = vmatpush3.bf16.msra.mxu0 %v961_v24  ;;  %v31_v59 = vld [vmem:[%s1625_s0 + $0x88] sm:$0xff]  ;;  %v37_v61 = vld [vmem:[%s1625_s0 + $0xb8] sm:$0xff]  ;;  %v34_v62 = vld [vmem:[%s1625_s0 + $0xa0] sm:$0xff] }
  0x1f   :  { %994 = vmatpush3.bf16.msra.mxu1 %v993_v25  ;;  %964 = vmatprep.subr.bf16.mxu0 %v963_v26  ;;  %v35_v60 = vld [vmem:[%s1625_s0 + $0xa8] sm:$0xff]  ;;  %v36_v63 = vld [vmem:[%s1625_s0 + $0xb0] sm:$0xff]  ;;  %v42_v1 = vld [vmem:[%s1625_s0 + $0xe0] sm:$0xff] }
  0x20   :  { %996 = vmatprep.subr.bf16.mxu1 %v995_v30  ;;  %v40_v0 = vld [vmem:[%s1625_s0 + $0xd0] sm:$0xff]  ;;  %v39_v2 = vld [vmem:[%s1625_s0 + $0xc8] sm:$0xff]  ;;  %v41_v3 = vld [vmem:[%s1625_s0 + $0xd8] sm:$0xff] }
  0x21   :  { %v45_v4 = vld [vmem:[%s1625_s0 + $0xf8] sm:$0xff]  ;;  %v47_v5 = vld [vmem:[%s1625_s0 + $0x108] sm:$0xff]  ;;  %v44_v6 = vld [vmem:[%s1625_s0 + $0xf0] sm:$0xff] }
  0x22   :  { %966 = vmatpush3.bf16.msra.mxu0 %v965_v34  ;;  %v46_v7 = vld [vmem:[%s1625_s0 + $0x100] sm:$0xff]  ;;  %v52_v9 = vld [vmem:[%s1625_s0 + $0x130] sm:$0xff]  ;;  %v49_v10 = vld [vmem:[%s1625_s0 + $0x118] sm:$0xff] }
  0x23   :  { %998 = vmatpush3.bf16.msra.mxu1 %v997_v35  ;;  %1000 = vmatprep.subr.bf16.mxu0 %v999_v36  ;;  %v50_v8 = vld [vmem:[%s1625_s0 + $0x120] sm:$0xff]  ;;  %v51_v11 = vld [vmem:[%s1625_s0 + $0x128] sm:$0xff]  ;;  %v57_v13 = vld [vmem:[%s1625_s0 + $0x158] sm:$0xff] }
  0x24   :  { %1015 = vmatprep.subr.bf16.mxu1 %v999_v36  ;;  %v55_v12 = vld [vmem:[%s1625_s0 + $0x148] sm:$0xff]  ;;  %v54_v14 = vld [vmem:[%s1625_s0 + $0x140] sm:$0xff]  ;;  %v56_v15 = vld [vmem:[%s1625_s0 + $0x150] sm:$0xff] }
  0x25   :  { %287 = vmatmul.mubr.f32.vlgmr.msra.gmra.mrb[0].mxu0 %v14_v39  ;;  %v60_v16 = vld [vmem:[%s1625_s0 + $0x170] sm:$0xff]  ;;  %v62_v17 = vld [vmem:[%s1625_s0 + $0x180] sm:$0xff]  ;;  %v59_v18 = vld [vmem:[%s1625_s0 + $0x168] sm:$0xff] }
  0x26   :  { %432 = vmatmul.mubr.f32.vlgmr.msra.gmra.mrb[0].mxu1 %v16_v40  ;;  %1002 = vmatpush3.bf16.msra.mxu0 %v999_v36  ;;  %v61_v19 = vld [vmem:[%s1625_s0 + $0x178] sm:$0xff]  ;;  %v67_v21 = vld [vmem:[%s1625_s0 + $0x1a8] sm:$0xff]  ;;  %v64_v22 = vld [vmem:[%s1625_s0 + $0x190] sm:$0xff] }
  0x27   :  { %1019 = vmatpush3.bf16.msra.mxu1 %v999_v36  ;;  %291 = vmatprep.mubr.f32.mxu0 %v20_v41  ;;  %v65_v20 = vld [vmem:[%s1625_s0 + $0x198] sm:$0xff]  ;;  %v66_v23 = vld [vmem:[%s1625_s0 + $0x1a0] sm:$0xff]  ;;  %v72_v25 = vld [vmem:[%s1625_s0 + $0x1d0] sm:$0xff] }
  0x28   :  { %436 = vmatprep.mubr.f32.mxu1 %v22_v43  ;;  %1004 = vmatprep.subr.bf16.mxu0 %v1003_v42  ;;  %v70_v24 = vld [vmem:[%s1625_s0 + $0x1c0] sm:$0xff]  ;;  %v69_v26 = vld [vmem:[%s1625_s0 + $0x1b8] sm:$0xff]  ;;  %v71_v27 = vld [vmem:[%s1625_s0 + $0x1c8] sm:$0xff] }
  0x29   :  { %292 = vmatmul.mubr.f32.gmra.mrb[2].mxu0 %v19_v46  ;;  %1016 = vmatprep.subr.bf16.mxu1 %v1003_v42  ;;  %v75_v28 = vld [vmem:[%s1625_s0 + $0x1e8] sm:$0xff]  ;;  %v77_v29 = vld [vmem:[%s1625_s0 + $0x1f8] sm:$0xff]  ;;  %v74_v30 = vld [vmem:[%s1625_s0 + $0x1e0] sm:$0xff] }
  0x2a   :  { %437 = vmatmul.mubr.f32.gmra.mrb[2].mxu1 %v21_v47  ;;  %296 = vmatprep.mubr.f32.mxu0 %v25_v48  ;;  %v76_v31 = vld [vmem:[%s1625_s0 + $0x1f0] sm:$0xff]  ;;  %v82_v33 = vld [vmem:[%s1625_s0 + $0x220] sm:$0xff]  ;;  %v79_v34 = vld [vmem:[%s1625_s0 + $0x208] sm:$0xff] }
  0x2b   :  { %441 = vmatprep.mubr.f32.mxu1 %v27_v49  ;;  %1006 = vmatpush3.bf16.msra.mxu0 %v1003_v42  ;;  %v80_v32 = vld [vmem:[%s1625_s0 + $0x210] sm:$0xff]  ;;  %v81_v35 = vld [vmem:[%s1625_s0 + $0x218] sm:$0xff]  ;;  %v87_v37 = vld [vmem:[%s1625_s0 + $0x248] sm:$0xff] }
  0x2c   :  { %1020 = vmatpush3.bf16.msra.mxu1 %v1003_v42  ;;  %1008 = vmatprep.subr.bf16.mxu0 %v1007_v50  ;;  %v85_v36 = vld [vmem:[%s1625_s0 + $0x238] sm:$0xff]  ;;  %v84_v38 = vld [vmem:[%s1625_s0 + $0x230] sm:$0xff]  ;;  %v86_v39 = vld [vmem:[%s1625_s0 + $0x240] sm:$0xff] }
  0x2d   :  { %297 = vmatmul.mubr.f32.gmra.mrb[4].mxu0 %v24_v51  ;;  %1017 = vmatprep.subr.bf16.mxu1 %v1007_v50  ;;  %v90_v40 = vld [vmem:[%s1625_s0 + $0x260] sm:$0xff]  ;;  %v92_v41 = vld [vmem:[%s1625_s0 + $0x270] sm:$0xff]  ;;  %v89_v42 = vld [vmem:[%s1625_s0 + $0x258] sm:$0xff] }
  0x2e   :  { %442 = vmatmul.mubr.f32.gmra.mrb[4].mxu1 %v26_v53  ;;  %301 = vmatprep.mubr.f32.mxu0 %v30_v54  ;;  %v91_v43 = vld [vmem:[%s1625_s0 + $0x268] sm:$0xff]  ;;  %v18_v44 = vld [vmem:[%s1625_s0 + $0x20] sm:$0xff]  ;;  %v28_v48 = vld [vmem:[%s1625_s0 + $0x70] sm:$0xff] }
  0x2f   :  { %446 = vmatprep.mubr.f32.mxu1 %v32_v56  ;;  %1010 = vmatpush3.bf16.msra.mxu0 %v1007_v50  ;;  %v58_v45 = vld [vmem:[%s1625_s0 + $0x160] sm:$0xff]  ;;  %v23_v46 = vld [vmem:[%s1625_s0 + $0x48] sm:$0xff]  ;;  %v68_v49 = vld [vmem:[%s1625_s0 + $0x1b0] sm:$0xff] }
  0x30   :  { %1021 = vmatpush3.bf16.msra.mxu1 %v1007_v50  ;;  %1012 = vmatprep.subr.bf16.mxu0 %v1011_v57  ;;  %v63_v47 = vld [vmem:[%s1625_s0 + $0x188] sm:$0xff]  ;;  %v33_v50 = vld [vmem:[%s1625_s0 + $0x98] sm:$0xff]  ;;  %v38_v52 = vld [vmem:[%s1625_s0 + $0xc0] sm:$0xff] }
  0x31   :  { %302 = vmatmul.mubr.f32.gmra.mrb[6].mxu0 %v29_v58  ;;  %1018 = vmatprep.subr.bf16.mxu1 %v1011_v57  ;;  %v73_v51 = vld [vmem:[%s1625_s0 + $0x1d8] sm:$0xff]  ;;  %v78_v53 = vld [vmem:[%s1625_s0 + $0x200] sm:$0xff]  ;;  %v43_v54 = vld [vmem:[%s1625_s0 + $0xe8] sm:$0xff] }
  0x32   :  { %447 = vmatmul.mubr.f32.gmra.mrb[6].mxu1 %v31_v59  ;;  %306 = vmatprep.mubr.f32.mxu0 %v35_v60  ;;  %v83_v55 = vld [vmem:[%s1625_s0 + $0x228] sm:$0xff]  ;;  %v48_v56 = vld [vmem:[%s1625_s0 + $0x110] sm:$0xff]  ;;  %v53_v58 = vld [vmem:[%s1625_s0 + $0x138] sm:$0xff] }
  0x33   :  { %451 = vmatprep.mubr.f32.mxu1 %v37_v61  ;;  %1014 = vmatpush3.bf16.msra.mxu0 %v1011_v57  ;;  %v93_v59 = vld [vmem:[%s1625_s0 + $0x278] sm:$0xff] }
  0x34   :  { %1022 = vmatpush3.bf16.msra.mxu1 %v1011_v57  ;;  %v88_v57 = vld [vmem:[%s1625_s0 + $0x250] sm:$0xff] }
  0x35   :  { %307 = vmatmul.mubr.f32.gmra.mrb[8].mxu0 %v34_v62  ;;  %v1518_v62 = vld [vmem:[%s1626_s2] ss:$0 sm:$0xff] }
  0x36   :  { %452 = vmatmul.mubr.f32.gmra.mrb[8].mxu1 %v36_v63  ;;  %311 = vmatprep.mubr.f32.mxu0 %v40_v0 }
  0x37   :  { %456 = vmatprep.mubr.f32.mxu1 %v42_v1 }
  0x39   :  { %312 = vmatmul.mubr.f32.gmra.mrb[10].mxu0 %v39_v2 }
  0x3a   :  { %457 = vmatmul.mubr.f32.gmra.mrb[10].mxu1 %v41_v3  ;;  %316 = vmatprep.mubr.f32.mxu0 %v45_v4 }
  0x3b   :  { %461 = vmatprep.mubr.f32.mxu1 %v47_v5 }
  0x3d   :  { %317 = vmatmul.mubr.f32.gmra.mrb[12].mxu0 %v44_v6 }
  0x3e   :  { %462 = vmatmul.mubr.f32.gmra.mrb[12].mxu1 %v46_v7  ;;  %321 = vmatprep.mubr.f32.mxu0 %v50_v8 }
  0x3f   :  { %466 = vmatprep.mubr.f32.mxu1 %v52_v9 }
  0x41   :  { %322 = vmatmul.mubr.f32.gmra.mrb[14].mxu0 %v49_v10 }
  0x42   :  { %467 = vmatmul.mubr.f32.gmra.mrb[14].mxu1 %v51_v11  ;;  %326 = vmatprep.mubr.f32.mxu0 %v55_v12 }
  0x43   :  { %471 = vmatprep.mubr.f32.mxu1 %v57_v13 }
  0x45   :  { %327 = vmatmul.mubr.f32.gmra.mrb[16].mxu0 %v54_v14 }
  0x46   :  { %472 = vmatmul.mubr.f32.gmra.mrb[16].mxu1 %v56_v15  ;;  %331 = vmatprep.mubr.f32.mxu0 %v60_v16 }
  0x47   :  { %476 = vmatprep.mubr.f32.mxu1 %v62_v17 }
  0x49   :  { %332 = vmatmul.mubr.f32.gmra.mrb[18].mxu0 %v59_v18 }
  0x4a   :  { %477 = vmatmul.mubr.f32.gmra.mrb[18].mxu1 %v61_v19  ;;  %336 = vmatprep.mubr.f32.mxu0 %v65_v20 }
  0x4b   :  { %481 = vmatprep.mubr.f32.mxu1 %v67_v21 }
  0x4d   :  { %337 = vmatmul.mubr.f32.gmra.mrb[20].mxu0 %v64_v22 }
  0x4e   :  { %482 = vmatmul.mubr.f32.gmra.mrb[20].mxu1 %v66_v23  ;;  %341 = vmatprep.mubr.f32.mxu0 %v70_v24 }
  0x4f   :  { %486 = vmatprep.mubr.f32.mxu1 %v72_v25 }
  0x51   :  { %342 = vmatmul.mubr.f32.gmra.mrb[22].mxu0 %v69_v26 }
  0x52   :  { %487 = vmatmul.mubr.f32.gmra.mrb[22].mxu1 %v71_v27  ;;  %346 = vmatprep.mubr.f32.mxu0 %v75_v28 }
  0x53   :  { %491 = vmatprep.mubr.f32.mxu1 %v77_v29 }
  0x55   :  { %347 = vmatmul.mubr.f32.gmra.mrb[24].mxu0 %v74_v30 }
  0x56   :  { %492 = vmatmul.mubr.f32.gmra.mrb[24].mxu1 %v76_v31  ;;  %351 = vmatprep.mubr.f32.mxu0 %v80_v32 }
  0x57   :  { %496 = vmatprep.mubr.f32.mxu1 %v82_v33 }
  0x59   :  { %352 = vmatmul.mubr.f32.gmra.mrb[26].mxu0 %v79_v34 }
  0x5a   :  { %497 = vmatmul.mubr.f32.gmra.mrb[26].mxu1 %v81_v35  ;;  %356 = vmatprep.mubr.f32.mxu0 %v85_v36 }
  0x5b   :  { %501 = vmatprep.mubr.f32.mxu1 %v87_v37 }
  0x5d   :  { %357 = vmatmul.mubr.f32.gmra.mrb[28].mxu0 %v84_v38 }
  0x5e   :  { %502 = vmatmul.mubr.f32.gmra.mrb[28].mxu1 %v86_v39  ;;  %361 = vmatprep.mubr.f32.mxu0 %v90_v40 }
  0x5f   :  { %506 = vmatprep.mubr.f32.mxu1 %v92_v41 }
  0x61   :  { %362 = vmatmul.mubr.f32.gmra.mrb[30].mxu0 %v89_v42 }
  0x62   :  { %507 = vmatmul.mubr.f32.gmra.mrb[30].mxu1 %v91_v43  ;;  %911 = vmatprep.mubr.msk.f32.mxu0 %vm173_vm0, %v18_v44 }
  0x63   :  { %923 = vmatprep.mubr.msk.f32.mxu1 %vm173_vm0, %v58_v45 }
  0x65   :  { %912 = vmatmul.mubr.msk.f32.vlgmr.msra.gmra.mrb[32].mxu0 %vm173_vm0, %v23_v46 }
  0x66   :  { %924 = vmatmul.mubr.msk.f32.vlgmr.msra.gmra.mrb[32].mxu1 %vm173_vm0, %v63_v47  ;;  %914 = vmatprep.mubr.msk.f32.mxu0 %vm173_vm0, %v28_v48 }
  0x67   :  { %926 = vmatprep.mubr.msk.f32.mxu1 %vm173_vm0, %v68_v49 }
  0x69   :  { %915 = vmatmul.mubr.msk.f32.gmra.mrb[34].mxu0 %vm173_vm0, %v33_v50 }
  0x6a   :  { %927 = vmatmul.mubr.msk.f32.gmra.mrb[34].mxu1 %vm173_vm0, %v73_v51  ;;  %917 = vmatprep.mubr.msk.f32.mxu0 %vm173_vm0, %v38_v52 }
  0x6b   :  { %929 = vmatprep.mubr.msk.f32.mxu1 %vm173_vm0, %v78_v53 }
  0x6d   :  { %918 = vmatmul.mubr.msk.f32.gmra.mrb[36].mxu0 %vm173_vm0, %v43_v54 }
  0x6e   :  { %930 = vmatmul.mubr.msk.f32.gmra.mrb[36].mxu1 %vm173_vm0, %v83_v55  ;;  %920 = vmatprep.mubr.msk.f32.mxu0 %vm173_vm0, %v48_v56 }
  0x6f   :  { %932 = vmatprep.mubr.msk.f32.mxu1 %vm173_vm0, %v88_v57 }
  0x71   :  { %921 = vmatmul.mubr.msk.f32.gmra.mrb[38].mxu0 %vm173_vm0, %v53_v58 }
  0x72   :  { %933 = vmatmul.mubr.msk.f32.gmra.mrb[38].mxu1 %vm173_vm0, %v93_v59 }
  0xf8   :  { %v743_v60 = vpop.f32.mrb[0].mxu0 }
  0xf9   :  { %v823_v61 = vpop.f32.mrb[0].mxu1  ;;  %v744_v63 = vpop.f32.mrb[1].mxu0 }
  0xfa   :  { %v745_v0 = vadd.f32 %v744_v63, %v743_v60  ;;  %v824_v1 = vpop.f32.mrb[1].mxu1 }
  0xfb   :  { %v825_v2 = vadd.f32 %v824_v1, %v823_v61 }
  0xfc   :  { %v289_v3 = vadd.f32 %v745_v0, %v1518_v62  ;;  %v746_v4 = vpop.f32.mrb[2].mxu0 }
  0xfd   :  { %v826_v5 = vpop.f32.mrb[2].mxu1  ;;  %v747_v6 = vpop.f32.mrb[3].mxu0 }
  0xfe   :  { %v748_v7 = vadd.f32 %v747_v6, %v746_v4  ;;  %v827_v8 = vpop.f32.mrb[3].mxu1  ;;  %v1521_v9 = vadd.f32 %v825_v2, %v289_v3 }
  0xff   :  { %v828_v10 = vadd.f32 %v827_v8, %v826_v5 }
 0x100   :  { %v294_v11 = vadd.f32 %v748_v7, %v1518_v62  ;;  %v749_v12 = vpop.f32.mrb[4].mxu0 }
 0x101   :  { %v829_v13 = vpop.f32.mrb[4].mxu1  ;;  %v750_v14 = vpop.f32.mrb[5].mxu0 }
 0x102   :  { %v751_v15 = vadd.f32 %v750_v14, %v749_v12  ;;  %v830_v16 = vpop.f32.mrb[5].mxu1  ;;  %v1524_v17 = vadd.f32 %v828_v10, %v294_v11 }
 0x103   :  { %v831_v18 = vadd.f32 %v830_v16, %v829_v13 }
 0x104   :  { %v299_v19 = vadd.f32 %v751_v15, %v1518_v62  ;;  %v752_v20 = vpop.f32.mrb[6].mxu0 }
 0x105   :  { %v832_v21 = vpop.f32.mrb[6].mxu1  ;;  %v753_v22 = vpop.f32.mrb[7].mxu0 }
 0x106   :  { %v754_v23 = vadd.f32 %v753_v22, %v752_v20  ;;  %v833_v24 = vpop.f32.mrb[7].mxu1  ;;  %v1527_v25 = vadd.f32 %v831_v18, %v299_v19 }
 0x107   :  { %v834_v26 = vadd.f32 %v833_v24, %v832_v21 }
 0x108   :  { %v304_v27 = vadd.f32 %v754_v23, %v1518_v62  ;;  %v755_v28 = vpop.f32.mrb[8].mxu0 }
 0x109   :  { %v835_v29 = vpop.f32.mrb[8].mxu1  ;;  %v756_v30 = vpop.f32.mrb[9].mxu0 }
 0x10a   :  { %v757_v31 = vadd.f32 %v756_v30, %v755_v28  ;;  %v836_v32 = vpop.f32.mrb[9].mxu1  ;;  %v1530_v33 = vadd.f32 %v834_v26, %v304_v27 }
 0x10b   :  { %v837_v34 = vadd.f32 %v836_v32, %v835_v29 }
 0x10c   :  { %v309_v35 = vadd.f32 %v757_v31, %v1518_v62  ;;  %v758_v36 = vpop.f32.mrb[10].mxu0 }
 0x10d   :  { %v838_v37 = vpop.f32.mrb[10].mxu1  ;;  %v759_v38 = vpop.f32.mrb[11].mxu0 }
 0x10e   :  { %v760_v39 = vadd.f32 %v759_v38, %v758_v36  ;;  %v839_v40 = vpop.f32.mrb[11].mxu1  ;;  %v1533_v41 = vadd.f32 %v837_v34, %v309_v35 }
 0x10f   :  { %v840_v42 = vadd.f32 %v839_v40, %v838_v37 }
 0x110   :  { %v314_v43 = vadd.f32 %v760_v39, %v1518_v62  ;;  %v761_v44 = vpop.f32.mrb[12].mxu0 }
 0x111   :  { %v841_v45 = vpop.f32.mrb[12].mxu1  ;;  %v762_v46 = vpop.f32.mrb[13].mxu0 }
 0x112   :  { %v763_v47 = vadd.f32 %v762_v46, %v761_v44  ;;  %v842_v48 = vpop.f32.mrb[13].mxu1  ;;  %v1536_v49 = vadd.f32 %v840_v42, %v314_v43 }
 0x113   :  { %v843_v50 = vadd.f32 %v842_v48, %v841_v45 }
 0x114   :  { %v319_v51 = vadd.f32 %v763_v47, %v1518_v62  ;;  %v764_v52 = vpop.f32.mrb[14].mxu0 }
 0x115   :  { %v844_v53 = vpop.f32.mrb[14].mxu1  ;;  %v765_v54 = vpop.f32.mrb[15].mxu0 }
 0x116   :  { %v766_v55 = vadd.f32 %v765_v54, %v764_v52  ;;  %v845_v56 = vpop.f32.mrb[15].mxu1  ;;  %v1539_v57 = vadd.f32 %v843_v50, %v319_v51 }
 0x117   :  { %v846_v58 = vadd.f32 %v845_v56, %v844_v53 }
 0x118   :  { %v324_v59 = vadd.f32 %v766_v55, %v1518_v62  ;;  %v767_v60 = vpop.f32.mrb[16].mxu0 }
 0x119   :  { %v847_v61 = vpop.f32.mrb[16].mxu1  ;;  %v768_v63 = vpop.f32.mrb[17].mxu0 }
 0x11a   :  { %v769_v0 = vadd.f32 %v768_v63, %v767_v60  ;;  %v848_v1 = vpop.f32.mrb[17].mxu1  ;;  %v1542_v2 = vadd.f32 %v846_v58, %v324_v59 }
 0x11b   :  { %v849_v3 = vadd.f32 %v848_v1, %v847_v61 }
 0x11c   :  { %v329_v4 = vadd.f32 %v769_v0, %v1518_v62  ;;  %v770_v5 = vpop.f32.mrb[18].mxu0 }
 0x11d   :  { %v850_v6 = vpop.f32.mrb[18].mxu1  ;;  %v771_v7 = vpop.f32.mrb[19].mxu0 }
 0x11e   :  { %v772_v8 = vadd.f32 %v771_v7, %v770_v5  ;;  %v851_v10 = vpop.f32.mrb[19].mxu1  ;;  %v474_v11 = vadd.f32 %v849_v3, %v329_v4 }
 0x11f   :  { %v852_v12 = vadd.f32 %v851_v10, %v850_v6 }
 0x120   :  { %v334_v13 = vadd.f32 %v772_v8, %v1518_v62  ;;  %v773_v14 = vpop.f32.mrb[20].mxu0 }
 0x121   :  { %v853_v15 = vpop.f32.mrb[20].mxu1  ;;  %v774_v16 = vpop.f32.mrb[21].mxu0 }
 0x122   :  { %v775_v18 = vadd.f32 %v774_v16, %v773_v14  ;;  %v854_v19 = vpop.f32.mrb[21].mxu1  ;;  %v479_v20 = vadd.f32 %v852_v12, %v334_v13 }
 0x123   :  { %v855_v21 = vadd.f32 %v854_v19, %v853_v15 }
 0x124   :  { %v339_v22 = vadd.f32 %v775_v18, %v1518_v62  ;;  %v776_v23 = vpop.f32.mrb[22].mxu0 }
 0x125   :  { %v856_v24 = vpop.f32.mrb[22].mxu1  ;;  %v777_v26 = vpop.f32.mrb[23].mxu0 }
 0x126   :  { %v778_v27 = vadd.f32 %v777_v26, %v776_v23  ;;  %v857_v28 = vpop.f32.mrb[23].mxu1  ;;  %v484_v29 = vadd.f32 %v855_v21, %v339_v22 }
 0x127   :  { %v858_v30 = vadd.f32 %v857_v28, %v856_v24 }
 0x128   :  { %v344_v31 = vadd.f32 %v778_v27, %v1518_v62  ;;  %v779_v32 = vpop.f32.mrb[24].mxu0 }
 0x129   :  { %v859_v34 = vpop.f32.mrb[24].mxu1  ;;  %v780_v35 = vpop.f32.mrb[25].mxu0 }
 0x12a   :  { %v781_v36 = vadd.f32 %v780_v35, %v779_v32  ;;  %v860_v37 = vpop.f32.mrb[25].mxu1  ;;  %v489_v38 = vadd.f32 %v858_v30, %v344_v31 }
 0x12b   :  { %v861_v39 = vadd.f32 %v860_v37, %v859_v34 }
 0x12c   :  { %v349_v40 = vadd.f32 %v781_v36, %v1518_v62  ;;  %v782_v42 = vpop.f32.mrb[26].mxu0 }
 0x12d   :  { %v862_v43 = vpop.f32.mrb[26].mxu1  ;;  %v783_v44 = vpop.f32.mrb[27].mxu0 }
 0x12e   :  { %v784_v45 = vadd.f32 %v783_v44, %v782_v42  ;;  %v863_v46 = vpop.f32.mrb[27].mxu1  ;;  %v494_v47 = vadd.f32 %v861_v39, %v349_v40 }
 0x12f   :  { %v864_v48 = vadd.f32 %v863_v46, %v862_v43 }
 0x130   :  { %v354_v50 = vadd.f32 %v784_v45, %v1518_v62  ;;  %v785_v51 = vpop.f32.mrb[28].mxu0 }
 0x131   :  { %v865_v52 = vpop.f32.mrb[28].mxu1  ;;  %v786_v53 = vpop.f32.mrb[29].mxu0 }
 0x132   :  { %v787_v54 = vadd.f32 %v786_v53, %v785_v51  ;;  %v866_v55 = vpop.f32.mrb[29].mxu1  ;;  %v499_v56 = vadd.f32 %v864_v48, %v354_v50 }
 0x133   :  { %v867_v58 = vadd.f32 %v866_v55, %v865_v52 }
 0x134   :  { %v359_v59 = vadd.f32 %v787_v54, %v1518_v62  ;;  %v788_v60 = vpop.f32.mrb[30].mxu0 }
 0x135   :  { %v868_v61 = vpop.f32.mrb[30].mxu1  ;;  %v789_v63 = vpop.f32.mrb[31].mxu0 }
 0x136   :  { %v790_v0 = vadd.f32 %v789_v63, %v788_v60  ;;  %v869_v1 = vpop.f32.mrb[31].mxu1  ;;  %v504_v3 = vadd.f32 %v867_v58, %v359_v59 }
 0x137   :  { %v870_v4 = vadd.f32 %v869_v1, %v868_v61 }
 0x138   :  { %v364_v5 = vadd.f32 %v790_v0, %v1518_v62  ;;  %v913_v6 = vpop.f32.mrb[32].mxu0 }
 0x139   :  { %v584_v7 = vadd.f32 %v913_v6, %v1524_v17  ;;  %v925_v8 = vpop.f32.mrb[32].mxu1  ;;  %v578_v10 = vpop.f32.mrb[33].mxu0 }
 0x13a   :  { %v624_v12 = vadd.f32 %v925_v8, %v479_v20  ;;  %v579_v13 = vadd.f32 %v578_v10, %v1521_v9  ;;  %v618_v14 = vpop.f32.mrb[33].mxu1  ;;  %v509_v15 = vadd.f32 %v870_v4, %v364_v5 }
 0x13b   :  { %v658_v16 = vmax.f32 %v584_v7, 0.0  ;;  %v619_v18 = vadd.f32 %v618_v14, %v474_v11 }
 0x13c   :  { %v666_v19 = vmax.f32 %v624_v12, 0.0  ;;  %v657_v21 = vmax.f32 %v579_v13, 0.0  ;;  %v916_v22 = vpop.f32.mrb[34].mxu0 }
 0x13d   :  { %675 = vst.msk [vmem:[%s1627_s3 + $0x8] sm:$0xff] %vm673_vm1, %v658_v16  ;;  %v665_v62 = vmax.f32 %v619_v18, 0.0  ;;  %v594_v17 = vadd.f32 %v916_v22, %v1530_v33  ;;  %v928_v23 = vpop.f32.mrb[34].mxu1  ;;  %v588_v24 = vpop.f32.mrb[35].mxu0 }
 0x13e   :  { %683 = vst.msk [vmem:[%s1627_s3 + $0x48] sm:$0xff] %vm673_vm1, %v666_v19  ;;  %674 = vst.msk [vmem:[%s1627_s3] sm:$0xff] %vm673_vm1, %v657_v21  ;;  %v634_v9 = vadd.f32 %v928_v23, %v489_v38  ;;  %v589_v11 = vadd.f32 %v588_v24, %v1527_v25  ;;  %v628_v20 = vpop.f32.mrb[35].mxu1 }
 0x13f   :  { %682 = vst.msk [vmem:[%s1627_s3 + $0x40] sm:$0xff] %vm673_vm1, %v665_v62  ;;  %v660_v33 = vmax.f32 %v594_v17, 0.0  ;;  %v629_v26 = vadd.f32 %v628_v20, %v484_v29 }
 0x140   :  { %v668_v27 = vmax.f32 %v634_v9, 0.0  ;;  %v659_v28 = vmax.f32 %v589_v11, 0.0  ;;  %v919_v30 = vpop.f32.mrb[36].mxu0 }
 0x141   :  { %677 = vst.msk [vmem:[%s1627_s3 + $0x18] sm:$0xff] %vm673_vm1, %v660_v33  ;;  %v667_v31 = vmax.f32 %v629_v26, 0.0  ;;  %v604_v32 = vadd.f32 %v919_v30, %v1536_v49  ;;  %v931_v25 = vpop.f32.mrb[36].mxu1  ;;  %v598_v34 = vpop.f32.mrb[37].mxu0 }
 0x142   :  { %685 = vst.msk [vmem:[%s1627_s3 + $0x58] sm:$0xff] %vm673_vm1, %v668_v27  ;;  %676 = vst.msk [vmem:[%s1627_s3 + $0x10] sm:$0xff] %vm673_vm1, %v659_v28  ;;  %v644_v29 = vadd.f32 %v931_v25, %v499_v56  ;;  %v599_v35 = vadd.f32 %v598_v34, %v1533_v41  ;;  %v638_v36 = vpop.f32.mrb[37].mxu1 }
 0x143   :  { %684 = vst.msk [vmem:[%s1627_s3 + $0x50] sm:$0xff] %vm673_vm1, %v667_v31  ;;  %v662_v49 = vmax.f32 %v604_v32, 0.0  ;;  %v639_v37 = vadd.f32 %v638_v36, %v494_v47 }
 0x144   :  { %v670_v38 = vmax.f32 %v644_v29, 0.0  ;;  %v661_v39 = vmax.f32 %v599_v35, 0.0  ;;  %v922_v40 = vpop.f32.mrb[38].mxu0 }
 0x145   :  { %679 = vst.msk [vmem:[%s1627_s3 + $0x28] sm:$0xff] %vm673_vm1, %v662_v49  ;;  %v669_v42 = vmax.f32 %v639_v37, 0.0  ;;  %v614_v43 = vadd.f32 %v922_v40, %v1542_v2  ;;  %v934_v41 = vpop.f32.mrb[38].mxu1  ;;  %v608_v44 = vpop.f32.mrb[39].mxu0 }
 0x146   :  { %687 = vst.msk [vmem:[%s1627_s3 + $0x68] sm:$0xff] %vm673_vm1, %v670_v38  ;;  %678 = vst.msk [vmem:[%s1627_s3 + $0x20] sm:$0xff] %vm673_vm1, %v661_v39  ;;  %v654_v45 = vadd.f32 %v934_v41, %v509_v15  ;;  %v609_v46 = vadd.f32 %v608_v44, %v1539_v57  ;;  %v648_v47 = vpop.f32.mrb[39].mxu1 }
 0x147   :  { %686 = vst.msk [vmem:[%s1627_s3 + $0x60] sm:$0xff] %vm673_vm1, %v669_v42  ;;  %v664_v2 = vmax.f32 %v614_v43, 0.0  ;;  %v649_v48 = vadd.f32 %v648_v47, %v504_v3 }
 0x148   :  { %v672_v50 = vmax.f32 %v654_v45, 0.0  ;;  %v663_v51 = vmax.f32 %v609_v46, 0.0 }
 0x149   :  { %681 = vst.msk [vmem:[%s1627_s3 + $0x38] sm:$0xff] %vm673_vm1, %v664_v2  ;;  %v671_v52 = vmax.f32 %v649_v48, 0.0 }
 0x14a   :  { %689 = vst.msk [vmem:[%s1627_s3 + $0x78] sm:$0xff] %vm673_vm1, %v672_v50  ;;  %680 = vst.msk [vmem:[%s1627_s3 + $0x30] sm:$0xff] %vm673_vm1, %v663_v51 }
 0x14b   :  { %688 = vst.msk [vmem:[%s1627_s3 + $0x70] sm:$0xff] %vm673_vm1, %v671_v52 }

// kernel: vae_forward_pallas.11
= control target key start
LH: loop header
LB: loop body
LE: loop exit
PB: predicated region body
PF: predicated region fallthrough
CT: control target
= control target key end

     0   :  { %v1566_v0 = vmov 0.0|0.0   ;;  %vm167_vm0 = vcmask 130048   ;;  %vm1129_vm1 = vcmask 31744   ;;  %s2437_s1 = inlined_call_operand.vmem [shape: f32[144,4], index: 1, kind: input, shape index: {}]   ;;  %s2438_s0 = inlined_call_operand.vmem [shape: f32[512,144], index: 0, kind: input, shape index: {}]   ;;  %s2439_s2 = inlined_call_operand.vmem [shape: f32[1,4], index: 2, kind: input, shape index: {}]   ;;  %s2440_s3 = inlined_call_operand.vmem [shape: f32[512,4], index: 3, kind: output, shape index: {}]  }
   0x1   :  { %1263 = vmatprep.subr.bf16.mxu0 %v1566_v0  ;;  %1290 = vmatprep.subr.bf16.mxu1 %v1566_v0  ;;  %v142_v1 = vld [vmem:[%s2437_s1] sm:$0xff]  ;;  %v143_v2 = vld [vmem:[%s2437_s1 + $0x8] sm:$0xff]  ;;  %v144_v3 = vld [vmem:[%s2437_s1 + $0x10] sm:$0xff] }
   0x2   :  { %v1264_v4 = vpack.c.bf16 %v143_v2, %v142_v1  ;;  %v145_v5 = vld [vmem:[%s2437_s1 + $0x18] sm:$0xff]  ;;  %v146_v7 = vld [vmem:[%s2437_s1 + $0x20] sm:$0xff]  ;;  %v147_v8 = vld [vmem:[%s2437_s1 + $0x28] sm:$0xff] }
   0x3   :  { %v1267_v6 = vpack.c.bf16 %v145_v5, %v144_v3  ;;  %v15_v9 = vld [vmem:[%s2438_s0 + $0x8] sm:$0xff]  ;;  %v1270_v11 = vpack.c.bf16 %v147_v8, %v146_v7  ;;  %v148_v12 = vld [vmem:[%s2437_s1 + $0x30] sm:$0xff]  ;;  %v149_v13 = vld [vmem:[%s2437_s1 + $0x38] sm:$0xff] }
   0x4   :  { %1265 = vmatpush1.bf16.msra.mxu0 %v1264_v4  ;;  %1299 = vmatpush1.bf16.msra.mxu1 %v1264_v4  ;;  %v79_v10 = vld [vmem:[%s2438_s0 + $0x208] sm:$0xff]  ;;  %v1273_v14 = vpack.c.bf16 %v149_v13, %v148_v12  ;;  %v150_v15 = vld [vmem:[%s2437_s1 + $0x40] sm:$0xff]  ;;  %v152_v18 = vld [vmem:[%s2437_s1 + $0x50] sm:$0xff] }
   0x5   :  { %1266 = vmatprep.subr.bf16.mxu0 %v1566_v0  ;;  %1291 = vmatprep.subr.bf16.mxu1 %v1566_v0  ;;  %v151_v16 = vld [vmem:[%s2437_s1 + $0x48] sm:$0xff]  ;;  %v153_v19 = vld [vmem:[%s2437_s1 + $0x58] sm:$0xff]  ;;  %v154_v21 = vld [vmem:[%s2437_s1 + $0x60] sm:$0xff] }
   0x6   :  { %1199 = vmatprep.mubr.msk.f32.mxu0 %vm167_vm0, %v15_v9  ;;  %1231 = vmatprep.mubr.msk.f32.mxu1 %vm167_vm0, %v79_v10  ;;  %v1276_v17 = vpack.c.bf16 %v151_v16, %v150_v15  ;;  %v1279_v20 = vpack.c.bf16 %v153_v19, %v152_v18  ;;  %v155_v22 = vld [vmem:[%s2437_s1 + $0x68] sm:$0xff]  ;;  %v156_v24 = vld [vmem:[%s2437_s1 + $0x70] sm:$0xff]  ;;  %v157_v25 = vld [vmem:[%s2437_s1 + $0x78] sm:$0xff] }
   0x7   :  { %v1282_v23 = vpack.c.bf16 %v155_v22, %v154_v21  ;;  %v1285_v26 = vpack.c.bf16 %v157_v25, %v156_v24  ;;  %v158_v27 = vld [vmem:[%s2437_s1 + $0x80] sm:$0xff]  ;;  %v159_v28 = vld [vmem:[%s2437_s1 + $0x88] sm:$0xff]  ;;  %v17_v32 = vld [vmem:[%s2438_s0 + $0x18] sm:$0xff] }
   0x8   :  { %1268 = vmatpush1.bf16.msra.mxu0 %v1267_v6  ;;  %1300 = vmatpush1.bf16.msra.mxu1 %v1267_v6  ;;  %v1288_v29 = vpack.c.bf16 %v159_v28, %v158_v27  ;;  %v14_v30 = vld [vmem:[%s2438_s0] sm:$0xff]  ;;  %v81_v33 = vld [vmem:[%s2438_s0 + $0x218] sm:$0xff]  ;;  %v16_v34 = vld [vmem:[%s2438_s0 + $0x10] sm:$0xff] }
   0x9   :  { %1269 = vmatprep.subr.bf16.mxu0 %v1566_v0  ;;  %1292 = vmatprep.subr.bf16.mxu1 %v1566_v0  ;;  %v78_v31 = vld [vmem:[%s2438_s0 + $0x200] sm:$0xff]  ;;  %v80_v35 = vld [vmem:[%s2438_s0 + $0x210] sm:$0xff]  ;;  %v19_v36 = vld [vmem:[%s2438_s0 + $0x28] sm:$0xff] }
   0xa   :  { %v83_v37 = vld [vmem:[%s2438_s0 + $0x228] sm:$0xff]  ;;  %v18_v38 = vld [vmem:[%s2438_s0 + $0x20] sm:$0xff]  ;;  %v21_v40 = vld [vmem:[%s2438_s0 + $0x38] sm:$0xff] }
   0xb   :  { %v82_v39 = vld [vmem:[%s2438_s0 + $0x220] sm:$0xff]  ;;  %v85_v41 = vld [vmem:[%s2438_s0 + $0x238] sm:$0xff]  ;;  %v20_v42 = vld [vmem:[%s2438_s0 + $0x30] sm:$0xff] }
   0xc   :  { %1271 = vmatpush1.bf16.msra.mxu0 %v1270_v11  ;;  %1301 = vmatpush1.bf16.msra.mxu1 %v1270_v11  ;;  %v84_v43 = vld [vmem:[%s2438_s0 + $0x230] sm:$0xff]  ;;  %v23_v44 = vld [vmem:[%s2438_s0 + $0x48] sm:$0xff]  ;;  %v22_v46 = vld [vmem:[%s2438_s0 + $0x40] sm:$0xff] }
   0xd   :  { %1272 = vmatprep.subr.bf16.mxu0 %v1566_v0  ;;  %1293 = vmatprep.subr.bf16.mxu1 %v1566_v0  ;;  %v87_v45 = vld [vmem:[%s2438_s0 + $0x248] sm:$0xff]  ;;  %v86_v47 = vld [vmem:[%s2438_s0 + $0x240] sm:$0xff]  ;;  %v25_v48 = vld [vmem:[%s2438_s0 + $0x58] sm:$0xff] }
   0xe   :  { %v89_v49 = vld [vmem:[%s2438_s0 + $0x258] sm:$0xff]  ;;  %v24_v50 = vld [vmem:[%s2438_s0 + $0x50] sm:$0xff]  ;;  %v27_v52 = vld [vmem:[%s2438_s0 + $0x68] sm:$0xff] }
   0xf   :  { %v88_v51 = vld [vmem:[%s2438_s0 + $0x250] sm:$0xff]  ;;  %v91_v53 = vld [vmem:[%s2438_s0 + $0x268] sm:$0xff]  ;;  %v26_v54 = vld [vmem:[%s2438_s0 + $0x60] sm:$0xff] }
  0x10   :  { %1274 = vmatpush1.bf16.msra.mxu0 %v1273_v14  ;;  %1302 = vmatpush1.bf16.msra.mxu1 %v1273_v14  ;;  %v90_v55 = vld [vmem:[%s2438_s0 + $0x260] sm:$0xff]  ;;  %v29_v56 = vld [vmem:[%s2438_s0 + $0x78] sm:$0xff]  ;;  %v28_v58 = vld [vmem:[%s2438_s0 + $0x70] sm:$0xff] }
  0x11   :  { %1275 = vmatprep.subr.bf16.mxu0 %v1566_v0  ;;  %1294 = vmatprep.subr.bf16.mxu1 %v1566_v0  ;;  %v93_v57 = vld [vmem:[%s2438_s0 + $0x278] sm:$0xff]  ;;  %v92_v59 = vld [vmem:[%s2438_s0 + $0x270] sm:$0xff]  ;;  %v31_v60 = vld [vmem:[%s2438_s0 + $0x88] sm:$0xff] }
  0x12   :  { %v95_v61 = vld [vmem:[%s2438_s0 + $0x288] sm:$0xff]  ;;  %v30_v62 = vld [vmem:[%s2438_s0 + $0x80] sm:$0xff]  ;;  %v97_v1 = vld [vmem:[%s2438_s0 + $0x298] sm:$0xff] }
  0x13   :  { %v94_v63 = vld [vmem:[%s2438_s0 + $0x280] sm:$0xff]  ;;  %v32_v2 = vld [vmem:[%s2438_s0 + $0x90] sm:$0xff]  ;;  %v35_v4 = vld [vmem:[%s2438_s0 + $0xa8] sm:$0xff] }
  0x14   :  { %1277 = vmatpush1.bf16.msra.mxu0 %v1276_v17  ;;  %1303 = vmatpush1.bf16.msra.mxu1 %v1276_v17  ;;  %v96_v3 = vld [vmem:[%s2438_s0 + $0x290] sm:$0xff]  ;;  %v99_v5 = vld [vmem:[%s2438_s0 + $0x2a8] sm:$0xff]  ;;  %v34_v6 = vld [vmem:[%s2438_s0 + $0xa0] sm:$0xff] }
  0x15   :  { %1278 = vmatprep.subr.bf16.mxu0 %v1566_v0  ;;  %1295 = vmatprep.subr.bf16.mxu1 %v1566_v0  ;;  %v98_v7 = vld [vmem:[%s2438_s0 + $0x2a0] sm:$0xff]  ;;  %v37_v8 = vld [vmem:[%s2438_s0 + $0xb8] sm:$0xff]  ;;  %v36_v10 = vld [vmem:[%s2438_s0 + $0xb0] sm:$0xff] }
  0x16   :  { %v101_v9 = vld [vmem:[%s2438_s0 + $0x2b8] sm:$0xff]  ;;  %v100_v11 = vld [vmem:[%s2438_s0 + $0x2b0] sm:$0xff]  ;;  %v39_v12 = vld [vmem:[%s2438_s0 + $0xc8] sm:$0xff] }
  0x17   :  { %v103_v13 = vld [vmem:[%s2438_s0 + $0x2c8] sm:$0xff]  ;;  %v38_v14 = vld [vmem:[%s2438_s0 + $0xc0] sm:$0xff]  ;;  %v41_v16 = vld [vmem:[%s2438_s0 + $0xd8] sm:$0xff] }
  0x18   :  { %1280 = vmatpush1.bf16.msra.mxu0 %v1279_v20  ;;  %1304 = vmatpush1.bf16.msra.mxu1 %v1279_v20  ;;  %v102_v15 = vld [vmem:[%s2438_s0 + $0x2c0] sm:$0xff]  ;;  %v105_v17 = vld [vmem:[%s2438_s0 + $0x2d8] sm:$0xff]  ;;  %v40_v18 = vld [vmem:[%s2438_s0 + $0xd0] sm:$0xff] }
  0x19   :  { %1281 = vmatprep.subr.bf16.mxu0 %v1566_v0  ;;  %1296 = vmatprep.subr.bf16.mxu1 %v1566_v0  ;;  %v104_v19 = vld [vmem:[%s2438_s0 + $0x2d0] sm:$0xff]  ;;  %v43_v20 = vld [vmem:[%s2438_s0 + $0xe8] sm:$0xff]  ;;  %v42_v22 = vld [vmem:[%s2438_s0 + $0xe0] sm:$0xff] }
  0x1a   :  { %v107_v21 = vld [vmem:[%s2438_s0 + $0x2e8] sm:$0xff]  ;;  %v45_v24 = vld [vmem:[%s2438_s0 + $0xf8] sm:$0xff]  ;;  %v108_v27 = vld [vmem:[%s2438_s0 + $0x2f0] sm:$0xff] }
  0x1b   :  { %v109_v25 = vld [vmem:[%s2438_s0 + $0x2f8] sm:$0xff]  ;;  %v47_v28 = vld [vmem:[%s2438_s0 + $0x108] sm:$0xff] }
  0x1c   :  { %1283 = vmatpush1.bf16.msra.mxu0 %v1282_v23  ;;  %1305 = vmatpush1.bf16.msra.mxu1 %v1282_v23  ;;  %v106_v23 = vld [vmem:[%s2438_s0 + $0x2e0] sm:$0xff] }
  0x1d   :  { %1284 = vmatprep.subr.bf16.mxu0 %v1566_v0  ;;  %1297 = vmatprep.subr.bf16.mxu1 %v1566_v0 }
  0x20   :  { %1286 = vmatpush1.bf16.msra.mxu0 %v1285_v26  ;;  %1306 = vmatpush1.bf16.msra.mxu1 %v1285_v26  ;;  %v44_v26 = vld [vmem:[%s2438_s0 + $0xf0] sm:$0xff] }
  0x21   :  { %1287 = vmatprep.subr.bf16.mxu0 %v1566_v0  ;;  %1298 = vmatprep.subr.bf16.mxu1 %v1566_v0  ;;  %v33_v0 = vld [vmem:[%s2438_s0 + $0x98] sm:$0xff] }
  0x24   :  { %1289 = vmatpush1.bf16.msra.mxu0 %v1288_v29  ;;  %1307 = vmatpush1.bf16.msra.mxu1 %v1288_v29  ;;  %v111_v29 = vld [vmem:[%s2438_s0 + $0x308] sm:$0xff] }
  0x27   :  { %425 = vmatmul.mubr.f32.vlgmr.msra.gmra.mrb[0].mxu0 %v14_v30  ;;  %585 = vmatmul.mubr.f32.vlgmr.msra.gmra.mrb[0].mxu1 %v78_v31  ;;  %v46_v30 = vld [vmem:[%s2438_s0 + $0x100] sm:$0xff] }
  0x28   :  { %1200 = vmatprep.mubr.msk.f32.mxu0 %vm167_vm0, %v17_v32  ;;  %1232 = vmatprep.mubr.msk.f32.mxu1 %vm167_vm0, %v81_v33  ;;  %v110_v31 = vld [vmem:[%s2438_s0 + $0x300] sm:$0xff]  ;;  %v49_v32 = vld [vmem:[%s2438_s0 + $0x118] sm:$0xff] }
  0x29   :  { %v113_v33 = vld [vmem:[%s2438_s0 + $0x318] sm:$0xff] }
  0x2b   :  { %430 = vmatmul.mubr.f32.gmra.mrb[2].mxu0 %v16_v34  ;;  %590 = vmatmul.mubr.f32.gmra.mrb[2].mxu1 %v80_v35  ;;  %v48_v34 = vld [vmem:[%s2438_s0 + $0x110] sm:$0xff] }
  0x2c   :  { %1201 = vmatprep.mubr.msk.f32.mxu0 %vm167_vm0, %v19_v36  ;;  %1233 = vmatprep.mubr.msk.f32.mxu1 %vm167_vm0, %v83_v37  ;;  %v112_v35 = vld [vmem:[%s2438_s0 + $0x310] sm:$0xff]  ;;  %v51_v36 = vld [vmem:[%s2438_s0 + $0x128] sm:$0xff] }
  0x2d   :  { %v115_v37 = vld [vmem:[%s2438_s0 + $0x328] sm:$0xff] }
  0x2f   :  { %435 = vmatmul.mubr.f32.gmra.mrb[4].mxu0 %v18_v38  ;;  %595 = vmatmul.mubr.f32.gmra.mrb[4].mxu1 %v82_v39  ;;  %v50_v38 = vld [vmem:[%s2438_s0 + $0x120] sm:$0xff] }
  0x30   :  { %1202 = vmatprep.mubr.msk.f32.mxu0 %vm167_vm0, %v21_v40  ;;  %1234 = vmatprep.mubr.msk.f32.mxu1 %vm167_vm0, %v85_v41  ;;  %v114_v39 = vld [vmem:[%s2438_s0 + $0x320] sm:$0xff]  ;;  %v53_v40 = vld [vmem:[%s2438_s0 + $0x138] sm:$0xff] }
  0x31   :  { %v117_v41 = vld [vmem:[%s2438_s0 + $0x338] sm:$0xff] }
  0x33   :  { %440 = vmatmul.mubr.f32.gmra.mrb[6].mxu0 %v20_v42  ;;  %600 = vmatmul.mubr.f32.gmra.mrb[6].mxu1 %v84_v43  ;;  %v52_v42 = vld [vmem:[%s2438_s0 + $0x130] sm:$0xff] }
  0x34   :  { %1203 = vmatprep.mubr.msk.f32.mxu0 %vm167_vm0, %v23_v44  ;;  %1235 = vmatprep.mubr.msk.f32.mxu1 %vm167_vm0, %v87_v45  ;;  %v116_v43 = vld [vmem:[%s2438_s0 + $0x330] sm:$0xff]  ;;  %v55_v44 = vld [vmem:[%s2438_s0 + $0x148] sm:$0xff] }
  0x35   :  { %v119_v45 = vld [vmem:[%s2438_s0 + $0x348] sm:$0xff] }
  0x37   :  { %445 = vmatmul.mubr.f32.gmra.mrb[8].mxu0 %v22_v46  ;;  %605 = vmatmul.mubr.f32.gmra.mrb[8].mxu1 %v86_v47  ;;  %v54_v46 = vld [vmem:[%s2438_s0 + $0x140] sm:$0xff] }
  0x38   :  { %1204 = vmatprep.mubr.msk.f32.mxu0 %vm167_vm0, %v25_v48  ;;  %1236 = vmatprep.mubr.msk.f32.mxu1 %vm167_vm0, %v89_v49  ;;  %v118_v47 = vld [vmem:[%s2438_s0 + $0x340] sm:$0xff]  ;;  %v57_v48 = vld [vmem:[%s2438_s0 + $0x158] sm:$0xff] }
  0x39   :  { %v121_v49 = vld [vmem:[%s2438_s0 + $0x358] sm:$0xff] }
  0x3b   :  { %450 = vmatmul.mubr.f32.gmra.mrb[10].mxu0 %v24_v50  ;;  %610 = vmatmul.mubr.f32.gmra.mrb[10].mxu1 %v88_v51  ;;  %v56_v50 = vld [vmem:[%s2438_s0 + $0x150] sm:$0xff] }
  0x3c   :  { %1205 = vmatprep.mubr.msk.f32.mxu0 %vm167_vm0, %v27_v52  ;;  %1237 = vmatprep.mubr.msk.f32.mxu1 %vm167_vm0, %v91_v53  ;;  %v120_v51 = vld [vmem:[%s2438_s0 + $0x350] sm:$0xff]  ;;  %v59_v52 = vld [vmem:[%s2438_s0 + $0x168] sm:$0xff] }
  0x3d   :  { %v123_v53 = vld [vmem:[%s2438_s0 + $0x368] sm:$0xff] }
  0x3f   :  { %455 = vmatmul.mubr.f32.gmra.mrb[12].mxu0 %v26_v54  ;;  %615 = vmatmul.mubr.f32.gmra.mrb[12].mxu1 %v90_v55  ;;  %v58_v54 = vld [vmem:[%s2438_s0 + $0x160] sm:$0xff] }
  0x40   :  { %1206 = vmatprep.mubr.msk.f32.mxu0 %vm167_vm0, %v29_v56  ;;  %1238 = vmatprep.mubr.msk.f32.mxu1 %vm167_vm0, %v93_v57  ;;  %v122_v55 = vld [vmem:[%s2438_s0 + $0x360] sm:$0xff]  ;;  %v61_v56 = vld [vmem:[%s2438_s0 + $0x178] sm:$0xff] }
  0x41   :  { %v125_v57 = vld [vmem:[%s2438_s0 + $0x378] sm:$0xff] }
  0x43   :  { %460 = vmatmul.mubr.f32.gmra.mrb[14].mxu0 %v28_v58  ;;  %620 = vmatmul.mubr.f32.gmra.mrb[14].mxu1 %v92_v59  ;;  %v60_v58 = vld [vmem:[%s2438_s0 + $0x170] sm:$0xff] }
  0x44   :  { %1207 = vmatprep.mubr.msk.f32.mxu0 %vm167_vm0, %v31_v60  ;;  %1239 = vmatprep.mubr.msk.f32.mxu1 %vm167_vm0, %v95_v61  ;;  %v124_v59 = vld [vmem:[%s2438_s0 + $0x370] sm:$0xff]  ;;  %v63_v60 = vld [vmem:[%s2438_s0 + $0x188] sm:$0xff] }
  0x45   :  { %v127_v61 = vld [vmem:[%s2438_s0 + $0x388] sm:$0xff] }
  0x47   :  { %465 = vmatmul.mubr.f32.gmra.mrb[16].mxu0 %v30_v62  ;;  %625 = vmatmul.mubr.f32.gmra.mrb[16].mxu1 %v94_v63  ;;  %v62_v62 = vld [vmem:[%s2438_s0 + $0x180] sm:$0xff] }
  0x48   :  { %1208 = vmatprep.mubr.msk.f32.mxu0 %vm167_vm0, %v33_v0  ;;  %1240 = vmatprep.mubr.msk.f32.mxu1 %vm167_vm0, %v97_v1  ;;  %v126_v63 = vld [vmem:[%s2438_s0 + $0x380] sm:$0xff]  ;;  %v65_v0 = vld [vmem:[%s2438_s0 + $0x198] sm:$0xff] }
  0x49   :  { %v129_v1 = vld [vmem:[%s2438_s0 + $0x398] sm:$0xff] }
  0x4b   :  { %470 = vmatmul.mubr.f32.gmra.mrb[18].mxu0 %v32_v2  ;;  %630 = vmatmul.mubr.f32.gmra.mrb[18].mxu1 %v96_v3  ;;  %v64_v2 = vld [vmem:[%s2438_s0 + $0x190] sm:$0xff] }
  0x4c   :  { %1209 = vmatprep.mubr.msk.f32.mxu0 %vm167_vm0, %v35_v4  ;;  %1241 = vmatprep.mubr.msk.f32.mxu1 %vm167_vm0, %v99_v5  ;;  %v128_v3 = vld [vmem:[%s2438_s0 + $0x390] sm:$0xff]  ;;  %v67_v4 = vld [vmem:[%s2438_s0 + $0x1a8] sm:$0xff] }
  0x4d   :  { %v131_v5 = vld [vmem:[%s2438_s0 + $0x3a8] sm:$0xff] }
  0x4f   :  { %475 = vmatmul.mubr.f32.gmra.mrb[20].mxu0 %v34_v6  ;;  %635 = vmatmul.mubr.f32.gmra.mrb[20].mxu1 %v98_v7  ;;  %v66_v6 = vld [vmem:[%s2438_s0 + $0x1a0] sm:$0xff] }
  0x50   :  { %1210 = vmatprep.mubr.msk.f32.mxu0 %vm167_vm0, %v37_v8  ;;  %1242 = vmatprep.mubr.msk.f32.mxu1 %vm167_vm0, %v101_v9  ;;  %v130_v7 = vld [vmem:[%s2438_s0 + $0x3a0] sm:$0xff]  ;;  %v69_v8 = vld [vmem:[%s2438_s0 + $0x1b8] sm:$0xff] }
  0x51   :  { %v133_v9 = vld [vmem:[%s2438_s0 + $0x3b8] sm:$0xff] }
  0x53   :  { %480 = vmatmul.mubr.f32.gmra.mrb[22].mxu0 %v36_v10  ;;  %640 = vmatmul.mubr.f32.gmra.mrb[22].mxu1 %v100_v11  ;;  %v68_v10 = vld [vmem:[%s2438_s0 + $0x1b0] sm:$0xff] }
  0x54   :  { %1211 = vmatprep.mubr.msk.f32.mxu0 %vm167_vm0, %v39_v12  ;;  %1243 = vmatprep.mubr.msk.f32.mxu1 %vm167_vm0, %v103_v13  ;;  %v132_v11 = vld [vmem:[%s2438_s0 + $0x3b0] sm:$0xff]  ;;  %v71_v12 = vld [vmem:[%s2438_s0 + $0x1c8] sm:$0xff] }
  0x55   :  { %v135_v13 = vld [vmem:[%s2438_s0 + $0x3c8] sm:$0xff] }
  0x57   :  { %485 = vmatmul.mubr.f32.gmra.mrb[24].mxu0 %v38_v14  ;;  %645 = vmatmul.mubr.f32.gmra.mrb[24].mxu1 %v102_v15  ;;  %v70_v14 = vld [vmem:[%s2438_s0 + $0x1c0] sm:$0xff] }
  0x58   :  { %1212 = vmatprep.mubr.msk.f32.mxu0 %vm167_vm0, %v41_v16  ;;  %1244 = vmatprep.mubr.msk.f32.mxu1 %vm167_vm0, %v105_v17  ;;  %v134_v15 = vld [vmem:[%s2438_s0 + $0x3c0] sm:$0xff]  ;;  %v73_v16 = vld [vmem:[%s2438_s0 + $0x1d8] sm:$0xff] }
  0x59   :  { %v137_v17 = vld [vmem:[%s2438_s0 + $0x3d8] sm:$0xff] }
  0x5b   :  { %490 = vmatmul.mubr.f32.gmra.mrb[26].mxu0 %v40_v18  ;;  %650 = vmatmul.mubr.f32.gmra.mrb[26].mxu1 %v104_v19  ;;  %v72_v18 = vld [vmem:[%s2438_s0 + $0x1d0] sm:$0xff] }
  0x5c   :  { %1213 = vmatprep.mubr.msk.f32.mxu0 %vm167_vm0, %v43_v20  ;;  %1245 = vmatprep.mubr.msk.f32.mxu1 %vm167_vm0, %v107_v21  ;;  %v136_v19 = vld [vmem:[%s2438_s0 + $0x3d0] sm:$0xff]  ;;  %v75_v20 = vld [vmem:[%s2438_s0 + $0x1e8] sm:$0xff] }
  0x5d   :  { %v139_v21 = vld [vmem:[%s2438_s0 + $0x3e8] sm:$0xff] }
  0x5f   :  { %495 = vmatmul.mubr.f32.gmra.mrb[28].mxu0 %v42_v22  ;;  %655 = vmatmul.mubr.f32.gmra.mrb[28].mxu1 %v106_v23  ;;  %v74_v22 = vld [vmem:[%s2438_s0 + $0x1e0] sm:$0xff] }
  0x60   :  { %1214 = vmatprep.mubr.msk.f32.mxu0 %vm167_vm0, %v45_v24  ;;  %1246 = vmatprep.mubr.msk.f32.mxu1 %vm167_vm0, %v109_v25  ;;  %v138_v23 = vld [vmem:[%s2438_s0 + $0x3e0] sm:$0xff]  ;;  %v77_v24 = vld [vmem:[%s2438_s0 + $0x1f8] sm:$0xff] }
  0x61   :  { %v141_v25 = vld [vmem:[%s2438_s0 + $0x3f8] sm:$0xff] }
  0x63   :  { %500 = vmatmul.mubr.f32.gmra.mrb[30].mxu0 %v44_v26  ;;  %660 = vmatmul.mubr.f32.gmra.mrb[30].mxu1 %v108_v27  ;;  %v76_v26 = vld [vmem:[%s2438_s0 + $0x1f0] sm:$0xff] }
  0x64   :  { %1215 = vmatprep.mubr.msk.f32.mxu0 %vm167_vm0, %v47_v28  ;;  %1247 = vmatprep.mubr.msk.f32.mxu1 %vm167_vm0, %v111_v29  ;;  %v140_v27 = vld [vmem:[%s2438_s0 + $0x3f0] sm:$0xff]  ;;  %v2110_v28 = vld [vmem:[%s2439_s2] ss:$0 sm:$0xff] }
  0x67   :  { %505 = vmatmul.mubr.f32.gmra.mrb[32].mxu0 %v46_v30  ;;  %665 = vmatmul.mubr.f32.gmra.mrb[32].mxu1 %v110_v31 }
  0x68   :  { %1216 = vmatprep.mubr.msk.f32.mxu0 %vm167_vm0, %v49_v32  ;;  %1248 = vmatprep.mubr.msk.f32.mxu1 %vm167_vm0, %v113_v33 }
  0x6b   :  { %510 = vmatmul.mubr.f32.gmra.mrb[34].mxu0 %v48_v34  ;;  %670 = vmatmul.mubr.f32.gmra.mrb[34].mxu1 %v112_v35 }
  0x6c   :  { %1217 = vmatprep.mubr.msk.f32.mxu0 %vm167_vm0, %v51_v36  ;;  %1249 = vmatprep.mubr.msk.f32.mxu1 %vm167_vm0, %v115_v37 }
  0x6f   :  { %515 = vmatmul.mubr.f32.gmra.mrb[36].mxu0 %v50_v38  ;;  %675 = vmatmul.mubr.f32.gmra.mrb[36].mxu1 %v114_v39 }
  0x70   :  { %1218 = vmatprep.mubr.msk.f32.mxu0 %vm167_vm0, %v53_v40  ;;  %1250 = vmatprep.mubr.msk.f32.mxu1 %vm167_vm0, %v117_v41 }
  0x73   :  { %520 = vmatmul.mubr.f32.gmra.mrb[38].mxu0 %v52_v42  ;;  %680 = vmatmul.mubr.f32.gmra.mrb[38].mxu1 %v116_v43 }
  0x74   :  { %1219 = vmatprep.mubr.msk.f32.mxu0 %vm167_vm0, %v55_v44  ;;  %1251 = vmatprep.mubr.msk.f32.mxu1 %vm167_vm0, %v119_v45 }
  0x77   :  { %525 = vmatmul.mubr.f32.gmra.mrb[40].mxu0 %v54_v46  ;;  %685 = vmatmul.mubr.f32.gmra.mrb[40].mxu1 %v118_v47 }
  0x78   :  { %1220 = vmatprep.mubr.msk.f32.mxu0 %vm167_vm0, %v57_v48  ;;  %1252 = vmatprep.mubr.msk.f32.mxu1 %vm167_vm0, %v121_v49 }
  0x7b   :  { %530 = vmatmul.mubr.f32.gmra.mrb[42].mxu0 %v56_v50  ;;  %690 = vmatmul.mubr.f32.gmra.mrb[42].mxu1 %v120_v51 }
  0x7c   :  { %1221 = vmatprep.mubr.msk.f32.mxu0 %vm167_vm0, %v59_v52  ;;  %1253 = vmatprep.mubr.msk.f32.mxu1 %vm167_vm0, %v123_v53 }
  0x7f   :  { %535 = vmatmul.mubr.f32.gmra.mrb[44].mxu0 %v58_v54  ;;  %695 = vmatmul.mubr.f32.gmra.mrb[44].mxu1 %v122_v55 }
  0x80   :  { %1222 = vmatprep.mubr.msk.f32.mxu0 %vm167_vm0, %v61_v56  ;;  %1254 = vmatprep.mubr.msk.f32.mxu1 %vm167_vm0, %v125_v57 }
  0x83   :  { %540 = vmatmul.mubr.f32.gmra.mrb[46].mxu0 %v60_v58  ;;  %700 = vmatmul.mubr.f32.gmra.mrb[46].mxu1 %v124_v59 }
  0x84   :  { %1223 = vmatprep.mubr.msk.f32.mxu0 %vm167_vm0, %v63_v60  ;;  %1255 = vmatprep.mubr.msk.f32.mxu1 %vm167_vm0, %v127_v61 }
  0x87   :  { %545 = vmatmul.mubr.f32.gmra.mrb[48].mxu0 %v62_v62  ;;  %705 = vmatmul.mubr.f32.gmra.mrb[48].mxu1 %v126_v63 }
  0x88   :  { %1224 = vmatprep.mubr.msk.f32.mxu0 %vm167_vm0, %v65_v0  ;;  %1256 = vmatprep.mubr.msk.f32.mxu1 %vm167_vm0, %v129_v1 }
  0x8b   :  { %550 = vmatmul.mubr.f32.gmra.mrb[50].mxu0 %v64_v2  ;;  %710 = vmatmul.mubr.f32.gmra.mrb[50].mxu1 %v128_v3 }
  0x8c   :  { %1225 = vmatprep.mubr.msk.f32.mxu0 %vm167_vm0, %v67_v4  ;;  %1257 = vmatprep.mubr.msk.f32.mxu1 %vm167_vm0, %v131_v5 }
  0x8f   :  { %555 = vmatmul.mubr.f32.gmra.mrb[52].mxu0 %v66_v6  ;;  %715 = vmatmul.mubr.f32.gmra.mrb[52].mxu1 %v130_v7 }
  0x90   :  { %1226 = vmatprep.mubr.msk.f32.mxu0 %vm167_vm0, %v69_v8  ;;  %1258 = vmatprep.mubr.msk.f32.mxu1 %vm167_vm0, %v133_v9 }
  0x93   :  { %560 = vmatmul.mubr.f32.gmra.mrb[54].mxu0 %v68_v10  ;;  %720 = vmatmul.mubr.f32.gmra.mrb[54].mxu1 %v132_v11 }
  0x94   :  { %1227 = vmatprep.mubr.msk.f32.mxu0 %vm167_vm0, %v71_v12  ;;  %1259 = vmatprep.mubr.msk.f32.mxu1 %vm167_vm0, %v135_v13 }
  0x97   :  { %565 = vmatmul.mubr.f32.gmra.mrb[56].mxu0 %v70_v14  ;;  %725 = vmatmul.mubr.f32.gmra.mrb[56].mxu1 %v134_v15 }
  0x98   :  { %1228 = vmatprep.mubr.msk.f32.mxu0 %vm167_vm0, %v73_v16  ;;  %1260 = vmatprep.mubr.msk.f32.mxu1 %vm167_vm0, %v137_v17 }
  0x9b   :  { %570 = vmatmul.mubr.f32.gmra.mrb[58].mxu0 %v72_v18  ;;  %730 = vmatmul.mubr.f32.gmra.mrb[58].mxu1 %v136_v19 }
  0x9c   :  { %1229 = vmatprep.mubr.msk.f32.mxu0 %vm167_vm0, %v75_v20  ;;  %1261 = vmatprep.mubr.msk.f32.mxu1 %vm167_vm0, %v139_v21 }
  0x9f   :  { %575 = vmatmul.mubr.f32.gmra.mrb[60].mxu0 %v74_v22  ;;  %735 = vmatmul.mubr.f32.gmra.mrb[60].mxu1 %v138_v23 }
  0xa0   :  { %1230 = vmatprep.mubr.msk.f32.mxu0 %vm167_vm0, %v77_v24  ;;  %1262 = vmatprep.mubr.msk.f32.mxu1 %vm167_vm0, %v141_v25 }
  0xa3   :  { %580 = vmatmul.mubr.f32.gmra.mrb[62].mxu0 %v76_v26  ;;  %740 = vmatmul.mubr.f32.gmra.mrb[62].mxu1 %v140_v27 }
  0xfa   :  { %v426_v29 = vpop.f32.mrb[0].mxu0  ;;  %v586_v30 = vpop.f32.mrb[0].mxu1 }
  0xfb   :  { %v427_v31 = vadd.f32 %v2110_v28, %v426_v29  ;;  %v587_v32 = vadd.f32 %v2110_v28, %v586_v30  ;;  %v428_v33 = vpop.f32.mrb[1].mxu0  ;;  %v588_v34 = vpop.f32.mrb[1].mxu1 }
  0xfd   :  { %v745_v35 = vsub.f32 0.0, %v427_v31  ;;  %v777_v36 = vsub.f32 0.0, %v587_v32 }
  0xfe   :  { %v431_v37 = vpop.f32.mrb[2].mxu0  ;;  %v591_v38 = vpop.f32.mrb[2].mxu1 }
  0xff   :  { %v809_v39 = vmul.f32 1.442695, %v745_v35  ;;  %v873_v40 = vmul.f32 1.442695, %v777_v36  ;;  %v432_v41 = vadd.f32 %v2110_v28, %v431_v37  ;;  %v592_v42 = vadd.f32 %v2110_v28, %v591_v38  ;;  %v433_v43 = vpop.f32.mrb[3].mxu0  ;;  %v593_v44 = vpop.f32.mrb[3].mxu1 }
 0x101   :  { %1309 = vpow2.f32 %v809_v39  ;;  %v746_v45 = vsub.f32 0.0, %v432_v41  ;;  %v778_v46 = vsub.f32 0.0, %v592_v42 }
 0x102   :  { %1311 = vpow2.f32 %v873_v40  ;;  %v436_v47 = vpop.f32.mrb[4].mxu0  ;;  %v596_v48 = vpop.f32.mrb[4].mxu1 }
 0x103   :  { %v811_v49 = vmul.f32 1.442695, %v746_v45  ;;  %v875_v50 = vmul.f32 1.442695, %v778_v46  ;;  %v437_v51 = vadd.f32 %v2110_v28, %v436_v47  ;;  %v597_v52 = vadd.f32 %v2110_v28, %v596_v48  ;;  %v438_v53 = vpop.f32.mrb[5].mxu0  ;;  %v598_v54 = vpop.f32.mrb[5].mxu1 }
 0x105   :  { %1313 = vpow2.f32 %v811_v49  ;;  %v747_v55 = vsub.f32 0.0, %v437_v51  ;;  %v779_v56 = vsub.f32 0.0, %v597_v52 }
 0x106   :  { %1315 = vpow2.f32 %v875_v50  ;;  %v441_v57 = vpop.f32.mrb[6].mxu0  ;;  %v601_v58 = vpop.f32.mrb[6].mxu1 }
 0x107   :  { %v813_v59 = vmul.f32 1.442695, %v747_v55  ;;  %v877_v60 = vmul.f32 1.442695, %v779_v56  ;;  %v442_v61 = vadd.f32 %v2110_v28, %v441_v57  ;;  %v602_v62 = vadd.f32 %v2110_v28, %v601_v58  ;;  %v443_v63 = vpop.f32.mrb[7].mxu0  ;;  %v603_v0 = vpop.f32.mrb[7].mxu1 }
 0x109   :  { %1317 = vpow2.f32 %v813_v59  ;;  %v748_v1 = vsub.f32 0.0, %v442_v61  ;;  %v780_v2 = vsub.f32 0.0, %v602_v62 }
 0x10a   :  { %1319 = vpow2.f32 %v877_v60  ;;  %v446_v3 = vpop.f32.mrb[8].mxu0  ;;  %v606_v4 = vpop.f32.mrb[8].mxu1 }
 0x10b   :  { %v1310_v5 = vpop.eup %1309  ;;  %v815_v6 = vmul.f32 1.442695, %v748_v1  ;;  %v447_v7 = vadd.f32 %v2110_v28, %v446_v3  ;;  %v607_v8 = vadd.f32 %v2110_v28, %v606_v4  ;;  %v448_v9 = vpop.f32.mrb[9].mxu0  ;;  %v879_v13 = vmul.f32 1.442695, %v780_v2 }
 0x10c   :  { %v608_v10 = vpop.f32.mrb[9].mxu1  ;;  %v1312_v11 = vpop.eup %1311  ;;  %v937_v12 = vadd.f32 1.0, %v1310_v5 }
 0x10d   :  { %v969_v14 = vadd.f32 1.0, %v1312_v11  ;;  %1321 = vpow2.f32 %v815_v6  ;;  %v749_v15 = vsub.f32 0.0, %v447_v7  ;;  %v781_v16 = vsub.f32 0.0, %v607_v8 }
 0x10e   :  { %1323 = vrcp.f32 %v937_v12  ;;  %v451_v17 = vpop.f32.mrb[10].mxu0  ;;  %v611_v18 = vpop.f32.mrb[10].mxu1 }
 0x10f   :  { %v1314_v19 = vpop.eup %1313  ;;  %1325 = vrcp.f32 %v969_v14  ;;  %v817_v20 = vmul.f32 1.442695, %v749_v15  ;;  %v452_v21 = vadd.f32 %v2110_v28, %v451_v17  ;;  %v453_v22 = vpop.f32.mrb[11].mxu0  ;;  %v881_v26 = vmul.f32 1.442695, %v781_v16 }
 0x110   :  { %v613_v23 = vpop.f32.mrb[11].mxu1  ;;  %v1316_v24 = vpop.eup %1315  ;;  %v938_v25 = vadd.f32 1.0, %v1314_v19  ;;  %1327 = vpow2.f32 %v879_v13  ;;  %v612_v27 = vadd.f32 %v2110_v28, %v611_v18 }
 0x111   :  { %v970_v29 = vadd.f32 1.0, %v1316_v24  ;;  %1329 = vpow2.f32 %v817_v20  ;;  %v750_v30 = vsub.f32 0.0, %v452_v21 }
 0x112   :  { %1331 = vrcp.f32 %v938_v25  ;;  %v782_v31 = vsub.f32 0.0, %v612_v27  ;;  %v456_v32 = vpop.f32.mrb[12].mxu0  ;;  %v616_v33 = vpop.f32.mrb[12].mxu1 }
 0x113   :  { %v1318_v34 = vpop.eup %1317  ;;  %1333 = vrcp.f32 %v970_v29  ;;  %v819_v35 = vmul.f32 1.442695, %v750_v30  ;;  %v457_v36 = vadd.f32 %v2110_v28, %v456_v32  ;;  %v617_v37 = vadd.f32 %v2110_v28, %v616_v33  ;;  %v458_v38 = vpop.f32.mrb[13].mxu0 }
 0x114   :  { %v618_v39 = vpop.f32.mrb[13].mxu1  ;;  %v1320_v40 = vpop.eup %1319  ;;  %v939_v41 = vadd.f32 1.0, %v1318_v34  ;;  %1335 = vpow2.f32 %v881_v26  ;;  %v883_v42 = vmul.f32 1.442695, %v782_v31 }
 0x115   :  { %v971_v43 = vadd.f32 1.0, %v1320_v40  ;;  %1337 = vpow2.f32 %v819_v35  ;;  %v751_v44 = vsub.f32 0.0, %v457_v36  ;;  %v783_v45 = vsub.f32 0.0, %v617_v37 }
 0x116   :  { %1339 = vrcp.f32 %v939_v41  ;;  %v461_v46 = vpop.f32.mrb[14].mxu0  ;;  %v621_v47 = vpop.f32.mrb[14].mxu1 }
 0x117   :  { %v1322_v48 = vpop.eup %1321  ;;  %1341 = vrcp.f32 %v971_v43  ;;  %v821_v49 = vmul.f32 1.442695, %v751_v44  ;;  %v885_v50 = vmul.f32 1.442695, %v783_v45  ;;  %v462_v51 = vadd.f32 %v2110_v28, %v461_v46  ;;  %v463_v52 = vpop.f32.mrb[15].mxu0 }
 0x118   :  { %v623_v53 = vpop.f32.mrb[15].mxu1  ;;  %v1324_v54 = vpop.eup %1323  ;;  %v940_v55 = vadd.f32 1.0, %v1322_v48  ;;  %1343 = vpow2.f32 %v883_v42  ;;  %v622_v56 = vadd.f32 %v2110_v28, %v621_v47 }
 0x119   :  { %v1326_v57 = vpop.eup %1325  ;;  %1130 = vst.msk [vmem:[%s2440_s3] sm:$0xff] %vm1129_vm1, %v1324_v54  ;;  %1345 = vpow2.f32 %v821_v49  ;;  %v752_v58 = vsub.f32 0.0, %v462_v51 }
 0x11a   :  { %v1328_v59 = vpop.eup %1327  ;;  %1162 = vst.msk [vmem:[%s2440_s3 + $0x100] sm:$0xff] %vm1129_vm1, %v1326_v57  ;;  %1347 = vrcp.f32 %v940_v55  ;;  %v784_v60 = vsub.f32 0.0, %v622_v56  ;;  %v466_v61 = vpop.f32.mrb[16].mxu0 }
 0x11b   :  { %v626_v62 = vpop.f32.mrb[16].mxu1  ;;  %v1330_v63 = vpop.eup %1329  ;;  %v972_v0 = vadd.f32 1.0, %v1328_v59  ;;  %1349 = vpow2.f32 %v885_v50  ;;  %v823_v1 = vmul.f32 1.442695, %v752_v58  ;;  %v467_v2 = vadd.f32 %v2110_v28, %v466_v61 }
 0x11c   :  { %v468_v3 = vpop.f32.mrb[17].mxu0  ;;  %v628_v4 = vpop.f32.mrb[17].mxu1  ;;  %v941_v6 = vadd.f32 1.0, %v1330_v63  ;;  %v887_v7 = vmul.f32 1.442695, %v784_v60  ;;  %v627_v8 = vadd.f32 %v2110_v28, %v626_v62 }
 0x11d   :  { %v1332_v5 = vpop.eup %1331  ;;  %1351 = vrcp.f32 %v972_v0  ;;  %v753_v10 = vsub.f32 0.0, %v467_v2 }
 0x11e   :  { %v1334_v9 = vpop.eup %1333  ;;  %1131 = vst.msk [vmem:[%s2440_s3 + $0x8] sm:$0xff] %vm1129_vm1, %v1332_v5  ;;  %1353 = vrcp.f32 %v941_v6  ;;  %v785_v12 = vsub.f32 0.0, %v627_v8  ;;  %v471_v13 = vpop.f32.mrb[18].mxu0 }
 0x11f   :  { %v1336_v11 = vpop.eup %1335  ;;  %1163 = vst.msk [vmem:[%s2440_s3 + $0x108] sm:$0xff] %vm1129_vm1, %v1334_v9  ;;  %v631_v14 = vpop.f32.mrb[18].mxu1  ;;  %1355 = vpow2.f32 %v823_v1  ;;  %v825_v17 = vmul.f32 1.442695, %v753_v10  ;;  %v472_v18 = vadd.f32 %v2110_v28, %v471_v13 }
 0x120   :  { %v1338_v15 = vpop.eup %1337  ;;  %v973_v16 = vadd.f32 1.0, %v1336_v11  ;;  %v473_v19 = vpop.f32.mrb[19].mxu0  ;;  %1357 = vpow2.f32 %v887_v7  ;;  %v889_v23 = vmul.f32 1.442695, %v785_v12  ;;  %v632_v24 = vadd.f32 %v2110_v28, %v631_v14 }
 0x121   :  { %v633_v20 = vpop.f32.mrb[19].mxu1  ;;  %v1340_v21 = vpop.eup %1339  ;;  %v942_v22 = vadd.f32 1.0, %v1338_v15  ;;  %v754_v26 = vsub.f32 0.0, %v472_v18 }
 0x122   :  { %v1342_v25 = vpop.eup %1341  ;;  %1132 = vst.msk [vmem:[%s2440_s3 + $0x10] sm:$0xff] %vm1129_vm1, %v1340_v21  ;;  %1359 = vrcp.f32 %v973_v16  ;;  %v786_v29 = vsub.f32 0.0, %v632_v24  ;;  %v476_v30 = vpop.f32.mrb[20].mxu0 }
 0x123   :  { %v1344_v27 = vpop.eup %1343  ;;  %1164 = vst.msk [vmem:[%s2440_s3 + $0x110] sm:$0xff] %vm1129_vm1, %v1342_v25  ;;  %1361 = vrcp.f32 %v942_v22  ;;  %v636_v31 = vpop.f32.mrb[20].mxu1  ;;  %v827_v34 = vmul.f32 1.442695, %v754_v26  ;;  %v477_v35 = vadd.f32 %v2110_v28, %v476_v30 }
 0x124   :  { %v1346_v32 = vpop.eup %1345  ;;  %v974_v33 = vadd.f32 1.0, %v1344_v27  ;;  %1363 = vpow2.f32 %v825_v17  ;;  %v478_v36 = vpop.f32.mrb[21].mxu0  ;;  %v637_v40 = vadd.f32 %v2110_v28, %v636_v31  ;;  %v891_v42 = vmul.f32 1.442695, %v786_v29 }
 0x125   :  { %v638_v37 = vpop.f32.mrb[21].mxu1  ;;  %v1348_v38 = vpop.eup %1347  ;;  %v943_v39 = vadd.f32 1.0, %v1346_v32  ;;  %1365 = vpow2.f32 %v889_v23  ;;  %v755_v43 = vsub.f32 0.0, %v477_v35 }
 0x126   :  { %v1350_v41 = vpop.eup %1349  ;;  %1133 = vst.msk [vmem:[%s2440_s3 + $0x18] sm:$0xff] %vm1129_vm1, %v1348_v38  ;;  %1367 = vrcp.f32 %v974_v33  ;;  %v787_v45 = vsub.f32 0.0, %v637_v40  ;;  %v481_v46 = vpop.f32.mrb[22].mxu0 }
 0x127   :  { %1369 = vrcp.f32 %v943_v39  ;;  %v975_v44 = vadd.f32 1.0, %v1350_v41  ;;  %v641_v47 = vpop.f32.mrb[22].mxu1  ;;  %v1352_v48 = vpop.eup %1351  ;;  %v829_v49 = vmul.f32 1.442695, %v755_v43  ;;  %v482_v50 = vadd.f32 %v2110_v28, %v481_v46 }
 0x128   :  { %1371 = vpow2.f32 %v827_v34  ;;  %v642_v51 = vadd.f32 %v2110_v28, %v641_v47  ;;  %v483_v52 = vpop.f32.mrb[23].mxu0  ;;  %v643_v53 = vpop.f32.mrb[23].mxu1  ;;  %1165 = vst.msk [vmem:[%s2440_s3 + $0x118] sm:$0xff] %vm1129_vm1, %v1352_v48  ;;  %v893_v55 = vmul.f32 1.442695, %v787_v45 }
 0x129   :  { %v1354_v54 = vpop.eup %1353  ;;  %1373 = vrcp.f32 %v975_v44  ;;  %v756_v57 = vsub.f32 0.0, %v482_v50 }
 0x12a   :  { %v1356_v56 = vpop.eup %1355  ;;  %1134 = vst.msk [vmem:[%s2440_s3 + $0x20] sm:$0xff] %vm1129_vm1, %v1354_v54  ;;  %1375 = vpow2.f32 %v891_v42  ;;  %v788_v58 = vsub.f32 0.0, %v642_v51  ;;  %v486_v61 = vpop.f32.mrb[24].mxu0 }
 0x12b   :  { %v1358_v59 = vpop.eup %1357  ;;  %v944_v60 = vadd.f32 1.0, %v1356_v56  ;;  %1377 = vpow2.f32 %v829_v49  ;;  %v646_v62 = vpop.f32.mrb[24].mxu1  ;;  %v831_v1 = vmul.f32 1.442695, %v756_v57  ;;  %v487_v5 = vadd.f32 %v2110_v28, %v486_v61 }
 0x12c   :  { %v1360_v63 = vpop.eup %1359  ;;  %v976_v0 = vadd.f32 1.0, %v1358_v59  ;;  %1379 = vpow2.f32 %v893_v55  ;;  %v895_v2 = vmul.f32 1.442695, %v788_v58  ;;  %v488_v3 = vpop.f32.mrb[25].mxu0  ;;  %v647_v6 = vadd.f32 %v2110_v28, %v646_v62 }
 0x12d   :  { %v1362_v4 = vpop.eup %1361  ;;  %1166 = vst.msk [vmem:[%s2440_s3 + $0x120] sm:$0xff] %vm1129_vm1, %v1360_v63  ;;  %1381 = vrcp.f32 %v944_v60  ;;  %v648_v7 = vpop.f32.mrb[25].mxu1  ;;  %v757_v11 = vsub.f32 0.0, %v487_v5 }
 0x12e   :  { %v1364_v8 = vpop.eup %1363  ;;  %1135 = vst.msk [vmem:[%s2440_s3 + $0x28] sm:$0xff] %vm1129_vm1, %v1362_v4  ;;  %1383 = vrcp.f32 %v976_v0  ;;  %v789_v12 = vsub.f32 0.0, %v647_v6  ;;  %v491_v13 = vpop.f32.mrb[26].mxu0 }
 0x12f   :  { %v1366_v9 = vpop.eup %1365  ;;  %v945_v10 = vadd.f32 1.0, %v1364_v8  ;;  %1385 = vpow2.f32 %v831_v1  ;;  %v651_v14 = vpop.f32.mrb[26].mxu1  ;;  %v492_v17 = vadd.f32 %v2110_v28, %v491_v13  ;;  %v833_v22 = vmul.f32 1.442695, %v757_v11 }
 0x130   :  { %v1368_v15 = vpop.eup %1367  ;;  %v977_v16 = vadd.f32 1.0, %v1366_v9  ;;  %1387 = vpow2.f32 %v895_v2  ;;  %v652_v18 = vadd.f32 %v2110_v28, %v651_v14  ;;  %v493_v19 = vpop.f32.mrb[27].mxu0  ;;  %v897_v23 = vmul.f32 1.442695, %v789_v12 }
 0x131   :  { %v653_v20 = vpop.f32.mrb[27].mxu1  ;;  %v1370_v21 = vpop.eup %1369  ;;  %1167 = vst.msk [vmem:[%s2440_s3 + $0x128] sm:$0xff] %vm1129_vm1, %v1368_v15  ;;  %1389 = vrcp.f32 %v945_v10  ;;  %v758_v25 = vsub.f32 0.0, %v492_v17 }
 0x132   :  { %v1372_v24 = vpop.eup %1371  ;;  %1136 = vst.msk [vmem:[%s2440_s3 + $0x30] sm:$0xff] %vm1129_vm1, %v1370_v21  ;;  %1391 = vrcp.f32 %v977_v16  ;;  %v790_v26 = vsub.f32 0.0, %v652_v18  ;;  %v496_v30 = vpop.f32.mrb[28].mxu0 }
 0x133   :  { %v1374_v27 = vpop.eup %1373  ;;  %v946_v29 = vadd.f32 1.0, %v1372_v24  ;;  %1393 = vpow2.f32 %v833_v22  ;;  %v656_v31 = vpop.f32.mrb[28].mxu1  ;;  %v835_v33 = vmul.f32 1.442695, %v758_v25  ;;  %v497_v34 = vadd.f32 %v2110_v28, %v496_v30 }
 0x134   :  { %v1376_v32 = vpop.eup %1375  ;;  %1168 = vst.msk [vmem:[%s2440_s3 + $0x130] sm:$0xff] %vm1129_vm1, %v1374_v27  ;;  %1395 = vpow2.f32 %v897_v23  ;;  %v498_v35 = vpop.f32.mrb[29].mxu0  ;;  %v657_v39 = vadd.f32 %v2110_v28, %v656_v31  ;;  %v899_v42 = vmul.f32 1.442695, %v790_v26 }
 0x135   :  { %v658_v36 = vpop.f32.mrb[29].mxu1  ;;  %v1378_v37 = vpop.eup %1377  ;;  %1397 = vrcp.f32 %v946_v29  ;;  %v978_v38 = vadd.f32 1.0, %v1376_v32  ;;  %v759_v43 = vsub.f32 0.0, %v497_v34 }
 0x136   :  { %v1380_v40 = vpop.eup %1379  ;;  %v947_v41 = vadd.f32 1.0, %v1378_v37  ;;  %1399 = vpow2.f32 %v835_v33  ;;  %v791_v46 = vsub.f32 0.0, %v657_v39  ;;  %v501_v47 = vpop.f32.mrb[30].mxu0 }
 0x137   :  { %v1382_v44 = vpop.eup %1381  ;;  %1401 = vrcp.f32 %v978_v38  ;;  %v979_v45 = vadd.f32 1.0, %v1380_v40  ;;  %v661_v48 = vpop.f32.mrb[30].mxu1  ;;  %v837_v50 = vmul.f32 1.442695, %v759_v43  ;;  %v502_v51 = vadd.f32 %v2110_v28, %v501_v47 }
 0x138   :  { %v1384_v49 = vpop.eup %1383  ;;  %1137 = vst.msk [vmem:[%s2440_s3 + $0x38] sm:$0xff] %vm1129_vm1, %v1382_v44  ;;  %1403 = vrcp.f32 %v947_v41  ;;  %v662_v52 = vadd.f32 %v2110_v28, %v661_v48  ;;  %v503_v53 = vpop.f32.mrb[31].mxu0  ;;  %v901_v56 = vmul.f32 1.442695, %v791_v46 }
 0x139   :  { %v663_v54 = vpop.f32.mrb[31].mxu1  ;;  %v1386_v55 = vpop.eup %1385  ;;  %1169 = vst.msk [vmem:[%s2440_s3 + $0x138] sm:$0xff] %vm1129_vm1, %v1384_v49  ;;  %1405 = vrcp.f32 %v979_v45  ;;  %v760_v59 = vsub.f32 0.0, %v502_v51 }
 0x13a   :  { %v1388_v57 = vpop.eup %1387  ;;  %v948_v58 = vadd.f32 1.0, %v1386_v55  ;;  %1407 = vpow2.f32 %v899_v42  ;;  %v792_v60 = vsub.f32 0.0, %v662_v52  ;;  %v506_v63 = vpop.f32.mrb[32].mxu0 }
 0x13b   :  { %v1390_v61 = vpop.eup %1389  ;;  %v980_v62 = vadd.f32 1.0, %v1388_v57  ;;  %1409 = vpow2.f32 %v837_v50  ;;  %v666_v0 = vpop.f32.mrb[32].mxu1  ;;  %v839_v2 = vmul.f32 1.442695, %v760_v59  ;;  %v507_v3 = vadd.f32 %v2110_v28, %v506_v63 }
 0x13c   :  { %v1392_v1 = vpop.eup %1391  ;;  %1138 = vst.msk [vmem:[%s2440_s3 + $0x40] sm:$0xff] %vm1129_vm1, %v1390_v61  ;;  %1411 = vrcp.f32 %v948_v58  ;;  %v508_v4 = vpop.f32.mrb[33].mxu0  ;;  %v667_v7 = vadd.f32 %v2110_v28, %v666_v0  ;;  %v903_v10 = vmul.f32 1.442695, %v792_v60 }
 0x13d   :  { %v668_v5 = vpop.f32.mrb[33].mxu1  ;;  %v1394_v6 = vpop.eup %1393  ;;  %1170 = vst.msk [vmem:[%s2440_s3 + $0x140] sm:$0xff] %vm1129_vm1, %v1392_v1  ;;  %1413 = vrcp.f32 %v980_v62  ;;  %v761_v11 = vsub.f32 0.0, %v507_v3 }
 0x13e   :  { %v1396_v8 = vpop.eup %1395  ;;  %v949_v9 = vadd.f32 1.0, %v1394_v6  ;;  %1415 = vpow2.f32 %v901_v56  ;;  %v793_v14 = vsub.f32 0.0, %v667_v7  ;;  %v511_v15 = vpop.f32.mrb[34].mxu0 }
 0x13f   :  { %v1398_v12 = vpop.eup %1397  ;;  %v981_v13 = vadd.f32 1.0, %v1396_v8  ;;  %1417 = vpow2.f32 %v839_v2  ;;  %v671_v16 = vpop.f32.mrb[34].mxu1  ;;  %v841_v18 = vmul.f32 1.442695, %v761_v11  ;;  %v512_v19 = vadd.f32 %v2110_v28, %v511_v15 }
 0x140   :  { %v1400_v17 = vpop.eup %1399  ;;  %1139 = vst.msk [vmem:[%s2440_s3 + $0x48] sm:$0xff] %vm1129_vm1, %v1398_v12  ;;  %1419 = vrcp.f32 %v949_v9  ;;  %v672_v20 = vadd.f32 %v2110_v28, %v671_v16  ;;  %v513_v21 = vpop.f32.mrb[35].mxu0  ;;  %v905_v25 = vmul.f32 1.442695, %v793_v14 }
 0x141   :  { %v673_v22 = vpop.f32.mrb[35].mxu1  ;;  %v1402_v23 = vpop.eup %1401  ;;  %1421 = vrcp.f32 %v981_v13  ;;  %v950_v24 = vadd.f32 1.0, %v1400_v17  ;;  %v762_v27 = vsub.f32 0.0, %v512_v19 }
 0x142   :  { %v1404_v26 = vpop.eup %1403  ;;  %1171 = vst.msk [vmem:[%s2440_s3 + $0x148] sm:$0xff] %vm1129_vm1, %v1402_v23  ;;  %1423 = vpow2.f32 %v903_v10  ;;  %v794_v29 = vsub.f32 0.0, %v672_v20  ;;  %v516_v31 = vpop.f32.mrb[36].mxu0 }
 0x143   :  { %v1406_v30 = vpop.eup %1405  ;;  %1140 = vst.msk [vmem:[%s2440_s3 + $0x50] sm:$0xff] %vm1129_vm1, %v1404_v26  ;;  %1425 = vrcp.f32 %v950_v24  ;;  %v676_v32 = vpop.f32.mrb[36].mxu1  ;;  %v843_v34 = vmul.f32 1.442695, %v762_v27  ;;  %v517_v35 = vadd.f32 %v2110_v28, %v516_v31 }
 0x144   :  { %v1408_v33 = vpop.eup %1407  ;;  %1172 = vst.msk [vmem:[%s2440_s3 + $0x150] sm:$0xff] %vm1129_vm1, %v1406_v30  ;;  %1427 = vpow2.f32 %v841_v18  ;;  %v518_v36 = vpop.f32.mrb[37].mxu0  ;;  %v907_v40 = vmul.f32 1.442695, %v794_v29  ;;  %v677_v41 = vadd.f32 %v2110_v28, %v676_v32 }
 0x145   :  { %v678_v37 = vpop.f32.mrb[37].mxu1  ;;  %v1410_v38 = vpop.eup %1409  ;;  %v982_v39 = vadd.f32 1.0, %v1408_v33  ;;  %1429 = vpow2.f32 %v905_v25  ;;  %v763_v44 = vsub.f32 0.0, %v517_v35 }
 0x146   :  { %v1412_v42 = vpop.eup %1411  ;;  %v951_v43 = vadd.f32 1.0, %v1410_v38  ;;  %1431 = vpow2.f32 %v843_v34  ;;  %v795_v46 = vsub.f32 0.0, %v677_v41  ;;  %v521_v47 = vpop.f32.mrb[38].mxu0 }
 0x147   :  { %v1414_v45 = vpop.eup %1413  ;;  %1141 = vst.msk [vmem:[%s2440_s3 + $0x58] sm:$0xff] %vm1129_vm1, %v1412_v42  ;;  %1433 = vrcp.f32 %v982_v39  ;;  %v681_v48 = vpop.f32.mrb[38].mxu1  ;;  %v845_v50 = vmul.f32 1.442695, %v763_v44  ;;  %v522_v51 = vadd.f32 %v2110_v28, %v521_v47 }
 0x148   :  { %v1416_v49 = vpop.eup %1415  ;;  %1173 = vst.msk [vmem:[%s2440_s3 + $0x158] sm:$0xff] %vm1129_vm1, %v1414_v45  ;;  %1435 = vrcp.f32 %v951_v43  ;;  %v682_v52 = vadd.f32 %v2110_v28, %v681_v48  ;;  %v523_v53 = vpop.f32.mrb[39].mxu0  ;;  %v909_v57 = vmul.f32 1.442695, %v795_v46 }
 0x149   :  { %v683_v54 = vpop.f32.mrb[39].mxu1  ;;  %v1418_v55 = vpop.eup %1417  ;;  %v983_v56 = vadd.f32 1.0, %v1416_v49  ;;  %1437 = vpow2.f32 %v907_v40  ;;  %v764_v60 = vsub.f32 0.0, %v522_v51 }
 0x14a   :  { %v1420_v58 = vpop.eup %1419  ;;  %v952_v59 = vadd.f32 1.0, %v1418_v55  ;;  %1439 = vpow2.f32 %v845_v50  ;;  %v796_v61 = vsub.f32 0.0, %v682_v52  ;;  %v526_v63 = vpop.f32.mrb[40].mxu0 }
 0x14b   :  { %v1422_v62 = vpop.eup %1421  ;;  %1142 = vst.msk [vmem:[%s2440_s3 + $0x60] sm:$0xff] %vm1129_vm1, %v1420_v58  ;;  %1441 = vrcp.f32 %v983_v56  ;;  %v686_v0 = vpop.f32.mrb[40].mxu1  ;;  %v847_v2 = vmul.f32 1.442695, %v764_v60  ;;  %v527_v4 = vadd.f32 %v2110_v28, %v526_v63 }
 0x14c   :  { %v1424_v1 = vpop.eup %1423  ;;  %1174 = vst.msk [vmem:[%s2440_s3 + $0x160] sm:$0xff] %vm1129_vm1, %v1422_v62  ;;  %1443 = vrcp.f32 %v952_v59  ;;  %v911_v3 = vmul.f32 1.442695, %v796_v61  ;;  %v528_v5 = vpop.f32.mrb[41].mxu0  ;;  %v687_v9 = vadd.f32 %v2110_v28, %v686_v0 }
 0x14d   :  { %v688_v6 = vpop.f32.mrb[41].mxu1  ;;  %v1426_v7 = vpop.eup %1425  ;;  %v984_v8 = vadd.f32 1.0, %v1424_v1  ;;  %1445 = vpow2.f32 %v909_v57  ;;  %v765_v11 = vsub.f32 0.0, %v527_v4 }
 0x14e   :  { %v1428_v10 = vpop.eup %1427  ;;  %1143 = vst.msk [vmem:[%s2440_s3 + $0x68] sm:$0xff] %vm1129_vm1, %v1426_v7  ;;  %1447 = vpow2.f32 %v847_v2  ;;  %v797_v14 = vsub.f32 0.0, %v687_v9  ;;  %v531_v15 = vpop.f32.mrb[42].mxu0 }
 0x14f   :  { %v1430_v12 = vpop.eup %1429  ;;  %1449 = vrcp.f32 %v984_v8  ;;  %v953_v13 = vadd.f32 1.0, %v1428_v10  ;;  %v691_v16 = vpop.f32.mrb[42].mxu1  ;;  %v849_v19 = vmul.f32 1.442695, %v765_v11  ;;  %v532_v20 = vadd.f32 %v2110_v28, %v531_v15 }
 0x150   :  { %v1432_v17 = vpop.eup %1431  ;;  %v985_v18 = vadd.f32 1.0, %v1430_v12  ;;  %1451 = vpow2.f32 %v911_v3  ;;  %v533_v21 = vpop.f32.mrb[43].mxu0  ;;  %v913_v25 = vmul.f32 1.442695, %v797_v14  ;;  %v692_v26 = vadd.f32 %v2110_v28, %v691_v16 }
 0x151   :  { %v693_v22 = vpop.f32.mrb[43].mxu1  ;;  %v1434_v23 = vpop.eup %1433  ;;  %1453 = vrcp.f32 %v953_v13  ;;  %v954_v24 = vadd.f32 1.0, %v1432_v17  ;;  %v766_v29 = vsub.f32 0.0, %v532_v20 }
 0x152   :  { %v1436_v27 = vpop.eup %1435  ;;  %1175 = vst.msk [vmem:[%s2440_s3 + $0x168] sm:$0xff] %vm1129_vm1, %v1434_v23  ;;  %1455 = vrcp.f32 %v985_v18  ;;  %v798_v31 = vsub.f32 0.0, %v692_v26  ;;  %v536_v32 = vpop.f32.mrb[44].mxu0 }
 0x153   :  { %v1438_v30 = vpop.eup %1437  ;;  %1144 = vst.msk [vmem:[%s2440_s3 + $0x70] sm:$0xff] %vm1129_vm1, %v1436_v27  ;;  %1457 = vrcp.f32 %v954_v24  ;;  %v696_v33 = vpop.f32.mrb[44].mxu1  ;;  %v851_v36 = vmul.f32 1.442695, %v766_v29  ;;  %v537_v37 = vadd.f32 %v2110_v28, %v536_v32 }
 0x154   :  { %v1440_v34 = vpop.eup %1439  ;;  %v986_v35 = vadd.f32 1.0, %v1438_v30  ;;  %1459 = vpow2.f32 %v849_v19  ;;  %v538_v38 = vpop.f32.mrb[45].mxu0  ;;  %v915_v42 = vmul.f32 1.442695, %v798_v31  ;;  %v697_v43 = vadd.f32 %v2110_v28, %v696_v33 }
 0x155   :  { %v698_v39 = vpop.f32.mrb[45].mxu1  ;;  %v1442_v40 = vpop.eup %1441  ;;  %v955_v41 = vadd.f32 1.0, %v1440_v34  ;;  %1461 = vpow2.f32 %v913_v25  ;;  %v767_v45 = vsub.f32 0.0, %v537_v37 }
 0x156   :  { %v1444_v44 = vpop.eup %1443  ;;  %1176 = vst.msk [vmem:[%s2440_s3 + $0x170] sm:$0xff] %vm1129_vm1, %v1442_v40  ;;  %1463 = vrcp.f32 %v986_v35  ;;  %v799_v47 = vsub.f32 0.0, %v697_v43  ;;  %v541_v48 = vpop.f32.mrb[46].mxu0 }
 0x157   :  { %v1446_v46 = vpop.eup %1445  ;;  %1145 = vst.msk [vmem:[%s2440_s3 + $0x78] sm:$0xff] %vm1129_vm1, %v1444_v44  ;;  %1465 = vrcp.f32 %v955_v41  ;;  %v701_v49 = vpop.f32.mrb[46].mxu1  ;;  %v853_v52 = vmul.f32 1.442695, %v767_v45  ;;  %v542_v53 = vadd.f32 %v2110_v28, %v541_v48 }
 0x158   :  { %v1448_v50 = vpop.eup %1447  ;;  %v987_v51 = vadd.f32 1.0, %v1446_v46  ;;  %1467 = vpow2.f32 %v851_v36  ;;  %v543_v54 = vpop.f32.mrb[47].mxu0  ;;  %v702_v58 = vadd.f32 %v2110_v28, %v701_v49  ;;  %v917_v60 = vmul.f32 1.442695, %v799_v47 }
 0x159   :  { %v703_v55 = vpop.f32.mrb[47].mxu1  ;;  %v1450_v56 = vpop.eup %1449  ;;  %v956_v57 = vadd.f32 1.0, %v1448_v50  ;;  %1469 = vpow2.f32 %v915_v42  ;;  %v768_v61 = vsub.f32 0.0, %v542_v53 }
 0x15a   :  { %v1452_v59 = vpop.eup %1451  ;;  %1177 = vst.msk [vmem:[%s2440_s3 + $0x178] sm:$0xff] %vm1129_vm1, %v1450_v56  ;;  %1471 = vrcp.f32 %v987_v51  ;;  %v800_v0 = vsub.f32 0.0, %v702_v58  ;;  %v546_v1 = vpop.f32.mrb[48].mxu0 }
 0x15b   :  { %v1454_v62 = vpop.eup %1453  ;;  %1473 = vrcp.f32 %v956_v57  ;;  %v988_v63 = vadd.f32 1.0, %v1452_v59  ;;  %v706_v2 = vpop.f32.mrb[48].mxu1  ;;  %v855_v4 = vmul.f32 1.442695, %v768_v61  ;;  %v547_v5 = vadd.f32 %v2110_v28, %v546_v1 }
 0x15c   :  { %v1456_v3 = vpop.eup %1455  ;;  %1146 = vst.msk [vmem:[%s2440_s3 + $0x80] sm:$0xff] %vm1129_vm1, %v1454_v62  ;;  %1475 = vpow2.f32 %v853_v52  ;;  %v707_v6 = vadd.f32 %v2110_v28, %v706_v2  ;;  %v548_v7 = vpop.f32.mrb[49].mxu0  ;;  %v919_v10 = vmul.f32 1.442695, %v800_v0 }
 0x15d   :  { %v708_v8 = vpop.f32.mrb[49].mxu1  ;;  %v1458_v9 = vpop.eup %1457  ;;  %1178 = vst.msk [vmem:[%s2440_s3 + $0x180] sm:$0xff] %vm1129_vm1, %v1456_v3  ;;  %1477 = vrcp.f32 %v988_v63  ;;  %v769_v12 = vsub.f32 0.0, %v547_v5 }
 0x15e   :  { %v1460_v11 = vpop.eup %1459  ;;  %1147 = vst.msk [vmem:[%s2440_s3 + $0x88] sm:$0xff] %vm1129_vm1, %v1458_v9  ;;  %1479 = vpow2.f32 %v917_v60  ;;  %v801_v13 = vsub.f32 0.0, %v707_v6  ;;  %v551_v16 = vpop.f32.mrb[50].mxu0 }
 0x15f   :  { %v1462_v14 = vpop.eup %1461  ;;  %v957_v15 = vadd.f32 1.0, %v1460_v11  ;;  %1481 = vpow2.f32 %v855_v4  ;;  %v711_v17 = vpop.f32.mrb[50].mxu1  ;;  %v857_v20 = vmul.f32 1.442695, %v769_v12  ;;  %v552_v24 = vadd.f32 %v2110_v28, %v551_v16 }
 0x160   :  { %v1464_v18 = vpop.eup %1463  ;;  %v989_v19 = vadd.f32 1.0, %v1462_v14  ;;  %1483 = vpow2.f32 %v919_v10  ;;  %v921_v21 = vmul.f32 1.442695, %v801_v13  ;;  %v553_v22 = vpop.f32.mrb[51].mxu0  ;;  %v712_v25 = vadd.f32 %v2110_v28, %v711_v17  ;;  %v2315_v28 = vld [vmem:[%s2439_s2] ss:$0 sm:$0xff] }
 0x161   :  { %v1466_v23 = vpop.eup %1465  ;;  %1179 = vst.msk [vmem:[%s2440_s3 + $0x188] sm:$0xff] %vm1129_vm1, %v1464_v18  ;;  %1485 = vrcp.f32 %v957_v15  ;;  %v713_v26 = vpop.f32.mrb[51].mxu1  ;;  %v770_v31 = vsub.f32 0.0, %v552_v24 }
 0x162   :  { %v1468_v27 = vpop.eup %1467  ;;  %1148 = vst.msk [vmem:[%s2440_s3 + $0x90] sm:$0xff] %vm1129_vm1, %v1466_v23  ;;  %1487 = vrcp.f32 %v989_v19  ;;  %v802_v32 = vsub.f32 0.0, %v712_v25  ;;  %v556_v33 = vpop.f32.mrb[52].mxu0 }
 0x163   :  { %v1470_v29 = vpop.eup %1469  ;;  %v958_v30 = vadd.f32 1.0, %v1468_v27  ;;  %1489 = vpow2.f32 %v857_v20  ;;  %v716_v34 = vpop.f32.mrb[52].mxu1  ;;  %v557_v37 = vadd.f32 %v2315_v28, %v556_v33  ;;  %v859_v42 = vmul.f32 1.442695, %v770_v31 }
 0x164   :  { %v1472_v35 = vpop.eup %1471  ;;  %v990_v36 = vadd.f32 1.0, %v1470_v29  ;;  %1491 = vpow2.f32 %v921_v21  ;;  %v717_v38 = vadd.f32 %v2315_v28, %v716_v34  ;;  %v558_v39 = vpop.f32.mrb[53].mxu0  ;;  %v923_v43 = vmul.f32 1.442695, %v802_v32 }
 0x165   :  { %v718_v40 = vpop.f32.mrb[53].mxu1  ;;  %v1474_v41 = vpop.eup %1473  ;;  %1180 = vst.msk [vmem:[%s2440_s3 + $0x190] sm:$0xff] %vm1129_vm1, %v1472_v35  ;;  %1493 = vrcp.f32 %v958_v30  ;;  %v771_v45 = vsub.f32 0.0, %v557_v37 }
 0x166   :  { %v1476_v44 = vpop.eup %1475  ;;  %1149 = vst.msk [vmem:[%s2440_s3 + $0x98] sm:$0xff] %vm1129_vm1, %v1474_v41  ;;  %1495 = vrcp.f32 %v990_v36  ;;  %v803_v46 = vsub.f32 0.0, %v717_v38  ;;  %v561_v49 = vpop.f32.mrb[54].mxu0 }
 0x167   :  { %v1478_v47 = vpop.eup %1477  ;;  %v959_v48 = vadd.f32 1.0, %v1476_v44  ;;  %1497 = vpow2.f32 %v859_v42  ;;  %v721_v50 = vpop.f32.mrb[54].mxu1  ;;  %v861_v52 = vmul.f32 1.442695, %v771_v45  ;;  %v562_v53 = vadd.f32 %v2315_v28, %v561_v49 }
 0x168   :  { %v1480_v51 = vpop.eup %1479  ;;  %1181 = vst.msk [vmem:[%s2440_s3 + $0x198] sm:$0xff] %vm1129_vm1, %v1478_v47  ;;  %1499 = vpow2.f32 %v923_v43  ;;  %v563_v54 = vpop.f32.mrb[55].mxu0  ;;  %v722_v58 = vadd.f32 %v2315_v28, %v721_v50  ;;  %v925_v61 = vmul.f32 1.442695, %v803_v46 }
 0x169   :  { %v723_v55 = vpop.f32.mrb[55].mxu1  ;;  %v1482_v56 = vpop.eup %1481  ;;  %1501 = vrcp.f32 %v959_v48  ;;  %v991_v57 = vadd.f32 1.0, %v1480_v51  ;;  %v772_v62 = vsub.f32 0.0, %v562_v53 }
 0x16a   :  { %v1484_v59 = vpop.eup %1483  ;;  %v960_v60 = vadd.f32 1.0, %v1482_v56  ;;  %1503 = vpow2.f32 %v861_v52  ;;  %v804_v1 = vsub.f32 0.0, %v722_v58  ;;  %v566_v2 = vpop.f32.mrb[56].mxu0 }
 0x16b   :  { %v1486_v63 = vpop.eup %1485  ;;  %1505 = vrcp.f32 %v991_v57  ;;  %v992_v0 = vadd.f32 1.0, %v1484_v59  ;;  %v726_v3 = vpop.f32.mrb[56].mxu1  ;;  %v863_v5 = vmul.f32 1.442695, %v772_v62  ;;  %v567_v6 = vadd.f32 %v2315_v28, %v566_v2 }
 0x16c   :  { %v1488_v4 = vpop.eup %1487  ;;  %1150 = vst.msk [vmem:[%s2440_s3 + $0xa0] sm:$0xff] %vm1129_vm1, %v1486_v63  ;;  %1507 = vrcp.f32 %v960_v60  ;;  %v727_v7 = vadd.f32 %v2315_v28, %v726_v3  ;;  %v568_v8 = vpop.f32.mrb[57].mxu0  ;;  %v927_v11 = vmul.f32 1.442695, %v804_v1 }
 0x16d   :  { %v728_v9 = vpop.f32.mrb[57].mxu1  ;;  %v1490_v10 = vpop.eup %1489  ;;  %1182 = vst.msk [vmem:[%s2440_s3 + $0x1a0] sm:$0xff] %vm1129_vm1, %v1488_v4  ;;  %1509 = vrcp.f32 %v992_v0  ;;  %v773_v14 = vsub.f32 0.0, %v567_v6 }
 0x16e   :  { %v1492_v12 = vpop.eup %1491  ;;  %v961_v13 = vadd.f32 1.0, %v1490_v10  ;;  %1511 = vpow2.f32 %v925_v61  ;;  %v805_v15 = vsub.f32 0.0, %v727_v7  ;;  %v571_v18 = vpop.f32.mrb[58].mxu0 }
 0x16f   :  { %v1494_v16 = vpop.eup %1493  ;;  %v993_v17 = vadd.f32 1.0, %v1492_v12  ;;  %1513 = vpow2.f32 %v863_v5  ;;  %v731_v19 = vpop.f32.mrb[58].mxu1  ;;  %v865_v21 = vmul.f32 1.442695, %v773_v14  ;;  %v572_v22 = vadd.f32 %v2315_v28, %v571_v18 }
 0x170   :  { %v1496_v20 = vpop.eup %1495  ;;  %1151 = vst.msk [vmem:[%s2440_s3 + $0xa8] sm:$0xff] %vm1129_vm1, %v1494_v16  ;;  %1515 = vrcp.f32 %v961_v13  ;;  %v573_v23 = vpop.f32.mrb[59].mxu0  ;;  %v732_v26 = vadd.f32 %v2315_v28, %v731_v19  ;;  %v929_v30 = vmul.f32 1.442695, %v805_v15 }
 0x171   :  { %v733_v24 = vpop.f32.mrb[59].mxu1  ;;  %v1498_v25 = vpop.eup %1497  ;;  %1183 = vst.msk [vmem:[%s2440_s3 + $0x1a8] sm:$0xff] %vm1129_vm1, %v1496_v20  ;;  %1517 = vrcp.f32 %v993_v17  ;;  %v774_v31 = vsub.f32 0.0, %v572_v22 }
 0x172   :  { %v1500_v27 = vpop.eup %1499  ;;  %v962_v29 = vadd.f32 1.0, %v1498_v25  ;;  %1519 = vpow2.f32 %v927_v11  ;;  %v806_v34 = vsub.f32 0.0, %v732_v26  ;;  %v576_v35 = vpop.f32.mrb[60].mxu0 }
 0x173   :  { %v1502_v32 = vpop.eup %1501  ;;  %v994_v33 = vadd.f32 1.0, %v1500_v27  ;;  %1521 = vpow2.f32 %v865_v21  ;;  %v736_v36 = vpop.f32.mrb[60].mxu1  ;;  %v867_v38 = vmul.f32 1.442695, %v774_v31  ;;  %v577_v39 = vadd.f32 %v2315_v28, %v576_v35 }
 0x174   :  { %v1504_v37 = vpop.eup %1503  ;;  %1152 = vst.msk [vmem:[%s2440_s3 + $0xb0] sm:$0xff] %vm1129_vm1, %v1502_v32  ;;  %1523 = vrcp.f32 %v962_v29  ;;  %v737_v40 = vadd.f32 %v2315_v28, %v736_v36  ;;  %v578_v41 = vpop.f32.mrb[61].mxu0  ;;  %v931_v45 = vmul.f32 1.442695, %v806_v34 }
 0x175   :  { %v738_v42 = vpop.f32.mrb[61].mxu1  ;;  %v1506_v43 = vpop.eup %1505  ;;  %1525 = vrcp.f32 %v994_v33  ;;  %v963_v44 = vadd.f32 1.0, %v1504_v37  ;;  %v775_v47 = vsub.f32 0.0, %v577_v39 }
 0x176   :  { %v1508_v46 = vpop.eup %1507  ;;  %1184 = vst.msk [vmem:[%s2440_s3 + $0x1b0] sm:$0xff] %vm1129_vm1, %v1506_v43  ;;  %1527 = vpow2.f32 %v929_v30  ;;  %v807_v48 = vsub.f32 0.0, %v737_v40  ;;  %v581_v50 = vpop.f32.mrb[62].mxu0 }
 0x177   :  { %v1510_v49 = vpop.eup %1509  ;;  %1153 = vst.msk [vmem:[%s2440_s3 + $0xb8] sm:$0xff] %vm1129_vm1, %v1508_v46  ;;  %1529 = vrcp.f32 %v963_v44  ;;  %v741_v51 = vpop.f32.mrb[62].mxu1  ;;  %v869_v53 = vmul.f32 1.442695, %v775_v47  ;;  %v582_v54 = vadd.f32 %v2315_v28, %v581_v50 }
 0x178   :  { %v1512_v52 = vpop.eup %1511  ;;  %1185 = vst.msk [vmem:[%s2440_s3 + $0x1b8] sm:$0xff] %vm1129_vm1, %v1510_v49  ;;  %1531 = vpow2.f32 %v867_v38  ;;  %v583_v55 = vpop.f32.mrb[63].mxu0  ;;  %v933_v59 = vmul.f32 1.442695, %v807_v48  ;;  %v742_v60 = vadd.f32 %v2315_v28, %v741_v51 }
 0x179   :  { %v743_v56 = vpop.f32.mrb[63].mxu1  ;;  %v1514_v57 = vpop.eup %1513  ;;  %v995_v58 = vadd.f32 1.0, %v1512_v52  ;;  %1533 = vpow2.f32 %v931_v45  ;;  %v776_v63 = vsub.f32 0.0, %v582_v54 }
 0x17a   :  { %v1516_v61 = vpop.eup %1515  ;;  %v964_v62 = vadd.f32 1.0, %v1514_v57  ;;  %1535 = vpow2.f32 %v869_v53  ;;  %v808_v1 = vsub.f32 0.0, %v742_v60 }
 0x17b   :  { %v1518_v0 = vpop.eup %1517  ;;  %1154 = vst.msk [vmem:[%s2440_s3 + $0xc0] sm:$0xff] %vm1129_vm1, %v1516_v61  ;;  %1537 = vrcp.f32 %v995_v58  ;;  %v871_v28 = vmul.f32 1.442695, %v776_v63 }
 0x17c   :  { %v1520_v2 = vpop.eup %1519  ;;  %1186 = vst.msk [vmem:[%s2440_s3 + $0x1c0] sm:$0xff] %vm1129_vm1, %v1518_v0  ;;  %1539 = vrcp.f32 %v964_v62  ;;  %v935_v5 = vmul.f32 1.442695, %v808_v1 }
 0x17d   :  { %v1522_v3 = vpop.eup %1521  ;;  %v996_v4 = vadd.f32 1.0, %v1520_v2  ;;  %1541 = vpow2.f32 %v933_v59 }
 0x17e   :  { %v1524_v6 = vpop.eup %1523  ;;  %v965_v7 = vadd.f32 1.0, %v1522_v3  ;;  %1543 = vpow2.f32 %v871_v28 }
 0x17f   :  { %v1526_v8 = vpop.eup %1525  ;;  %1155 = vst.msk [vmem:[%s2440_s3 + $0xc8] sm:$0xff] %vm1129_vm1, %v1524_v6  ;;  %1545 = vrcp.f32 %v996_v4 }
 0x180   :  { %v1528_v9 = vpop.eup %1527  ;;  %1187 = vst.msk [vmem:[%s2440_s3 + $0x1c8] sm:$0xff] %vm1129_vm1, %v1526_v8  ;;  %1547 = vrcp.f32 %v965_v7 }
 0x181   :  { %v1530_v10 = vpop.eup %1529  ;;  %v997_v11 = vadd.f32 1.0, %v1528_v9  ;;  %1549 = vpow2.f32 %v935_v5 }
 0x182   :  { %v1532_v12 = vpop.eup %1531  ;;  %1156 = vst.msk [vmem:[%s2440_s3 + $0xd0] sm:$0xff] %vm1129_vm1, %v1530_v10 }
 0x183   :  { %v1534_v13 = vpop.eup %1533  ;;  %1551 = vrcp.f32 %v997_v11  ;;  %v966_v14 = vadd.f32 1.0, %v1532_v12 }
 0x184   :  { %v1536_v15 = vpop.eup %1535  ;;  %v998_v16 = vadd.f32 1.0, %v1534_v13 }
 0x185   :  { %v1538_v17 = vpop.eup %1537  ;;  %1553 = vrcp.f32 %v966_v14  ;;  %v967_v18 = vadd.f32 1.0, %v1536_v15 }
 0x186   :  { %v1540_v19 = vpop.eup %1539  ;;  %1188 = vst.msk [vmem:[%s2440_s3 + $0x1d0] sm:$0xff] %vm1129_vm1, %v1538_v17  ;;  %1555 = vrcp.f32 %v998_v16 }
 0x187   :  { %v1542_v20 = vpop.eup %1541  ;;  %1157 = vst.msk [vmem:[%s2440_s3 + $0xd8] sm:$0xff] %vm1129_vm1, %v1540_v19  ;;  %1557 = vrcp.f32 %v967_v18 }
 0x188   :  { %v1544_v21 = vpop.eup %1543  ;;  %v999_v22 = vadd.f32 1.0, %v1542_v20 }
 0x189   :  { %v1546_v23 = vpop.eup %1545  ;;  %v968_v24 = vadd.f32 1.0, %v1544_v21 }
 0x18a   :  { %v1548_v25 = vpop.eup %1547  ;;  %1189 = vst.msk [vmem:[%s2440_s3 + $0x1d8] sm:$0xff] %vm1129_vm1, %v1546_v23  ;;  %1559 = vrcp.f32 %v999_v22 }
 0x18b   :  { %v1550_v26 = vpop.eup %1549  ;;  %1158 = vst.msk [vmem:[%s2440_s3 + $0xe0] sm:$0xff] %vm1129_vm1, %v1548_v25  ;;  %1561 = vrcp.f32 %v968_v24 }
 0x18c   :  { %v1000_v27 = vadd.f32 1.0, %v1550_v26 }
 0x18d   :  { %v1552_v29 = vpop.eup %1551 }
 0x18e   :  { %1190 = vst.msk [vmem:[%s2440_s3 + $0x1e0] sm:$0xff] %vm1129_vm1, %v1552_v29  ;;  %1563 = vrcp.f32 %v1000_v27 }
 0x18f   :  { %v1554_v30 = vpop.eup %1553 }
 0x190   :  { %v1556_v31 = vpop.eup %1555  ;;  %1159 = vst.msk [vmem:[%s2440_s3 + $0xe8] sm:$0xff] %vm1129_vm1, %v1554_v30 }
 0x191   :  { %v1558_v32 = vpop.eup %1557  ;;  %1191 = vst.msk [vmem:[%s2440_s3 + $0x1e8] sm:$0xff] %vm1129_vm1, %v1556_v31 }
 0x192   :  { %1160 = vst.msk [vmem:[%s2440_s3 + $0xf0] sm:$0xff] %vm1129_vm1, %v1558_v32 }
 0x194   :  { %v1560_v33 = vpop.eup %1559 }
 0x195   :  { %v1562_v34 = vpop.eup %1561  ;;  %1192 = vst.msk [vmem:[%s2440_s3 + $0x1f0] sm:$0xff] %vm1129_vm1, %v1560_v33 }
 0x196   :  { %1161 = vst.msk [vmem:[%s2440_s3 + $0xf8] sm:$0xff] %vm1129_vm1, %v1562_v34 }
 0x198   :  { %v1564_v35 = vpop.eup %1563 }
 0x199   :  { %1193 = vst.msk [vmem:[%s2440_s3 + $0x1f8] sm:$0xff] %vm1129_vm1, %v1564_v35 }

</bundles_post_ra>
